<compile_context>
chip_gen: v7x
topology: tpu7x:2x2x1
jax: 0.10.0
libtpu: 0.0.40
codegen_flags: <defaults>
</compile_context>

<pallas_src>
import math

import jax
import jax.numpy as jnp
from jax.experimental import pallas as pl
from jax.experimental.pallas import tpu as pltpu

LN_EPS = 1e-6
_SQRT1_2 = 0.7071067811865476


def _layernorm_f32(v, g, b):
    mu = jnp.mean(v, axis=-1, keepdims=True)
    var = jnp.mean(jnp.square(v - mu), axis=-1, keepdims=True)
    return (v - mu) * jax.lax.rsqrt(var + LN_EPS) * g + b


def _erf_poly(x):
    # Abramowitz & Stegun 7.1.26, |error| <= 1.5e-7; uses only exp/mul/add/div
    # so it always lowers in Mosaic (no dependence on a lax.erf rule).
    a1, a2, a3, a4, a5 = (0.254829592, -0.284496736, 1.421413741,
                          -1.453152027, 1.061405429)
    p = 0.3275911
    ax = jnp.abs(x)
    t = 1.0 / (1.0 + p * ax)
    poly = ((((a5 * t + a4) * t + a3) * t + a2) * t + a1) * t
    y = 1.0 - poly * jnp.exp(-ax * ax)
    return jnp.where(x < 0.0, -y, y)


def _gelu_exact(x):
    return 0.5 * x * (1.0 + _erf_poly(x * _SQRT1_2))


def _make_kernel(num_heads: int, head_dim: int, approx_gelu: bool):
    def kernel(x_ref,
               wqkv_ref, bqkv_ref,
               wod_ref, bod_ref,
               g1_ref, b1_ref, g2_ref, b2_ref,
               wi_ref, bi_ref, wo_ref, bo_ref,
               o_ref):
        BB, S, H = x_ref.shape
        M = BB * S                                   # rows per grid step

        x = x_ref[...].reshape(M, H).astype(jnp.float32)

        # --- layernorm_before (f32 element-wise math) ---
        ln1 = _layernorm_f32(x, g1_ref[...], b1_ref[...])

        # --- QKV projection: bf16 operands, f32 accumulation on the MXU ---
        qkv = jnp.dot(ln1.astype(jnp.bfloat16), wqkv_ref[...],
                      preferred_element_type=jnp.float32) + bqkv_ref[...]
        # 1/sqrt(head_dim) is already folded into the q columns (wrapper).
        q = qkv[:, 0 * H:1 * H].astype(jnp.bfloat16)
        k = qkv[:, 1 * H:2 * H].astype(jnp.bfloat16)
        v = qkv[:, 2 * H:3 * H].astype(jnp.bfloat16)

        # Head-major layout with a fused (head, batch) leading dim so every
        # attention contraction is a single-leading-batch-dim einsum (the
        # Mosaic-supported batched dot_general pattern).
        def to_heads(t):                              # (M, H) -> (nh*BB, S, hd)
            t = t.reshape(M, num_heads, head_dim).transpose(1, 0, 2)
            return t.reshape(num_heads * BB, S, head_dim)

        qh, kh, vh = to_heads(q), to_heads(k), to_heads(v)

        # --- multi-head attention ---
        s = jnp.einsum('bqd,bkd->bqk', qh, kh,
                       preferred_element_type=jnp.float32)      # (nh*BB, S, S)
        s = s - jnp.max(s, axis=-1, keepdims=True)
        p = jnp.exp(s)
        p = p * pl.reciprocal(jnp.sum(p, axis=-1, keepdims=True), approx=True)
        ctx = jnp.einsum('bqk,bkd->bqd', p.astype(jnp.bfloat16), vh,
                         preferred_element_type=jnp.float32)    # (nh*BB, S, hd)

        # --- fused (out_proj . dense) with the head merge folded into the
        #     weight:  a[m,o] = sum_h sum_d ctx[h,m,d] * W_od[h,d,o]  ---
        ctx_h = ctx.reshape(num_heads, M, head_dim).astype(jnp.bfloat16)
        a = jnp.einsum('hmd,hdo->hmo', ctx_h, wod_ref[...],
                       preferred_element_type=jnp.float32)      # (nh, M, H)
        a = jnp.sum(a, axis=0) + bod_ref[...]

        # --- residual + layernorm_after ---
        h = a + x
        ln2 = _layernorm_f32(h, g2_ref[...], b2_ref[...])

        # --- feed-forward + residual ---
        ff = jnp.dot(ln2.astype(jnp.bfloat16), wi_ref[...],
                     preferred_element_type=jnp.float32) + bi_ref[...]
        if approx_gelu:
            inter = jax.nn.gelu(ff, approximate=True)   # tanh-GELU (EUP, v5e)
        else:
            inter = _gelu_exact(ff)                     # exact-erf polynomial
        out = jnp.dot(inter.astype(jnp.bfloat16), wo_ref[...],
                      preferred_element_type=jnp.float32) + bo_ref[...] + h

        o_ref[...] = out.reshape(BB, S, H).astype(o_ref.dtype)

    return kernel


def _default_batch_block(B: int, S: int) -> int:
    """Rows per grid step: aim for >=256 rows (MXU fill on v6e/v7x), keep >=2
    grid steps when B allows (feed both v7x TensorCores), bound VMEM use."""
    max_rows = 1024          # VMEM guard for the fused (non-flash) body
    divisors = [d for d in range(1, B + 1) if B % d == 0]
    cand = [d for d in divisors if B // d >= 2] or divisors
    cand = [d for d in cand if d * S <= max_rows] or [min(cand)]
    reach = [d for d in cand if d * S >= 256]
    return min(reach) if reach else max(cand)


def point_mae_layer(x, params, *, num_heads: int, batch_block=None,
                    approx_gelu: bool = False):
    """x: (B, S, H) float32 or bfloat16. params: dict of weights (init_params)."""
    B, S, H = x.shape
    assert H % num_heads == 0
    head_dim = H // num_heads
    I = params["wi"].shape[1]

    BB = batch_block if batch_block is not None else _default_batch_block(B, S)
    assert B % BB == 0, "batch_block must divide the batch size"
    grid = (B // BB,)

    f32 = jnp.float32
    # --- weight prep (do once per model in production, not per call) ---
    # Fuse FlashMHA.out_proj with PointMAESelfOutput.dense; compose in f32,
    # cast to bf16 once.  Reshape to (nh, hd, H) so the head merge is folded
    # into the contraction inside the kernel.
    wd32 = params["wd"].astype(f32)
    w_od = params["wout"].astype(f32) @ wd32
    wod = w_od.reshape(num_heads, head_dim, H).astype(jnp.bfloat16)
    bod = params["bout"].astype(f32) @ wd32 + params["bd"].astype(f32)
    # Fold 1/sqrt(head_dim) into the q columns of Wqkv / bqkv.
    scale = 1.0 / math.sqrt(head_dim)
    wqkv = params["wqkv"].astype(f32).at[:, :H].multiply(scale).astype(jnp.bfloat16)
    bqkv = params["bqkv"].astype(f32).at[:, :H].multiply(scale)

    weights = [wqkv, bqkv, wod, bod,
               params["g1"], params["b1"], params["g2"], params["b2"],
               params["wi"], params["bi"], params["wo"], params["bo"]]

    kernel = _make_kernel(num_heads, head_dim, approx_gelu)

    x_spec = pl.BlockSpec((BB, S, H), lambda b: (b, 0, 0))
    out_spec = pl.BlockSpec((BB, S, H), lambda b: (b, 0, 0))

    # VMEM budget: double-buffered x/out blocks + weights + fused-body
    # intermediates; clamp to [32, 48] MiB (safe across v5e/v6e/v7x).
    M = BB * S
    weight_bytes = sum(int(w.size) * w.dtype.itemsize for w in weights)
    act_bytes = M * (4 * H * 4                 # pipelined x/out blocks (2 each)
                     + 3 * H * 6               # qkv f32 + q/k/v bf16
                     + 10 * H * 4              # ln/h/a/ctx/per-head partials
                     + I * 6                   # ffn intermediate f32 + bf16
                     + num_heads * S * 8)      # scores + probs
    vmem_limit = min(max(2 * weight_bytes + act_bytes + (4 << 20), 32 << 20),
                     48 << 20)

    matmul_flops = (2 * B * S * (3 * H * H + H * H + 2 * H * I)
                    + 4 * B * num_heads * S * S * head_dim)
    transcendentals = B * S * (num_heads * S + I + 2)
    bytes_accessed = 2 * x.size * x.dtype.itemsize + weight_bytes
    cost = pl.CostEstimate(flops=matmul_flops, transcendentals=transcendentals,
                           bytes_accessed=bytes_accessed)

    def build(weight_pipeline_mode):
        w_specs = []
        for w in weights:
            kwargs = {}
            if weight_pipeline_mode is not None:
                kwargs["pipeline_mode"] = weight_pipeline_mode
            w_specs.append(
                pl.BlockSpec(w.shape, lambda b, _nd=w.ndim: (0,) * _nd, **kwargs))
        return pl.pallas_call(
            kernel,
            out_shape=jax.ShapeDtypeStruct((B, S, H), x.dtype),
            grid_spec=pltpu.PrefetchScalarGridSpec(
                num_scalar_prefetch=0,
                grid=grid,
                in_specs=[x_spec] + w_specs,
                out_specs=out_spec,
                scratch_shapes=[]),
            compiler_params=pltpu.CompilerParams(
                dimension_semantics=("parallel",),
                vmem_limit_bytes=vmem_limit),
            cost_estimate=cost,
        )

    try:
        # Constant-index weight blocks only need a single VMEM buffer.
        out = jax.block_until_ready(build(pl.Buffered(1))(x, *weights))
    except Exception:
        # Fallback: default double-buffering if Buffered(1) is rejected.
        out = jax.block_until_ready(build(None)(x, *weights))
    return out


def init_params(key, hidden: int, intermediate: int):
    """Deterministic synthetic weights.

    Linear weights are stored (in, out) so the math is y = x @ W + b (identical
    to PyTorch nn.Linear's y = x W^T + b).  Matmul weights are kept in bf16
    (MXU-native); biases and LayerNorm params stay f32.
    """
    ks = jax.random.split(key, 8)
    std = 0.02

    def lin(k, fin, fout):
        kw, kb = jax.random.split(k)
        w = jax.random.normal(kw, (fin, fout), jnp.float32) * std
        b = jax.random.normal(kb, (1, fout), jnp.float32) * std
        return w.astype(jnp.bfloat16), b

    wqkv, bqkv = lin(ks[0], hidden, 3 * hidden)   # FlashMHA.Wqkv
    wout, bout = lin(ks[1], hidden, hidden)       # FlashMHA.out_proj
    wd, bd = lin(ks[2], hidden, hidden)           # PointMAESelfOutput.dense
    wi, bi = lin(ks[3], hidden, intermediate)     # PointMAEIntermediate.dense
    wo, bo = lin(ks[4], intermediate, hidden)     # PointMAEOutput.dense
    g1 = 1.0 + 0.1 * jax.random.normal(ks[5], (1, hidden), jnp.float32)
    b1 = 0.1 * jax.random.normal(ks[6], (1, hidden), jnp.float32)
    g2 = 1.0 + 0.1 * jax.random.normal(ks[7], (1, hidden), jnp.float32)
    b2 = jnp.zeros((1, hidden), jnp.float32)
    return dict(wqkv=wqkv, bqkv=bqkv, wout=wout, bout=bout, wd=wd, bd=bd,
                g1=g1, b1=b1, g2=g2, b2=b2, wi=wi, bi=bi, wo=wo, bo=bo)


def reference(x, p, *, num_heads: int):
    """Pure-JAX (f32) reference mirroring the PyTorch forward."""
    B, S, H = x.shape
    hd = H // num_heads

    def f32(a):
        return a.astype(jnp.float32)

    def ln(v, g, b):
        mu = jnp.mean(v, axis=-1, keepdims=True)
        var = jnp.mean((v - mu) ** 2, axis=-1, keepdims=True)
        return (v - mu) / jnp.sqrt(var + LN_EPS) * g + b

    ln1 = ln(x, p["g1"], p["b1"])
    qkv = ln1 @ f32(p["wqkv"]) + p["bqkv"]                  # (B, S, 3H)
    qkv = qkv.reshape(B, S, 3, num_heads, hd)
    q, k, v = qkv[:, :, 0], qkv[:, :, 1], qkv[:, :, 2]      # (B, S, h, d)
    s = jnp.einsum("bqhd,bkhd->bhqk", q, k) / math.sqrt(hd)
    attn = jax.nn.softmax(s, axis=-1)
    ctx = jnp.einsum("bhqk,bkhd->bqhd", attn, v).reshape(B, S, H)
    a = ctx @ f32(p["wout"]) + p["bout"]
    a = a @ f32(p["wd"]) + p["bd"]
    h = a + x
    ln2 = ln(h, p["g2"], p["b2"])
    inter = jax.nn.gelu(ln2 @ f32(p["wi"]) + p["bi"], approximate=False)
    return inter @ f32(p["wo"]) + p["bo"] + h


if __name__ == "__main__":
    # PointMAE defaults: hidden_size=128, num_heads=4 (head_dim=32),
    # intermediate_size=128.  B=8, S=16 -> batch blocking picks BB=4
    # (64 rows per step, 2 parallel grid steps to feed both v7x TensorCores).
    B, S, H, NH = 8, 16, 128, 4
    INTER = 128

    key = jax.random.PRNGKey(0)
    kx, kp = jax.random.split(key)
    x = jax.random.normal(kx, (B, S, H), jnp.float32)
    params = init_params(kp, H, INTER)

    y = jax.block_until_ready(point_mae_layer(x, params, num_heads=NH))

    y_ref = reference(x, params, num_heads=NH)
    max_err = float(jnp.max(jnp.abs(y - y_ref)))
    # bf16 matmul operands, fused Wout·Wd weights, approx softmax reciprocal
    # vs the all-f32 reference.
    assert jnp.allclose(y, y_ref, atol=2e-2, rtol=2e-2), max_err

    print("KERNEL_OK")
</pallas_src>

<mosaic_0001>
module attributes {stable_mosaic.version = 11 : i64} {
  func.func @kernel(%arg0: i32, %arg1: memref<4x16x128xf32, #tpu.memory_space<vmem>>, %arg2: memref<128x384xbf16, #tpu.memory_space<vmem>>, %arg3: memref<1x384xf32, #tpu.memory_space<vmem>>, %arg4: memref<4x32x128xbf16, #tpu.memory_space<vmem>>, %arg5: memref<1x128xf32, #tpu.memory_space<vmem>>, %arg6: memref<1x128xf32, #tpu.memory_space<vmem>>, %arg7: memref<1x128xf32, #tpu.memory_space<vmem>>, %arg8: memref<1x128xf32, #tpu.memory_space<vmem>>, %arg9: memref<1x128xf32, #tpu.memory_space<vmem>>, %arg10: memref<128x128xbf16, #tpu.memory_space<vmem>>, %arg11: memref<1x128xf32, #tpu.memory_space<vmem>>, %arg12: memref<128x128xbf16, #tpu.memory_space<vmem>>, %arg13: memref<1x128xf32, #tpu.memory_space<vmem>>, %arg14: memref<4x16x128xf32, #tpu.memory_space<vmem>>) attributes {dimension_semantics = [#tpu.dimension_semantics<parallel>], iteration_bounds = array<i64: 2>, scalar_prefetch = 0 : i64, scratch_operands = 0 : i64, tpu.core_type = #tpu.core_type<tc>, window_params = [{transform_indices = @transform_0, window_bounds = array<i64: 4, 16, 128>}, {pipeline_mode = #tpu.pipeline_mode<synchronous>, transform_indices = @transform_1, window_bounds = array<i64: 128, 384>}, {pipeline_mode = #tpu.pipeline_mode<synchronous>, transform_indices = @transform_2, window_bounds = array<i64: 1, 384>}, {pipeline_mode = #tpu.pipeline_mode<synchronous>, transform_indices = @transform_3, window_bounds = array<i64: 4, 32, 128>}, {pipeline_mode = #tpu.pipeline_mode<synchronous>, transform_indices = @transform_4, window_bounds = array<i64: 1, 128>}, {pipeline_mode = #tpu.pipeline_mode<synchronous>, transform_indices = @transform_5, window_bounds = array<i64: 1, 128>}, {pipeline_mode = #tpu.pipeline_mode<synchronous>, transform_indices = @transform_6, window_bounds = array<i64: 1, 128>}, {pipeline_mode = #tpu.pipeline_mode<synchronous>, transform_indices = @transform_7, window_bounds = array<i64: 1, 128>}, {pipeline_mode = #tpu.pipeline_mode<synchronous>, transform_indices = @transform_8, window_bounds = array<i64: 1, 128>}, {pipeline_mode = #tpu.pipeline_mode<synchronous>, transform_indices = @transform_9, window_bounds = array<i64: 128, 128>}, {pipeline_mode = #tpu.pipeline_mode<synchronous>, transform_indices = @transform_10, window_bounds = array<i64: 1, 128>}, {pipeline_mode = #tpu.pipeline_mode<synchronous>, transform_indices = @transform_11, window_bounds = array<i64: 128, 128>}, {pipeline_mode = #tpu.pipeline_mode<synchronous>, transform_indices = @transform_12, window_bounds = array<i64: 1, 128>}, {transform_indices = @transform_13, window_bounds = array<i64: 4, 16, 128>}]} {
    %c0 = arith.constant 0 : index
    %c0_0 = arith.constant 0 : index
    %c0_1 = arith.constant 0 : index
    %0 = vector.load %arg1[%c0, %c0_0, %c0_1] : memref<4x16x128xf32, #tpu.memory_space<vmem>>, vector<4x16x128xf32>
    %1 = vector.shape_cast %0 : vector<4x16x128xf32> to vector<64x128xf32>
    %c0_2 = arith.constant 0 : index
    %c0_3 = arith.constant 0 : index
    %2 = vector.load %arg6[%c0_2, %c0_3] : memref<1x128xf32, #tpu.memory_space<vmem>>, vector<1x128xf32>
    %c0_4 = arith.constant 0 : index
    %c0_5 = arith.constant 0 : index
    %3 = vector.load %arg7[%c0_4, %c0_5] : memref<1x128xf32, #tpu.memory_space<vmem>>, vector<1x128xf32>
    %cst = arith.constant dense<0.000000e+00> : vector<64xf32>
    %4 = vector.multi_reduction <add>, %1, %cst [1] : vector<64x128xf32> to vector<64xf32>
    %5 = vector.shape_cast %4 : vector<64xf32> to vector<64x1xf32>
    %cst_6 = arith.constant 1.280000e+02 : f32
    %6 = vector.broadcast %cst_6 : f32 to vector<64x1xf32>
    %7 = arith.divf %5, %6 : vector<64x1xf32>
    %8 = vector.broadcast %7 : vector<64x1xf32> to vector<64x128xf32>
    %9 = arith.subf %1, %8 : vector<64x128xf32>
    %10 = arith.mulf %9, %9 : vector<64x128xf32>
    %cst_7 = arith.constant dense<0.000000e+00> : vector<64xf32>
    %11 = vector.multi_reduction <add>, %10, %cst_7 [1] : vector<64x128xf32> to vector<64xf32>
    %12 = vector.shape_cast %11 : vector<64xf32> to vector<64x1xf32>
    %cst_8 = arith.constant 1.280000e+02 : f32
    %13 = vector.broadcast %cst_8 : f32 to vector<64x1xf32>
    %14 = arith.divf %12, %13 : vector<64x1xf32>
    %15 = vector.broadcast %7 : vector<64x1xf32> to vector<64x128xf32>
    %16 = arith.subf %1, %15 : vector<64x128xf32>
    %cst_9 = arith.constant 9.99999997E-7 : f32
    %17 = vector.broadcast %cst_9 : f32 to vector<64x1xf32>
    %18 = arith.addf %14, %17 : vector<64x1xf32>
    %19 = math.rsqrt %18 : vector<64x1xf32>
    %20 = vector.broadcast %19 : vector<64x1xf32> to vector<64x128xf32>
    %21 = arith.mulf %16, %20 : vector<64x128xf32>
    %22 = vector.broadcast %2 : vector<1x128xf32> to vector<64x128xf32>
    %23 = arith.mulf %21, %22 : vector<64x128xf32>
    %24 = vector.broadcast %3 : vector<1x128xf32> to vector<64x128xf32>
    %25 = arith.addf %23, %24 : vector<64x128xf32>
    %26 = arith.truncf %25 : vector<64x128xf32> to vector<64x128xbf16>
    %c0_10 = arith.constant 0 : index
    %c0_11 = arith.constant 0 : index
    %27 = vector.load %arg2[%c0_10, %c0_11] : memref<128x384xbf16, #tpu.memory_space<vmem>>, vector<128x384xbf16>
    %cst_12 = arith.constant dense<0.000000e+00> : vector<64x384xf32>
    %28 = tpu.matmul %26, %27, %cst_12 {dimension_numbers = #tpu.dot_dimension_numbers<[1], [0], [0], [1], [0, 0, 1, 1], [], []>} : vector<64x128xbf16>, vector<128x384xbf16>, vector<64x384xf32> -> vector<64x384xf32>
    %c0_13 = arith.constant 0 : index
    %c0_14 = arith.constant 0 : index
    %29 = vector.load %arg3[%c0_13, %c0_14] : memref<1x384xf32, #tpu.memory_space<vmem>>, vector<1x384xf32>
    %30 = vector.broadcast %29 : vector<1x384xf32> to vector<64x384xf32>
    %31 = arith.addf %28, %30 : vector<64x384xf32>
    %32 = vector.extract_strided_slice %31 {offsets = [0, 0], sizes = [64, 128], strides = [1, 1]} : vector<64x384xf32> to vector<64x128xf32>
    %33 = arith.truncf %32 : vector<64x128xf32> to vector<64x128xbf16>
    %34 = vector.extract_strided_slice %31 {offsets = [0, 128], sizes = [64, 128], strides = [1, 1]} : vector<64x384xf32> to vector<64x128xf32>
    %35 = arith.truncf %34 : vector<64x128xf32> to vector<64x128xbf16>
    %36 = vector.extract_strided_slice %31 {offsets = [0, 256], sizes = [64, 128], strides = [1, 1]} : vector<64x384xf32> to vector<64x128xf32>
    %37 = arith.truncf %36 : vector<64x128xf32> to vector<64x128xbf16>
    %38 = vector.shape_cast %33 : vector<64x128xbf16> to vector<64x4x32xbf16>
    %39 = tpu.transpose %38, [1, 0, 2] : vector<64x4x32xbf16> -> vector<4x64x32xbf16>
    %40 = vector.shape_cast %39 : vector<4x64x32xbf16> to vector<16x16x32xbf16>
    %41 = vector.shape_cast %35 : vector<64x128xbf16> to vector<64x4x32xbf16>
    %42 = tpu.transpose %41, [1, 0, 2] : vector<64x4x32xbf16> -> vector<4x64x32xbf16>
    %43 = vector.shape_cast %42 : vector<4x64x32xbf16> to vector<16x16x32xbf16>
    %44 = vector.shape_cast %37 : vector<64x128xbf16> to vector<64x4x32xbf16>
    %45 = tpu.transpose %44, [1, 0, 2] : vector<64x4x32xbf16> -> vector<4x64x32xbf16>
    %46 = vector.shape_cast %45 : vector<4x64x32xbf16> to vector<16x16x32xbf16>
    "tpu.trace_start"() <{level = 10 : i32, message = "bqd,bkd->bqk"}> : () -> ()
    %cst_15 = arith.constant dense<0.000000e+00> : vector<16x16x16xf32>
    %47 = tpu.matmul %40, %43, %cst_15 {dimension_numbers = #tpu.dot_dimension_numbers<[2], [2], [1], [1], [0, 0, 0, 1, 1, 1], [0], [0]>} : vector<16x16x32xbf16>, vector<16x16x32xbf16>, vector<16x16x16xf32> -> vector<16x16x16xf32>
    "tpu.trace_stop"() : () -> ()
    %cst_16 = arith.constant dense<0xFF800000> : vector<16x16xf32>
    %48 = vector.multi_reduction <maximumf>, %47, %cst_16 [2] : vector<16x16x16xf32> to vector<16x16xf32>
    %49 = vector.shape_cast %48 : vector<16x16xf32> to vector<16x16x1xf32>
    %50 = vector.broadcast %49 : vector<16x16x1xf32> to vector<16x16x16xf32>
    %51 = arith.subf %47, %50 : vector<16x16x16xf32>
    %52 = math.exp %51 : vector<16x16x16xf32>
    %cst_17 = arith.constant dense<0.000000e+00> : vector<16x16xf32>
    %53 = vector.multi_reduction <add>, %52, %cst_17 [2] : vector<16x16x16xf32> to vector<16x16xf32>
    %54 = vector.shape_cast %53 : vector<16x16xf32> to vector<16x16x1xf32>
    %55 = tpu.reciprocal %54 {approx = true} : vector<16x16x1xf32> -> vector<16x16x1xf32>
    %56 = vector.broadcast %55 : vector<16x16x1xf32> to vector<16x16x16xf32>
    %57 = arith.mulf %52, %56 : vector<16x16x16xf32>
    %58 = arith.truncf %57 : vector<16x16x16xf32> to vector<16x16x16xbf16>
    "tpu.trace_start"() <{level = 10 : i32, message = "bqk,bkd->bqd"}> : () -> ()
    %cst_18 = arith.constant dense<0.000000e+00> : vector<16x16x32xf32>
    %59 = tpu.matmul %58, %46, %cst_18 {dimension_numbers = #tpu.dot_dimension_numbers<[2], [1], [1], [2], [0, 0, 0, 1, 1, 2], [0], [0]>} : vector<16x16x16xbf16>, vector<16x16x32xbf16>, vector<16x16x32xf32> -> vector<16x16x32xf32>
    "tpu.trace_stop"() : () -> ()
    %60 = vector.shape_cast %59 : vector<16x16x32xf32> to vector<4x64x32xf32>
    %61 = arith.truncf %60 : vector<4x64x32xf32> to vector<4x64x32xbf16>
    %c0_19 = arith.constant 0 : index
    %c0_20 = arith.constant 0 : index
    %c0_21 = arith.constant 0 : index
    %62 = vector.load %arg4[%c0_19, %c0_20, %c0_21] : memref<4x32x128xbf16, #tpu.memory_space<vmem>>, vector<4x32x128xbf16>
    "tpu.trace_start"() <{level = 10 : i32, message = "hmd,hdo->hmo"}> : () -> ()
    %cst_22 = arith.constant dense<0.000000e+00> : vector<4x64x128xf32>
    %63 = tpu.matmul %61, %62, %cst_22 {dimension_numbers = #tpu.dot_dimension_numbers<[2], [1], [1], [2], [0, 0, 0, 1, 1, 2], [0], [0]>} : vector<4x64x32xbf16>, vector<4x32x128xbf16>, vector<4x64x128xf32> -> vector<4x64x128xf32>
    "tpu.trace_stop"() : () -> ()
    %cst_23 = arith.constant dense<0.000000e+00> : vector<64x128xf32>
    %64 = vector.multi_reduction <add>, %63, %cst_23 [0] : vector<4x64x128xf32> to vector<64x128xf32>
    %c0_24 = arith.constant 0 : index
    %c0_25 = arith.constant 0 : index
    %65 = vector.load %arg5[%c0_24, %c0_25] : memref<1x128xf32, #tpu.memory_space<vmem>>, vector<1x128xf32>
    %66 = vector.broadcast %65 : vector<1x128xf32> to vector<64x128xf32>
    %67 = arith.addf %64, %66 : vector<64x128xf32>
    %68 = arith.addf %67, %1 : vector<64x128xf32>
    %c0_26 = arith.constant 0 : index
    %c0_27 = arith.constant 0 : index
    %69 = vector.load %arg8[%c0_26, %c0_27] : memref<1x128xf32, #tpu.memory_space<vmem>>, vector<1x128xf32>
    %c0_28 = arith.constant 0 : index
    %c0_29 = arith.constant 0 : index
    %70 = vector.load %arg9[%c0_28, %c0_29] : memref<1x128xf32, #tpu.memory_space<vmem>>, vector<1x128xf32>
    %cst_30 = arith.constant dense<0.000000e+00> : vector<64xf32>
    %71 = vector.multi_reduction <add>, %68, %cst_30 [1] : vector<64x128xf32> to vector<64xf32>
    %72 = vector.shape_cast %71 : vector<64xf32> to vector<64x1xf32>
    %cst_31 = arith.constant 1.280000e+02 : f32
    %73 = vector.broadcast %cst_31 : f32 to vector<64x1xf32>
    %74 = arith.divf %72, %73 : vector<64x1xf32>
    %75 = vector.broadcast %74 : vector<64x1xf32> to vector<64x128xf32>
    %76 = arith.subf %68, %75 : vector<64x128xf32>
    %77 = arith.mulf %76, %76 : vector<64x128xf32>
    %cst_32 = arith.constant dense<0.000000e+00> : vector<64xf32>
    %78 = vector.multi_reduction <add>, %77, %cst_32 [1] : vector<64x128xf32> to vector<64xf32>
    %79 = vector.shape_cast %78 : vector<64xf32> to vector<64x1xf32>
    %cst_33 = arith.constant 1.280000e+02 : f32
    %80 = vector.broadcast %cst_33 : f32 to vector<64x1xf32>
    %81 = arith.divf %79, %80 : vector<64x1xf32>
    %82 = vector.broadcast %74 : vector<64x1xf32> to vector<64x128xf32>
    %83 = arith.subf %68, %82 : vector<64x128xf32>
    %cst_34 = arith.constant 9.99999997E-7 : f32
    %84 = vector.broadcast %cst_34 : f32 to vector<64x1xf32>
    %85 = arith.addf %81, %84 : vector<64x1xf32>
    %86 = math.rsqrt %85 : vector<64x1xf32>
    %87 = vector.broadcast %86 : vector<64x1xf32> to vector<64x128xf32>
    %88 = arith.mulf %83, %87 : vector<64x128xf32>
    %89 = vector.broadcast %69 : vector<1x128xf32> to vector<64x128xf32>
    %90 = arith.mulf %88, %89 : vector<64x128xf32>
    %91 = vector.broadcast %70 : vector<1x128xf32> to vector<64x128xf32>
    %92 = arith.addf %90, %91 : vector<64x128xf32>
    %93 = arith.truncf %92 : vector<64x128xf32> to vector<64x128xbf16>
    %c0_35 = arith.constant 0 : index
    %c0_36 = arith.constant 0 : index
    %94 = vector.load %arg10[%c0_35, %c0_36] : memref<128x128xbf16, #tpu.memory_space<vmem>>, vector<128x128xbf16>
    %cst_37 = arith.constant dense<0.000000e+00> : vector<64x128xf32>
    %95 = tpu.matmul %93, %94, %cst_37 {dimension_numbers = #tpu.dot_dimension_numbers<[1], [0], [0], [1], [0, 0, 1, 1], [], []>} : vector<64x128xbf16>, vector<128x128xbf16>, vector<64x128xf32> -> vector<64x128xf32>
    %c0_38 = arith.constant 0 : index
    %c0_39 = arith.constant 0 : index
    %96 = vector.load %arg11[%c0_38, %c0_39] : memref<1x128xf32, #tpu.memory_space<vmem>>, vector<1x128xf32>
    %97 = vector.broadcast %96 : vector<1x128xf32> to vector<64x128xf32>
    %98 = arith.addf %95, %97 : vector<64x128xf32>
    %cst_40 = arith.constant 5.000000e-01 : f32
    %99 = vector.broadcast %cst_40 : f32 to vector<64x128xf32>
    %100 = arith.mulf %99, %98 : vector<64x128xf32>
    %cst_41 = arith.constant 0.707106769 : f32
    %101 = vector.broadcast %cst_41 : f32 to vector<64x128xf32>
    %102 = arith.mulf %98, %101 : vector<64x128xf32>
    %103 = math.absf %102 : vector<64x128xf32>
    %cst_42 = arith.constant 0.327591091 : f32
    %104 = vector.broadcast %cst_42 : f32 to vector<64x128xf32>
    %105 = arith.mulf %104, %103 : vector<64x128xf32>
    %cst_43 = arith.constant 1.000000e+00 : f32
    %106 = vector.broadcast %cst_43 : f32 to vector<64x128xf32>
    %107 = arith.addf %106, %105 : vector<64x128xf32>
    %cst_44 = arith.constant 1.000000e+00 : f32
    %108 = vector.broadcast %cst_44 : f32 to vector<64x128xf32>
    %109 = arith.divf %108, %107 : vector<64x128xf32>
    %cst_45 = arith.constant 1.06140542 : f32
    %110 = vector.broadcast %cst_45 : f32 to vector<64x128xf32>
    %111 = arith.mulf %110, %109 : vector<64x128xf32>
    %cst_46 = arith.constant -1.45315206 : f32
    %112 = vector.broadcast %cst_46 : f32 to vector<64x128xf32>
    %113 = arith.addf %111, %112 : vector<64x128xf32>
    %114 = arith.mulf %113, %109 : vector<64x128xf32>
    %cst_47 = arith.constant 1.42141378 : f32
    %115 = vector.broadcast %cst_47 : f32 to vector<64x128xf32>
    %116 = arith.addf %114, %115 : vector<64x128xf32>
    %117 = arith.mulf %116, %109 : vector<64x128xf32>
    %cst_48 = arith.constant -0.284496725 : f32
    %118 = vector.broadcast %cst_48 : f32 to vector<64x128xf32>
    %119 = arith.addf %117, %118 : vector<64x128xf32>
    %120 = arith.mulf %119, %109 : vector<64x128xf32>
    %cst_49 = arith.constant 0.254829586 : f32
    %121 = vector.broadcast %cst_49 : f32 to vector<64x128xf32>
    %122 = arith.addf %120, %121 : vector<64x128xf32>
    %123 = arith.mulf %122, %109 : vector<64x128xf32>
    %cst_50 = arith.constant 0.000000e+00 : f32
    %124 = vector.broadcast %cst_50 : f32 to vector<64x128xf32>
    %125 = arith.subf %124, %103 : vector<64x128xf32>
    %126 = arith.mulf %125, %103 : vector<64x128xf32>
    %127 = math.exp %126 : vector<64x128xf32>
    %128 = arith.mulf %123, %127 : vector<64x128xf32>
    %cst_51 = arith.constant 1.000000e+00 : f32
    %129 = vector.broadcast %cst_51 : f32 to vector<64x128xf32>
    %130 = arith.subf %129, %128 : vector<64x128xf32>
    %cst_52 = arith.constant 0.000000e+00 : f32
    %131 = vector.broadcast %cst_52 : f32 to vector<64x128xf32>
    %132 = arith.cmpf olt, %102, %131 : vector<64x128xf32>
    %cst_53 = arith.constant 0.000000e+00 : f32
    %133 = vector.broadcast %cst_53 : f32 to vector<64x128xf32>
    %134 = arith.subf %133, %130 : vector<64x128xf32>
    %135 = arith.select %132, %134, %130 : vector<64x128xi1>, vector<64x128xf32>
    %cst_54 = arith.constant 1.000000e+00 : f32
    %136 = vector.broadcast %cst_54 : f32 to vector<64x128xf32>
    %137 = arith.addf %136, %135 : vector<64x128xf32>
    %138 = arith.mulf %100, %137 : vector<64x128xf32>
    %139 = arith.truncf %138 : vector<64x128xf32> to vector<64x128xbf16>
    %c0_55 = arith.constant 0 : index
    %c0_56 = arith.constant 0 : index
    %140 = vector.load %arg12[%c0_55, %c0_56] : memref<128x128xbf16, #tpu.memory_space<vmem>>, vector<128x128xbf16>
    %cst_57 = arith.constant dense<0.000000e+00> : vector<64x128xf32>
    %141 = tpu.matmul %139, %140, %cst_57 {dimension_numbers = #tpu.dot_dimension_numbers<[1], [0], [0], [1], [0, 0, 1, 1], [], []>} : vector<64x128xbf16>, vector<128x128xbf16>, vector<64x128xf32> -> vector<64x128xf32>
    %c0_58 = arith.constant 0 : index
    %c0_59 = arith.constant 0 : index
    %142 = vector.load %arg13[%c0_58, %c0_59] : memref<1x128xf32, #tpu.memory_space<vmem>>, vector<1x128xf32>
    %143 = vector.broadcast %142 : vector<1x128xf32> to vector<64x128xf32>
    %144 = arith.addf %141, %143 : vector<64x128xf32>
    %145 = arith.addf %144, %68 : vector<64x128xf32>
    %146 = vector.shape_cast %145 : vector<64x128xf32> to vector<4x16x128xf32>
    %c0_60 = arith.constant 0 : index
    %c0_61 = arith.constant 0 : index
    %c0_62 = arith.constant 0 : index
    %147 = vector.load %arg14[%c0_60, %c0_61, %c0_62] : memref<4x16x128xf32, #tpu.memory_space<vmem>>, vector<4x16x128xf32>
    tpu.vector_store %arg14[%c0_60, %c0_61, %c0_62], %146 {strides = array<i32>} : memref<4x16x128xf32, #tpu.memory_space<vmem>>, vector<4x16x128xf32>,
    return
  }
  func.func @transform_0(%arg0: i32) -> (i32, i32, i32) {
    %c0_i32 = arith.constant 0 : i32
    %c0_i32_0 = arith.constant 0 : i32
    %c0_i32_1 = arith.constant 0 : i32
    return %arg0, %c0_i32, %c0_i32_0 : i32, i32, i32
  }
  func.func @transform_1(%arg0: i32) -> (i32, i32) {
    %c0_i32 = arith.constant 0 : i32
    %c0_i32_0 = arith.constant 0 : i32
    %c0_i32_1 = arith.constant 0 : i32
    return %c0_i32, %c0_i32_0 : i32, i32
  }
  func.func @transform_2(%arg0: i32) -> (i32, i32) {
    %c0_i32 = arith.constant 0 : i32
    %c0_i32_0 = arith.constant 0 : i32
    %c0_i32_1 = arith.constant 0 : i32
    return %c0_i32, %c0_i32_0 : i32, i32
  }
  func.func @transform_3(%arg0: i32) -> (i32, i32, i32) {
    %c0_i32 = arith.constant 0 : i32
    %c0_i32_0 = arith.constant 0 : i32
    %c0_i32_1 = arith.constant 0 : i32
    %c0_i32_2 = arith.constant 0 : i32
    return %c0_i32, %c0_i32_0, %c0_i32_1 : i32, i32, i32
  }
  func.func @transform_4(%arg0: i32) -> (i32, i32) {
    %c0_i32 = arith.constant 0 : i32
    %c0_i32_0 = arith.constant 0 : i32
    %c0_i32_1 = arith.constant 0 : i32
    return %c0_i32, %c0_i32_0 : i32, i32
  }
  func.func @transform_5(%arg0: i32) -> (i32, i32) {
    %c0_i32 = arith.constant 0 : i32
    %c0_i32_0 = arith.constant 0 : i32
    %c0_i32_1 = arith.constant 0 : i32
    return %c0_i32, %c0_i32_0 : i32, i32
  }
  func.func @transform_6(%arg0: i32) -> (i32, i32) {
    %c0_i32 = arith.constant 0 : i32
    %c0_i32_0 = arith.constant 0 : i32
    %c0_i32_1 = arith.constant 0 : i32
    return %c0_i32, %c0_i32_0 : i32, i32
  }
  func.func @transform_7(%arg0: i32) -> (i32, i32) {
    %c0_i32 = arith.constant 0 : i32
    %c0_i32_0 = arith.constant 0 : i32
    %c0_i32_1 = arith.constant 0 : i32
    return %c0_i32, %c0_i32_0 : i32, i32
  }
  func.func @transform_8(%arg0: i32) -> (i32, i32) {
    %c0_i32 = arith.constant 0 : i32
    %c0_i32_0 = arith.constant 0 : i32
    %c0_i32_1 = arith.constant 0 : i32
    return %c0_i32, %c0_i32_0 : i32, i32
  }
  func.func @transform_9(%arg0: i32) -> (i32, i32) {
    %c0_i32 = arith.constant 0 : i32
    %c0_i32_0 = arith.constant 0 : i32
    %c0_i32_1 = arith.constant 0 : i32
    return %c0_i32, %c0_i32_0 : i32, i32
  }
  func.func @transform_10(%arg0: i32) -> (i32, i32) {
    %c0_i32 = arith.constant 0 : i32
    %c0_i32_0 = arith.constant 0 : i32
    %c0_i32_1 = arith.constant 0 : i32
    return %c0_i32, %c0_i32_0 : i32, i32
  }
  func.func @transform_11(%arg0: i32) -> (i32, i32) {
    %c0_i32 = arith.constant 0 : i32
    %c0_i32_0 = arith.constant 0 : i32
    %c0_i32_1 = arith.constant 0 : i32
    return %c0_i32, %c0_i32_0 : i32, i32
  }
  func.func @transform_12(%arg0: i32) -> (i32, i32) {
    %c0_i32 = arith.constant 0 : i32
    %c0_i32_0 = arith.constant 0 : i32
    %c0_i32_1 = arith.constant 0 : i32
    return %c0_i32, %c0_i32_0 : i32, i32
  }
  func.func @transform_13(%arg0: i32) -> (i32, i32, i32) {
    %c0_i32 = arith.constant 0 : i32
    %c0_i32_0 = arith.constant 0 : i32
    %c0_i32_1 = arith.constant 0 : i32
    return %arg0, %c0_i32, %c0_i32_0 : i32, i32, i32
  }
}

module attributes {stable_mosaic.version = 11 : i64} {
  func.func @kernel(%arg0: i32, %arg1: memref<4x16x128xf32, #tpu.memory_space<vmem>>, %arg2: memref<128x384xbf16, #tpu.memory_space<vmem>>, %arg3: memref<1x384xf32, #tpu.memory_space<vmem>>, %arg4: memref<4x32x128xbf16, #tpu.memory_space<vmem>>, %arg5: memref<1x128xf32, #tpu.memory_space<vmem>>, %arg6: memref<1x128xf32, #tpu.memory_space<vmem>>, %arg7: memref<1x128xf32, #tpu.memory_space<vmem>>, %arg8: memref<1x128xf32, #tpu.memory_space<vmem>>, %arg9: memref<1x128xf32, #tpu.memory_space<vmem>>, %arg10: memref<128x128xbf16, #tpu.memory_space<vmem>>, %arg11: memref<1x128xf32, #tpu.memory_space<vmem>>, %arg12: memref<128x128xbf16, #tpu.memory_space<vmem>>, %arg13: memref<1x128xf32, #tpu.memory_space<vmem>>, %arg14: memref<4x16x128xf32, #tpu.memory_space<vmem>>) attributes {dimension_semantics = [#tpu.dimension_semantics<parallel>], iteration_bounds = array<i64: 2>, scalar_prefetch = 0 : i64, scratch_operands = 0 : i64, tpu.core_type = #tpu.core_type<tc>, window_params = [{transform_indices = @transform_0, window_bounds = array<i64: 4, 16, 128>}, {pipeline_mode = #tpu.pipeline_mode<synchronous>, transform_indices = @transform_1, window_bounds = array<i64: 128, 384>}, {pipeline_mode = #tpu.pipeline_mode<synchronous>, transform_indices = @transform_2, window_bounds = array<i64: 1, 384>}, {pipeline_mode = #tpu.pipeline_mode<synchronous>, transform_indices = @transform_3, window_bounds = array<i64: 4, 32, 128>}, {pipeline_mode = #tpu.pipeline_mode<synchronous>, transform_indices = @transform_4, window_bounds = array<i64: 1, 128>}, {pipeline_mode = #tpu.pipeline_mode<synchronous>, transform_indices = @transform_5, window_bounds = array<i64: 1, 128>}, {pipeline_mode = #tpu.pipeline_mode<synchronous>, transform_indices = @transform_6, window_bounds = array<i64: 1, 128>}, {pipeline_mode = #tpu.pipeline_mode<synchronous>, transform_indices = @transform_7, window_bounds = array<i64: 1, 128>}, {pipeline_mode = #tpu.pipeline_mode<synchronous>, transform_indices = @transform_8, window_bounds = array<i64: 1, 128>}, {pipeline_mode = #tpu.pipeline_mode<synchronous>, transform_indices = @transform_9, window_bounds = array<i64: 128, 128>}, {pipeline_mode = #tpu.pipeline_mode<synchronous>, transform_indices = @transform_10, window_bounds = array<i64: 1, 128>}, {pipeline_mode = #tpu.pipeline_mode<synchronous>, transform_indices = @transform_11, window_bounds = array<i64: 128, 128>}, {pipeline_mode = #tpu.pipeline_mode<synchronous>, transform_indices = @transform_12, window_bounds = array<i64: 1, 128>}, {transform_indices = @transform_13, window_bounds = array<i64: 4, 16, 128>}]} {
    %c0 = arith.constant 0 : index
    %c0_0 = arith.constant 0 : index
    %c0_1 = arith.constant 0 : index
    %0 = vector.load %arg1[%c0, %c0_0, %c0_1] : memref<4x16x128xf32, #tpu.memory_space<vmem>>, vector<4x16x128xf32>
    %1 = vector.shape_cast %0 : vector<4x16x128xf32> to vector<64x128xf32>
    %c0_2 = arith.constant 0 : index
    %c0_3 = arith.constant 0 : index
    %2 = vector.load %arg6[%c0_2, %c0_3] : memref<1x128xf32, #tpu.memory_space<vmem>>, vector<1x128xf32>
    %c0_4 = arith.constant 0 : index
    %c0_5 = arith.constant 0 : index
    %3 = vector.load %arg7[%c0_4, %c0_5] : memref<1x128xf32, #tpu.memory_space<vmem>>, vector<1x128xf32>
    %cst = arith.constant dense<0.000000e+00> : vector<64xf32>
    %4 = vector.multi_reduction <add>, %1, %cst [1] : vector<64x128xf32> to vector<64xf32>
    %5 = vector.shape_cast %4 : vector<64xf32> to vector<64x1xf32>
    %cst_6 = arith.constant 1.280000e+02 : f32
    %6 = vector.broadcast %cst_6 : f32 to vector<64x1xf32>
    %7 = arith.divf %5, %6 : vector<64x1xf32>
    %8 = vector.broadcast %7 : vector<64x1xf32> to vector<64x128xf32>
    %9 = arith.subf %1, %8 : vector<64x128xf32>
    %10 = arith.mulf %9, %9 : vector<64x128xf32>
    %cst_7 = arith.constant dense<0.000000e+00> : vector<64xf32>
    %11 = vector.multi_reduction <add>, %10, %cst_7 [1] : vector<64x128xf32> to vector<64xf32>
    %12 = vector.shape_cast %11 : vector<64xf32> to vector<64x1xf32>
    %cst_8 = arith.constant 1.280000e+02 : f32
    %13 = vector.broadcast %cst_8 : f32 to vector<64x1xf32>
    %14 = arith.divf %12, %13 : vector<64x1xf32>
    %15 = vector.broadcast %7 : vector<64x1xf32> to vector<64x128xf32>
    %16 = arith.subf %1, %15 : vector<64x128xf32>
    %cst_9 = arith.constant 9.99999997E-7 : f32
    %17 = vector.broadcast %cst_9 : f32 to vector<64x1xf32>
    %18 = arith.addf %14, %17 : vector<64x1xf32>
    %19 = math.rsqrt %18 : vector<64x1xf32>
    %20 = vector.broadcast %19 : vector<64x1xf32> to vector<64x128xf32>
    %21 = arith.mulf %16, %20 : vector<64x128xf32>
    %22 = vector.broadcast %2 : vector<1x128xf32> to vector<64x128xf32>
    %23 = arith.mulf %21, %22 : vector<64x128xf32>
    %24 = vector.broadcast %3 : vector<1x128xf32> to vector<64x128xf32>
    %25 = arith.addf %23, %24 : vector<64x128xf32>
    %26 = arith.truncf %25 : vector<64x128xf32> to vector<64x128xbf16>
    %c0_10 = arith.constant 0 : index
    %c0_11 = arith.constant 0 : index
    %27 = vector.load %arg2[%c0_10, %c0_11] : memref<128x384xbf16, #tpu.memory_space<vmem>>, vector<128x384xbf16>
    %cst_12 = arith.constant dense<0.000000e+00> : vector<64x384xf32>
    %28 = tpu.matmul %26, %27, %cst_12 {dimension_numbers = #tpu.dot_dimension_numbers<[1], [0], [0], [1], [0, 0, 1, 1], [], []>} : vector<64x128xbf16>, vector<128x384xbf16>, vector<64x384xf32> -> vector<64x384xf32>
    %c0_13 = arith.constant 0 : index
    %c0_14 = arith.constant 0 : index
    %29 = vector.load %arg3[%c0_13, %c0_14] : memref<1x384xf32, #tpu.memory_space<vmem>>, vector<1x384xf32>
    %30 = vector.broadcast %29 : vector<1x384xf32> to vector<64x384xf32>
    %31 = arith.addf %28, %30 : vector<64x384xf32>
    %32 = vector.extract_strided_slice %31 {offsets = [0, 0], sizes = [64, 128], strides = [1, 1]} : vector<64x384xf32> to vector<64x128xf32>
    %33 = arith.truncf %32 : vector<64x128xf32> to vector<64x128xbf16>
    %34 = vector.extract_strided_slice %31 {offsets = [0, 128], sizes = [64, 128], strides = [1, 1]} : vector<64x384xf32> to vector<64x128xf32>
    %35 = arith.truncf %34 : vector<64x128xf32> to vector<64x128xbf16>
    %36 = vector.extract_strided_slice %31 {offsets = [0, 256], sizes = [64, 128], strides = [1, 1]} : vector<64x384xf32> to vector<64x128xf32>
    %37 = arith.truncf %36 : vector<64x128xf32> to vector<64x128xbf16>
    %38 = vector.shape_cast %33 : vector<64x128xbf16> to vector<64x4x32xbf16>
    %39 = tpu.transpose %38, [1, 0, 2] : vector<64x4x32xbf16> -> vector<4x64x32xbf16>
    %40 = vector.shape_cast %39 : vector<4x64x32xbf16> to vector<16x16x32xbf16>
    %41 = vector.shape_cast %35 : vector<64x128xbf16> to vector<64x4x32xbf16>
    %42 = tpu.transpose %41, [1, 0, 2] : vector<64x4x32xbf16> -> vector<4x64x32xbf16>
    %43 = vector.shape_cast %42 : vector<4x64x32xbf16> to vector<16x16x32xbf16>
    %44 = vector.shape_cast %37 : vector<64x128xbf16> to vector<64x4x32xbf16>
    %45 = tpu.transpose %44, [1, 0, 2] : vector<64x4x32xbf16> -> vector<4x64x32xbf16>
    %46 = vector.shape_cast %45 : vector<4x64x32xbf16> to vector<16x16x32xbf16>
    "tpu.trace_start"() <{level = 10 : i32, message = "bqd,bkd->bqk"}> : () -> ()
    %cst_15 = arith.constant dense<0.000000e+00> : vector<16x16x16xf32>
    %47 = tpu.matmul %40, %43, %cst_15 {dimension_numbers = #tpu.dot_dimension_numbers<[2], [2], [1], [1], [0, 0, 0, 1, 1, 1], [0], [0]>} : vector<16x16x32xbf16>, vector<16x16x32xbf16>, vector<16x16x16xf32> -> vector<16x16x16xf32>
    "tpu.trace_stop"() : () -> ()
    %cst_16 = arith.constant dense<0xFF800000> : vector<16x16xf32>
    %48 = vector.multi_reduction <maximumf>, %47, %cst_16 [2] : vector<16x16x16xf32> to vector<16x16xf32>
    %49 = vector.shape_cast %48 : vector<16x16xf32> to vector<16x16x1xf32>
    %50 = vector.broadcast %49 : vector<16x16x1xf32> to vector<16x16x16xf32>
    %51 = arith.subf %47, %50 : vector<16x16x16xf32>
    %52 = math.exp %51 : vector<16x16x16xf32>
    %cst_17 = arith.constant dense<0.000000e+00> : vector<16x16xf32>
    %53 = vector.multi_reduction <add>, %52, %cst_17 [2] : vector<16x16x16xf32> to vector<16x16xf32>
    %54 = vector.shape_cast %53 : vector<16x16xf32> to vector<16x16x1xf32>
    %55 = tpu.reciprocal %54 {approx = true} : vector<16x16x1xf32> -> vector<16x16x1xf32>
    %56 = vector.broadcast %55 : vector<16x16x1xf32> to vector<16x16x16xf32>
    %57 = arith.mulf %52, %56 : vector<16x16x16xf32>
    %58 = arith.truncf %57 : vector<16x16x16xf32> to vector<16x16x16xbf16>
    "tpu.trace_start"() <{level = 10 : i32, message = "bqk,bkd->bqd"}> : () -> ()
    %cst_18 = arith.constant dense<0.000000e+00> : vector<16x16x32xf32>
    %59 = tpu.matmul %58, %46, %cst_18 {dimension_numbers = #tpu.dot_dimension_numbers<[2], [1], [1], [2], [0, 0, 0, 1, 1, 2], [0], [0]>} : vector<16x16x16xbf16>, vector<16x16x32xbf16>, vector<16x16x32xf32> -> vector<16x16x32xf32>
    "tpu.trace_stop"() : () -> ()
    %60 = vector.shape_cast %59 : vector<16x16x32xf32> to vector<4x64x32xf32>
    %61 = arith.truncf %60 : vector<4x64x32xf32> to vector<4x64x32xbf16>
    %c0_19 = arith.constant 0 : index
    %c0_20 = arith.constant 0 : index
    %c0_21 = arith.constant 0 : index
    %62 = vector.load %arg4[%c0_19, %c0_20, %c0_21] : memref<4x32x128xbf16, #tpu.memory_space<vmem>>, vector<4x32x128xbf16>
    "tpu.trace_start"() <{level = 10 : i32, message = "hmd,hdo->hmo"}> : () -> ()
    %cst_22 = arith.constant dense<0.000000e+00> : vector<4x64x128xf32>
    %63 = tpu.matmul %61, %62, %cst_22 {dimension_numbers = #tpu.dot_dimension_numbers<[2], [1], [1], [2], [0, 0, 0, 1, 1, 2], [0], [0]>} : vector<4x64x32xbf16>, vector<4x32x128xbf16>, vector<4x64x128xf32> -> vector<4x64x128xf32>
    "tpu.trace_stop"() : () -> ()
    %cst_23 = arith.constant dense<0.000000e+00> : vector<64x128xf32>
    %64 = vector.multi_reduction <add>, %63, %cst_23 [0] : vector<4x64x128xf32> to vector<64x128xf32>
    %c0_24 = arith.constant 0 : index
    %c0_25 = arith.constant 0 : index
    %65 = vector.load %arg5[%c0_24, %c0_25] : memref<1x128xf32, #tpu.memory_space<vmem>>, vector<1x128xf32>
    %66 = vector.broadcast %65 : vector<1x128xf32> to vector<64x128xf32>
    %67 = arith.addf %64, %66 : vector<64x128xf32>
    %68 = arith.addf %67, %1 : vector<64x128xf32>
    %c0_26 = arith.constant 0 : index
    %c0_27 = arith.constant 0 : index
    %69 = vector.load %arg8[%c0_26, %c0_27] : memref<1x128xf32, #tpu.memory_space<vmem>>, vector<1x128xf32>
    %c0_28 = arith.constant 0 : index
    %c0_29 = arith.constant 0 : index
    %70 = vector.load %arg9[%c0_28, %c0_29] : memref<1x128xf32, #tpu.memory_space<vmem>>, vector<1x128xf32>
    %cst_30 = arith.constant dense<0.000000e+00> : vector<64xf32>
    %71 = vector.multi_reduction <add>, %68, %cst_30 [1] : vector<64x128xf32> to vector<64xf32>
    %72 = vector.shape_cast %71 : vector<64xf32> to vector<64x1xf32>
    %cst_31 = arith.constant 1.280000e+02 : f32
    %73 = vector.broadcast %cst_31 : f32 to vector<64x1xf32>
    %74 = arith.divf %72, %73 : vector<64x1xf32>
    %75 = vector.broadcast %74 : vector<64x1xf32> to vector<64x128xf32>
    %76 = arith.subf %68, %75 : vector<64x128xf32>
    %77 = arith.mulf %76, %76 : vector<64x128xf32>
    %cst_32 = arith.constant dense<0.000000e+00> : vector<64xf32>
    %78 = vector.multi_reduction <add>, %77, %cst_32 [1] : vector<64x128xf32> to vector<64xf32>
    %79 = vector.shape_cast %78 : vector<64xf32> to vector<64x1xf32>
    %cst_33 = arith.constant 1.280000e+02 : f32
    %80 = vector.broadcast %cst_33 : f32 to vector<64x1xf32>
    %81 = arith.divf %79, %80 : vector<64x1xf32>
    %82 = vector.broadcast %74 : vector<64x1xf32> to vector<64x128xf32>
    %83 = arith.subf %68, %82 : vector<64x128xf32>
    %cst_34 = arith.constant 9.99999997E-7 : f32
    %84 = vector.broadcast %cst_34 : f32 to vector<64x1xf32>
    %85 = arith.addf %81, %84 : vector<64x1xf32>
    %86 = math.rsqrt %85 : vector<64x1xf32>
    %87 = vector.broadcast %86 : vector<64x1xf32> to vector<64x128xf32>
    %88 = arith.mulf %83, %87 : vector<64x128xf32>
    %89 = vector.broadcast %69 : vector<1x128xf32> to vector<64x128xf32>
    %90 = arith.mulf %88, %89 : vector<64x128xf32>
    %91 = vector.broadcast %70 : vector<1x128xf32> to vector<64x128xf32>
    %92 = arith.addf %90, %91 : vector<64x128xf32>
    %93 = arith.truncf %92 : vector<64x128xf32> to vector<64x128xbf16>
    %c0_35 = arith.constant 0 : index
    %c0_36 = arith.constant 0 : index
    %94 = vector.load %arg10[%c0_35, %c0_36] : memref<128x128xbf16, #tpu.memory_space<vmem>>, vector<128x128xbf16>
    %cst_37 = arith.constant dense<0.000000e+00> : vector<64x128xf32>
    %95 = tpu.matmul %93, %94, %cst_37 {dimension_numbers = #tpu.dot_dimension_numbers<[1], [0], [0], [1], [0, 0, 1, 1], [], []>} : vector<64x128xbf16>, vector<128x128xbf16>, vector<64x128xf32> -> vector<64x128xf32>
    %c0_38 = arith.constant 0 : index
    %c0_39 = arith.constant 0 : index
    %96 = vector.load %arg11[%c0_38, %c0_39] : memref<1x128xf32, #tpu.memory_space<vmem>>, vector<1x128xf32>
    %97 = vector.broadcast %96 : vector<1x128xf32> to vector<64x128xf32>
    %98 = arith.addf %95, %97 : vector<64x128xf32>
    %cst_40 = arith.constant 5.000000e-01 : f32
    %99 = vector.broadcast %cst_40 : f32 to vector<64x128xf32>
    %100 = arith.mulf %99, %98 : vector<64x128xf32>
    %cst_41 = arith.constant 0.707106769 : f32
    %101 = vector.broadcast %cst_41 : f32 to vector<64x128xf32>
    %102 = arith.mulf %98, %101 : vector<64x128xf32>
    %103 = math.absf %102 : vector<64x128xf32>
    %cst_42 = arith.constant 0.327591091 : f32
    %104 = vector.broadcast %cst_42 : f32 to vector<64x128xf32>
    %105 = arith.mulf %104, %103 : vector<64x128xf32>
    %cst_43 = arith.constant 1.000000e+00 : f32
    %106 = vector.broadcast %cst_43 : f32 to vector<64x128xf32>
    %107 = arith.addf %106, %105 : vector<64x128xf32>
    %cst_44 = arith.constant 1.000000e+00 : f32
    %108 = vector.broadcast %cst_44 : f32 to vector<64x128xf32>
    %109 = arith.divf %108, %107 : vector<64x128xf32>
    %cst_45 = arith.constant 1.06140542 : f32
    %110 = vector.broadcast %cst_45 : f32 to vector<64x128xf32>
    %111 = arith.mulf %110, %109 : vector<64x128xf32>
    %cst_46 = arith.constant -1.45315206 : f32
    %112 = vector.broadcast %cst_46 : f32 to vector<64x128xf32>
    %113 = arith.addf %111, %112 : vector<64x128xf32>
    %114 = arith.mulf %113, %109 : vector<64x128xf32>
    %cst_47 = arith.constant 1.42141378 : f32
    %115 = vector.broadcast %cst_47 : f32 to vector<64x128xf32>
    %116 = arith.addf %114, %115 : vector<64x128xf32>
    %117 = arith.mulf %116, %109 : vector<64x128xf32>
    %cst_48 = arith.constant -0.284496725 : f32
    %118 = vector.broadcast %cst_48 : f32 to vector<64x128xf32>
    %119 = arith.addf %117, %118 : vector<64x128xf32>
    %120 = arith.mulf %119, %109 : vector<64x128xf32>
    %cst_49 = arith.constant 0.254829586 : f32
    %121 = vector.broadcast %cst_49 : f32 to vector<64x128xf32>
    %122 = arith.addf %120, %121 : vector<64x128xf32>
    %123 = arith.mulf %122, %109 : vector<64x128xf32>
    %cst_50 = arith.constant 0.000000e+00 : f32
    %124 = vector.broadcast %cst_50 : f32 to vector<64x128xf32>
    %125 = arith.subf %124, %103 : vector<64x128xf32>
    %126 = arith.mulf %125, %103 : vector<64x128xf32>
    %127 = math.exp %126 : vector<64x128xf32>
    %128 = arith.mulf %123, %127 : vector<64x128xf32>
    %cst_51 = arith.constant 1.000000e+00 : f32
    %129 = vector.broadcast %cst_51 : f32 to vector<64x128xf32>
    %130 = arith.subf %129, %128 : vector<64x128xf32>
    %cst_52 = arith.constant 0.000000e+00 : f32
    %131 = vector.broadcast %cst_52 : f32 to vector<64x128xf32>
    %132 = arith.cmpf olt, %102, %131 : vector<64x128xf32>
    %cst_53 = arith.constant 0.000000e+00 : f32
    %133 = vector.broadcast %cst_53 : f32 to vector<64x128xf32>
    %134 = arith.subf %133, %130 : vector<64x128xf32>
    %135 = arith.select %132, %134, %130 : vector<64x128xi1>, vector<64x128xf32>
    %cst_54 = arith.constant 1.000000e+00 : f32
    %136 = vector.broadcast %cst_54 : f32 to vector<64x128xf32>
    %137 = arith.addf %136, %135 : vector<64x128xf32>
    %138 = arith.mulf %100, %137 : vector<64x128xf32>
    %139 = arith.truncf %138 : vector<64x128xf32> to vector<64x128xbf16>
    %c0_55 = arith.constant 0 : index
    %c0_56 = arith.constant 0 : index
    %140 = vector.load %arg12[%c0_55, %c0_56] : memref<128x128xbf16, #tpu.memory_space<vmem>>, vector<128x128xbf16>
    %cst_57 = arith.constant dense<0.000000e+00> : vector<64x128xf32>
    %141 = tpu.matmul %139, %140, %cst_57 {dimension_numbers = #tpu.dot_dimension_numbers<[1], [0], [0], [1], [0, 0, 1, 1], [], []>} : vector<64x128xbf16>, vector<128x128xbf16>, vector<64x128xf32> -> vector<64x128xf32>
    %c0_58 = arith.constant 0 : index
    %c0_59 = arith.constant 0 : index
    %142 = vector.load %arg13[%c0_58, %c0_59] : memref<1x128xf32, #tpu.memory_space<vmem>>, vector<1x128xf32>
    %143 = vector.broadcast %142 : vector<1x128xf32> to vector<64x128xf32>
    %144 = arith.addf %141, %143 : vector<64x128xf32>
    %145 = arith.addf %144, %68 : vector<64x128xf32>
    %146 = vector.shape_cast %145 : vector<64x128xf32> to vector<4x16x128xf32>
    %c0_60 = arith.constant 0 : index
    %c0_61 = arith.constant 0 : index
    %c0_62 = arith.constant 0 : index
    %147 = vector.load %arg14[%c0_60, %c0_61, %c0_62] : memref<4x16x128xf32, #tpu.memory_space<vmem>>, vector<4x16x128xf32>
    tpu.vector_store %arg14[%c0_60, %c0_61, %c0_62], %146 {strides = array<i32>} : memref<4x16x128xf32, #tpu.memory_space<vmem>>, vector<4x16x128xf32>,
    return
  }
  func.func @transform_0(%arg0: i32) -> (i32, i32, i32) {
    %c0_i32 = arith.constant 0 : i32
    %c0_i32_0 = arith.constant 0 : i32
    %c0_i32_1 = arith.constant 0 : i32
    return %arg0, %c0_i32, %c0_i32_0 : i32, i32, i32
  }
  func.func @transform_1(%arg0: i32) -> (i32, i32) {
    %c0_i32 = arith.constant 0 : i32
    %c0_i32_0 = arith.constant 0 : i32
    %c0_i32_1 = arith.constant 0 : i32
    return %c0_i32, %c0_i32_0 : i32, i32
  }
  func.func @transform_2(%arg0: i32) -> (i32, i32) {
    %c0_i32 = arith.constant 0 : i32
    %c0_i32_0 = arith.constant 0 : i32
    %c0_i32_1 = arith.constant 0 : i32
    return %c0_i32, %c0_i32_0 : i32, i32
  }
  func.func @transform_3(%arg0: i32) -> (i32, i32, i32) {
    %c0_i32 = arith.constant 0 : i32
    %c0_i32_0 = arith.constant 0 : i32
    %c0_i32_1 = arith.constant 0 : i32
    %c0_i32_2 = arith.constant 0 : i32
    return %c0_i32, %c0_i32_0, %c0_i32_1 : i32, i32, i32
  }
  func.func @transform_4(%arg0: i32) -> (i32, i32) {
    %c0_i32 = arith.constant 0 : i32
    %c0_i32_0 = arith.constant 0 : i32
    %c0_i32_1 = arith.constant 0 : i32
    return %c0_i32, %c0_i32_0 : i32, i32
  }
  func.func @transform_5(%arg0: i32) -> (i32, i32) {
    %c0_i32 = arith.constant 0 : i32
    %c0_i32_0 = arith.constant 0 : i32
    %c0_i32_1 = arith.constant 0 : i32
    return %c0_i32, %c0_i32_0 : i32, i32
  }
  func.func @transform_6(%arg0: i32) -> (i32, i32) {
    %c0_i32 = arith.constant 0 : i32
    %c0_i32_0 = arith.constant 0 : i32
    %c0_i32_1 = arith.constant 0 : i32
    return %c0_i32, %c0_i32_0 : i32, i32
  }
  func.func @transform_7(%arg0: i32) -> (i32, i32) {
    %c0_i32 = arith.constant 0 : i32
    %c0_i32_0 = arith.constant 0 : i32
    %c0_i32_1 = arith.constant 0 : i32
    return %c0_i32, %c0_i32_0 : i32, i32
  }
  func.func @transform_8(%arg0: i32) -> (i32, i32) {
    %c0_i32 = arith.constant 0 : i32
    %c0_i32_0 = arith.constant 0 : i32
    %c0_i32_1 = arith.constant 0 : i32
    return %c0_i32, %c0_i32_0 : i32, i32
  }
  func.func @transform_9(%arg0: i32) -> (i32, i32) {
    %c0_i32 = arith.constant 0 : i32
    %c0_i32_0 = arith.constant 0 : i32
    %c0_i32_1 = arith.constant 0 : i32
    return %c0_i32, %c0_i32_0 : i32, i32
  }
  func.func @transform_10(%arg0: i32) -> (i32, i32) {
    %c0_i32 = arith.constant 0 : i32
    %c0_i32_0 = arith.constant 0 : i32
    %c0_i32_1 = arith.constant 0 : i32
    return %c0_i32, %c0_i32_0 : i32, i32
  }
  func.func @transform_11(%arg0: i32) -> (i32, i32) {
    %c0_i32 = arith.constant 0 : i32
    %c0_i32_0 = arith.constant 0 : i32
    %c0_i32_1 = arith.constant 0 : i32
    return %c0_i32, %c0_i32_0 : i32, i32
  }
  func.func @transform_12(%arg0: i32) -> (i32, i32) {
    %c0_i32 = arith.constant 0 : i32
    %c0_i32_0 = arith.constant 0 : i32
    %c0_i32_1 = arith.constant 0 : i32
    return %c0_i32, %c0_i32_0 : i32, i32
  }
  func.func @transform_13(%arg0: i32) -> (i32, i32, i32) {
    %c0_i32 = arith.constant 0 : i32
    %c0_i32_0 = arith.constant 0 : i32
    %c0_i32_1 = arith.constant 0 : i32
    return %arg0, %c0_i32, %c0_i32_0 : i32, i32, i32
  }
}

</mosaic_0001>

<bundles_post_ra>
// kernel: tpu_custom_call.1
= control target key start
LH: loop header
LB: loop body
LE: loop exit
PB: predicated region body
PF: predicated region fallthrough
CT: control target
= control target key end

     0   :  { %s10953_s0 = inlined_call_operand.hbm [shape: f32[8,16,128], index: 0, kind: input, shape index: {}]   ;;  %s10954_s1 = inlined_call_operand.hbm [shape: bf16[128,384], index: 1, kind: input, shape index: {}]   ;;  %s10955_s2 = inlined_call_operand.vmem [shape: f32[1,384], index: 2, kind: input, shape index: {}]   ;;  %s10956_s3 = inlined_call_operand.hbm [shape: bf16[4,32,128], index: 3, kind: input, shape index: {}]   ;;  %s10957_s4 = inlined_call_operand.vmem [shape: f32[1,128], index: 4, kind: input, shape index: {}]   ;;  %s10958_s5 = inlined_call_operand.vmem [shape: f32[1,128], index: 5, kind: input, shape index: {}]   ;;  %s10959_s6 = inlined_call_operand.vmem [shape: f32[1,128], index: 6, kind: input, shape index: {}]   ;;  %s10960_s7 = inlined_call_operand.vmem [shape: f32[1,128], index: 7, kind: input, shape index: {}]   ;;  %s10961_s8 = inlined_call_operand.vmem [shape: f32[1,128], index: 8, kind: input, shape index: {}]   ;;  %s10962_s9 = inlined_call_operand.hbm [shape: bf16[128,128], index: 9, kind: input, shape index: {}]   ;;  %s10963_s10 = inlined_call_operand.vmem [shape: f32[1,128], index: 10, kind: input, shape index: {}]   ;;  %s10964_s11 = inlined_call_operand.hbm [shape: bf16[128,128], index: 11, kind: input, shape index: {}]   ;;  %s10965_s12 = inlined_call_operand.vmem [shape: f32[1,128], index: 12, kind: input, shape index: {}]   ;;  %s10966_s13 = inlined_call_operand.hbm [shape: f32[8,16,128], index: 13, kind: output, shape index: {}]  }
   0x1   :  { %11006 = sst [smem:[#allocation46_spill]] %s10957_s4 }
   0x2   :  { %11007 = sst [smem:[#allocation47_spill]] %s10960_s7 }
   0x3   :  { %11008 = sst [smem:[#allocation48_spill]] %s10961_s8 }
   0x4   :  { %11009 = sst [smem:[#allocation49_spill]] %s10963_s10 }
   0x5   :  { %11010 = sst [smem:[#allocation50_spill]] %s10965_s12 }
   0x6   :  { %11011 = sst [smem:[#allocation51_spill]] %s10966_s13 }
   0x7   :  { %18 = vsyncpa [#allocation3], 0 }
   0x8   :  { %20 = vsyncpa [#allocation3 + $0x1], 0 }
   0x9   :  { %21 = vsyncpa [#allocation6], 0 }
   0xa   :  { %22 = vsyncpa [#allocation9], 0 }
   0xb   :  { %23 = vsyncpa [#allocation4], 0 }
   0xc   :  { %25 = vsyncpa [#allocation4 + $0x1], 0  ;;  %s8530_s25 = smov 0   ;;  %s8532_s26 = smov 0  }
   0xd   :  { %s8534_s27 = smov 0   ;;  %s8536_s28 = smov 0  }
   0xe LB: > { %11012 = sst [smem:[#allocation16_spill]] %s8424_s25  ;;  %s8551_s29 = sadd.s32 4294967295, %s8436_s28   ;;  %s8436_s28 = sphi %s8536_s28, %s11158_s28   ;;  %s8432_s27 = sphi %s8534_s27, %s11157_s27   ;;  %s8428_s26 = sphi %s8532_s26, %s11156_s26   ;;  %s8424_s25 = sphi %s8530_s25, %s11155_s25  }
   0xf   : > { %s7222_s30 = sadd.s32 4294967294, %s8436_s28   ;;  %p51_p0 = scmp.ne.s32.totalorder %s8428_s26, %s8424_s25 }
  0x10   : > { %p10970_p1 = scmp.eq.s32.totalorder %s8551_s29, 0  ;;  %p333_p3 = scmp.eq.s32.totalorder %s7222_s30, 1 }
  0x11   : > { %p7223_p5 = scmp.ge.s32.totalorder %s8436_s28, 1  ;;  %p340_p7 = scmp.lt.s32.totalorder %s8436_s28, 3 }
  0x12   : > { %p8560_p4 = por %p10970_p1, %p51_p0  ;;  %p8565_p6 = por %p333_p3, %p51_p0 }
  0x13   : > { %p8570_p8 = pnand %p7223_p5, %p340_p7  ;;  %s8438_s17 = smov [#allocation5]  }
  0x14   : > { %s11013_s14 = scalar_select %p8560_p4, 1, 0 }
  0x15   : > { %s11014_s15 = scalar_select %p8565_p6, 1, 0 }
  0x16   : > { %s11016_s16 = scalar_select %p8570_p8, 1, 0 }
  0x17   : > { %11015 = sst [smem:[#allocation17_spill]] %s11014_s15  ;;  %s352_s18 = sshll.u32 %s8438_s17, 4  ;;  %s353_s18 = int_to_ptr.vmem [resolvable:$true] %s352_s18 }
  0x18   : > { %p7881_p9 = pneg %p8570_p8  ;;  %s8439_s20 = smov [#allocation8]  }
  0x19   : > { %s396_s21 = sshll.u32 %s8439_s20, 4  ;;  %s8220_s24 = scalar_lea.hbm %s10954_s1, 3072  ;;  %s397_s21 = int_to_ptr.vmem [resolvable:$true] %s396_s21 }
  0x1a   : > { %p8579_p11 = pnand %p7881_p9, %p10970_p1  ;;  %p8221_p12 = scmp.ne.s32.totalorder %s10954_s1, %s8220_s24 }
  0x1b   : > { %p8227_p5 = scmp.lt.u32.totalorder %s8220_s24, %s10954_s1 }
  0x1c   : > { %p8591_p13 = pneg %p8579_p11 }
  0x1e   : > { %p8223_p0 = pnand %p8591_p13, %p8221_p12 }
  0x20   : > { %p8224_p3 = pneg %p8223_p0 }
  0x22   : > { %p8229_p7 = pnand %p8227_p5, %p8224_p3 }
  0x24   : > { %8232 = shalt.err (!%p8229_p7)
}
  0x25   : > { %s8233_s20 = scalar_lea.vmem %s353_s18, 3072  ;;  %p8241_p2 = scmp.lt.s32.totalorder %s353_s18, %s353_s18 }
  0x26   : > { %p8234_p9 = scmp.ne.s32.totalorder %s353_s18, %s8233_s20  ;;  %p8242_p6 = scmp.lt.s32.totalorder %s8233_s20, %s8233_s20 }
  0x28   : > { %p8236_p10 = pnand %p8234_p9, %p8591_p13  ;;  %p8243_p4 = por %p8242_p6, %p8241_p2 }
  0x2a   : > { %p8237_p1 = pneg %p8236_p10 }
  0x2c   : > { %p8244_p8 = pnand %p8243_p4, %p8237_p1 }
  0x2e   : > { %8247 = shalt.err (!%p8244_p8)
}
  0x2f   : > { %s8440_s15 = smov 192   ;;  %s8441_s22 = smov 12  }
  0x30   : > { %7884 = dma.hbm_to_vmem [thread:$0]  (!%p8579_p11), %s10954_s1, 3072, %s353_s18, [#allocation6], %s8440_s15, %s8440_s15, %s8441_s22  }
  0x31   : > { %s8442_s23 = smov [#allocation7]   ;;  %s8248_s10 = scalar_lea.hbm %s10962_s9, 1024 }
  0x32   : > { %s368_s24 = sshll.u32 %s8442_s23, 4  ;;  %p8249_p1 = scmp.ne.s32.totalorder %s10962_s9, %s8248_s10  ;;  %s369_s24 = int_to_ptr.vmem [resolvable:$true] %s368_s24 }
  0x33   : > { %p8255_p6 = scmp.lt.u32.totalorder %s8248_s10, %s10962_s9 }
  0x34   : > { %p8251_p2 = pnand %p8249_p1, %p8591_p13 }
  0x36   : > { %p8252_p4 = pneg %p8251_p2 }
  0x38   : > { %p8257_p8 = pnand %p8255_p6, %p8252_p4 }
  0x3a   : > { %8260 = shalt.err (!%p8257_p8)
}
  0x3b   : > { %s8261_s18 = scalar_lea.vmem %s397_s21, 1024  ;;  %p8269_p3 = scmp.lt.s32.totalorder %s397_s21, %s397_s21 }
  0x3c   : > { %p8262_p10 = scmp.ne.s32.totalorder %s397_s21, %s8261_s18  ;;  %p8270_p5 = scmp.lt.s32.totalorder %s8261_s18, %s8261_s18 }
  0x3e   : > { %p8264_p12 = pnand %p8262_p10, %p8591_p13  ;;  %p8271_p7 = por %p8270_p5, %p8269_p3 }
  0x40   : > { %p8265_p0 = pneg %p8264_p12 }
  0x42   : > { %p8272_p9 = pnand %p8271_p7, %p8265_p0 }
  0x44   : > { %8275 = shalt.err (!%p8272_p9)
}
  0x45   : > { %s8443_s8 = smov 64   ;;  %s8444_s12 = smov 4  }
  0x46   : > { %7890 = dma.hbm_to_vmem [thread:$0]  (!%p8579_p11), %s10962_s9, 1024, %s397_s21, [#allocation9], %s8443_s8, %s8443_s8, %s8444_s12  }
  0x47   : > { %s8276_s22 = scalar_lea.hbm %s10956_s3, 1024 }
  0x48   : > { %p8277_p1 = scmp.ne.s32.totalorder %s10956_s3, %s8276_s22  ;;  %p8283_p6 = scmp.lt.u32.totalorder %s8276_s22, %s10956_s3 }
  0x4a   : > { %p8279_p2 = pnand %p8277_p1, %p8591_p13 }
  0x4c   : > { %p8280_p4 = pneg %p8279_p2 }
  0x4e   : > { %p8285_p8 = pnand %p8283_p6, %p8280_p4 }
  0x50   : > { %8288 = shalt.err (!%p8285_p8)
}
  0x51   : > { %s8289_s20 = scalar_lea.vmem %s369_s24, 1024  ;;  %p8297_p3 = scmp.lt.s32.totalorder %s369_s24, %s369_s24 }
  0x52   : > { %p8290_p10 = scmp.ne.s32.totalorder %s369_s24, %s8289_s20  ;;  %p8298_p5 = scmp.lt.s32.totalorder %s8289_s20, %s8289_s20 }
  0x54   : > { %p8292_p12 = pnand %p8290_p10, %p8591_p13  ;;  %p8299_p7 = por %p8298_p5, %p8297_p3 }
  0x56   : > { %p8293_p0 = pneg %p8292_p12 }
  0x58   : > { %p8300_p9 = pnand %p8299_p7, %p8293_p0 }
  0x5a   : > { %8303 = shalt.err (!%p8300_p9)
}
  0x5b   : > { %7887 = dma.hbm_to_vmem [thread:$0]  (!%p8579_p11), %s10956_s3, 1024, %s369_s24, [#allocation6], %s8443_s8, %s8443_s8, %s8444_s12  }
  0x5c   : > { %s8445_s4 = smov [#allocation10]   ;;  %s8304_s22 = scalar_lea.hbm %s10964_s11, 1024 }
  0x5d   : > { %s412_s7 = sshll.u32 %s8445_s4, 4  ;;  %p8305_p1 = scmp.ne.s32.totalorder %s10964_s11, %s8304_s22  ;;  %s413_s7 = int_to_ptr.vmem [resolvable:$true] %s412_s7 }
  0x5e   : > { %p8311_p6 = scmp.lt.u32.totalorder %s8304_s22, %s10964_s11 }
  0x5f   : > { %p8307_p2 = pnand %p8305_p1, %p8591_p13 }
  0x61   : > { %p8308_p4 = pneg %p8307_p2 }
  0x63   : > { %p8313_p8 = pnand %p8311_p6, %p8308_p4 }
  0x65   : > { %8316 = shalt.err (!%p8313_p8)
}
  0x66   : > { %s8317_s24 = scalar_lea.vmem %s413_s7, 1024  ;;  %p8325_p3 = scmp.lt.s32.totalorder %s413_s7, %s413_s7 }
  0x67   : > { %p8318_p10 = scmp.ne.s32.totalorder %s413_s7, %s8317_s24  ;;  %p8326_p5 = scmp.lt.s32.totalorder %s8317_s24, %s8317_s24 }
  0x69   : > { %p8320_p12 = pnand %p8318_p10, %p8591_p13  ;;  %p8327_p7 = por %p8326_p5, %p8325_p3 }
  0x6b   : > { %p8321_p0 = pneg %p8320_p12 }
  0x6d   : > { %p8328_p9 = pnand %p8327_p7, %p8321_p0 }
  0x6f   : > { %8331 = shalt.err (!%p8328_p9)
}
  0x70   : > { %7893 = dma.hbm_to_vmem [thread:$0]  (!%p8579_p11), %s10964_s11, 1024, %s413_s7, [#allocation9], %s8443_s8, %s8443_s8, %s8444_s12  }
  0x71   : > { %s8671_s17 = sadd.s32 1, %s8436_s28   ;;  %s38_s19 = sadd.s32 1, %s8432_s27 }
  0x72   : > { %s35_s18 = ssub.s32 %s8436_s28, %s8671_s17  ;;  %p45_p13 = scmp.ne.s32.totalorder %s8432_s27, %s8428_s26 }
  0x73   : > { %p36_p1 = scmp.eq.s32.totalorder %s35_s18, 0  ;;  %p46_p2 = scmp.eq.s32.totalorder %s8436_s28, 0 }
  0x74   : > { %p11019_p4 = scmp.eq.s32.totalorder %s8551_s29, 1  ;;  %p7906_p8 = scmp.lt.s32.totalorder %s8436_s28, 2 }
  0x75   : > { %s8687_s10 = scalar_select %p36_p1, %s8432_s27, %s38_s19  }
  0x76   : > { %p8681_p6 = por %p11019_p4, %p45_p13  ;;  %p47_p10 = por %p46_p2, %p45_p13 }
  0x77   : > { %s429_s15 = sand.u32 1, %s8432_s27   ;;  %s7398_s8 = sshll.u32 %s8436_s28, 10 }
  0x78   : > { %s7229_s22 = sshll.u32 %s429_s15, 6  ;;  %s8694_s13 = scalar_lea.hbm %s10953_s0, %s7398_s8 }
  0x79   : > { %s433_s25 = scalar_lea.vmem [#allocation2], %s7229_s22  ;;  %p8698_p11 = pnand %p7906_p8, %p47_p10 }
  0x7a   : > { %s441_s23 = sshll.u32 %s433_s25, 4  ;;  %s8702_s24 = scalar_lea.sflag [#allocation3], %s429_s15  ;;  %s8696_s23 = int_to_ptr.vmem [resolvable:$true] %s441_s23 }
  0x7b   : > { %s8332_s20 = scalar_lea.hbm %s8694_s13, 1024  ;;  %p8334_p0 = pneg %p8698_p11 }
  0x7c   : > { %p8333_p12 = scmp.ne.s32.totalorder %s8694_s13, %s8332_s20  ;;  %s8337_s18 = scalar_lea.hbm %s10953_s0, 2048 }
  0x7d   : > { %p8338_p7 = scmp.lt.u32.totalorder %s8694_s13, %s10953_s0  ;;  %p8339_p9 = scmp.lt.u32.totalorder %s8337_s18, %s8332_s20 }
  0x7e   : > { %p8335_p3 = pnand %p8334_p0, %p8333_p12  ;;  %p8341_p1 = scmp.lt.u32.totalorder %s8332_s20, %s8694_s13 }
  0x7f   : > { %p8340_p13 = por %p8339_p9, %p8338_p7 }
  0x80   : > { %p8336_p5 = pneg %p8335_p3 }
  0x81   : > { %p8342_p2 = por %p8341_p1, %p8340_p13 }
  0x83   : > { %p8343_p4 = pnand %p8342_p2, %p8336_p5 }
  0x85   : > { %8346 = shalt.err (!%p8343_p4)
}
  0x86   : > { %s8347_s15 = scalar_lea.vmem %s8696_s23, 1024  ;;  %s8446_s12 = smov [#allocation2]  }
  0x87   : > { %p8348_p8 = scmp.ne.s32.totalorder %s8696_s23, %s8347_s15  ;;  %s8352_s7 = sshll.u32 %s8446_s12, 4  ;;  %s8353_s7 = int_to_ptr.vmem [resolvable:$false] %s8352_s7 }
  0x88   : > { %s8354_s25 = scalar_lea.vmem %s8353_s7, 2048  ;;  %p8355_p3 = scmp.lt.s32.totalorder %s8696_s23, %s8353_s7 }
  0x89   : > { %p8350_p10 = pnand %p8348_p8, %p8334_p0  ;;  %p8356_p7 = scmp.lt.s32.totalorder %s8354_s25, %s8347_s15 }
  0x8b   : > { %p8351_p12 = pneg %p8350_p10  ;;  %p8357_p9 = por %p8356_p7, %p8355_p3 }
  0x8d   : > { %p8358_p13 = pnand %p8357_p9, %p8351_p12 }
  0x8f   : > { %8361 = shalt.err (!%p8358_p13)
}
  0x90   : > { %s8447_s20 = smov 128   ;;  %s8448_s21 = smov 8  }
  0x91   : > { %7897 = dma.hbm_to_vmem [thread:$0]  (!%p8698_p11), %s8694_s13, 1024, %s8696_s23, %s8702_s24, %s8447_s20, %s8447_s20, %s8448_s21  }
  0x92   : > { %p11022_p0 = scmp.ne.s32.totalorder %s11016_s16, 0 }
  0x94   : > { %453 = sbr.rel (%p11022_p0) target bundleno = 2850 (0xb22), region = 72 }
  0x9b   : > { %s8733_s19 = sand.u32 1, %s8428_s26   ;;  %p11023_p5 = scmp.ne.s32.totalorder %s11013_s14, 0 }
  0x9c   : > { %s7234_s18 = sshll.u32 %s8733_s19, 6  ;;  %s456_s22 = scalar_lea.sflag [#allocation3], %s8733_s19 }
  0x9d   : > { %s8739_s8 = scalar_lea.vmem [#allocation2], %s7234_s18 }
  0x9e   : > { %8407 = dma.done.wait (%p11023_p5), %s456_s22, 1024  }
  0x9f   : > { %8409 = vsyncadd (%p11023_p5), %s456_s22, 4294966272  ;;  %p11024_p11 = scmp.eq.s32.totalorder %s8551_s29, 0 }
  0xa1   : > { %8411 = dma.done.wait (%p11024_p11), [#allocation6], 4096   ;;  %p11025_p1 = pmov %p11024_p11 }
  0xa3   : > { %8413 = vsyncadd (%p11025_p1), [#allocation6], 4294963200  ;;  %p11026_p2 = pmov %p11025_p1 }
  0xa4   : > { %p11027_p4 = pmov %p11025_p1 }
  0xa5   : > { %8415 = dma.done.wait (%p11026_p2), [#allocation9], 2048  }
  0xa6   : > { %8417 = vsyncadd (%p11027_p4), [#allocation9], 4294965248  ;;  %v521_v0 = vld [vmem:[%s8739_s8] sm:$0xff]  ;;  %v523_v1 = vld [vmem:[%s8739_s8 + $0x10] sm:$0xff]  ;;  %v8449_v63 = vmov 0   ;;  %s8450_s15 = smov 64  }
  0xa7   : > { %531 = vadd.xlane.f32.xlu0 %v521_v0  ;;  %535 = vadd.xlane.f32.xlu1 %v523_v1  ;;  %v522_v2 = vld [vmem:[%s8739_s8 + $0x8] sm:$0xff]  ;;  %v524_v3 = vld [vmem:[%s8739_s8 + $0x18] sm:$0xff]  ;;  %v525_v4 = vld [vmem:[%s8739_s8 + $0x20] sm:$0xff]  ;;  %s8451_s12 = smov 96   ;;  %s8452_s7 = smov 32   ;;  %vm8454_vm0 = vmmov 0  }
  0xa8   : > { %v526_v5 = vld [vmem:[%s8739_s8 + $0x28] sm:$0xff]  ;;  %v527_v6 = vld [vmem:[%s8739_s8 + $0x30] sm:$0xff]  ;;  %v528_v7 = vld [vmem:[%s8739_s8 + $0x38] sm:$0xff]  ;;  %861 = vmatprep.mubr.bf16.mxu0 %v8449_v63  ;;  %vm4205_vm1 = vcmask 261120   ;;  %vm4958_vm2 = vcmask 130048   ;;  %s11145_s21 = sld [smem:[#allocation46_spill]] }
  0xa9   : > { %v7964_v8 = vld [vmem:[#allocation5 + $0x4] ss:$12 sps:$4 sm:$0xff]   ;;  %v7966_v9 = vld [vmem:[#allocation5] ss:$12 sps:$4 sm:$0xff]   ;;  %v7967_v10 = vld [vmem:[#allocation5 + $0x1c] ss:$12 sps:$4 sm:$0xff]  }
  0xaa   : > { %v7969_v11 = vld [vmem:[#allocation5 + $0x8] ss:$12 sps:$4 sm:$0xff]   ;;  %829 = vmatprep.subr.bf16.mxu0 %v7964_v8  ;;  %v7970_v44 = vld [vmem:[#allocation5 + $0x18] ss:$12 sps:$4 sm:$0xff]   ;;  %v7973_v46 = vld [vmem:[#allocation5 + $0x20] ss:$12 sps:$4 sm:$0xff]  }
  0xab   : > { %533 = vadd.xlane.f32.xlu0 %v522_v2  ;;  %537 = vadd.xlane.f32.xlu1 %v524_v3  ;;  %v7971_v45 = vld [vmem:[#allocation5 + $0x34] ss:$12 sps:$4 sm:$0xff]   ;;  %v7974_v47 = vld [vmem:[#allocation5 + $0x30] ss:$12 sps:$4 sm:$0xff]   ;;  %v7975_v48 = vld [vmem:[#allocation5 + $0x4c] ss:$12 sps:$4 sm:$0xff]  }
  0xac   : > { %830 = vmatpush1.bf16.msra.mxu0 %v7966_v9  ;;  %7525 = vmatprep.subr.bf16.mxu1 %v7969_v11  ;;  %v7977_v49 = vld [vmem:[#allocation5 + $0x38] ss:$12 sps:$4 sm:$0xff]   ;;  %v7978_v50 = vld [vmem:[#allocation5 + $0x48] ss:$12 sps:$4 sm:$0xff]   ;;  %v7981_v52 = vld [vmem:[#allocation5 + $0x50] ss:$12 sps:$4 sm:$0xff]  }
  0xad   : > { %831 = vmatprep.subr.bf16.mxu0 %v7967_v10  ;;  %7526 = vmatpush3.bf16.msra.mxu1 %v7969_v11  ;;  %v7979_v51 = vld [vmem:[#allocation5 + $0x64] ss:$12 sps:$4 sm:$0xff]   ;;  %v7982_v53 = vld [vmem:[#allocation5 + $0x60] ss:$12 sps:$4 sm:$0xff]   ;;  %v7983_v54 = vld [vmem:[#allocation5 + $0x7c] ss:$12 sps:$4 sm:$0xff]  }
  0xae   : > { %7527 = vmatprep.subr.bf16.mxu1 %v7973_v46  ;;  %v7985_v55 = vld [vmem:[#allocation5 + $0x68] ss:$12 sps:$4 sm:$0xff]   ;;  %v7986_v56 = vld [vmem:[#allocation5 + $0x78] ss:$12 sps:$4 sm:$0xff]   ;;  %v7989_v58 = vld [vmem:[#allocation5 + $0x80] ss:$12 sps:$4 sm:$0xff]  }
  0xaf   : > { %539 = vadd.xlane.f32.xlu0 %v525_v4  ;;  %541 = vadd.xlane.f32.xlu1 %v526_v5  ;;  %v7987_v57 = vld [vmem:[#allocation5 + $0x94] ss:$12 sps:$4 sm:$0xff]   ;;  %v7990_v59 = vld [vmem:[#allocation5 + $0x90] ss:$12 sps:$4 sm:$0xff]   ;;  %v7991_v60 = vld [vmem:[#allocation5 + $0xac] ss:$12 sps:$4 sm:$0xff]  }
  0xb0   : > { %832 = vmatpush1.bf16.msra.mxu0 %v7970_v44  ;;  %v7993_v61 = vld [vmem:[#allocation5 + $0x98] ss:$12 sps:$4 sm:$0xff]   ;;  %v7994_v62 = vld [vmem:[#allocation5 + $0xa8] ss:$12 sps:$4 sm:$0xff]   ;;  %s11146_s14 = sld [smem:[#allocation47_spill]]  ;;  %s11147_s23 = sld [smem:[#allocation48_spill]] }
  0xb1   : > { %833 = vmatprep.subr.bf16.mxu0 %v7971_v45  ;;  %7528 = vmatpush3.bf16.msra.mxu1 %v7973_v46  ;;  %s11149_s25 = sld [smem:[#allocation50_spill]]  ;;  %s517_s20 = scalar_lea.vmem [#allocation11], %s7234_s18 }
  0xb2   : > { %7529 = vmatprep.subr.bf16.mxu1 %v7977_v49  ;;  %s7400_s22 = sshll.u32 %s8551_s29, 10  ;;  %s7097_s16 = scalar_lea.sflag [#allocation4], %s8733_s19 }
  0xb3   : > { %543 = vadd.xlane.f32.xlu0 %v527_v6  ;;  %545 = vadd.xlane.f32.xlu1 %v528_v7 }
  0xb4   : > { %834 = vmatpush1.bf16.msra.mxu0 %v7974_v47 }
  0xb5   : > { %835 = vmatprep.subr.bf16.mxu0 %v7975_v48  ;;  %7530 = vmatpush3.bf16.msra.mxu1 %v7977_v49 }
  0xb6   : > { %7531 = vmatprep.subr.bf16.mxu1 %v7981_v52 }
  0xb8   : > { %836 = vmatpush1.bf16.msra.mxu0 %v7978_v50 }
  0xb9   : > { %837 = vmatprep.subr.bf16.mxu0 %v7979_v51  ;;  %7532 = vmatpush3.bf16.msra.mxu1 %v7981_v52 }
  0xba   : > { %7533 = vmatprep.subr.bf16.mxu1 %v7985_v55 }
  0xbc   : > { %838 = vmatpush1.bf16.msra.mxu0 %v7982_v53 }
  0xbd   : > { %839 = vmatprep.subr.bf16.mxu0 %v7983_v54  ;;  %7534 = vmatpush3.bf16.msra.mxu1 %v7985_v55 }
  0xbe   : > { %7535 = vmatprep.subr.bf16.mxu1 %v7989_v58 }
  0xc0   : > { %840 = vmatpush1.bf16.msra.mxu0 %v7986_v56 }
  0xc1   : > { %841 = vmatprep.subr.bf16.mxu0 %v7987_v57  ;;  %7536 = vmatpush3.bf16.msra.mxu1 %v7989_v58 }
  0xc2   : > { %7537 = vmatprep.subr.bf16.mxu1 %v7993_v61 }
  0xc4   : > { %842 = vmatpush1.bf16.msra.mxu0 %v7990_v59 }
  0xc5   : > { %843 = vmatprep.subr.bf16.mxu0 %v7991_v60  ;;  %7538 = vmatpush3.bf16.msra.mxu1 %v7993_v61 }
  0xc8   : > { %844 = vmatpush1.bf16.msra.mxu0 %v7994_v62 }
 0x134   : > { %v532_v12 = vpop.xlane.xlu0 %531  ;;  %v536_v13 = vpop.xlane.xlu1 %535 }
 0x135   : > { %v548_v14 = vmul.f32 0.0078125, %v532_v12  ;;  %v550_v15 = vmul.f32 0.0078125, %v536_v13 }
 0x137   : > { %v8761_v16 = vsub.f32 %v521_v0, %v548_v14  ;;  %v8763_v17 = vsub.f32 %v523_v1, %v550_v15  ;;  %v7995_v0 = vld [vmem:[#allocation5 + $0xb0] ss:$12 sps:$4 sm:$0xff]  }
 0x138   : > { %v534_v18 = vpop.xlane.xlu0 %533  ;;  %v538_v19 = vpop.xlane.xlu1 %537  ;;  %7539 = vmatprep.subr.bf16.mxu1 %v7995_v0 }
 0x139   : > { %v549_v20 = vmul.f32 0.0078125, %v534_v18  ;;  %v564_v21 = vmul.f32 %v8761_v16, %v8761_v16  ;;  %v551_v22 = vmul.f32 0.0078125, %v538_v19  ;;  %v566_v23 = vmul.f32 %v8763_v17, %v8763_v17  ;;  %7540 = vmatpush3.bf16.msra.mxu1 %v7995_v0 }
 0x13b   : > { %572 = vadd.xlane.f32.xlu0 %v564_v21  ;;  %v8769_v24 = vsub.f32 %v522_v2, %v549_v20  ;;  %v8771_v25 = vsub.f32 %v524_v3, %v551_v22 }
 0x13c   : > { %v540_v26 = vpop.xlane.xlu0 %539  ;;  %v542_v27 = vpop.xlane.xlu1 %541 }
 0x13d   : > { %v552_v28 = vmul.f32 0.0078125, %v540_v26  ;;  %v565_v29 = vmul.f32 %v8769_v24, %v8769_v24  ;;  %v553_v30 = vmul.f32 0.0078125, %v542_v27  ;;  %v567_v31 = vmul.f32 %v8771_v25, %v8771_v25 }
 0x13f   : > { %576 = vadd.xlane.f32.xlu0 %v566_v23  ;;  %574 = vadd.xlane.f32.xlu1 %v565_v29  ;;  %v8777_v32 = vsub.f32 %v525_v4, %v552_v28  ;;  %v8779_v33 = vsub.f32 %v526_v5, %v553_v30  ;;  %v7240_v30 = vld [vmem:[%s10958_s5] ss:$0 sm:$0xff] }
 0x140   : > { %v544_v34 = vpop.xlane.xlu0 %543  ;;  %v546_v35 = vpop.xlane.xlu1 %545 }
 0x141   : > { %v554_v36 = vmul.f32 0.0078125, %v544_v34  ;;  %v568_v37 = vmul.f32 %v8777_v32, %v8777_v32  ;;  %v555_v38 = vmul.f32 0.0078125, %v546_v35  ;;  %v569_v39 = vmul.f32 %v8779_v33, %v8779_v33 }
 0x143   : > { %578 = vadd.xlane.f32.xlu1 %v567_v31  ;;  %580 = vadd.xlane.f32.xlu0 %v568_v37  ;;  %v8785_v40 = vsub.f32 %v527_v6, %v554_v36  ;;  %v8787_v41 = vsub.f32 %v528_v7, %v555_v38  ;;  %v7241_v38 = vld [vmem:[%s10959_s6] ss:$0 sm:$0xff] }
 0x145   : > { %v570_v42 = vmul.f32 %v8785_v40, %v8785_v40  ;;  %v571_v43 = vmul.f32 %v8787_v41, %v8787_v41 }
 0x147   : > { %582 = vadd.xlane.f32.xlu1 %v569_v39  ;;  %584 = vadd.xlane.f32.xlu0 %v570_v42 }
 0x14b   : > { %586 = vadd.xlane.f32.xlu1 %v571_v43 }
 0x1c8   : > { %v573_v1 = vpop.xlane.xlu0 %572 }
 0x1c9   : > { %v588_v2 = vmul.f32 0.0078125, %v573_v1 }
 0x1cb   : > { %v596_v3 = vadd.f32 1e-06, %v588_v2 }
 0x1cc   : > { %v575_v4 = vpop.xlane.xlu1 %574  ;;  %v577_v5 = vpop.xlane.xlu0 %576 }
 0x1cd   : > { %8020 = vrsqrt.f32 %v596_v3  ;;  %v589_v6 = vmul.f32 0.0078125, %v575_v4  ;;  %v590_v7 = vmul.f32 0.0078125, %v577_v5  ;;  %v684_v3 = vld [vmem:[%s10955_s2] sm:$0x7] }
 0x1cf   : > { %v597_v8 = vadd.f32 1e-06, %v589_v6  ;;  %v598_v9 = vadd.f32 1e-06, %v590_v7 }
 0x1d0   : > { %v579_v10 = vpop.xlane.xlu1 %578  ;;  %v581_v11 = vpop.xlane.xlu0 %580 }
 0x1d1   : > { %8022 = vrsqrt.f32 %v597_v8  ;;  %v591_v12 = vmul.f32 0.0078125, %v579_v10  ;;  %v592_v13 = vmul.f32 0.0078125, %v581_v11 }
 0x1d2   : > { %8024 = vrsqrt.f32 %v598_v9 }
 0x1d3   : > { %v599_v14 = vadd.f32 1e-06, %v591_v12  ;;  %v600_v15 = vadd.f32 1e-06, %v592_v13 }
 0x1d4   : > { %v583_v18 = vpop.xlane.xlu1 %582  ;;  %v585_v19 = vpop.xlane.xlu0 %584 }
 0x1d5   : > { %8026 = vrsqrt.f32 %v599_v14  ;;  %v593_v20 = vmul.f32 0.0078125, %v583_v18  ;;  %v594_v21 = vmul.f32 0.0078125, %v585_v19 }
 0x1d6   : > { %8028 = vrsqrt.f32 %v600_v15 }
 0x1d7   : > { %v8021_v22 = vpop.eup %8020  ;;  %v601_v23 = vadd.f32 1e-06, %v593_v20  ;;  %v602_v26 = vadd.f32 1e-06, %v594_v21 }
 0x1d8   : > { %v587_v27 = vpop.xlane.xlu1 %586  ;;  %v612_v28 = vmul.f32 %v8021_v22, %v8761_v16 }
 0x1d9   : > { %8030 = vrsqrt.f32 %v601_v23  ;;  %v595_v29 = vmul.f32 0.0078125, %v587_v27 }
 0x1da   : > { %8032 = vrsqrt.f32 %v602_v26  ;;  %v626_v37 = vmul.f32 %v7240_v30, %v612_v28 }
 0x1db   : > { %v8023_v31 = vpop.eup %8022  ;;  %v603_v34 = vadd.f32 1e-06, %v595_v29 }
 0x1dc   : > { %v8025_v35 = vpop.eup %8024  ;;  %v613_v36 = vmul.f32 %v8023_v31, %v8769_v24  ;;  %v640_v45 = vadd.f32 %v7241_v38, %v626_v37 }
 0x1dd   : > { %8034 = vrsqrt.f32 %v603_v34  ;;  %v614_v16 = vmul.f32 %v8025_v35, %v8763_v17 }
 0x1de   : > { %v627_v39 = vmul.f32 %v7240_v30, %v613_v36 }
 0x1df   : > { %v8027_v42 = vpop.eup %8026  ;;  %v628_v43 = vmul.f32 %v7240_v30, %v614_v16 }
 0x1e0   : > { %v8029_v44 = vpop.eup %8028  ;;  %v641_v46 = vadd.f32 %v7241_v38, %v627_v39  ;;  %v615_v47 = vmul.f32 %v8027_v42, %v8771_v25 }
 0x1e1   : > { %v616_v48 = vmul.f32 %v8029_v44, %v8777_v32  ;;  %v642_v51 = vadd.f32 %v7241_v38, %v628_v43 }
 0x1e2   : > { %v648_v49 = vpack.c.bf16 %v641_v46, %v640_v45  ;;  %v629_v24 = vmul.f32 %v7240_v30, %v615_v47 }
 0x1e3   : > { %v8031_v50 = vpop.eup %8030  ;;  %v630_v54 = vmul.f32 %v7240_v30, %v616_v48 }
 0x1e4   : > { %v8033_v52 = vpop.eup %8032  ;;  %862 = vmatmul.mubr.bf16.vlgmr.msra.gmra.mrb[0].mxu0 %v648_v49  ;;  %7541 = vmatprep.mubr.bf16.mxu1 %v648_v49  ;;  %v643_v53 = vadd.f32 %v7241_v38, %v629_v24  ;;  %v617_v17 = vmul.f32 %v8031_v50, %v8779_v33 }
 0x1e5   : > { %871 = vmatprep.mubr.bf16.mxu0 %v8449_v63  ;;  %v618_v55 = vmul.f32 %v8033_v52, %v8785_v40  ;;  %v644_v32 = vadd.f32 %v7241_v38, %v630_v54  ;;  %v686_v40 = vlaneseq }
 0x1e6   : > { %v649_v56 = vpack.c.bf16 %v643_v53, %v642_v51  ;;  %v631_v57 = vmul.f32 %v7240_v30, %v617_v17 }
 0x1e7   : > { %v8035_v25 = vpop.eup %8034  ;;  %v632_v60 = vmul.f32 %v7240_v30, %v618_v55  ;;  %v8811_v2 = vshrl.u32 %v686_v40, 7 }
 0x1e8   : > { %7542 = vmatmul.mubr.bf16.vlgmr.msra.gmra.mrb[0].mxu1 %v649_v56  ;;  %v645_v58 = vadd.f32 %v7241_v38, %v631_v57  ;;  %v619_v59 = vmul.f32 %v8035_v25, %v8787_v41 }
 0x1e9   : > { %v646_v0 = vadd.f32 %v7241_v38, %v632_v60  ;;  %v688_v41 = vsub.s32 0, %v8811_v2  ;;  %v692_v4 = vsub.s32 1, %v8811_v2  ;;  %v696_v6 = vsub.s32 2, %v8811_v2 }
 0x1ea   : > { %v650_v61 = vpack.c.bf16 %v645_v58, %v644_v32  ;;  %v633_v62 = vmul.f32 %v7240_v30, %v619_v59 }
 0x1eb   : > { %v8818_v5 = vrot.slane %v684_v3, %v688_v41  ;;  %v8821_v8 = vrot.slane %v684_v3, %v692_v4  ;;  %v697_v14 = vrot.slane %v684_v3, %v696_v6 }
 0x1ec   : > { %872 = vmatmul.mubr.bf16.gmra.mrb[4].mxu0 %v649_v56  ;;  %7545 = vmatprep.mubr.bf16.mxu1 %v650_v61  ;;  %v647_v33 = vadd.f32 %v7241_v38, %v633_v62 }
 0x1ed   : > { %881 = vmatprep.mubr.bf16.mxu0 %v8449_v63 }
 0x1ee   : > { %v651_v1 = vpack.c.bf16 %v647_v33, %v646_v0 }
 0x1f0   : > { %7546 = vmatmul.mubr.bf16.gmra.mrb[4].mxu1 %v651_v1 }
 0x1f4   : > { %882 = vmatmul.mubr.bf16.gmra.mrb[8].mxu0 %v650_v61 }
 0x1f5   : > { %891 = vmatprep.mubr.bf16.mxu0 %v8449_v63 }
 0x1fc   : > { %892 = vmatmul.mubr.bf16.gmra.mrb[12].mxu0 %v651_v1 }
 0x2b7   : > { %v863_v7 = vpop.f32.mrb[0].mxu0 }
 0x2b8   : > { %v865_v9 = vpop.f32.mrb[1].mxu0  ;;  %v864_v11 = vadd.f32 %v863_v7, %v8818_v5 }
 0x2b9   : > { %v867_v10 = vpop.f32.mrb[2].mxu0  ;;  %v866_v15 = vadd.f32 %v865_v9, %v8821_v8 }
 0x2ba   : > { %v868_v12 = vadd.f32 %v867_v10, %v8818_v5  ;;  %v869_v13 = vpop.f32.mrb[3].mxu0 }
 0x2bb   : > { %v870_v18 = vadd.f32 %v869_v13, %v8821_v8  ;;  %v7543_v19 = vpop.f32.mrb[0].mxu1 }
 0x2bc   : > { %v8827_v20 = vpack.c.bf16 %v868_v12, %v864_v11  ;;  %v936_v21 = vpop.f32.mrb[1].mxu1  ;;  %v945_v26 = vadd.f32 %v7543_v19, %v697_v14  ;;  %v8456_v11 = vmov 1934713408  }
 0x2bd   : > { %v8829_v22 = vpack.c.bf16 %v870_v18, %v866_v15  ;;  %v7544_v23 = vpop.f32.mrb[2].mxu1  ;;  %v937_v29 = vadd.f32 %v936_v21, %v697_v14  ;;  %v1110_v12 = vunpack.c.l.s4 %v8456_v11 }
 0x2be   : > { %v948_v27 = vadd.f32 %v7544_v23, %v697_v14  ;;  %991 = vrot.lane.b32.xlu0 %v8827_v20, %s8450_s15  ;;  %983 = vrot.lane.b32.xlu1 %v8827_v20, %s8451_s12  ;;  %v939_v28 = vpop.f32.mrb[3].mxu1 }
 0x2bf   : > { %v940_v30 = vadd.f32 %v939_v28, %v697_v14  ;;  %v873_v31 = vpop.f32.mrb[4].mxu0  ;;  %v1111_v21 = vunpack.c.0.s8 %v1110_v12 }
 0x2c0   : > { %v8835_v34 = vpack.c.bf16 %v948_v27, %v945_v26  ;;  %v875_v35 = vpop.f32.mrb[5].mxu0  ;;  %v874_v38 = vadd.f32 %v873_v31, %v8818_v5  ;;  %v1011_v26 = vshrl.u32 %v8827_v20, 16 }
 0x2c1   : > { %v8837_v36 = vpack.c.bf16 %v940_v30, %v937_v29  ;;  %v877_v37 = vpop.f32.mrb[6].mxu0  ;;  %v876_v42 = vadd.f32 %v875_v35, %v8821_v8 }
 0x2c2   : > { %11028 = vst [vmem:[#allocation18_spill] sm:$0xff] %v8835_v34  ;;  %v878_v16 = vadd.f32 %v877_v37, %v8818_v5  ;;  %2057 = vrot.lane.b32.xlu0 %v8829_v22, %s8451_s12  ;;  %999 = vrot.lane.b32.xlu1 %v8827_v20, %s8452_s7  ;;  %v879_v39 = vpop.f32.mrb[7].mxu0 }
 0x2c3   : > { %v880_v43 = vadd.f32 %v879_v39, %v8821_v8  ;;  %v7547_v44 = vpop.f32.mrb[4].mxu1 }
 0x2c4   : > { %v8847_v45 = vpack.c.bf16 %v878_v16, %v874_v38  ;;  %v952_v46 = vpop.f32.mrb[5].mxu1  ;;  %v961_v49 = vadd.f32 %v7547_v44, %v697_v14 }
 0x2c5   : > { %v8849_v47 = vpack.c.bf16 %v880_v43, %v876_v42  ;;  %v7548_v48 = vpop.f32.mrb[6].mxu1  ;;  %v953_v51 = vadd.f32 %v952_v46, %v697_v14 }
 0x2c6   : > { %v964_v24 = vadd.f32 %v7548_v48, %v697_v14  ;;  %2065 = vrot.lane.b32.xlu1 %v8829_v22, %s8450_s15  ;;  %985 = vrot.lane.b32.xlu0 %v8847_v45, %s8451_s12  ;;  %v955_v50 = vpop.f32.mrb[7].mxu1 }
 0x2c7   : > { %v956_v52 = vadd.f32 %v955_v50, %v697_v14  ;;  %v883_v53 = vpop.f32.mrb[8].mxu0  ;;  %v8939_v14 = vpack.i.b16 %v8449_v63, %v8449_v63  ;;  %v8948_v63 = vsub.s32 %v1111_v21, %v8811_v2 }
 0x2c8   : > { %v8855_v17 = vpack.c.bf16 %v964_v24, %v961_v49  ;;  %v885_v54 = vpop.f32.mrb[9].mxu0  ;;  %v884_v57 = vadd.f32 %v883_v53, %v8818_v5 }
 0x2c9   : > { %v8857_v55 = vpack.c.bf16 %v956_v52, %v953_v51  ;;  %v887_v56 = vpop.f32.mrb[10].mxu0  ;;  %v886_v58 = vadd.f32 %v885_v54, %v8821_v8 }
 0x2ca   : > { %11029 = vst [vmem:[#allocation19_spill] sm:$0xff] %v8855_v17  ;;  %v888_v25 = vadd.f32 %v887_v56, %v8818_v5  ;;  %2073 = vrot.lane.b32.xlu1 %v8829_v22, %s8452_s7  ;;  %1001 = vrot.lane.b32.xlu0 %v8847_v45, %s8452_s7  ;;  %v889_v32 = vpop.f32.mrb[11].mxu0 }
 0x2cb   : > { %v890_v59 = vadd.f32 %v889_v32, %v8821_v8  ;;  %v2085_v32 = vshrl.u32 %v8829_v22, 16 }
 0x2cc   : > { %v8867_v60 = vpack.c.bf16 %v888_v25, %v884_v57 }
 0x2cd   : > { %v8869_v61 = vpack.c.bf16 %v890_v59, %v886_v58 }
 0x2ce   : > { %993 = vrot.lane.b32.xlu1 %v8847_v45, %s8450_s15  ;;  %2059 = vrot.lane.b32.xlu0 %v8849_v47, %s8451_s12  ;;  %v1049_v21 = vshrl.u32 %v8867_v60, 16 }
 0x2cf   : > { %v893_v62 = vpop.f32.mrb[12].mxu0 }
 0x2d0   : > { %v895_v0 = vpop.f32.mrb[13].mxu0  ;;  %v894_v1 = vadd.f32 %v893_v62, %v8818_v5 }
 0x2d1   : > { %v897_v33 = vpop.f32.mrb[14].mxu0  ;;  %v896_v3 = vadd.f32 %v895_v0, %v8821_v8 }
 0x2d2   : > { %v898_v40 = vadd.f32 %v897_v33, %v8818_v5  ;;  %2067 = vrot.lane.b32.xlu1 %v8849_v47, %s8450_s15  ;;  %2075 = vrot.lane.b32.xlu0 %v8849_v47, %s8452_s7  ;;  %v899_v41 = vpop.f32.mrb[15].mxu0  ;;  %v10973_v5 = vmov 0.0  }
 0x2d3   : > { %v900_v4 = vadd.f32 %v899_v41, %v8821_v8  ;;  %7549 = vmatprep.subr.bf16.mxu1 %v10973_v5  ;;  %7561 = vmatprep.subr.bf16.mxu0 %v10973_v5  ;;  %v8455_v8 = vmov 1983009808  }
 0x2d4   : > { %v8883_v6 = vpack.c.bf16 %v898_v40, %v894_v1  ;;  %7551 = vmatprep.mubr.msk.bf16.mxu1 %vm8454_vm0, %v10973_v5  ;;  %7563 = vmatprep.mubr.msk.bf16.mxu0 %vm8454_vm0, %v10973_v5  ;;  %v1079_v9 = vunpack.c.l.s4 %v8455_v8 }
 0x2d5   : > { %v8885_v7 = vpack.c.bf16 %v900_v4, %v896_v3 }
 0x2d6   : > { %995 = vrot.lane.b32.xlu1 %v8867_v60, %s8450_s15  ;;  %987 = vrot.lane.b32.xlu0 %v8867_v60, %s8451_s12  ;;  %v1080_v10 = vunpack.c.0.s8 %v1079_v9  ;;  %v1033_v9 = vshrl.u32 %v8847_v45, 16 }
 0x2d8   : > { %v8943_v19 = vsub.s32 %v1080_v10, %v8811_v2 }
 0x2da   : > { %2061 = vrot.lane.b32.xlu1 %v8869_v61, %s8451_s12  ;;  %2069 = vrot.lane.b32.xlu0 %v8869_v61, %s8450_s15 }
 0x2de   : > { %2077 = vrot.lane.b32.xlu1 %v8869_v61, %s8452_s7  ;;  %2071 = vrot.lane.b32.xlu0 %v8885_v7, %s8450_s15 }
 0x2e2   : > { %1003 = vrot.lane.b32.xlu0 %v8867_v60, %s8452_s7  ;;  %2063 = vrot.lane.b32.xlu1 %v8885_v7, %s8451_s12 }
 0x2e6   : > { %2079 = vrot.lane.b32.xlu1 %v8885_v7, %s8452_s7  ;;  %997 = vrot.lane.b32.xlu0 %v8883_v6, %s8450_s15 }
 0x2ea   : > { %3125 = vrot.lane.b32.xlu0 %v8837_v36, %s8451_s12  ;;  %989 = vrot.lane.b32.xlu1 %v8883_v6, %s8451_s12 }
 0x2ee   : > { %3135 = vrot.lane.b32.xlu0 %v8835_v34, %s8450_s15  ;;  %1005 = vrot.lane.b32.xlu1 %v8883_v6, %s8452_s7 }
 0x2f2   : > { %3129 = vrot.lane.b32.xlu0 %v8857_v55, %s8451_s12  ;;  %3133 = vrot.lane.b32.xlu1 %v8837_v36, %s8450_s15 }
 0x2f6   : > { %3141 = vrot.lane.b32.xlu1 %v8837_v36, %s8452_s7 }
 0x2fa   : > { %3127 = vrot.lane.b32.xlu1 %v8835_v34, %s8451_s12 }
 0x2fe   : > { %3143 = vrot.lane.b32.xlu1 %v8835_v34, %s8452_s7 }
 0x302   : > { %3137 = vrot.lane.b32.xlu1 %v8857_v55, %s8450_s15 }
 0x306   : > { %3145 = vrot.lane.b32.xlu1 %v8857_v55, %s8452_s7 }
 0x30a   : > { %3131 = vrot.lane.b32.xlu1 %v8855_v17, %s8451_s12  ;;  %v11037_v17 = vshrl.u32 %v8885_v7, 16 }
 0x330   : > { %v984_v13 = vpop.permute.xlu1 %983  ;;  %v992_v23 = vpop.permute.xlu0 %991 }
 0x331   : > { %v1009_v15 = vpack.i.b16 %v984_v13, %v8827_v20  ;;  %v1012_v18 = vshrl.u32 %v984_v13, 16  ;;  %v1019_v31 = vshrl.u32 %v992_v23, 16 }
 0x333   : > { %v1077_v28 = vcombine.high %v1009_v15, %v8939_v14  ;;  %v1013_v30 = vpack.i.b16 %v1012_v18, %v1011_v26  ;;  %v1084_v37 = vrot.slane %v1009_v15, %v8943_v19 }
 0x334   : > { %v1000_v27 = vpop.permute.xlu1 %999  ;;  %v2058_v50 = vpop.permute.xlu0 %2057 }
 0x335   : > { %v1017_v29 = vpack.i.b16 %v1000_v27, %v992_v23  ;;  %v1020_v35 = vshrl.u32 %v1000_v27, 16  ;;  %v1091_v42 = vrot.slane %v1077_v28, %v8943_v19  ;;  %v1143_v48 = vcombine.high %v1013_v30, %v8939_v14 }
 0x336   : > { %v1150_v2 = vrot.slane %v1013_v30, %v8943_v19  ;;  %v2083_v58 = vpack.i.b16 %v2058_v50, %v8829_v22  ;;  %v2086_v1 = vshrl.u32 %v2058_v50, 16  ;;  %v2101_v22 = vshrl.u32 %v8849_v47, 16 }
 0x337   : > { %v1092_v38 = vcombine.high %v1017_v29, %v8939_v14  ;;  %v1099_v16 = vrot.slane %v1017_v29, %v8943_v19  ;;  %v1021_v39 = vpack.i.b16 %v1020_v35, %v1019_v31  ;;  %v1157_v62 = vrot.slane %v1143_v48, %v8943_v19 }
 0x338   : > { %v8955_v46 = vpop.permute.xlu1 %2065  ;;  %v986_v10 = vpop.permute.xlu0 %985  ;;  %v2145_v18 = vcombine.high %v2083_v58, %v8939_v14  ;;  %v2087_v27 = vpack.i.b16 %v2086_v1, %v2085_v32  ;;  %v2117_v28 = vshrl.u32 %v8869_v61, 16 }
 0x339   : > { %v1106_v20 = vrot.slane %v1092_v38, %v8943_v19  ;;  %v1107_v43 = vcombine.low %v1084_v37, %v1099_v16  ;;  %v1108_v44 = vcombine.high %v1084_v37, %v1099_v16  ;;  %v1158_v49 = vcombine.high %v1021_v39, %v8939_v14 }
 0x33a   : > { %v1165_v24 = vrot.slane %v1021_v39, %v8943_v19  ;;  %v2152_v37 = vrot.slane %v2083_v58, %v8943_v19 }
 0x33b   : > { %v1115_v51 = vrot.slane %v1107_v43, %v8948_v63  ;;  %v1122_v52 = vrot.slane %v1108_v44, %v8948_v63  ;;  %v1123_v53 = vcombine.low %v1091_v42, %v1106_v20  ;;  %v1124_v54 = vcombine.high %v1091_v42, %v1106_v20 }
 0x33c   : > { %v1173_v56 = vcombine.low %v1150_v2, %v1165_v24  ;;  %v1174_v57 = vcombine.high %v1150_v2, %v1165_v24  ;;  %v1172_v25 = vrot.slane %v1158_v49, %v8943_v19  ;;  %v2074_v8 = vpop.permute.xlu1 %2073  ;;  %v2159_v43 = vrot.slane %v2145_v18, %v8943_v19 }
 0x33d   : > { %v1131_v0 = vrot.slane %v1123_v53, %v8948_v63  ;;  %v1138_v33 = vrot.slane %v1124_v54, %v8948_v63  ;;  %v1605_v3 = vcombine.low %v1115_v51, %v1122_v52  ;;  %v7266_v4 = vcombine.high %v1115_v51, %v1122_v52  ;;  %v1002_v51 = vpop.permute.xlu0 %1001 }
 0x33e   : > { %v1181_v40 = vrot.slane %v1173_v56, %v8948_v63  ;;  %v1188_v41 = vrot.slane %v1174_v57, %v8948_v63  ;;  %v1189_v13 = vcombine.low %v1157_v62, %v1172_v25  ;;  %v1190_v15 = vcombine.high %v1157_v62, %v1172_v25 }
 0x33f   : > { %v1621_v23 = vcombine.low %v1131_v0, %v1138_v33  ;;  %v7267_v26 = vcombine.high %v1131_v0, %v1138_v33  ;;  %v1612_v29 = vrot.slane %v1605_v3, %v8943_v19  ;;  %v1620_v30 = vrot.slane %v7266_v4, %v8943_v19 }
 0x340   : > { %v1655_v31 = vcombine.low %v1181_v40, %v1188_v41  ;;  %v7268_v35 = vcombine.high %v1181_v40, %v1188_v41  ;;  %v2091_v38 = vpack.i.b16 %v2074_v8, %v8955_v46  ;;  %v1197_v42 = vrot.slane %v1189_v13, %v8948_v63  ;;  %v994_v48 = vpop.permute.xlu1 %993 }
 0x341   : > { %v1204_v20 = vrot.slane %v1190_v15, %v8948_v63  ;;  %v2093_v44 = vshrl.u32 %v8955_v46, 16  ;;  %v1628_v2 = vrot.slane %v1621_v23, %v8943_v19  ;;  %v1636_v49 = vrot.slane %v7267_v26, %v8943_v19  ;;  %v9006_v26 = vpop.permute.xlu0 %2059 }
 0x342   : > { %v2094_v24 = vshrl.u32 %v2074_v8, 16  ;;  %v2160_v50 = vcombine.high %v2091_v38, %v8939_v14  ;;  %v1637_v52 = vcombine.low %v1612_v29, %v1620_v30  ;;  %v1662_v53 = vrot.slane %v1655_v31, %v8943_v19 }
 0x343   : > { %v1670_v54 = vrot.slane %v7268_v35, %v8943_v19  ;;  %v2211_v56 = vcombine.high %v2087_v27, %v8939_v14  ;;  %v1031_v57 = vpack.i.b16 %v986_v10, %v8847_v45  ;;  %v1034_v25 = vshrl.u32 %v986_v10, 16 }
 0x344   : > { %v2095_v46 = vpack.i.b16 %v2094_v24, %v2093_v44  ;;  %v1039_v32 = vpack.i.b16 %v1002_v51, %v994_v48  ;;  %v1671_v58 = vcombine.low %v1197_v42, %v1204_v20  ;;  %v2167_v62 = vrot.slane %v2091_v38, %v8943_v19 }
 0x345   : > { %v2174_v0 = vrot.slane %v2160_v50, %v8943_v19  ;;  %v1041_v33 = vshrl.u32 %v994_v48, 16  ;;  %v1645_v1 = vcombine.low %v1628_v2, %v1636_v49  ;;  %v7269_v40 = vcombine.high %v1197_v42, %v1204_v20 }
 0x346   : > { %v2218_v41 = vrot.slane %v2087_v27, %v8943_v19  ;;  %v1042_v3 = vshrl.u32 %v1002_v51, 16  ;;  %v9000_v4 = vrot.slane %v1637_v52, %v8948_v63  ;;  %v1687_v8 = vcombine.low %v1662_v53, %v1670_v54  ;;  %v2068_v54 = vpop.permute.xlu1 %2067 }
 0x347   : > { %v2225_v45 = vrot.slane %v2211_v56, %v8943_v19  ;;  %v1224_v10 = vcombine.high %v1039_v32, %v8939_v14  ;;  %v1035_v13 = vpack.i.b16 %v1034_v25, %v1033_v9  ;;  %v1209_v15 = vcombine.high %v1031_v57, %v8939_v14 }
 0x348   : > { %11030 = vst [vmem:[#allocation20_spill] sm:$0xff] %v9000_v4  ;;  %v2226_v18 = vcombine.high %v2095_v46, %v8939_v14  ;;  %v1043_v23 = vpack.i.b16 %v1042_v3, %v1041_v33  ;;  %v9009_v29 = vrot.slane %v1671_v58, %v8943_v19  ;;  %v2175_v27 = vcombine.low %v2152_v37, %v2167_v62 }
 0x349   : > { %v2176_v30 = vcombine.high %v2152_v37, %v2167_v62  ;;  %v2191_v31 = vcombine.low %v2159_v43, %v2174_v0  ;;  %v9012_v35 = vrot.slane %v1645_v1, %v8948_v63  ;;  %v9015_v38 = vrot.slane %v7269_v40, %v8943_v19 }
 0x34a   : > { %v2192_v9 = vcombine.high %v2159_v43, %v2174_v0  ;;  %v2233_v42 = vrot.slane %v2095_v46, %v8943_v19  ;;  %v9019_v20 = vrot.slane %v1687_v8, %v8948_v63  ;;  %v1216_v44 = vrot.slane %v1031_v57, %v8943_v19 }
 0x34b   : > { %11031 = vst [vmem:[#allocation21_spill] sm:$0xff] %v9012_v35  ;;  %v1231_v48 = vrot.slane %v1039_v32, %v8943_v19  ;;  %v1238_v2 = vrot.slane %v1224_v10, %v8943_v19  ;;  %v1223_v37 = vrot.slane %v1209_v15, %v8943_v19  ;;  %v1275_v49 = vcombine.high %v1035_v13, %v8939_v14  ;;  %v2076_v32 = vpop.permute.xlu0 %2075 }
 0x34c   : > { %11032 = vst [vmem:[#allocation22_spill] sm:$0xff] %v9019_v20  ;;  %v2240_v24 = vrot.slane %v2226_v18, %v8943_v19  ;;  %v1290_v50 = vcombine.high %v1043_v23, %v8939_v14  ;;  %v1282_v43 = vrot.slane %v1035_v13, %v8943_v19  ;;  %v9030_v51 = vrot.slane %v2175_v27, %v8948_v63 }
 0x34d   : > { %v9033_v52 = vrot.slane %v2176_v30, %v8948_v63  ;;  %v9036_v53 = vrot.slane %v2191_v31, %v8948_v63  ;;  %v9039_v56 = vrot.slane %v2192_v9, %v8948_v63  ;;  %v2241_v57 = vcombine.low %v2218_v41, %v2233_v42 }
 0x34e   : > { %v2242_v25 = vcombine.high %v2218_v41, %v2233_v42  ;;  %v1297_v46 = vrot.slane %v1043_v23, %v8943_v19  ;;  %v1239_v58 = vcombine.low %v1216_v44, %v1231_v48  ;;  %v1240_v62 = vcombine.high %v1216_v44, %v1231_v48  ;;  %v9062_v44 = vpop.permute.xlu1 %995 }
 0x34f   : > { %v1255_v0 = vcombine.low %v1223_v37, %v1238_v2  ;;  %v1256_v33 = vcombine.high %v1223_v37, %v1238_v2  ;;  %v1289_v40 = vrot.slane %v1275_v49, %v8943_v19  ;;  %v2257_v3 = vcombine.low %v2225_v45, %v2240_v24 }
 0x350   : > { %v1304_v8 = vrot.slane %v1290_v50, %v8943_v19  ;;  %v2258_v10 = vcombine.high %v2225_v45, %v2240_v24  ;;  %v1305_v41 = vcombine.low %v1282_v43, %v1297_v46  ;;  %v1306_v15 = vcombine.high %v1282_v43, %v1297_v46  ;;  %v988_v24 = vpop.permute.xlu0 %987 }
 0x351   : > { %v9049_v18 = vrot.slane %v2241_v57, %v8948_v63  ;;  %v9052_v23 = vrot.slane %v2242_v25, %v8948_v63  ;;  %v1247_v31 = vrot.slane %v1239_v58, %v8948_v63  ;;  %v1254_v45 = vrot.slane %v1240_v62, %v8948_v63 }
 0x352   : > { %v1263_v9 = vrot.slane %v1255_v0, %v8948_v63  ;;  %v1270_v42 = vrot.slane %v1256_v33, %v8948_v63  ;;  %v9065_v48 = vrot.slane %v2257_v3, %v8948_v63  ;;  %v1321_v37 = vcombine.low %v1289_v40, %v1304_v8  ;;  %v2062_v39 = vpop.permute.xlu1 %2061 }
 0x353   : > { %v1322_v49 = vcombine.high %v1289_v40, %v1304_v8  ;;  %v9070_v50 = vrot.slane %v2258_v10, %v8948_v63  ;;  %v1313_v43 = vrot.slane %v1305_v41, %v8948_v63  ;;  %v1320_v57 = vrot.slane %v1306_v15, %v8948_v63 }
 0x354   : > { %v2102_v25 = vshrl.u32 %v9006_v26, 16  ;;  %v2099_v62 = vpack.i.b16 %v9006_v26, %v8849_v47  ;;  %v2109_v0 = vshrl.u32 %v2068_v54, 16  ;;  %v1705_v33 = vcombine.low %v1247_v31, %v1254_v45 }
 0x355   : > { %v7270_v40 = vcombine.high %v1247_v31, %v1254_v45  ;;  %v1721_v3 = vcombine.low %v1263_v9, %v1270_v42  ;;  %v7271_v8 = vcombine.high %v1263_v9, %v1270_v42  ;;  %v1329_v10 = vrot.slane %v1321_v37, %v8948_v63  ;;  %v9088_v9 = vpop.permute.xlu0 %2069 }
 0x356   : > { %v1336_v41 = vrot.slane %v1322_v49, %v8948_v63  ;;  %v2107_v15 = vpack.i.b16 %v2076_v32, %v2068_v54  ;;  %v2110_v59 = vshrl.u32 %v2076_v32, 16  ;;  %v1755_v12 = vcombine.low %v1313_v43, %v1320_v57 }
 0x357   : > { %v7272_v11 = vcombine.high %v1313_v43, %v1320_v57  ;;  %v2103_v1 = vpack.i.b16 %v2102_v25, %v2101_v22  ;;  %v1050_v5 = vshrl.u32 %v988_v24, 16  ;;  %v2277_v26 = vcombine.high %v2099_v62, %v8939_v14 }
 0x358   : > { %v2111_v58 = vpack.i.b16 %v2110_v59, %v2109_v0  ;;  %v2292_v31 = vcombine.high %v2107_v15, %v8939_v14  ;;  %v2299_v45 = vrot.slane %v2107_v15, %v8943_v19  ;;  %v9091_v42 = vrot.slane %v1705_v33, %v8943_v19 }
 0x359   : > { %v9094_v54 = vrot.slane %v7270_v40, %v8943_v19  ;;  %v9097_v47 = vrot.slane %v1721_v3, %v8943_v19  ;;  %v9100_v22 = vrot.slane %v7271_v8, %v8943_v19  ;;  %v1771_v32 = vcombine.low %v1329_v10, %v1336_v41  ;;  %v9127_v15 = vpop.permute.xlu0 %2071 }
 0x35a   : > { %11033 = vst [vmem:[#allocation23_spill] sm:$0xff] %v9091_v42  ;;  %v7273_v59 = vcombine.high %v1329_v10, %v1336_v41  ;;  %v2284_v37 = vrot.slane %v2099_v62, %v8943_v19  ;;  %v2306_v49 = vrot.slane %v2292_v31, %v8943_v19  ;;  %v9105_v43 = vrot.slane %v1755_v12, %v8943_v19 }
 0x35b   : > { %11034 = vst [vmem:[#allocation24_spill] sm:$0xff] %v9094_v54  ;;  %v9108_v57 = vrot.slane %v7272_v11, %v8943_v19  ;;  %v1047_v25 = vpack.i.b16 %v988_v24, %v8867_v60  ;;  %v1051_v0 = vpack.i.b16 %v1050_v5, %v1049_v21  ;;  %v2291_v33 = vrot.slane %v2277_v26, %v8943_v19  ;;  %v2078_v24 = vpop.permute.xlu1 %2077 }
 0x35c   : > { %11035 = vst [vmem:[#allocation25_spill] sm:$0xff] %v9105_v43  ;;  %v2307_v40 = vcombine.low %v2284_v37, %v2299_v45  ;;  %v2308_v3 = vcombine.high %v2284_v37, %v2299_v45  ;;  %v2358_v8 = vcombine.high %v2111_v58, %v8939_v14  ;;  %v2343_v11 = vcombine.high %v2103_v1, %v8939_v14 }
 0x35d   : > { %11036 = vst [vmem:[#allocation26_spill] sm:$0xff] %v9108_v57  ;;  %v2365_v10 = vrot.slane %v2111_v58, %v8943_v19  ;;  %v9122_v60 = vrot.slane %v1771_v32, %v8943_v19  ;;  %v9125_v5 = vrot.slane %v7273_v59, %v8943_v19  ;;  %v2323_v21 = vcombine.low %v2291_v33, %v2306_v49  ;;  %v1004_v13 = vpop.permute.xlu0 %1003 }
 0x35e   : > { %v2324_v41 = vcombine.high %v2291_v33, %v2306_v49  ;;  %v2350_v31 = vrot.slane %v2103_v1, %v8943_v19  ;;  %v1341_v45 = vcombine.high %v1047_v25, %v8939_v14  ;;  %v1407_v58 = vcombine.high %v1051_v0, %v8939_v14 }
 0x35f   : > { %v9135_v37 = vrot.slane %v2307_v40, %v8948_v63  ;;  %v9138_v32 = vrot.slane %v2308_v3, %v8948_v63  ;;  %v2372_v59 = vrot.slane %v2358_v8, %v8943_v19  ;;  %v2118_v49 = vshrl.u32 %v2062_v39, 16 }
 0x360   : > { %v2357_v33 = vrot.slane %v2343_v11, %v8943_v19  ;;  %v2373_v62 = vcombine.low %v2350_v31, %v2365_v10  ;;  %v2374_v12 = vcombine.high %v2350_v31, %v2365_v10  ;;  %v1057_v26 = vshrl.u32 %v9062_v44, 16  ;;  %v2064_v31 = vpop.permute.xlu1 %2063 }
 0x361   : > { %v9144_v1 = vrot.slane %v2323_v21, %v8948_v63  ;;  %v9147_v46 = vrot.slane %v2324_v41, %v8948_v63  ;;  %v9150_v40 = vrot.slane %v1047_v25, %v8943_v19  ;;  %v2115_v3 = vpack.i.b16 %v2062_v39, %v8869_v61 }
 0x362   : > { %v9154_v8 = vrot.slane %v1341_v45, %v8943_v19  ;;  %v9157_v11 = vrot.slane %v1051_v0, %v8943_v19  ;;  %v9160_v10 = vrot.slane %v1407_v58, %v8943_v19  ;;  %v2123_v21 = vpack.i.b16 %v2078_v24, %v9088_v9 }
 0x363   : > { %v2389_v27 = vcombine.low %v2357_v33, %v2372_v59  ;;  %v2390_v41 = vcombine.high %v2357_v33, %v2372_v59  ;;  %v2119_v39 = vpack.i.b16 %v2118_v49, %v2117_v28  ;;  %v9168_v45 = vrot.slane %v2373_v62, %v8948_v63 }
 0x364   : > { %v9171_v0 = vrot.slane %v2374_v12, %v8948_v63  ;;  %v2126_v2 = vshrl.u32 %v2078_v24, 16  ;;  %v2424_v33 = vcombine.high %v2123_v21, %v8939_v14  ;;  %v2131_v25 = vpack.i.b16 %v2064_v31, %v8885_v7 }
 0x365   : > { %v2134_v61 = vshrl.u32 %v2064_v31, 16  ;;  %v2409_v62 = vcombine.high %v2115_v3, %v8939_v14  ;;  %v2125_v12 = vshrl.u32 %v9088_v9, 16  ;;  %v1055_v49 = vpack.i.b16 %v1004_v13, %v9062_v44 }
 0x366   : > { %v9185_v58 = vrot.slane %v2389_v27, %v8948_v63  ;;  %v9188_v24 = vrot.slane %v2390_v41, %v8948_v63  ;;  %v2475_v59 = vcombine.high %v2119_v39, %v8939_v14  ;;  %v2431_v30 = vrot.slane %v2123_v21, %v8943_v19 }
 0x367   : > { %v2127_v16 = vpack.i.b16 %v2126_v2, %v2125_v12  ;;  %v1058_v9 = vshrl.u32 %v1004_v13, 16  ;;  %v2416_v44 = vrot.slane %v2115_v3, %v8943_v19  ;;  %v2438_v27 = vrot.slane %v2424_v33, %v8943_v19 }
 0x368   : > { %v2135_v41 = vpack.i.b16 %v2134_v61, %v11037_v17  ;;  %v2541_v34 = vcombine.high %v2131_v25, %v8939_v14  ;;  %v2423_v57 = vrot.slane %v2409_v62, %v8943_v19  ;;  %v2482_v21 = vrot.slane %v2119_v39, %v8943_v19 }
 0x369   : > { %v1356_v43 = vcombine.high %v1055_v49, %v8939_v14  ;;  %v9206_v2 = vrot.slane %v2475_v59, %v8943_v19  ;;  %v2439_v13 = vcombine.low %v2416_v44, %v2431_v30  ;;  %v2440_v3 = vcombine.high %v2416_v44, %v2431_v30 }
 0x36a   : > { %v9209_v33 = vrot.slane %v2131_v25, %v8943_v19  ;;  %v2490_v17 = vcombine.high %v2127_v16, %v8939_v14  ;;  %v2497_v7 = vrot.slane %v2127_v16, %v8943_v19  ;;  %v1059_v61 = vpack.i.b16 %v1058_v9, %v1057_v26 }
 0x36b   : > { %v1363_v62 = vrot.slane %v1055_v49, %v8943_v19  ;;  %v2455_v39 = vcombine.low %v2423_v57, %v2438_v27  ;;  %v9215_v12 = vrot.slane %v2541_v34, %v8943_v19  ;;  %v2607_v28 = vcombine.high %v2135_v41, %v8939_v14 }
 0x36c   : > { %v9219_v59 = vrot.slane %v2135_v41, %v8943_v19  ;;  %v1370_v30 = vrot.slane %v1356_v43, %v8943_v19  ;;  %v1422_v16 = vcombine.high %v1059_v61, %v8939_v14  ;;  %v9226_v26 = vrot.slane %v2439_v13, %v8948_v63 }
 0x36d   : > { %v1371_v25 = vcombine.low %v9150_v40, %v1363_v62  ;;  %v1372_v44 = vcombine.high %v9150_v40, %v1363_v62  ;;  %v9229_v49 = vrot.slane %v2440_v3, %v8948_v63  ;;  %v2456_v34 = vcombine.high %v2423_v57, %v2438_v27 }
 0x36e   : > { %v1429_v9 = vrot.slane %v1059_v61, %v8943_v19  ;;  %v2505_v31 = vcombine.low %v2482_v21, %v2497_v7  ;;  %v1387_v43 = vcombine.low %v9154_v8, %v1370_v30  ;;  %v1388_v54 = vcombine.high %v9154_v8, %v1370_v30 }
 0x36f   : > { %11038 = vst [vmem:[#allocation27_spill] sm:$0xff] %v9229_v49  ;;  %v1379_v41 = vrot.slane %v1371_v25, %v8948_v63  ;;  %v1386_v40 = vrot.slane %v1372_v44, %v8948_v63  ;;  %v1436_v62 = vrot.slane %v1422_v16, %v8943_v19  ;;  %v9240_v3 = vrot.slane %v2455_v39, %v8948_v63 }
 0x370   : > { %v1437_v13 = vcombine.low %v9157_v11, %v1429_v9  ;;  %v1438_v42 = vcombine.high %v9157_v11, %v1429_v9  ;;  %v9243_v57 = vrot.slane %v2490_v17, %v8943_v19  ;;  %v2506_v27 = vcombine.high %v2482_v21, %v2497_v7 }
 0x371   : > { %v9246_v61 = vrot.slane %v2607_v28, %v8943_v19  ;;  %v9249_v8 = vrot.slane %v2456_v34, %v8948_v63  ;;  %v1395_v25 = vrot.slane %v1387_v43, %v8948_v63  ;;  %v1402_v11 = vrot.slane %v1388_v54, %v8948_v63 }
 0x372   : > { %v9256_v39 = vrot.slane %v2505_v31, %v8948_v63  ;;  %v1453_v21 = vcombine.low %v9160_v10, %v1436_v62  ;;  %v1454_v28 = vcombine.high %v9160_v10, %v1436_v62  ;;  %v1445_v7 = vrot.slane %v1437_v13, %v8948_v63 }
 0x373   : > { %v1452_v44 = vrot.slane %v1438_v42, %v8948_v63  ;;  %v1805_v16 = vcombine.low %v1379_v41, %v1386_v40  ;;  %v7274_v34 = vcombine.high %v1379_v41, %v1386_v40  ;;  %v9265_v9 = vrot.slane %v2506_v27, %v8948_v63 }
 0x374   : > { %v2521_v54 = vcombine.low %v9206_v2, %v9243_v57  ;;  %v11039_v31 = vcombine.low %v9036_v53, %v9039_v56  ;;  %v11040_v10 = vcombine.high %v9036_v53, %v9039_v56  ;;  %v2522_v42 = vcombine.high %v9206_v2, %v9243_v57  ;;  %v2080_v2 = vpop.permute.xlu1 %2079 }
 0x375   : > { %v1821_v40 = vcombine.low %v1395_v25, %v1402_v11  ;;  %v7275_v13 = vcombine.high %v1395_v25, %v1402_v11  ;;  %v1461_v27 = vrot.slane %v1453_v21, %v8948_v63  ;;  %v1468_v17 = vrot.slane %v1454_v28, %v8948_v63 }
 0x376   : > { %v2696_v43 = vrot.slane %v11039_v31, %v8943_v19  ;;  %v2704_v62 = vrot.slane %v11040_v10, %v8943_v19  ;;  %v11041_v31 = vcombine.low %v9030_v51, %v9033_v52  ;;  %v11042_v53 = vcombine.high %v9030_v51, %v9033_v52 }
 0x377   : > { %v1812_v57 = vrot.slane %v1805_v16, %v8943_v19  ;;  %v1820_v10 = vrot.slane %v7274_v34, %v8943_v19  ;;  %v1855_v25 = vcombine.low %v1445_v7, %v1452_v44  ;;  %v11043_v11 = vcombine.low %v9049_v18, %v9052_v23 }
 0x378   : > { %v2680_v30 = vrot.slane %v11041_v31, %v8943_v19  ;;  %v2688_v56 = vrot.slane %v11042_v53, %v8943_v19  ;;  %v7276_v28 = vcombine.high %v1445_v7, %v1452_v44  ;;  %v2713_v41 = vcombine.low %v2696_v43, %v2704_v62 }
 0x379   : > { %v2730_v21 = vrot.slane %v11043_v11, %v8943_v19  ;;  %v11044_v31 = vcombine.high %v9049_v18, %v9052_v23  ;;  %v2739_v51 = vcombine.low %v9065_v48, %v9070_v50  ;;  %v1828_v52 = vrot.slane %v1821_v40, %v8943_v19 }
 0x37a   : > { %v1836_v16 = vrot.slane %v7275_v13, %v8943_v19  ;;  %v7285_v34 = vcombine.high %v9065_v48, %v9070_v50  ;;  %v2139_v53 = vpack.i.b16 %v2080_v2, %v9127_v15  ;;  %v1871_v11 = vcombine.low %v1461_v27, %v1468_v17 }
 0x37b   : > { %v2738_v49 = vrot.slane %v11044_v31, %v8943_v19  ;;  %v7277_v7 = vcombine.high %v1461_v27, %v1468_v17  ;;  %v2705_v44 = vcombine.low %v2680_v30, %v2688_v56  ;;  %v2746_v43 = vrot.slane %v2739_v51, %v8943_v19 }
 0x37c   : > { %v2754_v18 = vrot.slane %v7285_v34, %v8943_v19  ;;  %v2142_v62 = vshrl.u32 %v2080_v2, 16  ;;  %v2556_v31 = vcombine.high %v2139_v53, %v8939_v14  ;;  %v1862_v13 = vrot.slane %v1855_v25, %v8943_v19 }
 0x37d   : > { %v2755_v23 = vcombine.low %v2730_v21, %v2738_v49  ;;  %v9315_v48 = vrot.slane %v2713_v41, %v8948_v63  ;;  %v2563_v50 = vrot.slane %v2139_v53, %v8943_v19  ;;  %v1870_v30 = vrot.slane %v7276_v28, %v8943_v19 }
 0x37e   : > { %v2763_v17 = vcombine.low %v2746_v43, %v2754_v18  ;;  %v11046_v27 = vshrl.u32 %v9127_v15, 16  ;;  %v2570_v49 = vrot.slane %v2556_v31, %v8943_v19  ;;  %v1845_v2 = vcombine.low %v1828_v52, %v1836_v16 }
 0x37f   : > { %11045 = vst [vmem:[#allocation28_spill] sm:$0xff] %v9315_v48  ;;  %v1878_v21 = vrot.slane %v1871_v11, %v8943_v19  ;;  %v1886_v51 = vrot.slane %v7277_v7, %v8943_v19  ;;  %v9325_v25 = vrot.slane %v2705_v44, %v8948_v63  ;;  %v9328_v41 = vrot.slane %v2521_v54, %v8948_v63  ;;  %v990_v7 = vpop.permute.xlu1 %989 }
 0x380   : > { %v2143_v56 = vpack.i.b16 %v2142_v62, %v11046_v27  ;;  %v1837_v34 = vcombine.low %v1812_v57, %v1820_v10  ;;  %v9331_v28 = vrot.slane %v2755_v23, %v8948_v63  ;;  %v9334_v15 = vrot.slane %v2763_v17, %v8948_v63 }
 0x381   : > { %11047 = vst [vmem:[#allocation29_spill] sm:$0xff] %v9325_v25  ;;  %v9338_v52 = vcombine.low %v9325_v25, %v9315_v48  ;;  %v2571_v16 = vcombine.low %v9209_v33, %v2563_v50  ;;  %v2572_v53 = vcombine.high %v9209_v33, %v2563_v50  ;;  %v2587_v11 = vcombine.low %v9215_v12, %v2570_v49  ;;  %v11075_v25 = vld [vmem:[#allocation25_spill] sm:$0xff] }
 0x382   : > { %11048 = vst [vmem:[#allocation30_spill] sm:$0xff] %v9331_v28  ;;  %11049 = vst [vmem:[#allocation31_spill] sm:$0xff] %v9334_v15  ;;  %v9345_v54 = vcombine.low %v9331_v28, %v9334_v15  ;;  %v2588_v57 = vcombine.high %v9215_v12, %v2570_v49  ;;  %v2622_v10 = vcombine.high %v2143_v56, %v8939_v14  ;;  %v1066_v50 = vshrl.u32 %v990_v7, 16 }
 0x383   : > { %v2629_v44 = vrot.slane %v2143_v56, %v8943_v19  ;;  %v9351_v43 = vrot.slane %v2522_v42, %v8948_v63  ;;  %v9354_v18 = vrot.slane %v1845_v2, %v8948_v63  ;;  %v1887_v33 = vcombine.low %v1862_v13, %v1870_v30  ;;  %v998_v13 = vpop.permute.xlu0 %997 }
 0x384   : > { %v1895_v23 = vcombine.low %v1878_v21, %v1886_v51  ;;  %v3075_v31 = vpack.i.b16 %v9345_v54, %v9338_v52  ;;  %v1063_v12 = vpack.i.b16 %v990_v7, %v8883_v6  ;;  %v9362_v17 = vrot.slane %v1837_v34, %v8948_v63 }
 0x385   : > { %11050 = vst [vmem:[#allocation32_spill] sm:$0xff] %v9354_v18  ;;  %v2579_v42 = vrot.slane %v2571_v16, %v8948_v63  ;;  %v2586_v27 = vrot.slane %v2572_v53, %v8948_v63  ;;  %v9367_v56 = vrot.slane %v2587_v11, %v8948_v63  ;;  %v9371_v49 = vrot.slane %v2588_v57, %v8948_v63 }
 0x386   : > { %11051 = vst [vmem:[#allocation33_spill] sm:$0xff] %v9362_v17  ;;  %v4210_v30 = vsel %vm4205_vm1, %v3075_v31, 0  ;;  %v2636_v2 = vrot.slane %v2622_v10, %v8943_v19  ;;  %v2637_v21 = vcombine.low %v9219_v59, %v2629_v44  ;;  %v9379_v34 = vcombine.low %v9362_v17, %v9354_v18 }
 0x387   : > { %v9382_v16 = vrot.slane %v1887_v33, %v8948_v63  ;;  %v9385_v53 = vrot.slane %v1895_v23, %v8948_v63  ;;  %7550 = vmatpush3.bf16.xpose.msra.mxu1 %v4210_v30  ;;  %v1073_v11 = vshrl.u32 %v998_v13, 16  ;;  %v11053_v7 = vshrl.u32 %v8883_v6, 16  ;;  %v3126_v17 = vpop.permute.xlu0 %3125 }
 0x388   : > { %v1473_v10 = vcombine.high %v1063_v12, %v8939_v14  ;;  %v9393_v31 = vrot.slane %v1063_v12, %v8943_v19  ;;  %v11054_v51 = vmov 0.0   ;;  %v2638_v62 = vcombine.high %v9219_v59, %v2629_v44 }
 0x389   : > { %11052 = vst [vmem:[#allocation34_spill] sm:$0xff] %v9382_v16  ;;  %v9389_v57 = vpack.i.b16 %v1066_v50, %v11053_v7  ;;  %7555 = vmatprep.subr.bf16.mxu1 %v11054_v51  ;;  %v2973_v33 = vcombine.low %v2579_v42, %v2586_v27  ;;  %v7294_v40 = vcombine.high %v2579_v42, %v2586_v27 }
 0x38a   : > { %v11055_v23 = vcombine.low %v9009_v29, %v9015_v38  ;;  %v9404_v6 = vrot.slane %v2637_v21, %v8948_v63  ;;  %v2653_v50 = vcombine.low %v9246_v61, %v2636_v2  ;;  %v2654_v12 = vcombine.high %v9246_v61, %v2636_v2 }
 0x38b   : > { %v9412_v59 = vcombine.low %v9000_v4, %v9012_v35  ;;  %v11057_v38 = vcombine.low %v9144_v1, %v9147_v46  ;;  %v11058_v61 = vcombine.high %v9144_v1, %v9147_v46  ;;  %v11059_v27 = vcombine.low %v9135_v37, %v9138_v32 }
 0x38c   : > { %v9401_v30 = vrot.slane %v11055_v23, %v8948_v63  ;;  %v11060_v21 = vcombine.high %v9135_v37, %v9138_v32  ;;  %v11061_v7 = vcombine.low %v9168_v45, %v9171_v0  ;;  %v11062_v46 = vcombine.high %v9168_v45, %v9171_v0 }
 0x38d   : > { %v2796_v44 = vrot.slane %v11057_v38, %v8943_v19  ;;  %v2804_v42 = vrot.slane %v11058_v61, %v8943_v19  ;;  %v2780_v2 = vrot.slane %v11059_v27, %v8943_v19  ;;  %v1006_v61 = vpop.permute.xlu1 %1005  ;;  %v9443_v18 = vrot.slane %v2638_v62, %v8948_v63 }
 0x38e   : > { %11056 = vst [vmem:[#allocation35_spill] sm:$0xff] %v9401_v30  ;;  %v9416_v29 = vcombine.low %v9019_v20, %v9401_v30  ;;  %v2788_v23 = vrot.slane %v11060_v21, %v8943_v19  ;;  %v2830_v38 = vrot.slane %v11061_v7, %v8943_v19  ;;  %v2838_v1 = vrot.slane %v11062_v46, %v8943_v19  ;;  %v9471_v20 = vpop.permute.xlu0 %3135 }
 0x38f   : > { %v9446_v27 = vrot.slane %v2973_v33, %v8943_v19  ;;  %v9449_v37 = vrot.slane %v7294_v40, %v8943_v19  ;;  %v9454_v7 = vrot.slane %v2653_v50, %v8948_v63  ;;  %v2813_v21 = vcombine.low %v2796_v44, %v2804_v42 }
 0x390   : > { %v2007_v32 = vpack.i.b16 %v9416_v29, %v9412_v59  ;;  %v2839_v45 = vcombine.low %v9185_v58, %v9188_v24  ;;  %v7289_v0 = vcombine.high %v9185_v58, %v9188_v24  ;;  %v9461_v62 = vrot.slane %v2654_v12, %v8948_v63 }
 0x391   : > { %v3154_v33 = vshrl.u32 %v3126_v17, 16  ;;  %v1071_v40 = vpack.i.b16 %v1006_v61, %v998_v13  ;;  %v1074_v46 = vshrl.u32 %v1006_v61, 16  ;;  %v2805_v4 = vcombine.low %v2780_v2, %v2788_v23 }
 0x392   : > { %7552 = vmatmul.mubr.msk.bf16.vlgmr.msra.gmra.mrb[8].mxu1 %vm4205_vm1, %v2007_v32  ;;  %v2846_v35 = vrot.slane %v2839_v45, %v8943_v19  ;;  %v2854_v50 = vrot.slane %v7289_v0, %v8943_v19  ;;  %v2855_v44 = vcombine.low %v2830_v38, %v2838_v1  ;;  %v1487_v42 = vrot.slane %v1473_v10, %v8943_v19 }
 0x393   : > { %7557 = vmatprep.mubr.msk.bf16.mxu1 %vm8454_vm0, %v11054_v51  ;;  %v1075_v58 = vpack.i.b16 %v1074_v46, %v1073_v11  ;;  %v1488_v24 = vcombine.high %v1071_v40, %v8939_v14  ;;  %v1495_v12 = vrot.slane %v1071_v40, %v8943_v19  ;;  %v1539_v13 = vcombine.high %v9389_v57, %v8939_v14 }
 0x394   : > { %v3151_v2 = vpack.i.b16 %v3126_v17, %v8837_v36  ;;  %v9477_v23 = vrot.slane %v2813_v21, %v8948_v63  ;;  %v2863_v38 = vcombine.low %v2846_v35, %v2854_v50  ;;  %v11064_v32 = vshrl.u32 %v8837_v36, 16 }
 0x395   : > { %v1502_v1 = vrot.slane %v1488_v24, %v8943_v19  ;;  %v1503_v10 = vcombine.low %v9393_v31, %v1495_v12  ;;  %v1504_v11 = vcombine.high %v9393_v31, %v1495_v12  ;;  %v1554_v61 = vcombine.high %v1075_v58, %v8939_v14  ;;  %v3134_v12 = vpop.permute.xlu1 %3133 }
 0x396   : > { %11063 = vst [vmem:[#allocation36_spill] sm:$0xff] %v9477_v23  ;;  %v3155_v45 = vpack.i.b16 %v3154_v33, %v11064_v32  ;;  %v9486_v0 = vrot.slane %v2805_v4, %v8948_v63  ;;  %v9489_v17 = vrot.slane %v2855_v44, %v8948_v63  ;;  %v9492_v21 = vrot.slane %v2863_v38, %v8948_v63  ;;  %v3130_v38 = vpop.permute.xlu0 %3129 }
 0x397   : > { %v1519_v40 = vcombine.low %v1487_v42, %v1502_v1  ;;  %v1520_v46 = vcombine.high %v1487_v42, %v1502_v1  ;;  %v1561_v31 = vrot.slane %v1075_v58, %v8943_v19  ;;  %v1511_v33 = vrot.slane %v1503_v10, %v8948_v63 }
 0x398   : > { %11065 = vst [vmem:[#allocation37_spill] sm:$0xff] %v9486_v0  ;;  %11066 = vst [vmem:[#allocation38_spill] sm:$0xff] %v9489_v17  ;;  %v9499_v36 = vcombine.low %v9486_v0, %v9477_v23  ;;  %v9503_v4 = vcombine.low %v9489_v17, %v9492_v21  ;;  %v1518_v50 = vrot.slane %v1504_v11, %v8948_v63 }
 0x399   : > { %11067 = vst [vmem:[#allocation39_spill] sm:$0xff] %v9492_v21  ;;  %v1546_v58 = vrot.slane %v9389_v57, %v8943_v19  ;;  %v1568_v24 = vrot.slane %v1554_v61, %v8943_v19  ;;  %v1553_v1 = vrot.slane %v1539_v13, %v8943_v19  ;;  %v3213_v32 = vcombine.high %v3151_v2, %v8939_v14 }
 0x39a   : > { %v3279_v10 = vcombine.high %v3155_v45, %v8939_v14  ;;  %v3087_v11 = vpack.i.b16 %v9503_v4, %v9499_v36  ;;  %v1527_v44 = vrot.slane %v1519_v40, %v8948_v63  ;;  %v1534_v42 = vrot.slane %v1520_v46, %v8948_v63 }
 0x39b   : > { %v1569_v35 = vcombine.low %v1546_v58, %v1561_v31  ;;  %v1570_v30 = vcombine.high %v1546_v58, %v1561_v31  ;;  %v1905_v0 = vcombine.low %v1511_v33, %v1518_v50  ;;  %v3186_v13 = vshrl.u32 %v3130_v38, 16 }
 0x39c   : > { %v4257_v61 = vsel %vm4205_vm1, %v3087_v11, 0  ;;  %v1585_v17 = vcombine.low %v1553_v1, %v1568_v24  ;;  %v1586_v21 = vcombine.high %v1553_v1, %v1568_v24  ;;  %v7278_v28 = vcombine.high %v1511_v33, %v1518_v50 }
 0x39d   : > { %7556 = vmatpush3.bf16.xpose.msra.mxu1 %v4257_v61  ;;  %v9527_v40 = vrot.slane %v3151_v2, %v8943_v19  ;;  %v9530_v46 = vrot.slane %v3213_v32, %v8943_v19  ;;  %v9533_v31 = vrot.slane %v3155_v45, %v8943_v19  ;;  %v3183_v58 = vpack.i.b16 %v3130_v38, %v8857_v55  ;;  %v3142_v2 = vpop.permute.xlu1 %3141 }
 0x39e   : > { %7567 = vmatprep.subr.bf16.mxu1 %v11054_v51  ;;  %v9538_v11 = vrot.slane %v3279_v10, %v8943_v19  ;;  %v1577_v61 = vrot.slane %v1569_v35, %v8948_v63  ;;  %v1584_v33 = vrot.slane %v1570_v30, %v8948_v63  ;;  %v1921_v50 = vcombine.low %v1527_v44, %v1534_v42 }
 0x39f   : > { %v1912_v24 = vrot.slane %v1905_v0, %v8943_v19  ;;  %v3161_v32 = vshrl.u32 %v3134_v12, 16  ;;  %v11068_v45 = vshrl.u32 %v8857_v55, 16  ;;  %v1593_v38 = vrot.slane %v1585_v17, %v8948_v63 }
 0x3a0   : > { %v1600_v57 = vrot.slane %v1586_v21, %v8948_v63  ;;  %v1920_v10 = vrot.slane %v7278_v28, %v8943_v19  ;;  %v7279_v15 = vcombine.high %v1527_v44, %v1534_v42  ;;  %v3477_v35 = vcombine.high %v3183_v58, %v8939_v14  ;;  %v11071_v21 = vld [vmem:[#allocation23_spill] sm:$0xff]  ;;  %v11072_v28 = vld [vmem:[#allocation24_spill] sm:$0xff] }
 0x3a1   : > { %v3187_v23 = vpack.i.b16 %v3186_v13, %v11068_v45  ;;  %v11069_v30 = vcombine.low %v9097_v47, %v9100_v22  ;;  %v1795_v1 = vcombine.low %v9122_v60, %v9125_v5  ;;  %v3159_v55 = vpack.i.b16 %v3142_v2, %v3134_v12  ;;  %v11076_v47 = vld [vmem:[#allocation26_spill] sm:$0xff] }
 0x3a2   : > { %v9559_v13 = vrot.slane %v1921_v50, %v8943_v19  ;;  %v1955_v17 = vcombine.low %v1577_v61, %v1584_v33  ;;  %v11073_v44 = vcombine.low %v11071_v21, %v11072_v28  ;;  %v3162_v45 = vshrl.u32 %v3142_v2, 16 }
 0x3a3   : > { %v9554_v0 = vrot.slane %v11069_v30, %v8948_v63  ;;  %v11077_v22 = vcombine.low %v11075_v25, %v11076_v47  ;;  %v9574_v60 = vrot.slane %v1795_v1, %v8948_v63  ;;  %v3228_v5 = vcombine.high %v3159_v55, %v8939_v14 }
 0x3a4   : > { %v9565_v42 = vrot.slane %v11073_v44, %v8948_v63  ;;  %v3235_v12 = vrot.slane %v3159_v55, %v8943_v19  ;;  %v9579_v50 = vrot.slane %v7279_v15, %v8943_v19  ;;  %v1937_v21 = vcombine.low %v1912_v24, %v1920_v10 }
 0x3a5   : > { %11070 = vst [vmem:[#allocation40_spill] sm:$0xff] %v9554_v0  ;;  %v9571_v30 = vrot.slane %v11077_v22, %v8948_v63  ;;  %11079 = vst [vmem:[#allocation25_spill] sm:$0xff] %v9574_v60  ;;  %v7280_v28 = vcombine.high %v1577_v61, %v1584_v33  ;;  %v1971_v44 = vcombine.low %v1593_v38, %v1600_v57 }
 0x3a6   : > { %11074 = vst [vmem:[#allocation23_spill] sm:$0xff] %v9565_v42  ;;  %v7281_v2 = vcombine.high %v1593_v38, %v1600_v57  ;;  %v9583_v48 = vcombine.low %v9565_v42, %v9554_v0  ;;  %v3163_v1 = vpack.i.b16 %v3162_v45, %v3161_v32  ;;  %v9590_v47 = vrot.slane %v1955_v17, %v8943_v19  ;;  %v11081_v57 = vld [vmem:[#allocation27_spill] sm:$0xff] }
 0x3a7   : > { %11078 = vst [vmem:[#allocation24_spill] sm:$0xff] %v9571_v30  ;;  %v9587_v25 = vcombine.low %v9571_v30, %v9574_v60  ;;  %v9593_v55 = vrot.slane %v3183_v58, %v8943_v19  ;;  %v3242_v15 = vrot.slane %v3228_v5, %v8943_v19  ;;  %v11082_v61 = vcombine.low %v9226_v26, %v11081_v57 }
 0x3a8   : > { %11080 = vst [vmem:[#allocation26_spill] sm:$0xff] %v9583_v48  ;;  %v3243_v38 = vcombine.low %v9527_v40, %v3235_v12  ;;  %v3244_v32 = vcombine.high %v9527_v40, %v3235_v12  ;;  %v11083_v10 = vcombine.high %v9226_v26, %v11081_v57  ;;  %v9609_v17 = vrot.slane %v7280_v28, %v8943_v19 }
 0x3a9   : > { %v2880_v33 = vrot.slane %v11082_v61, %v8943_v19  ;;  %v2019_v24 = vpack.i.b16 %v9587_v25, %v9583_v48  ;;  %v9612_v45 = vrot.slane %v1971_v44, %v8943_v19  ;;  %v9615_v22 = vrot.slane %v3477_v35, %v8943_v19  ;;  %v3128_v61 = vpop.permute.xlu1 %3127 }
 0x3aa   : > { %v2888_v58 = vrot.slane %v11083_v10, %v8943_v19  ;;  %v3543_v5 = vcombine.high %v3187_v23, %v8939_v14  ;;  %v9619_v30 = vrot.slane %v7281_v2, %v8943_v19  ;;  %v3294_v26 = vcombine.high %v3163_v1, %v8939_v14 }
 0x3ab   : > { %7558 = vmatmul.mubr.msk.bf16.vlgmr.msra.gmra.mrb[12].mxu1 %vm4205_vm1, %v2019_v24  ;;  %v11084_v40 = vcombine.low %v9240_v3, %v9249_v8  ;;  %v11085_v35 = vcombine.high %v9240_v3, %v9249_v8  ;;  %v9632_v44 = vrot.slane %v1937_v21, %v8948_v63  ;;  %v3259_v57 = vcombine.low %v9530_v46, %v3242_v15 }
 0x3ac   : > { %v3301_v24 = vrot.slane %v3163_v1, %v8943_v19  ;;  %7569 = vmatprep.mubr.msk.bf16.mxu1 %vm8454_vm0, %v11054_v51  ;;  %v9641_v10 = vrot.slane %v3187_v23, %v8943_v19  ;;  %v3258_v3 = vrot.slane %v3244_v32, %v8948_v63  ;;  %v2905_v8 = vcombine.low %v2880_v33, %v2888_v58 }
 0x3ad   : > { %v2896_v12 = vrot.slane %v11084_v40, %v8943_v19  ;;  %v2904_v28 = vrot.slane %v11085_v35, %v8943_v19  ;;  %v3251_v40 = vrot.slane %v3243_v38, %v8948_v63  ;;  %v9648_v35 = vrot.slane %v3543_v5, %v8943_v19  ;;  %v3144_v21 = vpop.permute.xlu1 %3143 }
 0x3ae   : > { %v3260_v2 = vcombine.high %v9530_v46, %v3242_v15  ;;  %v11086_v1 = vcombine.low %v9256_v39, %v9265_v9  ;;  %v3308_v38 = vrot.slane %v3294_v26, %v8943_v19  ;;  %v11087_v33 = vcombine.high %v9256_v39, %v9265_v9 }
 0x3af   : > { %v2913_v32 = vcombine.low %v2896_v12, %v2904_v28  ;;  %v3267_v5 = vrot.slane %v3259_v57, %v8948_v63  ;;  %v3309_v46 = vcombine.low %v9533_v31, %v3301_v24  ;;  %v3310_v15 = vcombine.high %v9533_v31, %v3301_v24  ;;  %v11089_v57 = vld [vmem:[#allocation18_spill] sm:$0xff] }
 0x3b0   : > { %v2930_v60 = vrot.slane %v11086_v1, %v8943_v19  ;;  %v2938_v58 = vrot.slane %v11087_v33, %v8943_v19  ;;  %v2939_v1 = vcombine.low %v9328_v41, %v9351_v43  ;;  %v3741_v42 = vcombine.low %v3251_v40, %v3258_v3 }
 0x3b1   : > { %v7298_v23 = vcombine.high %v3251_v40, %v3258_v3  ;;  %v9668_v26 = vrot.slane %v2905_v8, %v8948_v63  ;;  %v7293_v12 = vcombine.high %v9328_v41, %v9351_v43  ;;  %v3274_v39 = vrot.slane %v3260_v2, %v8948_v63 }
 0x3b2   : > { %v2946_v9 = vrot.slane %v2939_v1, %v8943_v19  ;;  %v2955_v28 = vcombine.low %v2930_v60, %v2938_v58  ;;  %v3167_v33 = vpack.i.b16 %v3128_v61, %v11089_v57  ;;  %v3170_v24 = vshrl.u32 %v3128_v61, 16 }
 0x3b3   : > { %11088 = vst [vmem:[#allocation27_spill] sm:$0xff] %v9668_v26  ;;  %v2954_v31 = vrot.slane %v7293_v12, %v8943_v19  ;;  %v3175_v0 = vpack.i.b16 %v3144_v21, %v9471_v20  ;;  %v3178_v48 = vshrl.u32 %v3144_v21, 16  ;;  %v3317_v40 = vrot.slane %v3309_v46, %v8948_v63 }
 0x3b4   : > { %v3324_v3 = vrot.slane %v3310_v15, %v8948_v63  ;;  %v3325_v8 = vcombine.low %v9538_v11, %v3308_v38  ;;  %v9681_v41 = vrot.slane %v2913_v32, %v8948_v63  ;;  %v11090_v60 = vshrl.u32 %v9471_v20, 16 }
 0x3b5   : > { %v2963_v43 = vcombine.low %v2946_v9, %v2954_v31  ;;  %v3360_v58 = vcombine.high %v3175_v0, %v8939_v14  ;;  %v3367_v61 = vrot.slane %v3175_v0, %v8943_v19  ;;  %v3326_v1 = vcombine.high %v9538_v11, %v3308_v38 }
 0x3b6   : > { %v3179_v2 = vpack.i.b16 %v3178_v48, %v11090_v60  ;;  %v9689_v21 = vrot.slane %v3741_v42, %v8943_v19  ;;  %v3345_v46 = vcombine.high %v3167_v33, %v8939_v14  ;;  %v3352_v15 = vrot.slane %v3167_v33, %v8943_v19  ;;  %v3138_v60 = vpop.permute.xlu1 %3137 }
 0x3b7   : > { %v9694_v32 = vrot.slane %v7298_v23, %v8943_v19  ;;  %v9697_v12 = vrot.slane %v2955_v28, %v8948_v63  ;;  %v9700_v20 = vrot.slane %v2963_v43, %v8948_v63  ;;  %v11093_v48 = vshrl.u32 %v11089_v57, 16 }
 0x3b8   : > { %11091 = vst [vmem:[#allocation18_spill] sm:$0xff] %v9689_v21  ;;  %v9705_v11 = vrot.slane %v3325_v8, %v8948_v63  ;;  %v3757_v42 = vcombine.low %v3267_v5, %v3274_v39  ;;  %v3374_v38 = vrot.slane %v3360_v58, %v8943_v19  ;;  %v3375_v9 = vcombine.low %v3352_v15, %v3367_v61 }
 0x3b9   : > { %11092 = vst [vmem:[#allocation41_spill] sm:$0xff] %v9694_v32  ;;  %v3171_v0 = vpack.i.b16 %v3170_v24, %v11093_v48  ;;  %v9710_v23 = vcombine.low %v9668_v26, %v9681_v41  ;;  %v9714_v28 = vcombine.low %v9697_v12, %v9700_v20  ;;  %v3376_v33 = vcombine.high %v3352_v15, %v3367_v61 }
 0x3ba   : > { %v3433_v31 = vrot.slane %v3179_v2, %v8943_v19  ;;  %v9718_v57 = vrot.slane %v3326_v1, %v8948_v63  ;;  %v7299_v24 = vcombine.high %v3267_v5, %v3274_v39  ;;  %v3791_v8 = vcombine.low %v3317_v40, %v3324_v3 }
 0x3bb   : > { %v3359_v43 = vrot.slane %v3345_v46, %v8943_v19  ;;  %v7300_v58 = vcombine.high %v3317_v40, %v3324_v3  ;;  %v3099_v48 = vpack.i.b16 %v9714_v28, %v9710_v23  ;;  %v3418_v21 = vrot.slane %v3171_v0, %v8943_v19 }
 0x3bc   : > { %v9726_v32 = vcombine.low %v9382_v16, %v9385_v53  ;;  %v3411_v61 = vcombine.high %v3171_v0, %v8939_v14  ;;  %v9730_v1 = vrot.slane %v3375_v9, %v8948_v63  ;;  %v3426_v39 = vcombine.high %v3179_v2, %v8939_v14 }
 0x3bd   : > { %v3391_v5 = vcombine.low %v3359_v43, %v3374_v38  ;;  %v4304_v46 = vsel %vm4205_vm1, %v3099_v48, 0  ;;  %v9735_v40 = vrot.slane %v3376_v33, %v8948_v63  ;;  %v3392_v3 = vcombine.high %v3359_v43, %v3374_v38 }
 0x3be   : > { %v3441_v15 = vcombine.low %v3418_v21, %v3433_v31  ;;  %v9738_v26 = vrot.slane %v3757_v42, %v8943_v19  ;;  %v9741_v16 = vrot.slane %v7299_v24, %v8943_v19  ;;  %v9744_v0 = vrot.slane %v3791_v8, %v8943_v19  ;;  %7562 = vmatpush3.bf16.xpose.msra.mxu0 %v4304_v46 }
 0x3bf   : > { %v11097_v2 = vcombine.low %v9367_v56, %v9371_v49  ;;  %v9751_v33 = vrot.slane %v7300_v58, %v8943_v19  ;;  %v3442_v38 = vcombine.high %v3418_v21, %v3433_v31  ;;  %v2031_v42 = vpack.i.b16 %v9726_v32, %v9379_v34  ;;  %7573 = vmatprep.subr.bf16.mxu0 %v11054_v51  ;;  %v3146_v58 = vpop.permute.xlu1 %3145 }
 0x3c0   : > { %11094 = vst [vmem:[#allocation42_spill] sm:$0xff] %v9738_v26  ;;  %11095 = vst [vmem:[#allocation43_spill] sm:$0xff] %v9741_v16  ;;  %v11099_v24 = vcombine.high %v9367_v56, %v9371_v49  ;;  %v3425_v43 = vrot.slane %v3411_v61, %v8943_v19  ;;  %v3399_v48 = vrot.slane %v3391_v5, %v8948_v63  ;;  %v3193_v16 = vshrl.u32 %v3138_v60, 16 }
 0x3c1   : > { %11096 = vst [vmem:[#allocation44_spill] sm:$0xff] %v9744_v0  ;;  %v2996_v9 = vrot.slane %v11097_v2, %v8943_v19  ;;  %11098 = vst [vmem:[#allocation45_spill] sm:$0xff] %v9751_v33  ;;  %v3440_v46 = vrot.slane %v3426_v39, %v8943_v19  ;;  %v11100_v21 = vcombine.low %v9404_v6, %v9443_v18 }
 0x3c2   : > { %v3004_v8 = vrot.slane %v11099_v24, %v8943_v19  ;;  %v3406_v2 = vrot.slane %v3392_v3, %v8948_v63  ;;  %v3449_v0 = vrot.slane %v3441_v15, %v8948_v63  ;;  %v3841_v56 = vcombine.low %v9730_v1, %v9735_v40 }
 0x3c3   : > { %v3030_v31 = vrot.slane %v11100_v21, %v8943_v19  ;;  %v3005_v49 = vcombine.low %v9446_v27, %v9449_v37  ;;  %v11101_v5 = vcombine.high %v9404_v6, %v9443_v18  ;;  %v11102_v24 = vcombine.low %v9454_v7, %v9461_v62 }
 0x3c4   : > { %v3013_v61 = vcombine.low %v2996_v9, %v3004_v8  ;;  %v11103_v3 = vcombine.high %v9454_v7, %v9461_v62  ;;  %v3456_v33 = vrot.slane %v3442_v38, %v8948_v63  ;;  %v3076_v27 = vshrl.u32 %v9338_v52, 16 }
 0x3c5   : > { %v3038_v39 = vrot.slane %v11101_v5, %v8943_v19  ;;  %v3046_v21 = vrot.slane %v11102_v24, %v8943_v19  ;;  %v3077_v37 = vshrl.u32 %v9345_v54, 16  ;;  %v3191_v9 = vpack.i.b16 %v3146_v58, %v3138_v60  ;;  %7564 = vmatmul.mubr.msk.bf16.vlgmr.msra.gmra.mrb[16].mxu0 %vm4205_vm1, %v2031_v42 }
 0x3c6   : > { %v3054_v15 = vrot.slane %v11103_v3, %v8943_v19  ;;  %v9789_v18 = vrot.slane %v3013_v61, %v8948_v63  ;;  %v3194_v5 = vshrl.u32 %v3146_v58, 16  ;;  %v3457_v26 = vcombine.low %v3425_v43, %v3440_v46  ;;  %7575 = vmatprep.mubr.msk.bf16.mxu0 %vm8454_vm0, %v11054_v51 }
 0x3c7   : > { %v3055_v6 = vcombine.low %v3030_v31, %v3038_v39  ;;  %v3078_v24 = vpack.i.b16 %v3077_v37, %v3076_v27  ;;  %v3499_v7 = vrot.slane %v3191_v9, %v8943_v19  ;;  %v3458_v62 = vcombine.high %v3425_v43, %v3440_v46 }
 0x3c8   : > { %v3063_v8 = vcombine.low %v3046_v21, %v3054_v15  ;;  %v9794_v38 = vrot.slane %v3005_v49, %v8948_v63  ;;  %v7302_v42 = vcombine.high %v9730_v1, %v9735_v40  ;;  %v3195_v31 = vpack.i.b16 %v3194_v5, %v3193_v16 }
 0x3c9   : > { %v9797_v52 = vrot.slane %v3055_v6, %v8948_v63  ;;  %v4398_v60 = vsel %vm4205_vm1, %v3078_v24, 0  ;;  %v3492_v43 = vcombine.high %v3191_v9, %v8939_v14  ;;  %v3507_v49 = vcombine.low %v9593_v55, %v3499_v7 }
 0x3ca   : > { %v9800_v54 = vrot.slane %v3063_v8, %v8948_v63  ;;  %v9810_v46 = vcombine.low %v9794_v38, %v9789_v18  ;;  %7574 = vmatpush3.bf16.xpose.msra.mxu0 %v4398_v60  ;;  %v3508_v61 = vcombine.high %v9593_v55, %v3499_v7  ;;  %v9819_v1 = vrot.slane %v3457_v26, %v8948_v63 }
 0x3cb   : > { %v3857_v40 = vcombine.low %v3399_v48, %v3406_v2  ;;  %v7303_v16 = vcombine.high %v3399_v48, %v3406_v2  ;;  %v3891_v39 = vcombine.low %v3449_v0, %v3456_v33  ;;  %7585 = vmatprep.subr.bf16.mxu0 %v11054_v51  ;;  %v9823_v21 = vrot.slane %v3458_v62, %v8948_v63 }
 0x3cc   : > { %v9814_v58 = vcombine.low %v9797_v52, %v9800_v54  ;;  %v7304_v3 = vcombine.high %v3449_v0, %v3456_v33  ;;  %v11104_v27 = vcombine.low %v9559_v13, %v9579_v50  ;;  %v3807_v26 = vcombine.low %v9705_v11, %v9718_v57 }
 0x3cd   : > { %v7301_v48 = vcombine.high %v9705_v11, %v9718_v57  ;;  %v3506_v2 = vrot.slane %v3492_v43, %v8943_v19  ;;  %v3558_v37 = vcombine.high %v3195_v31, %v8939_v14  ;;  %v3515_v33 = vrot.slane %v3507_v49, %v8948_v63 }
 0x3ce   : > { %v3111_v15 = vpack.i.b16 %v9814_v58, %v9810_v46  ;;  %v9831_v55 = vrot.slane %v11104_v27, %v8948_v63  ;;  %v3522_v9 = vrot.slane %v3508_v61, %v8948_v63  ;;  %v3565_v13 = vrot.slane %v3195_v31, %v8943_v19 }
 0x3cf   : > { %v9844_v50 = vrot.slane %v3841_v56, %v8943_v19  ;;  %v9847_v6 = vrot.slane %v7302_v42, %v8943_v19  ;;  %v9850_v8 = vrot.slane %v3857_v40, %v8943_v19  ;;  %v9853_v5 = vrot.slane %v7303_v16, %v8943_v19 }
 0x3d0   : > { %v4351_v0 = vsel %vm4205_vm1, %v3111_v15, 0  ;;  %v9856_v24 = vrot.slane %v3891_v39, %v8943_v19  ;;  %v9859_v7 = vrot.slane %v7304_v3, %v8943_v19  ;;  %v3907_v56 = vcombine.low %v9819_v1, %v9823_v21 }
 0x3d1   : > { %7568 = vmatpush3.bf16.xpose.msra.mxu1 %v4351_v0  ;;  %v9865_v62 = vcombine.low %v9632_v44, %v9831_v55  ;;  %v3523_v42 = vcombine.low %v9615_v22, %v3506_v2  ;;  %v3524_v60 = vcombine.high %v9615_v22, %v3506_v2  ;;  %v11105_v31 = vcombine.low %v9590_v47, %v9609_v17 }
 0x3d2   : > { %7579 = vmatprep.subr.bf16.mxu1 %v11054_v51  ;;  %v11106_v49 = vcombine.low %v9612_v45, %v9619_v30  ;;  %v3572_v40 = vrot.slane %v3558_v37, %v8943_v19  ;;  %v3573_v16 = vcombine.low %v9641_v10, %v3565_v13  ;;  %v3574_v39 = vcombine.high %v9641_v10, %v3565_v13 }
 0x3d3   : > { %v9874_v43 = vrot.slane %v11105_v31, %v8948_v63  ;;  %v3941_v3 = vcombine.low %v3515_v33, %v3522_v9  ;;  %v7306_v22 = vcombine.high %v3515_v33, %v3522_v9  ;;  %v2008_v47 = vshrl.u32 %v9412_v59, 16 }
 0x3d4   : > { %v9880_v61 = vrot.slane %v11106_v49, %v8948_v63  ;;  %v2009_v17 = vshrl.u32 %v9416_v29, 16  ;;  %v3088_v30 = vshrl.u32 %v9499_v36, 16  ;;  %v3089_v45 = vshrl.u32 %v9503_v4, 16 }
 0x3d5   : > { %v3100_v27 = vshrl.u32 %v9710_v23, 16  ;;  %v3101_v2 = vshrl.u32 %v9714_v28, 16  ;;  %v3531_v10 = vrot.slane %v3523_v42, %v8948_v63  ;;  %v3538_v37 = vrot.slane %v3524_v60, %v8948_v63 }
 0x3d6   : > { %v9887_v15 = vcombine.low %v9874_v43, %v9880_v61  ;;  %v2010_v33 = vpack.i.b16 %v2009_v17, %v2008_v47  ;;  %v7305_v59 = vcombine.high %v9819_v1, %v9823_v21  ;;  %v3581_v29 = vrot.slane %v3573_v16, %v8948_v63  ;;  %v11108_v47 = vld [vmem:[#allocation29_spill] sm:$0xff] }
 0x3d7   : > { %v3090_v36 = vpack.i.b16 %v3089_v45, %v3088_v30  ;;  %v3102_v9 = vpack.i.b16 %v3101_v2, %v3100_v27  ;;  %v3588_v4 = vrot.slane %v3574_v39, %v8948_v63  ;;  %v3589_v23 = vcombine.low %v9648_v35, %v3572_v40  ;;  %v11109_v30 = vld [vmem:[#allocation31_spill] sm:$0xff]  ;;  %v11110_v45 = vld [vmem:[#allocation30_spill] sm:$0xff] }
 0x3d8   : > { %v2043_v0 = vpack.i.b16 %v9887_v15, %v9865_v62  ;;  %v3590_v28 = vcombine.high %v9648_v35, %v3572_v40  ;;  %7576 = vmatmul.mubr.msk.bf16.vlgmr.msra.gmra.mrb[20].mxu0 %vm4205_vm1, %v2010_v33  ;;  %v9908_v13 = vrot.slane %v3941_v3, %v8943_v19  ;;  %v9911_v42 = vrot.slane %v7306_v22, %v8943_v19  ;;  %v11107_v22 = vld [vmem:[#allocation28_spill] sm:$0xff] }
 0x3d9   : > { %v4445_v60 = vsel %vm4205_vm1, %v3090_v36, 0  ;;  %v4492_v31 = vsel %vm4205_vm1, %v3102_v9, 0  ;;  %7587 = vmatprep.mubr.msk.bf16.mxu0 %vm8454_vm0, %v11054_v51  ;;  %v3957_v35 = vcombine.low %v3531_v10, %v3538_v37  ;;  %v7307_v49 = vcombine.high %v3531_v10, %v3538_v37  ;;  %v11111_v37 = vld [vmem:[#allocation26_spill] sm:$0xff] }
 0x3da   : > { %7570 = vmatmul.mubr.msk.bf16.vlgmr.msra.gmra.mrb[16].mxu1 %vm4205_vm1, %v2043_v0  ;;  %7586 = vmatpush3.bf16.xpose.msra.mxu0 %v4492_v31  ;;  %v2021_v40 = vshrl.u32 %v9587_v25, 16  ;;  %v2033_v16 = vshrl.u32 %v9726_v32, 16  ;;  %v3112_v39 = vshrl.u32 %v9810_v46, 16  ;;  %v3113_v3 = vshrl.u32 %v9814_v58, 16 }
 0x3db   : > { %7581 = vmatprep.mubr.msk.bf16.mxu1 %vm8454_vm0, %v11054_v51  ;;  %7580 = vmatpush3.bf16.xpose.msra.mxu1 %v4445_v60  ;;  %v2722_v17 = vcombine.high %v11108_v47, %v11107_v22  ;;  %v2772_v27 = vcombine.high %v11110_v45, %v11109_v30  ;;  %v9930_v2 = vrot.slane %v3589_v23, %v8948_v63  ;;  %v2020_v0 = vshrl.u32 %v11111_v37, 16  ;;  %v11112_v60 = vld [vmem:[#allocation39_spill] sm:$0xff]  ;;  %v11113_v23 = vld [vmem:[#allocation38_spill] sm:$0xff]  ;;  %v11114_v22 = vld [vmem:[#allocation36_spill] sm:$0xff] }
 0x3dc   : > { %7591 = vmatprep.subr.bf16.mxu1 %v11054_v51  ;;  %7597 = vmatprep.subr.bf16.mxu0 %v11054_v51  ;;  %v9933_v25 = vrot.slane %v3590_v28, %v8948_v63  ;;  %v3991_v32 = vcombine.low %v3581_v29, %v3588_v4  ;;  %v7308_v10 = vcombine.high %v3581_v29, %v3588_v4  ;;  %v2032_v46 = vshrl.u32 %v9379_v34, 16  ;;  %v11115_v34 = vld [vmem:[#allocation37_spill] sm:$0xff]  ;;  %v11118_v45 = vld [vmem:[#allocation27_spill] sm:$0xff] }
 0x3dd   : > { %v3114_v33 = vpack.i.b16 %v3113_v3, %v3112_v39  ;;  %v3081_v58 = vpack.i.b16 %v2772_v27, %v2722_v17  ;;  %v9938_v36 = vrot.slane %v3957_v35, %v8943_v19  ;;  %v9941_v9 = vrot.slane %v7307_v49, %v8943_v19  ;;  %v11116_v3 = vld [vmem:[#allocation40_spill] sm:$0xff]  ;;  %v11117_v35 = vld [vmem:[#allocation23_spill] sm:$0xff] }
 0x3de   : > { %v9945_v31 = vcombine.high %v11113_v23, %v11112_v60  ;;  %v9949_v28 = vcombine.high %v9697_v12, %v9700_v20  ;;  %v2022_v29 = vpack.i.b16 %v2021_v40, %v2020_v0  ;;  %v2034_v4 = vpack.i.b16 %v2033_v16, %v2032_v46  ;;  %v11119_v12 = vld [vmem:[#allocation25_spill] sm:$0xff]  ;;  %v11120_v20 = vld [vmem:[#allocation24_spill] sm:$0xff]  ;;  %v11122_v46 = vld [vmem:[#allocation22_spill] sm:$0xff] }
 0x3df   : > { %v9953_v39 = vcombine.high %v11115_v34, %v11114_v22  ;;  %v9957_v47 = vcombine.high %v11117_v35, %v11116_v3  ;;  %v9960_v49 = vrot.slane %v3991_v32, %v8943_v19  ;;  %v2045_v30 = vshrl.u32 %v9887_v15, 16  ;;  %v11121_v32 = vld [vmem:[#allocation35_spill] sm:$0xff]  ;;  %v11124_v22 = vld [vmem:[#allocation20_spill] sm:$0xff]  ;;  %v11125_v3 = vld [vmem:[#allocation34_spill] sm:$0xff] }
 0x3e0   : > { %v9965_v37 = vcombine.high %v11118_v45, %v9681_v41  ;;  %v9969_v40 = vcombine.high %v11120_v20, %v11119_v12  ;;  %v4539_v16 = vsel %vm4205_vm1, %v3114_v33, 0  ;;  %v4586_v0 = vsel %vm4205_vm1, %v3081_v58, 0  ;;  %v11126_v20 = vld [vmem:[#allocation32_spill] sm:$0xff] }
 0x3e1   : > { %7588 = vmatmul.mubr.msk.bf16.vlgmr.msra.gmra.mrb[24].mxu0 %vm4205_vm1, %v2034_v4  ;;  %v1704_v60 = vcombine.high %v11122_v46, %v11121_v32  ;;  %v3093_v15 = vpack.i.b16 %v9945_v31, %v9953_v39  ;;  %v9988_v33 = vrot.slane %v7308_v10, %v8943_v19  ;;  %v2044_v58 = vshrl.u32 %v9865_v62, 16  ;;  %v11123_v4 = vld [vmem:[#allocation21_spill] sm:$0xff] }
 0x3e2   : > { %7582 = vmatmul.mubr.msk.bf16.vlgmr.msra.gmra.mrb[20].mxu1 %vm4205_vm1, %v2022_v29  ;;  %7598 = vmatpush3.bf16.xpose.msra.mxu0 %v4586_v0  ;;  %v3105_v41 = vpack.i.b16 %v9949_v28, %v9965_v37  ;;  %v2025_v23 = vpack.i.b16 %v9969_v40, %v9957_v47  ;;  %v9985_v29 = vcombine.high %v9797_v52, %v9800_v54  ;;  %v3083_v10 = vshrl.u32 %v2772_v27, 16 }
 0x3e3   : > { %7592 = vmatpush3.bf16.xpose.msra.mxu1 %v4539_v16  ;;  %7593 = vmatprep.mubr.msk.bf16.mxu1 %vm8454_vm0, %v11054_v51  ;;  %v1654_v34 = vcombine.high %v11124_v22, %v11123_v4  ;;  %v9999_v35 = vcombine.high %v11125_v3, %v9385_v53  ;;  %v4007_v52 = vcombine.low %v9930_v2, %v9933_v25  ;;  %v11127_v53 = vld [vmem:[#allocation33_spill] sm:$0xff]  ;;  %v3082_v0 = vshrl.u32 %v2722_v17, 16  ;;  %v11129_v3 = vld [vmem:[#allocation18_spill] sm:$0xff] }
 0x3e4   : > { %7599 = vmatprep.mubr.msk.bf16.mxu0 %vm8454_vm0, %v11054_v51  ;;  %7603 = vmatprep.subr.bf16.mxu1 %v11054_v51  ;;  %v10009_v62 = vcombine.high %v9794_v38, %v9789_v18  ;;  %v2046_v45 = vpack.i.b16 %v2045_v30, %v2044_v58  ;;  %v10013_v16 = vcombine.high %v11127_v53, %v11126_v20  ;;  %v4633_v32 = vsel %vm4205_vm1, %v3093_v15, 0  ;;  %v11128_v58 = vld [vmem:[#allocation41_spill] sm:$0xff]  ;;  %v11131_v53 = vld [vmem:[#allocation42_spill] sm:$0xff] }
 0x3e5   : > { %7609 = vmatprep.subr.bf16.mxu0 %v11054_v51  ;;  %v2013_v12 = vpack.i.b16 %v1704_v60, %v1654_v34  ;;  %v4680_v46 = vsel %vm4205_vm1, %v3105_v41, 0  ;;  %v10021_v22 = vcombine.high %v9874_v43, %v9880_v61  ;;  %v10027_v38 = vcombine.high %v9632_v44, %v9831_v55  ;;  %v11130_v55 = vld [vmem:[#allocation43_spill] sm:$0xff] }
 0x3e6   : > { %v3117_v4 = vpack.i.b16 %v9985_v29, %v10009_v62  ;;  %v2037_v18 = vpack.i.b16 %v9999_v35, %v10013_v16  ;;  %v2026_v17 = vshrl.u32 %v9957_v47, 16  ;;  %v2027_v27 = vshrl.u32 %v9969_v40, 16 }
 0x3e7   : > { %v3084_v30 = vpack.i.b16 %v3083_v10, %v3082_v0  ;;  %v2014_v15 = vshrl.u32 %v1654_v34, 16  ;;  %v2015_v41 = vshrl.u32 %v1704_v60, 16  ;;  %v3773_v20 = vcombine.low %v11129_v3, %v11128_v58 }
 0x3e8   : > { %v3094_v43 = vshrl.u32 %v9953_v39, 16  ;;  %v3095_v61 = vshrl.u32 %v9945_v31, 16  ;;  %v10037_v44 = vpack.i.b16 %v2027_v27, %v2026_v17  ;;  %v3781_v54 = vcombine.low %v11131_v53, %v11130_v55 }
 0x3e9   : > { %7600 = vmatmul.mubr.msk.bf16.vlgmr.msra.gmra.mrb[28].mxu0 %vm4205_vm1, %v2013_v12  ;;  %v4727_v60 = vsel %vm4205_vm1, %v3117_v4, 0  ;;  %v2049_v34 = vpack.i.b16 %v10021_v22, %v10027_v38  ;;  %v3107_v10 = vshrl.u32 %v9949_v28, 16  ;;  %v3106_v31 = vshrl.u32 %v9965_v37, 16  ;;  %v11133_v37 = vld [vmem:[#allocation44_spill] sm:$0xff] }
 0x3ea   : > { %7594 = vmatmul.mubr.msk.bf16.vlgmr.msra.gmra.mrb[24].mxu1 %vm4205_vm1, %v2046_v45  ;;  %7610 = vmatpush3.bf16.xpose.msra.mxu0 %v4680_v46  ;;  %v3780_v45 = vrot.slane %v3773_v20, %v8948_v63  ;;  %v3788_v39 = vrot.slane %v3781_v54, %v8948_v63  ;;  %v3814_v12 = vrot.slane %v3807_v26, %v8943_v19  ;;  %v4774_v0 = vsel %vm4205_vm1, %v3084_v30, 0 }
 0x3eb   : > { %7604 = vmatpush3.bf16.xpose.msra.mxu1 %v4633_v32  ;;  %7605 = vmatprep.mubr.msk.bf16.mxu1 %vm8454_vm0, %v11054_v51  ;;  %v3822_v28 = vrot.slane %v7301_v48, %v8943_v19  ;;  %v11132_v32 = vld [vmem:[#allocation45_spill] sm:$0xff]  ;;  %v3873_v54 = vcombine.low %v9844_v50, %v9847_v6  ;;  %v3881_v26 = vcombine.low %v9850_v8, %v9853_v5  ;;  %v2039_v1 = vshrl.u32 %v9999_v35, 16 }
 0x3ec   : > { %7611 = vmatprep.mubr.msk.bf16.mxu0 %vm8454_vm0, %v11054_v51  ;;  %7615 = vmatprep.subr.bf16.mxu1 %v11054_v51  ;;  %v3823_v46 = vcombine.low %v11133_v37, %v11132_v32  ;;  %v2016_v4 = vpack.i.b16 %v2015_v41, %v2014_v15  ;;  %v3096_v17 = vpack.i.b16 %v3095_v61, %v3094_v43 }
 0x3ed   : > { %7621 = vmatprep.subr.bf16.mxu0 %v11054_v51  ;;  %v3831_v27 = vcombine.low %v3814_v12, %v3822_v28  ;;  %v3914_v11 = vrot.slane %v3907_v56, %v8943_v19  ;;  %v3108_v57 = vpack.i.b16 %v3107_v10, %v3106_v31  ;;  %v10073_v48 = vcombine.low %v3780_v45, %v3788_v39 }
 0x3ee   : > { %v3888_v30 = vrot.slane %v3881_v26, %v8948_v63  ;;  %v3922_v50 = vrot.slane %v7305_v59, %v8943_v19  ;;  %v3830_v6 = vrot.slane %v3823_v46, %v8948_v63  ;;  %v3880_v5 = vrot.slane %v3873_v54, %v8948_v63 }
 0x3ef   : > { %v3838_v8 = vrot.slane %v3831_v27, %v8948_v63  ;;  %v3923_v15 = vcombine.low %v9856_v24, %v9859_v7  ;;  %v3973_v41 = vcombine.low %v9908_v13, %v9911_v42  ;;  %v3981_v58 = vcombine.low %v9938_v36, %v9941_v9 }
 0x3f0   : > { %v3931_v56 = vcombine.low %v3914_v11, %v3922_v50  ;;  %v4014_v3 = vrot.slane %v4007_v52, %v8943_v19  ;;  %v10098_v24 = vcombine.low %v3880_v5, %v3888_v30  ;;  %v3119_v59 = vshrl.u32 %v9985_v29, 16 }
 0x3f1   : > { %7612 = vmatmul.mubr.msk.bf16.vlgmr.msra.gmra.mrb[32].mxu0 %vm4205_vm1, %v2037_v18  ;;  %v10096_v21 = vcombine.low %v3830_v6, %v3838_v8  ;;  %v3930_v7 = vrot.slane %v3923_v15, %v8948_v63  ;;  %v3988_v42 = vrot.slane %v3981_v58, %v8948_v63  ;;  %v11134_v36 = vcombine.high %v9930_v2, %v9933_v25 }
 0x3f2   : > { %7606 = vmatmul.mubr.msk.bf16.vlgmr.msra.gmra.mrb[28].mxu1 %vm4205_vm1, %v2025_v23  ;;  %7622 = vmatpush3.bf16.xpose.msra.mxu0 %v4774_v0  ;;  %v3938_v13 = vrot.slane %v3931_v56, %v8948_v63  ;;  %v4023_v47 = vcombine.low %v9960_v49, %v9988_v33  ;;  %v4145_v40 = vshrl.u32 %v10073_v48, 16  ;;  %v10116_v29 = vcombine.high %v3780_v45, %v3788_v39 }
 0x3f3   : > { %7616 = vmatpush3.bf16.xpose.msra.mxu1 %v4727_v60  ;;  %v4022_v9 = vrot.slane %v11134_v36, %v8943_v19  ;;  %7617 = vmatprep.mubr.msk.bf16.mxu1 %vm8454_vm0, %v11054_v51  ;;  %v4146_v23 = vshrl.u32 %v10096_v21, 16  ;;  %v4821_v2 = vsel %vm4205_vm1, %v3096_v17, 0  ;;  %v3980_v35 = vrot.slane %v3973_v41, %v8948_v63 }
 0x3f4   : > { %7623 = vmatprep.mubr.msk.bf16.mxu0 %vm8454_vm0, %v11054_v51  ;;  %7627 = vmatprep.subr.bf16.mxu1 %v11054_v51  ;;  %v3939_v25 = vcombine.low %v3930_v7, %v3938_v13  ;;  %v4161_v49 = vshrl.u32 %v10098_v24, 16  ;;  %v10125_v33 = vcombine.high %v3830_v6, %v3838_v8  ;;  %v10127_v20 = vcombine.high %v3880_v5, %v3888_v30 }
 0x3f5   : > { %7633 = vmatprep.subr.bf16.mxu0 %v11054_v51  ;;  %v4031_v52 = vcombine.low %v4014_v3, %v4022_v9  ;;  %v10122_v18 = vpack.i.b16 %v4146_v23, %v4145_v40  ;;  %v10129_v43 = vcombine.low %v3980_v35, %v3988_v42  ;;  %v4030_v61 = vrot.slane %v4023_v47, %v8948_v63 }
 0x3f6   : > { %v4162_v53 = vshrl.u32 %v3939_v25, 16  ;;  %v10135_v10 = vcombine.high %v3930_v7, %v3938_v13  ;;  %v10137_v45 = vcombine.high %v3980_v35, %v3988_v42  ;;  %v4153_v31 = vshrl.u32 %v10116_v29, 16 }
 0x3f7   : > { %v4038_v55 = vrot.slane %v4031_v52, %v8948_v63  ;;  %v4154_v0 = vshrl.u32 %v10125_v33, 16  ;;  %v4868_v32 = vsel %vm4205_vm1, %v3108_v57, 0  ;;  %v4169_v46 = vshrl.u32 %v10127_v20, 16 }
 0x3f8   : > { %v10142_v12 = vpack.i.b16 %v4162_v53, %v4161_v49  ;;  %v4170_v54 = vshrl.u32 %v10135_v10, 16  ;;  %v4177_v26 = vshrl.u32 %v10129_v43, 16  ;;  %v4185_v57 = vshrl.u32 %v10137_v45, 16 }
 0x3f9   : > { %v10140_v39 = vcombine.low %v4030_v61, %v4038_v55  ;;  %v10144_v28 = vcombine.high %v4030_v61, %v4038_v55  ;;  %7624 = vmatmul.mubr.msk.bf16.vlgmr.msra.gmra.mrb[36].mxu0 %vm4205_vm1, %v2016_v4  ;;  %v10161_v27 = vpack.i.b16 %v4154_v0, %v4153_v31  ;;  %v3118_v4 = vshrl.u32 %v10009_v62, 16 }
 0x3fa   : > { %7618 = vmatmul.mubr.msk.bf16.vlgmr.msra.gmra.mrb[32].mxu1 %vm4205_vm1, %v2049_v34  ;;  %7634 = vmatpush3.bf16.xpose.msra.mxu0 %v4868_v32  ;;  %v10168_v11 = vpack.i.b16 %v4170_v54, %v4169_v46  ;;  %v2038_v6 = vshrl.u32 %v10013_v16, 16  ;;  %v4143_v62 = vpack.i.b16 %v10096_v21, %v10073_v48  ;;  %v2051_v16 = vshrl.u32 %v10021_v22, 16 }
 0x3fb   : > { %7628 = vmatpush3.bf16.xpose.msra.mxu1 %v4821_v2  ;;  %v4178_v17 = vshrl.u32 %v10140_v39, 16  ;;  %11135 = vst [vmem:[#allocation28_spill] sm:$0xff] %v10161_v27  ;;  %7629 = vmatprep.mubr.msk.bf16.mxu1 %vm8454_vm0, %v11054_v51  ;;  %v4186_v30 = vshrl.u32 %v10144_v28, 16  ;;  %v3120_v8 = vpack.i.b16 %v3119_v59, %v3118_v4  ;;  %v4159_v41 = vpack.i.b16 %v3939_v25, %v10098_v24 }
 0x3fc   : > { %7635 = vmatprep.mubr.msk.bf16.mxu0 %vm8454_vm0, %v11054_v51  ;;  %11136 = vst [vmem:[#allocation29_spill] sm:$0xff] %v10168_v11  ;;  %7639 = vmatprep.subr.bf16.mxu1 %v11054_v51  ;;  %v2040_v15 = vpack.i.b16 %v2039_v1, %v2038_v6 }
 0x3fd   : > { %7645 = vmatprep.subr.bf16.mxu0 %v11054_v51  ;;  %v10174_v50 = vpack.i.b16 %v4178_v17, %v4177_v26  ;;  %v10177_v5 = vpack.i.b16 %v4186_v30, %v4185_v57  ;;  %v4915_v56 = vsel %vm4205_vm1, %v3120_v8, 0 }
 0x3ff   : > { %11137 = vst [vmem:[#allocation31_spill] sm:$0xff] %v10177_v5 }
 0x401   : > { %7636 = vmatmul.mubr.msk.bf16.vlgmr.msra.gmra.mrb[40].mxu0 %vm4205_vm1, %v2040_v15 }
 0x402   : > { %7630 = vmatmul.mubr.msk.bf16.vlgmr.msra.gmra.mrb[36].mxu1 %vm4205_vm1, %v10037_v44  ;;  %7646 = vmatpush3.bf16.msra.mxu0 %v4143_v62  ;;  %v2050_v44 = vshrl.u32 %v10027_v38, 16 }
 0x403   : > { %7640 = vmatpush3.bf16.xpose.msra.mxu1 %v4915_v56  ;;  %7641 = vmatprep.mubr.msk.bf16.mxu1 %vm8454_vm0, %v11054_v51 }
 0x404   : > { %7651 = vmatprep.subr.bf16.mxu1 %v11054_v51  ;;  %7647 = vmatprep.mubr.msk.bf16.mxu0 %vm8454_vm0, %v11054_v51  ;;  %v2052_v48 = vpack.i.b16 %v2051_v16, %v2050_v44 }
 0x405   : > { %7657 = vmatprep.subr.bf16.mxu0 %v11054_v51 }
 0x40a   : > { %7642 = vmatmul.mubr.msk.bf16.vlgmr.msra.gmra.mrb[40].mxu1 %vm4205_vm1, %v2052_v48 }
 0x40b   : > { %7652 = vmatpush3.bf16.msra.mxu1 %v4159_v41  ;;  %7653 = vmatprep.mubr.msk.bf16.mxu1 %vm8454_vm0, %v11054_v51 }
 0x40c   : > { %7663 = vmatprep.subr.bf16.mxu1 %v11054_v51 }
 0x465   : > { %v10198_v22 = vpop.f32.mrb[8].mxu1 }
 0x466   : > { %v7553_v58 = vpop.f32.mrb[9].mxu1  ;;  %v4959_v3 = vsel %vm4958_vm2, %v10198_v22, -inf }
 0x467   : > { %4960 = vmax.xlane.f32.xlu0 %v4959_v3  ;;  %v10202_v38 = vpop.f32.mrb[10].mxu1 }
 0x468   : > { %v7554_v1 = vpop.f32.mrb[11].mxu1  ;;  %v4962_v21 = vsel %vm4958_vm2, %v10202_v38, -inf }
 0x469   : > { %4963 = vmax.xlane.f32.xlu1 %v4962_v21 }
 0x47e   : > { %v10206_v24 = vpop.f32.mrb[12].mxu1 }
 0x47f   : > { %v7559_v7 = vpop.f32.mrb[13].mxu1  ;;  %v4965_v59 = vsel %vm4958_vm2, %v10206_v24, -inf }
 0x480   : > { %4966 = vmax.xlane.f32.xlu0 %v4965_v59  ;;  %v10210_v13 = vpop.f32.mrb[14].mxu1 }
 0x481   : > { %v7560_v42 = vpop.f32.mrb[15].mxu1  ;;  %v4968_v36 = vsel %vm4958_vm2, %v10210_v13, -inf }
 0x484   : > { %4969 = vmax.xlane.f32.xlu0 %v4968_v36 }
 0x498   : > { %v10214_v9 = vpop.f32.mrb[16].mxu0 }
 0x499   : > { %v7565_v47 = vpop.f32.mrb[17].mxu0  ;;  %v4971_v40 = vsel %vm4958_vm2, %v10214_v9, -inf }
 0x49a   : > { %4972 = vmax.xlane.f32.xlu0 %v4971_v40  ;;  %v10218_v23 = vpop.f32.mrb[18].mxu0 }
 0x49b   : > { %v7566_v2 = vpop.f32.mrb[19].mxu0  ;;  %v4974_v25 = vsel %vm4958_vm2, %v10218_v23, -inf }
 0x49c   : > { %4975 = vmax.xlane.f32.xlu1 %v4974_v25 }
 0x4ab   : > { %v10224_v52 = vpop.f32.mrb[20].mxu0 }
 0x4ac   : > { %v7577_v61 = vpop.f32.mrb[21].mxu0  ;;  %v4983_v54 = vsel %vm4958_vm2, %v10224_v52, -inf }
 0x4ad   : > { %v10222_v35 = vpop.f32.mrb[16].mxu1  ;;  %v10228_v53 = vpop.f32.mrb[22].mxu0 }
 0x4ae   : > { %v7571_v49 = vpop.f32.mrb[17].mxu1  ;;  %v4977_v55 = vsel %vm4958_vm2, %v10222_v35, -inf  ;;  %v7578_v32 = vpop.f32.mrb[23].mxu0  ;;  %v4986_v26 = vsel %vm4958_vm2, %v10228_v53, -inf }
 0x4af   : > { %4978 = vmax.xlane.f32.xlu0 %v4977_v55  ;;  %v10230_v31 = vpop.f32.mrb[18].mxu1 }
 0x4b0   : > { %v7572_v0 = vpop.f32.mrb[19].mxu1  ;;  %v4980_v46 = vsel %vm4958_vm2, %v10230_v31, -inf }
 0x4b1   : > { %4981 = vmax.xlane.f32.xlu1 %v4980_v46 }
 0x4b3   : > { %4984 = vmax.xlane.f32.xlu0 %v4983_v54 }
 0x4b4   : > { %v10238_v17 = vpop.f32.mrb[24].mxu0 }
 0x4b5   : > { %4987 = vmax.xlane.f32.xlu1 %v4986_v26  ;;  %v10240_v4 = vpop.f32.mrb[20].mxu1  ;;  %v7589_v30 = vpop.f32.mrb[25].mxu0  ;;  %v4995_v44 = vsel %vm4958_vm2, %v10238_v17, -inf }
 0x4b6   : > { %v7583_v57 = vpop.f32.mrb[21].mxu1  ;;  %v4989_v6 = vsel %vm4958_vm2, %v10240_v4, -inf  ;;  %v10244_v8 = vpop.f32.mrb[26].mxu0 }
 0x4b7   : > { %4990 = vmax.xlane.f32.xlu0 %v4989_v6  ;;  %v10246_v15 = vpop.f32.mrb[22].mxu1  ;;  %v7590_v56 = vpop.f32.mrb[27].mxu0  ;;  %v4998_v48 = vsel %vm4958_vm2, %v10244_v8, -inf }
 0x4b8   : > { %v7584_v62 = vpop.f32.mrb[23].mxu1  ;;  %v4992_v16 = vsel %vm4958_vm2, %v10246_v15, -inf }
 0x4b9   : > { %4993 = vmax.xlane.f32.xlu1 %v4992_v16 }
 0x4bb   : > { %4996 = vmax.xlane.f32.xlu0 %v4995_v44 }
 0x4bc   : > { %v10254_v41 = vpop.f32.mrb[28].mxu0 }
 0x4bd   : > { %4999 = vmax.xlane.f32.xlu1 %v4998_v48  ;;  %v10256_v58 = vpop.f32.mrb[24].mxu1  ;;  %v7601_v1 = vpop.f32.mrb[29].mxu0  ;;  %v5007_v40 = vsel %vm4958_vm2, %v10254_v41, -inf }
 0x4be   : > { %v7595_v3 = vpop.f32.mrb[25].mxu1  ;;  %v5001_v21 = vsel %vm4958_vm2, %v10256_v58, -inf  ;;  %v10260_v7 = vpop.f32.mrb[30].mxu0 }
 0x4bf   : > { %5002 = vmax.xlane.f32.xlu0 %v5001_v21  ;;  %v10262_v59 = vpop.f32.mrb[26].mxu1  ;;  %v7602_v36 = vpop.f32.mrb[31].mxu0  ;;  %v5010_v2 = vsel %vm4958_vm2, %v10260_v7, -inf }
 0x4c0   : > { %v7596_v42 = vpop.f32.mrb[27].mxu1  ;;  %v5004_v47 = vsel %vm4958_vm2, %v10262_v59, -inf }
 0x4c1   : > { %5005 = vmax.xlane.f32.xlu1 %v5004_v47 }
 0x4c3   : > { %5008 = vmax.xlane.f32.xlu0 %v5007_v40 }
 0x4c4   : > { %v10270_v25 = vpop.f32.mrb[32].mxu0 }
 0x4c5   : > { %5011 = vmax.xlane.f32.xlu1 %v5010_v2  ;;  %v10272_v49 = vpop.f32.mrb[28].mxu1  ;;  %v7613_v55 = vpop.f32.mrb[33].mxu0  ;;  %v5019_v30 = vsel %vm4958_vm2, %v10270_v25, -inf }
 0x4c6   : > { %v7607_v61 = vpop.f32.mrb[29].mxu1  ;;  %v5013_v0 = vsel %vm4958_vm2, %v10272_v49, -inf  ;;  %v10276_v32 = vpop.f32.mrb[34].mxu0 }
 0x4c7   : > { %5014 = vmax.xlane.f32.xlu0 %v5013_v0  ;;  %v10278_v46 = vpop.f32.mrb[30].mxu1  ;;  %v7614_v26 = vpop.f32.mrb[35].mxu0  ;;  %v5022_v6 = vsel %vm4958_vm2, %v10276_v32, -inf }
 0x4c8   : > { %v7608_v54 = vpop.f32.mrb[31].mxu1  ;;  %v5016_v57 = vsel %vm4958_vm2, %v10278_v46, -inf }
 0x4c9   : > { %5017 = vmax.xlane.f32.xlu1 %v5016_v57 }
 0x4cb   : > { %5020 = vmax.xlane.f32.xlu0 %v5019_v30 }
 0x4cc   : > { %v10286_v62 = vpop.f32.mrb[36].mxu0 }
 0x4cd   : > { %5023 = vmax.xlane.f32.xlu1 %v5022_v6  ;;  %v10288_v56 = vpop.f32.mrb[32].mxu1  ;;  %v7625_v44 = vpop.f32.mrb[37].mxu0  ;;  %v5031_v47 = vsel %vm4958_vm2, %v10286_v62, -inf }
 0x4ce   : > { %v7619_v16 = vpop.f32.mrb[33].mxu1  ;;  %v5025_v48 = vsel %vm4958_vm2, %v10288_v56, -inf  ;;  %v10292_v3 = vpop.f32.mrb[38].mxu0 }
 0x4cf   : > { %5026 = vmax.xlane.f32.xlu0 %v5025_v48  ;;  %v10294_v1 = vpop.f32.mrb[34].mxu1  ;;  %v7626_v42 = vpop.f32.mrb[39].mxu0  ;;  %v5034_v40 = vsel %vm4958_vm2, %v10292_v3, -inf }
 0x4d0   : > { %v7620_v21 = vpop.f32.mrb[35].mxu1  ;;  %v5028_v36 = vsel %vm4958_vm2, %v10294_v1, -inf }
 0x4d1   : > { %5029 = vmax.xlane.f32.xlu1 %v5028_v36 }
 0x4d3   : > { %5032 = vmax.xlane.f32.xlu0 %v5031_v47 }
 0x4d4   : > { %v10302_v2 = vpop.f32.mrb[40].mxu0 }
 0x4d5   : > { %5035 = vmax.xlane.f32.xlu1 %v5034_v40  ;;  %v10304_v61 = vpop.f32.mrb[36].mxu1  ;;  %v7637_v0 = vpop.f32.mrb[41].mxu0  ;;  %v5043_v44 = vsel %vm4958_vm2, %v10302_v2, -inf }
 0x4d6   : > { %v7631_v55 = vpop.f32.mrb[37].mxu1  ;;  %v5037_v54 = vsel %vm4958_vm2, %v10304_v61, -inf  ;;  %v10308_v26 = vpop.f32.mrb[42].mxu0  ;;  %v11138_v0 = vld [vmem:[#allocation19_spill] sm:$0xff] }
 0x4d7   : > { %5038 = vmax.xlane.f32.xlu0 %v5037_v54  ;;  %v10310_v57 = vpop.f32.mrb[38].mxu1  ;;  %v7638_v6 = vpop.f32.mrb[43].mxu0  ;;  %v5046_v48 = vsel %vm4958_vm2, %v10308_v26, -inf }
 0x4d8   : > { %v7632_v30 = vpop.f32.mrb[39].mxu1  ;;  %v5040_v16 = vsel %vm4958_vm2, %v10310_v57, -inf  ;;  %v10328_v54 = vpop.permute.xlu1 %3131 }
 0x4d9   : > { %5041 = vmax.xlane.f32.xlu1 %v5040_v16 }
 0x4db   : > { %5044 = vmax.xlane.f32.xlu0 %v5043_v44 }
 0x4dd   : > { %5047 = vmax.xlane.f32.xlu1 %v5046_v48  ;;  %v10318_v21 = vpop.f32.mrb[40].mxu1 }
 0x4de   : > { %v7643_v42 = vpop.f32.mrb[41].mxu1  ;;  %v5049_v36 = vsel %vm4958_vm2, %v10318_v21, -inf }
 0x4df   : > { %5050 = vmax.xlane.f32.xlu0 %v5049_v36  ;;  %v10322_v47 = vpop.f32.mrb[42].mxu1 }
 0x4e0   : > { %v7644_v40 = vpop.f32.mrb[43].mxu1  ;;  %v5052_v55 = vsel %vm4958_vm2, %v10322_v47, -inf }
 0x4e1   : > { %5053 = vmax.xlane.f32.xlu1 %v5052_v55 }
 0x4f4   : > { %v4961_v30 = vpop.xlane.xlu0 %4960 }
 0x4f5   : > { %3139 = vrot.lane.b32.xlu0 %v11138_v0, %s8450_s15  ;;  %v5055_v44 = vsub.f32 %v10198_v22, %v4961_v30  ;;  %s11148_s15 = sld [smem:[#allocation49_spill]] }
 0x4f6   : > { %v4964_v6 = vpop.xlane.xlu1 %4963 }
 0x4f7   : > { %v5056_v16 = vsub.f32 %v10202_v38, %v4964_v6  ;;  %v5087_v42 = vmul.f32 1.442695, %v5055_v44 }
 0x4f9   : > { %v5089_v48 = vmul.f32 1.442695, %v5056_v16 }
 0x4fb   : > { %8036 = vpow2.f32 %v5089_v48 }
 0x4fc   : > { %8038 = vpow2.f32 %v5087_v42 }
 0x505   : > { %v10332_v36 = vpop.eup %8036 }
 0x506   : > { %v5154_v40 = vsel %vm4958_vm2, %v10332_v36, 0.0  ;;  %v10336_v55 = vpop.eup %8038 }
 0x507   : > { %5155 = vadd.xlane.f32.xlu1 %v5154_v40  ;;  %v5151_v37 = vsel %vm4958_vm2, %v10336_v55, 0.0 }
 0x50d   : > { %v4967_v34 = vpop.xlane.xlu0 %4966 }
 0x50e   : > { %v5057_v38 = vsub.f32 %v10206_v24, %v4967_v34 }
 0x510   : > { %v5091_v6 = vmul.f32 1.442695, %v5057_v38 }
 0x511   : > { %v4970_v22 = vpop.xlane.xlu0 %4969 }
 0x512   : > { %8040 = vpow2.f32 %v5091_v6  ;;  %v5058_v30 = vsub.f32 %v10210_v13, %v4970_v22 }
 0x514   : > { %5152 = vadd.xlane.f32.xlu0 %v5151_v37  ;;  %v5093_v16 = vmul.f32 1.442695, %v5058_v30 }
 0x516   : > { %8042 = vpow2.f32 %v5093_v16 }
 0x51c   : > { %v10342_v44 = vpop.eup %8040 }
 0x51d   : > { %v5157_v48 = vsel %vm4958_vm2, %v10342_v44, 0.0 }
 0x51e   : > { %5158 = vadd.xlane.f32.xlu0 %v5157_v48 }
 0x520   : > { %v10346_v42 = vpop.eup %8042 }
 0x521   : > { %v5160_v40 = vsel %vm4958_vm2, %v10346_v42, 0.0 }
 0x522   : > { %5161 = vadd.xlane.f32.xlu1 %v5160_v40 }
 0x527   : > { %v4973_v34 = vpop.xlane.xlu0 %4972 }
 0x528   : > { %v5059_v37 = vsub.f32 %v10214_v9, %v4973_v34 }
 0x529   : > { %v4976_v24 = vpop.xlane.xlu1 %4975 }
 0x52a   : > { %v5095_v38 = vmul.f32 1.442695, %v5059_v37  ;;  %v5060_v13 = vsub.f32 %v10218_v23, %v4976_v24 }
 0x52c   : > { %8044 = vpow2.f32 %v5095_v38  ;;  %v5097_v6 = vmul.f32 1.442695, %v5060_v13 }
 0x52e   : > { %8046 = vpow2.f32 %v5097_v6 }
 0x536   : > { %v10352_v22 = vpop.eup %8044 }
 0x537   : > { %v5163_v16 = vsel %vm4958_vm2, %v10352_v22, 0.0 }
 0x538   : > { %v10356_v48 = vpop.eup %8046  ;;  %5164 = vadd.xlane.f32.xlu0 %v5163_v16 }
 0x539   : > { %v5166_v9 = vsel %vm4958_vm2, %v10356_v48, 0.0 }
 0x53a   : > { %5167 = vadd.xlane.f32.xlu1 %v5166_v9 }
 0x53c   : > { %v4979_v30 = vpop.xlane.xlu0 %4978 }
 0x53d   : > { %v5061_v40 = vsub.f32 %v10222_v35, %v4979_v30 }
 0x53e   : > { %v4982_v60 = vpop.xlane.xlu1 %4981 }
 0x53f   : > { %v5099_v34 = vmul.f32 1.442695, %v5061_v40  ;;  %v5062_v23 = vsub.f32 %v10230_v31, %v4982_v60 }
 0x540   : > { %v4985_v37 = vpop.xlane.xlu0 %4984 }
 0x541   : > { %8048 = vpow2.f32 %v5099_v34  ;;  %v5063_v24 = vsub.f32 %v10224_v52, %v4985_v37  ;;  %v5101_v13 = vmul.f32 1.442695, %v5062_v23 }
 0x542   : > { %v4988_v38 = vpop.xlane.xlu1 %4987 }
 0x543   : > { %v5103_v6 = vmul.f32 1.442695, %v5063_v24 }
 0x544   : > { %v4991_v5 = vpop.xlane.xlu0 %4990 }
 0x545   : > { %8050 = vpow2.f32 %v5103_v6  ;;  %v5065_v35 = vsub.f32 %v10240_v4, %v4991_v5 }
 0x546   : > { %8052 = vpow2.f32 %v5101_v13  ;;  %v4994_v30 = vpop.xlane.xlu1 %4993 }
 0x547   : > { %v5107_v16 = vmul.f32 1.442695, %v5065_v35  ;;  %v5066_v11 = vsub.f32 %v10246_v15, %v4994_v30 }
 0x548   : > { %v4997_v40 = vpop.xlane.xlu0 %4996 }
 0x549   : > { %8054 = vpow2.f32 %v5107_v16  ;;  %v5109_v60 = vmul.f32 1.442695, %v5066_v11  ;;  %v5067_v31 = vsub.f32 %v10238_v17, %v4997_v40 }
 0x54a   : > { %v5000_v9 = vpop.xlane.xlu1 %4999 }
 0x54b   : > { %v10365_v27 = vpop.eup %8048  ;;  %8056 = vpow2.f32 %v5109_v60  ;;  %v5111_v5 = vmul.f32 1.442695, %v5067_v31  ;;  %3147 = vrot.lane.b32.xlu1 %v11138_v0, %s8452_s7 }
 0x54c   : > { %v5169_v52 = vsel %vm4958_vm2, %v10365_v27, 0.0  ;;  %v5003_v34 = vpop.xlane.xlu0 %5002 }
 0x54d   : > { %5170 = vadd.xlane.f32.xlu0 %v5169_v52  ;;  %v5069_v4 = vsub.f32 %v10256_v58, %v5003_v34  ;;  %8058 = vpow2.f32 %v5111_v5 }
 0x54e   : > { %v5006_v24 = vpop.xlane.xlu1 %5005 }
 0x54f   : > { %v10370_v23 = vpop.eup %8050  ;;  %v5115_v37 = vmul.f32 1.442695, %v5069_v4 }
 0x550   : > { %v5175_v15 = vsel %vm4958_vm2, %v10370_v23, 0.0  ;;  %v10377_v11 = vpop.eup %8052  ;;  %v5009_v17 = vpop.xlane.xlu0 %5008 }
 0x551   : > { %5176 = vadd.xlane.f32.xlu0 %v5175_v15  ;;  %v5071_v13 = vsub.f32 %v10254_v41, %v5009_v17  ;;  %v5172_v6 = vsel %vm4958_vm2, %v10377_v11, 0.0  ;;  %8060 = vpow2.f32 %v5115_v37 }
 0x552   : > { %v5012_v31 = vpop.xlane.xlu1 %5011 }
 0x553   : > { %v10382_v35 = vpop.eup %8054  ;;  %v5119_v30 = vmul.f32 1.442695, %v5071_v13 }
 0x554   : > { %v5015_v58 = vpop.xlane.xlu0 %5014  ;;  %v5181_v40 = vsel %vm4958_vm2, %v10382_v35, 0.0 }
 0x555   : > { %5173 = vadd.xlane.f32.xlu0 %v5172_v6  ;;  %v5073_v16 = vsub.f32 %v10272_v49, %v5015_v58  ;;  %v10387_v60 = vpop.eup %8056  ;;  %8062 = vpow2.f32 %v5119_v30  ;;  %v5064_v49 = vsub.f32 %v10228_v53, %v4988_v38 }
 0x556   : > { %v5184_v5 = vsel %vm4958_vm2, %v10387_v60, 0.0  ;;  %v5018_v17 = vpop.xlane.xlu1 %5017 }
 0x557   : > { %v5123_v41 = vmul.f32 1.442695, %v5073_v16  ;;  %v10392_v4 = vpop.eup %8058  ;;  %v5105_v30 = vmul.f32 1.442695, %v5064_v49  ;;  %v5068_v16 = vsub.f32 %v10244_v8, %v5000_v9 }
 0x558   : > { %v5021_v52 = vpop.xlane.xlu0 %5020  ;;  %v5187_v6 = vsel %vm4958_vm2, %v10392_v4, 0.0 }
 0x559   : > { %5182 = vadd.xlane.f32.xlu0 %v5181_v40  ;;  %v5075_v34 = vsub.f32 %v10270_v25, %v5021_v52  ;;  %8064 = vpow2.f32 %v5123_v41 }
 0x55b   : > { %v5127_v37 = vmul.f32 1.442695, %v5075_v34  ;;  %v10398_v58 = vpop.eup %8060  ;;  %v5113_v34 = vmul.f32 1.442695, %v5068_v16 }
 0x55c   : > { %v5027_v15 = vpop.xlane.xlu0 %5026  ;;  %v5193_v53 = vsel %vm4958_vm2, %v10398_v58, 0.0 }
 0x55d   : > { %5185 = vadd.xlane.f32.xlu0 %v5184_v5  ;;  %v5077_v13 = vsub.f32 %v10288_v56, %v5027_v15  ;;  %8066 = vpow2.f32 %v5127_v37  ;;  %v5024_v56 = vpop.xlane.xlu1 %5023  ;;  %v5070_v5 = vsub.f32 %v10262_v59, %v5006_v24 }
 0x55e   : > { %8068 = vpow2.f32 %v5105_v30 }
 0x55f   : > { %v5131_v40 = vmul.f32 1.442695, %v5077_v13  ;;  %v10404_v38 = vpop.eup %8062  ;;  %v5117_v37 = vmul.f32 1.442695, %v5070_v5  ;;  %v5072_v13 = vsub.f32 %v10260_v7, %v5012_v31  ;;  %v5076_v5 = vsub.f32 %v10276_v32, %v5024_v56 }
 0x560   : > { %v5033_v25 = vpop.xlane.xlu0 %5032  ;;  %v5199_v9 = vsel %vm4958_vm2, %v10404_v38, 0.0 }
 0x561   : > { %5188 = vadd.xlane.f32.xlu0 %v5187_v6  ;;  %v5079_v52 = vsub.f32 %v10286_v62, %v5033_v25  ;;  %8070 = vpow2.f32 %v5131_v40  ;;  %v5030_v6 = vpop.xlane.xlu1 %5029  ;;  %v5121_v16 = vmul.f32 1.442695, %v5072_v13  ;;  %v5074_v40 = vsub.f32 %v10278_v46, %v5018_v17 }
 0x562   : > { %8072 = vpow2.f32 %v5113_v34 }
 0x563   : > { %v5135_v15 = vmul.f32 1.442695, %v5079_v52  ;;  %v10410_v62 = vpop.eup %8064  ;;  %v5125_v34 = vmul.f32 1.442695, %v5074_v40 }
 0x564   : > { %v5039_v41 = vpop.xlane.xlu0 %5038  ;;  %v5205_v24 = vsel %vm4958_vm2, %v10410_v62, 0.0 }
 0x565   : > { %5194 = vadd.xlane.f32.xlu0 %v5193_v53  ;;  %v5081_v8 = vsub.f32 %v10304_v61, %v5039_v41  ;;  %8074 = vpow2.f32 %v5135_v15  ;;  %v5036_v41 = vpop.xlane.xlu1 %5035 }
 0x566   : > { %8076 = vpow2.f32 %v5117_v37 }
 0x567   : > { %v5139_v25 = vmul.f32 1.442695, %v5081_v8  ;;  %v10416_v61 = vpop.eup %8066 }
 0x568   : > { %v5045_v49 = vpop.xlane.xlu0 %5044  ;;  %v10420_v31 = vpop.eup %8068 }
 0x569   : > { %5200 = vadd.xlane.f32.xlu0 %v5199_v9  ;;  %v5083_v59 = vsub.f32 %v10302_v2, %v5045_v49  ;;  %8078 = vpow2.f32 %v5139_v25  ;;  %v5211_v2 = vsel %vm4958_vm2, %v10416_v61, 0.0  ;;  %v5178_v46 = vsel %vm4958_vm2, %v10420_v31, 0.0  ;;  %v5042_v37 = vpop.xlane.xlu1 %5041 }
 0x56a   : > { %8080 = vpow2.f32 %v5121_v16  ;;  %v5129_v9 = vmul.f32 1.442695, %v5076_v5  ;;  %v5078_v49 = vsub.f32 %v10294_v1, %v5030_v6 }
 0x56b   : > { %v5143_v52 = vmul.f32 1.442695, %v5083_v59  ;;  %v10424_v53 = vpop.eup %8070 }
 0x56c   : > { %v5051_v30 = vpop.xlane.xlu0 %5050  ;;  %v10429_v17 = vpop.eup %8072  ;;  %v5133_v59 = vmul.f32 1.442695, %v5078_v49 }
 0x56d   : > { %5206 = vadd.xlane.f32.xlu0 %v5205_v24  ;;  %v5085_v7 = vsub.f32 %v10318_v21, %v5051_v30  ;;  %8082 = vpow2.f32 %v5143_v52  ;;  %v5217_v21 = vsel %vm4958_vm2, %v10424_v53, 0.0  ;;  %v5190_v32 = vsel %vm4958_vm2, %v10429_v17, 0.0  ;;  %v5048_v40 = vpop.xlane.xlu1 %5047 }
 0x56e   : > { %8084 = vpow2.f32 %v5125_v34  ;;  %v5080_v24 = vsub.f32 %v10292_v3, %v5036_v41 }
 0x56f   : > { %v5147_v15 = vmul.f32 1.442695, %v5085_v7  ;;  %5179 = vadd.xlane.f32.xlu1 %v5178_v46  ;;  %v10433_v8 = vpop.eup %8074  ;;  %v5082_v7 = vsub.f32 %v10310_v57, %v5042_v37 }
 0x570   : > { %v10438_v56 = vpop.eup %8076  ;;  %v5223_v13 = vsel %vm4958_vm2, %v10433_v8, 0.0  ;;  %v5137_v52 = vmul.f32 1.442695, %v5080_v24 }
 0x571   : > { %5212 = vadd.xlane.f32.xlu0 %v5211_v2  ;;  %8086 = vpow2.f32 %v5147_v15  ;;  %v5196_v1 = vsel %vm4958_vm2, %v10438_v56, 0.0  ;;  %v5141_v5 = vmul.f32 1.442695, %v5082_v7  ;;  %v5084_v15 = vsub.f32 %v10308_v26, %v5048_v40  ;;  %v5054_v46 = vpop.xlane.xlu1 %5053 }
 0x572   : > { %8088 = vpow2.f32 %v5129_v9  ;;  %v5086_v37 = vsub.f32 %v10322_v47, %v5054_v46 }
 0x573   : > { %5191 = vadd.xlane.f32.xlu1 %v5190_v32  ;;  %v10442_v25 = vpop.eup %8078  ;;  %8090 = vpow2.f32 %v5133_v59  ;;  %v5145_v49 = vmul.f32 1.442695, %v5084_v15 }
 0x574   : > { %v10447_v6 = vpop.eup %8080  ;;  %v5229_v30 = vsel %vm4958_vm2, %v10442_v25, 0.0  ;;  %8092 = vpow2.f32 %v5137_v52  ;;  %v5149_v26 = vmul.f32 1.442695, %v5086_v37 }
 0x575   : > { %5218 = vadd.xlane.f32.xlu0 %v5217_v21  ;;  %v5202_v3 = vsel %vm4958_vm2, %v10447_v6, 0.0  ;;  %8094 = vpow2.f32 %v5141_v5  ;;  %v3140_v5 = vpop.permute.xlu0 %3139 }
 0x576   : > { %8096 = vpow2.f32 %v5145_v49 }
 0x577   : > { %5197 = vadd.xlane.f32.xlu1 %v5196_v1  ;;  %v10451_v16 = vpop.eup %8082  ;;  %8098 = vpow2.f32 %v5149_v26  ;;  %v4175_v26 = vpack.i.b16 %v10140_v39, %v10129_v43  ;;  %v3202_v43 = vshrl.u32 %v10328_v54, 16 }
 0x578   : > { %v10456_v2 = vpop.eup %8084  ;;  %v5235_v41 = vsel %vm4958_vm2, %v10451_v16, 0.0 }
 0x579   : > { %5224 = vadd.xlane.f32.xlu0 %v5223_v13  ;;  %v5208_v57 = vsel %vm4958_vm2, %v10456_v2, 0.0 }
 0x57b   : > { %5203 = vadd.xlane.f32.xlu1 %v5202_v3  ;;  %v10460_v34 = vpop.eup %8086 }
 0x57c   : > { %v10465_v21 = vpop.eup %8088  ;;  %v5241_v9 = vsel %vm4958_vm2, %v10460_v34, 0.0 }
 0x57d   : > { %5230 = vadd.xlane.f32.xlu0 %v5229_v30  ;;  %v5214_v32 = vsel %vm4958_vm2, %v10465_v21, 0.0  ;;  %v10472_v13 = vpop.eup %8090 }
 0x57e   : > { %v5220_v59 = vsel %vm4958_vm2, %v10472_v13, 0.0  ;;  %v10476_v24 = vpop.eup %8092 }
 0x57f   : > { %5209 = vadd.xlane.f32.xlu1 %v5208_v57  ;;  %v5226_v1 = vsel %vm4958_vm2, %v10476_v24, 0.0  ;;  %v10480_v30 = vpop.eup %8094 }
 0x580   : > { %v5232_v47 = vsel %vm4958_vm2, %v10480_v30, 0.0  ;;  %v10484_v40 = vpop.eup %8096 }
 0x581   : > { %5236 = vadd.xlane.f32.xlu0 %v5235_v41  ;;  %v5238_v52 = vsel %vm4958_vm2, %v10484_v40, 0.0  ;;  %v10488_v7 = vpop.eup %8098 }
 0x582   : > { %v5244_v3 = vsel %vm4958_vm2, %v10488_v7, 0.0 }
 0x583   : > { %5215 = vadd.xlane.f32.xlu1 %v5214_v32 }
 0x585   : > { %5242 = vadd.xlane.f32.xlu0 %v5241_v9 }
 0x587   : > { %5221 = vadd.xlane.f32.xlu1 %v5220_v59 }
 0x58b   : > { %5227 = vadd.xlane.f32.xlu1 %v5226_v1 }
 0x58f   : > { %5233 = vadd.xlane.f32.xlu1 %v5232_v47 }
 0x593   : > { %5239 = vadd.xlane.f32.xlu1 %v5238_v52 }
 0x594   : > { %v5156_v41 = vpop.xlane.xlu1 %5155 }
 0x595   : > { %8100 = vrcp.f32 %v5156_v41  ;;  %v3199_v41 = vpack.i.b16 %v10328_v54, %v11138_v0 }
 0x597   : > { %5245 = vadd.xlane.f32.xlu1 %v5244_v3  ;;  %v3201_v3 = vshrl.u32 %v11138_v0, 16 }
 0x59f   : > { %v8101_v46 = vpop.eup %8100 }
 0x5a0   : > { %v5280_v57 = vmul.f32 %v8101_v46, %v10332_v36 }
 0x5a1   : > { %v5153_v15 = vpop.xlane.xlu0 %5152 }
 0x5a2   : > { %8102 = vrcp.f32 %v5153_v15 }
 0x5ab   : > { %v5159_v37 = vpop.xlane.xlu0 %5158 }
 0x5ac   : > { %v8103_v9 = vpop.eup %8102  ;;  %8104 = vrcp.f32 %v5159_v37 }
 0x5ad   : > { %v5279_v49 = vmul.f32 %v8103_v9, %v10336_v55 }
 0x5af   : > { %v5311_v32 = vpack.c.bf16 %v5280_v57, %v5279_v49  ;;  %v5162_v59 = vpop.xlane.xlu1 %5161  ;;  %v3209_v57 = vshrl.u32 %v3140_v5, 16 }
 0x5b0   : > { %8106 = vrcp.f32 %v5162_v59 }
 0x5b1   : > { %7648 = vmatmul.mubr.msk.bf16.vlgmr.msra.gmra.mrb[44].mxu0 %vm4958_vm2, %v5311_v32  ;;  %v3616_v32 = vrot.slane %v3199_v41, %v8943_v19 }
 0x5b2   : > { %7658 = vmatpush3.bf16.msra.mxu0 %v4175_v26  ;;  %7659 = vmatprep.mubr.msk.bf16.mxu0 %vm8454_vm0, %v11054_v51 }
 0x5b3   : > { %7669 = vmatprep.subr.bf16.mxu0 %v11054_v51 }
 0x5b6   : > { %v8105_v36 = vpop.eup %8104 }
 0x5b7   : > { %v5281_v55 = vmul.f32 %v8105_v36, %v10342_v44  ;;  %v3203_v44 = vpack.i.b16 %v3202_v43, %v3201_v3 }
 0x5b9   : > { %v3675_v37 = vcombine.high %v3203_v44, %v8939_v14 }
 0x5ba   : > { %v8107_v1 = vpop.eup %8106 }
 0x5bb   : > { %v5282_v47 = vmul.f32 %v8107_v1, %v10346_v42  ;;  %v3609_v42 = vcombine.high %v3199_v41, %v8939_v14  ;;  %v3689_v43 = vrot.slane %v3675_v37, %v8943_v19 }
 0x5bd   : > { %v5312_v52 = vpack.c.bf16 %v5282_v47, %v5281_v55  ;;  %v3623_v0 = vrot.slane %v3609_v42, %v8943_v19 }
 0x5bf   : > { %7654 = vmatmul.mubr.msk.bf16.vlgmr.msra.gmra.mrb[44].mxu1 %vm4958_vm2, %v5312_v52 }
 0x5c0   : > { %7665 = vmatprep.mubr.msk.bf16.mxu1 %vm8454_vm0, %v11054_v51 }
 0x5c5   : > { %v5165_v39 = vpop.xlane.xlu0 %5164 }
 0x5c6   : > { %8108 = vrcp.f32 %v5165_v39 }
 0x5c7   : > { %v5168_v15 = vpop.xlane.xlu1 %5167 }
 0x5c8   : > { %8110 = vrcp.f32 %v5168_v15 }
 0x5cb   : > { %v3148_v46 = vpop.permute.xlu1 %3147 }
 0x5cc   : > { %v3207_v9 = vpack.i.b16 %v3148_v46, %v3140_v5  ;;  %v3210_v49 = vshrl.u32 %v3148_v46, 16  ;;  %v3682_v5 = vrot.slane %v3203_v44, %v8943_v19 }
 0x5ce   : > { %v3211_v26 = vpack.i.b16 %v3210_v49, %v3209_v57  ;;  %v3624_v59 = vcombine.high %v3207_v9, %v8939_v14  ;;  %v3631_v36 = vrot.slane %v3207_v9, %v8943_v19 }
 0x5d0   : > { %v8109_v54 = vpop.eup %8108  ;;  %v3638_v1 = vrot.slane %v3624_v59, %v8943_v19  ;;  %v3639_v55 = vcombine.low %v3616_v32, %v3631_v36  ;;  %v3640_v47 = vcombine.high %v3616_v32, %v3631_v36  ;;  %v3690_v52 = vcombine.high %v3211_v26, %v8939_v14 }
 0x5d1   : > { %v5283_v39 = vmul.f32 %v8109_v54, %v10352_v22  ;;  %v3697_v3 = vrot.slane %v3211_v26, %v8943_v19 }
 0x5d2   : > { %v8111_v41 = vpop.eup %8110  ;;  %v3647_v15 = vrot.slane %v3639_v55, %v8948_v63  ;;  %v3654_v42 = vrot.slane %v3640_v47, %v8948_v63  ;;  %v3655_v46 = vcombine.low %v3623_v0, %v3638_v1  ;;  %v3656_v57 = vcombine.high %v3623_v0, %v3638_v1 }
 0x5d3   : > { %v5284_v9 = vmul.f32 %v8111_v41, %v10356_v48  ;;  %v3704_v49 = vrot.slane %v3690_v52, %v8943_v19  ;;  %v3705_v14 = vcombine.low %v3682_v5, %v3697_v3  ;;  %v3706_v32 = vcombine.high %v3682_v5, %v3697_v3 }
 0x5d4   : > { %v3663_v44 = vrot.slane %v3655_v46, %v8948_v63  ;;  %v3670_v37 = vrot.slane %v3656_v57, %v8948_v63  ;;  %v4041_v22 = vcombine.low %v3647_v15, %v3654_v42  ;;  %v7310_v59 = vcombine.high %v3647_v15, %v3654_v42 }
 0x5d5   : > { %v3713_v26 = vrot.slane %v3705_v14, %v8948_v63  ;;  %v3720_v36 = vrot.slane %v3706_v32, %v8948_v63  ;;  %v3721_v54 = vcombine.low %v3689_v43, %v3704_v49  ;;  %v3722_v55 = vcombine.high %v3689_v43, %v3704_v49 }
 0x5d6   : > { %v4048_v0 = vrot.slane %v4041_v22, %v8943_v19  ;;  %v4056_v48 = vrot.slane %v7310_v59, %v8943_v19  ;;  %v4057_v1 = vcombine.low %v3663_v44, %v3670_v37  ;;  %v7311_v52 = vcombine.high %v3663_v44, %v3670_v37 }
 0x5d7   : > { %v3729_v5 = vrot.slane %v3721_v54, %v8948_v63  ;;  %v3736_v3 = vrot.slane %v3722_v55, %v8948_v63  ;;  %v4091_v41 = vcombine.low %v3713_v26, %v3720_v36  ;;  %v7312_v46 = vcombine.high %v3713_v26, %v3720_v36 }
 0x5d8   : > { %v4064_v15 = vrot.slane %v4057_v1, %v8943_v19  ;;  %v4072_v42 = vrot.slane %v7311_v52, %v8943_v19  ;;  %v5313_v57 = vpack.c.bf16 %v5284_v9, %v5283_v39  ;;  %v4073_v44 = vcombine.low %v4048_v0, %v4056_v48 }
 0x5d9   : > { %v4098_v43 = vrot.slane %v4091_v41, %v8943_v19  ;;  %v4106_v49 = vrot.slane %v7312_v46, %v8943_v19  ;;  %v4107_v14 = vcombine.low %v3729_v5, %v3736_v3  ;;  %v7313_v32 = vcombine.high %v3729_v5, %v3736_v3 }
 0x5da   : > { %v5171_v47 = vpop.xlane.xlu0 %5170  ;;  %7660 = vmatmul.mubr.msk.bf16.vlgmr.msra.gmra.mrb[48].mxu0 %vm4958_vm2, %v5313_v57  ;;  %v4081_v37 = vcombine.low %v4064_v15, %v4072_v42  ;;  %v10548_v55 = vrot.slane %v4073_v44, %v8948_v63 }
 0x5db   : > { %7670 = vmatpush3.bf16.msra.mxu0 %v10122_v18  ;;  %v4114_v59 = vrot.slane %v4107_v14, %v8943_v19  ;;  %v4122_v26 = vrot.slane %v7313_v32, %v8943_v19  ;;  %v4123_v36 = vcombine.low %v4098_v43, %v4106_v49  ;;  %7671 = vmatprep.mubr.msk.bf16.mxu0 %vm8454_vm0, %v11054_v51  ;;  %8112 = vrcp.f32 %v5171_v47 }
 0x5dc   : > { %7681 = vmatprep.subr.bf16.mxu0 %v11054_v51  ;;  %v10545_v9 = vrot.slane %v4081_v37, %v8948_v63 }
 0x5dd   : > { %v4131_v54 = vcombine.low %v4114_v59, %v4122_v26  ;;  %v10551_v18 = vrot.slane %v4123_v36, %v8948_v63 }
 0x5de   : > { %v5177_v22 = vpop.xlane.xlu0 %5176  ;;  %v4089_v47 = vcombine.low %v10548_v55, %v10545_v9 }
 0x5df   : > { %v10554_v19 = vrot.slane %v4131_v54, %v8948_v63 }
 0x5e1   : > { %v4139_v48 = vcombine.low %v10551_v18, %v10554_v19 }
 0x5e2   : > { %v5174_v39 = vpop.xlane.xlu0 %5173 }
 0x5e3   : > { %8114 = vrcp.f32 %v5174_v39  ;;  %v4191_v1 = vpack.i.b16 %v4139_v48, %v4089_v47  ;;  %v4194_v49 = vshrl.u32 %v4139_v48, 16 }
 0x5e5   : > { %7664 = vmatpush3.bf16.msra.mxu1 %v4191_v1  ;;  %v8113_v5 = vpop.eup %8112 }
 0x5e6   : > { %v5183_v0 = vpop.xlane.xlu0 %5182  ;;  %7675 = vmatprep.subr.bf16.mxu1 %v11054_v51  ;;  %v5285_v41 = vmul.f32 %v8113_v5, %v10365_v27 }
 0x5e7   : > { %8116 = vrcp.f32 %v5183_v0 }
 0x5ea   : > { %v5186_v52 = vpop.xlane.xlu0 %5185 }
 0x5eb   : > { %8118 = vrcp.f32 %v5186_v52 }
 0x5ec   : > { %8120 = vrcp.f32 %v5177_v22 }
 0x5ed   : > { %v8115_v3 = vpop.eup %8114 }
 0x5ee   : > { %v5286_v63 = vmul.f32 %v8115_v3, %v10377_v11  ;;  %v5189_v46 = vpop.xlane.xlu0 %5188  ;;  %v4193_v11 = vshrl.u32 %v4089_v47, 16 }
 0x5f0   : > { %v5314_v15 = vpack.c.bf16 %v5286_v63, %v5285_v41  ;;  %v4195_v44 = vpack.i.b16 %v4194_v49, %v4193_v11 }
 0x5f1   : > { %v8117_v42 = vpop.eup %8116 }
 0x5f2   : > { %7666 = vmatmul.mubr.msk.bf16.vlgmr.msra.gmra.mrb[48].mxu1 %vm4958_vm2, %v5314_v15  ;;  %v5195_v43 = vpop.xlane.xlu0 %5194  ;;  %v5289_v14 = vmul.f32 %v8117_v42, %v10382_v35 }
 0x5f3   : > { %7676 = vmatpush3.bf16.msra.mxu1 %v10142_v12  ;;  %7677 = vmatprep.mubr.msk.bf16.mxu1 %vm8454_vm0, %v11054_v51 }
 0x5f4   : > { %7687 = vmatprep.subr.bf16.mxu1 %v11054_v51 }
 0x5f5   : > { %v8119_v57 = vpop.eup %8118 }
 0x5f6   : > { %v5290_v27 = vmul.f32 %v8119_v57, %v10387_v60  ;;  %v5201_v37 = vpop.xlane.xlu0 %5200  ;;  %v8121_v36 = vpop.eup %8120 }
 0x5f7   : > { %v5287_v54 = vmul.f32 %v8121_v36, %v10370_v23 }
 0x5f8   : > { %v5316_v32 = vpack.c.bf16 %v5290_v27, %v5289_v14 }
 0x5fa   : > { %7678 = vmatmul.mubr.msk.bf16.vlgmr.msra.gmra.mrb[52].mxu1 %vm4958_vm2, %v5316_v32  ;;  %v5207_v12 = vpop.xlane.xlu0 %5206  ;;  %v4090_v32 = vcombine.high %v10548_v55, %v10545_v9 }
 0x5fb   : > { %7688 = vmatpush3.bf16.msra.mxu1 %v4195_v44  ;;  %7689 = vmatprep.mubr.msk.bf16.mxu1 %vm8454_vm0, %v11054_v51 }
 0x5fc   : > { %7699 = vmatprep.subr.bf16.mxu1 %v11054_v51  ;;  %v5180_v59 = vpop.xlane.xlu1 %5179 }
 0x5fd   : > { %8122 = vrcp.f32 %v5180_v59 }
 0x5fe   : > { %v5213_v35 = vpop.xlane.xlu0 %5212 }
 0x600   : > { %v5192_v26 = vpop.xlane.xlu1 %5191 }
 0x601   : > { %8124 = vrcp.f32 %v5192_v26 }
 0x602   : > { %8126 = vrcp.f32 %v5189_v46  ;;  %v5219_v0 = vpop.xlane.xlu0 %5218 }
 0x603   : > { %8128 = vrcp.f32 %v5195_v43 }
 0x604   : > { %v5198_v60 = vpop.xlane.xlu1 %5197 }
 0x605   : > { %8130 = vrcp.f32 %v5198_v60 }
 0x606   : > { %v5225_v23 = vpop.xlane.xlu0 %5224 }
 0x607   : > { %v8123_v39 = vpop.eup %8122 }
 0x608   : > { %v5288_v47 = vmul.f32 %v8123_v39, %v10420_v31  ;;  %v5204_v48 = vpop.xlane.xlu1 %5203 }
 0x609   : > { %8132 = vrcp.f32 %v5204_v48 }
 0x60a   : > { %8134 = vrcp.f32 %v5201_v37  ;;  %v5315_v22 = vpack.c.bf16 %v5288_v47, %v5287_v54  ;;  %v5231_v14 = vpop.xlane.xlu0 %5230 }
 0x60b   : > { %v8125_v1 = vpop.eup %8124  ;;  %8136 = vrcp.f32 %v5207_v12 }
 0x60c   : > { %v8127_v52 = vpop.eup %8126  ;;  %v5210_v5 = vpop.xlane.xlu1 %5209  ;;  %7672 = vmatmul.mubr.msk.bf16.vlgmr.msra.gmra.mrb[52].mxu0 %vm4958_vm2, %v5315_v22  ;;  %v5292_v31 = vmul.f32 %v8125_v1, %v10429_v17 }
 0x60d   : > { %v8129_v3 = vpop.eup %8128  ;;  %8138 = vrcp.f32 %v5210_v5  ;;  %7682 = vmatpush3.bf16.msra.mxu0 %v10174_v50  ;;  %7683 = vmatprep.mubr.msk.bf16.mxu0 %vm8454_vm0, %v11054_v51  ;;  %v5291_v63 = vmul.f32 %v8127_v52, %v10392_v4  ;;  %v11139_v4 = vpack.i.b16 %v10125_v33, %v10116_v29  ;;  %v4140_v29 = vcombine.high %v10551_v18, %v10554_v19 }
 0x60e   : > { %7693 = vmatprep.subr.bf16.mxu0 %v11054_v51  ;;  %v5293_v46 = vmul.f32 %v8129_v3, %v10398_v58  ;;  %v11140_v58 = vpack.i.b16 %v10135_v10, %v10127_v20  ;;  %v5237_v44 = vpop.xlane.xlu0 %5236  ;;  %v4201_v3 = vshrl.u32 %v4090_v32, 16 }
 0x60f   : > { %v8131_v41 = vpop.eup %8130  ;;  %v5317_v57 = vpack.c.bf16 %v5292_v31, %v5291_v63  ;;  %v4199_v26 = vpack.i.b16 %v4140_v29, %v4090_v32  ;;  %v4202_v22 = vshrl.u32 %v4140_v29, 16  ;;  %v7996_v63 = vld [vmem:[#allocation7] sm:$0xff]   ;;  %v7999_v29 = vld [vmem:[#allocation7 + $0x18] sm:$0xff]  }
 0x610   : > { %v5294_v15 = vmul.f32 %v8131_v41, %v10438_v56  ;;  %v5216_v42 = vpop.xlane.xlu1 %5215 }
 0x611   : > { %8140 = vrcp.f32 %v5216_v42  ;;  %v4203_v41 = vpack.i.b16 %v4202_v22, %v4201_v3  ;;  %v11144_v42 = vld [vmem:[#allocation31_spill] sm:$0xff] }
 0x612   : > { %8142 = vrcp.f32 %v5213_v35  ;;  %v5318_v50 = vpack.c.bf16 %v5294_v15, %v5293_v46 }
 0x613   : > { %v8133_v43 = vpop.eup %8132  ;;  %8144 = vrcp.f32 %v5219_v0 }
 0x614   : > { %v8135_v49 = vpop.eup %8134  ;;  %v5222_v27 = vpop.xlane.xlu1 %5221  ;;  %7684 = vmatmul.mubr.msk.bf16.vlgmr.msra.gmra.mrb[56].mxu0 %vm4958_vm2, %v5317_v57  ;;  %7690 = vmatmul.mubr.msk.bf16.vlgmr.msra.gmra.mrb[56].mxu1 %vm4958_vm2, %v5318_v50  ;;  %v5296_v56 = vmul.f32 %v8133_v43, %v10447_v6 }
 0x615   : > { %v8137_v17 = vpop.eup %8136  ;;  %8146 = vrcp.f32 %v5222_v27  ;;  %7694 = vmatpush3.bf16.msra.mxu0 %v11139_v4  ;;  %7700 = vmatpush3.bf16.msra.mxu1 %v11140_v58  ;;  %v5295_v33 = vmul.f32 %v8135_v49, %v10404_v38 }
 0x616   : > { %7695 = vmatprep.mubr.msk.bf16.mxu0 %vm8454_vm0, %v11054_v51  ;;  %7701 = vmatprep.mubr.msk.bf16.mxu1 %vm8454_vm0, %v11054_v51  ;;  %v5297_v20 = vmul.f32 %v8137_v17, %v10410_v62  ;;  %v11141_v62 = vpack.i.b16 %v10144_v28, %v10137_v45  ;;  %v5243_v45 = vpop.xlane.xlu0 %5242 }
 0x617   : > { %v8139_v11 = vpop.eup %8138  ;;  %7705 = vmatprep.subr.bf16.mxu0 %v11054_v51  ;;  %7711 = vmatprep.subr.bf16.mxu1 %v11054_v51  ;;  %v5319_v37 = vpack.c.bf16 %v5296_v56, %v5295_v33  ;;  %v8000_v33 = vld [vmem:[#allocation7 + $0x20] sm:$0xff]  }
 0x618   : > { %v5298_v10 = vmul.f32 %v8139_v11, %v10456_v2  ;;  %v5228_v6 = vpop.xlane.xlu1 %5227 }
 0x619   : > { %8148 = vrcp.f32 %v5228_v6 }
 0x61a   : > { %8150 = vrcp.f32 %v5225_v23  ;;  %v5320_v12 = vpack.c.bf16 %v5298_v10, %v5297_v20 }
 0x61b   : > { %v8141_v59 = vpop.eup %8140  ;;  %8152 = vrcp.f32 %v5231_v14  ;;  %v7997_v14 = vld [vmem:[#allocation7 + $0x8] sm:$0xff]  }
 0x61c   : > { %v8143_v35 = vpop.eup %8142  ;;  %v5234_v18 = vpop.xlane.xlu1 %5233  ;;  %7696 = vmatmul.mubr.msk.bf16.vlgmr.msra.gmra.mrb[60].mxu0 %vm4958_vm2, %v5319_v37  ;;  %7702 = vmatmul.mubr.msk.bf16.vlgmr.msra.gmra.mrb[60].mxu1 %vm4958_vm2, %v5320_v12  ;;  %v5300_v2 = vmul.f32 %v8141_v59, %v10465_v21 }
 0x61d   : > { %v8145_v38 = vpop.eup %8144  ;;  %8154 = vrcp.f32 %v5234_v18  ;;  %7706 = vmatpush3.bf16.msra.mxu0 %v11141_v62  ;;  %7712 = vmatpush3.bf16.msra.mxu1 %v4199_v26  ;;  %v5299_v55 = vmul.f32 %v8143_v35, %v10416_v61  ;;  %v11142_v61 = vld [vmem:[#allocation28_spill] sm:$0xff] }
 0x61e   : > { %7707 = vmatprep.mubr.msk.bf16.mxu0 %vm8454_vm0, %v11054_v51  ;;  %7713 = vmatprep.mubr.msk.bf16.mxu1 %vm8454_vm0, %v11054_v51  ;;  %v5301_v19 = vmul.f32 %v8145_v38, %v10424_v53  ;;  %v11143_v53 = vld [vmem:[#allocation29_spill] sm:$0xff] }
 0x61f   : > { %v8147_v9 = vpop.eup %8146  ;;  %7717 = vmatprep.subr.bf16.mxu0 %v11054_v51  ;;  %7723 = vmatprep.subr.bf16.mxu1 %v11054_v51  ;;  %v5321_v21 = vpack.c.bf16 %v5300_v2, %v5299_v55 }
 0x620   : > { %v5302_v28 = vmul.f32 %v8147_v9, %v10472_v13  ;;  %v5240_v60 = vpop.xlane.xlu1 %5239 }
 0x621   : > { %8156 = vrcp.f32 %v5240_v60 }
 0x622   : > { %8158 = vrcp.f32 %v5237_v44  ;;  %v5322_v36 = vpack.c.bf16 %v5302_v28, %v5301_v19 }
 0x623   : > { %v8149_v39 = vpop.eup %8148  ;;  %8160 = vrcp.f32 %v5243_v45 }
 0x624   : > { %v8151_v54 = vpop.eup %8150  ;;  %v5246_v0 = vpop.xlane.xlu1 %5245  ;;  %7708 = vmatmul.mubr.msk.bf16.vlgmr.msra.gmra.mrb[64].mxu0 %vm4958_vm2, %v5321_v21  ;;  %7714 = vmatmul.mubr.msk.bf16.vlgmr.msra.gmra.mrb[64].mxu1 %vm4958_vm2, %v5322_v36  ;;  %v5304_v13 = vmul.f32 %v8149_v39, %v10476_v24  ;;  %v8001_v21 = vld [vmem:[#allocation7 + $0x28] sm:$0xff]  }
 0x625   : > { %v8153_v47 = vpop.eup %8152  ;;  %8162 = vrcp.f32 %v5246_v0  ;;  %7718 = vmatpush3.bf16.msra.mxu0 %v11142_v61  ;;  %7724 = vmatpush3.bf16.msra.mxu1 %v11143_v53  ;;  %v5303_v1 = vmul.f32 %v8151_v54, %v10433_v8  ;;  %v8002_v54 = vld [vmem:[#allocation7 + $0x30] sm:$0xff]  }
 0x626   : > { %7719 = vmatprep.mubr.msk.bf16.mxu0 %vm8454_vm0, %v11054_v51  ;;  %7725 = vmatprep.mubr.msk.bf16.mxu1 %vm8454_vm0, %v11054_v51  ;;  %v5305_v52 = vmul.f32 %v8153_v47, %v10442_v25 }
 0x627   : > { %v8155_v48 = vpop.eup %8154  ;;  %7729 = vmatprep.subr.bf16.mxu0 %v11054_v51  ;;  %7735 = vmatprep.subr.bf16.mxu1 %v11054_v51  ;;  %v5323_v24 = vpack.c.bf16 %v5304_v13, %v5303_v1 }
 0x628   : > { %v5306_v5 = vmul.f32 %v8155_v48, %v10480_v30 }
 0x62a   : > { %v5324_v23 = vpack.c.bf16 %v5306_v5, %v5305_v52 }
 0x62b   : > { %v8157_v31 = vpop.eup %8156 }
 0x62c   : > { %v8159_v46 = vpop.eup %8158  ;;  %7720 = vmatmul.mubr.msk.bf16.vlgmr.msra.gmra.mrb[68].mxu0 %vm4958_vm2, %v5323_v24  ;;  %7726 = vmatmul.mubr.msk.bf16.vlgmr.msra.gmra.mrb[68].mxu1 %vm4958_vm2, %v5324_v23  ;;  %v5308_v8 = vmul.f32 %v8157_v31, %v10484_v40  ;;  %v7998_v40 = vld [vmem:[#allocation7 + $0x10] sm:$0xff]  }
 0x62d   : > { %v8161_v15 = vpop.eup %8160  ;;  %7730 = vmatpush3.bf16.msra.mxu0 %v11144_v42  ;;  %7736 = vmatpush3.bf16.msra.mxu1 %v4203_v41  ;;  %v5307_v30 = vmul.f32 %v8159_v46, %v10451_v16  ;;  %v8003_v42 = vld [vmem:[#allocation7 + $0x38] sm:$0xff]  }
 0x62e   : > { %7731 = vmatprep.mubr.msk.bf16.mxu0 %vm8454_vm0, %v11054_v51  ;;  %7737 = vmatprep.mubr.msk.bf16.mxu1 %vm8454_vm0, %v11054_v51  ;;  %v5309_v57 = vmul.f32 %v8161_v15, %v10460_v34 }
 0x62f   : > { %v8163_v25 = vpop.eup %8162  ;;  %7741 = vmatprep.subr.bf16.mxu0 %v7996_v63  ;;  %v5325_v43 = vpack.c.bf16 %v5308_v8, %v5307_v30 }
 0x630   : > { %v5310_v50 = vmul.f32 %v8163_v25, %v10488_v7 }
 0x632   : > { %v5326_v49 = vpack.c.bf16 %v5310_v50, %v5309_v57 }
 0x634   : > { %7732 = vmatmul.mubr.msk.bf16.vlgmr.msra.gmra.mrb[72].mxu0 %vm4958_vm2, %v5325_v43  ;;  %7738 = vmatmul.mubr.msk.bf16.vlgmr.msra.gmra.mrb[72].mxu1 %vm4958_vm2, %v5326_v49 }
 0x635   : > { %7742 = vmatpush3.bf16.msra.mxu0 %v7996_v63 }
 0x636   : > { %7743 = vmatprep.subr.bf16.mxu0 %v7997_v14 }
 0x639   : > { %7744 = vmatpush3.bf16.msra.mxu0 %v7997_v14 }
 0x63a   : > { %7753 = vmatprep.subr.bf16.mxu0 %v7998_v40 }
 0x684   : > { %v5364_v51 = vpop.f32.mrb[44].mxu0 }
 0x685   : > { %v7649_v27 = vpop.f32.mrb[45].mxu0 }
 0x686   : > { %v5367_v17 = vpop.f32.mrb[46].mxu0 }
 0x687   : > { %v6031_v16 = vpack.c.bf16 %v5367_v17, %v5364_v51  ;;  %v7650_v4 = vpop.f32.mrb[47].mxu0 }
 0x689   : > { %7745 = vmatprep.mubr.msk.bf16.mxu0 %vm4205_vm1, %v6031_v16 }
 0x692   : > { %v5408_v34 = vpop.f32.mrb[44].mxu1 }
 0x693   : > { %v7655_v7 = vpop.f32.mrb[45].mxu1 }
 0x694   : > { %v5411_v58 = vpop.f32.mrb[46].mxu1 }
 0x695   : > { %v6032_v56 = vpack.c.bf16 %v5411_v58, %v5408_v34  ;;  %v7656_v11 = vpop.f32.mrb[47].mxu1 }
 0x697   : > { %7746 = vmatmul.mubr.msk.bf16.vlgmr.msra.gmra.mrb[76].mxu0 %vm4205_vm1, %v6032_v56 }
 0x698   : > { %7754 = vmatpush3.bf16.msra.mxu0 %v7998_v40 }
 0x699   : > { %7755 = vmatprep.subr.bf16.mxu0 %v7999_v29 }
 0x69c   : > { %7756 = vmatpush3.bf16.msra.mxu0 %v7999_v29 }
 0x69d   : > { %7765 = vmatprep.subr.bf16.mxu0 %v8000_v33 }
 0x6ad   : > { %v5452_v20 = vpop.f32.mrb[48].mxu0 }
 0x6ae   : > { %v7661_v10 = vpop.f32.mrb[49].mxu0 }
 0x6af   : > { %v5455_v6 = vpop.f32.mrb[50].mxu0 }
 0x6b0   : > { %v6033_v32 = vpack.c.bf16 %v5455_v6, %v5452_v20  ;;  %v7662_v44 = vpop.f32.mrb[51].mxu0 }
 0x6b2   : > { %7749 = vmatprep.mubr.msk.bf16.mxu0 %vm4205_vm1, %v6033_v32 }
 0x6c5   : > { %v5496_v37 = vpop.f32.mrb[48].mxu1 }
 0x6c6   : > { %v7667_v12 = vpop.f32.mrb[49].mxu1 }
 0x6c7   : > { %v5499_v59 = vpop.f32.mrb[50].mxu1 }
 0x6c8   : > { %v6034_v26 = vpack.c.bf16 %v5499_v59, %v5496_v37  ;;  %v7668_v35 = vpop.f32.mrb[51].mxu1 }
 0x6c9   : > { %v7370_v35 = vld [vmem:[%s11145_s21] ss:$0 sm:$0xff]  ;;  %s7111_s21 = sshll.u32 %s517_s20, 4  ;;  %s10901_s21 = int_to_ptr.vmem [resolvable:$true] %s7111_s21 }
 0x6ca   : > { %7750 = vmatmul.mubr.msk.bf16.gmra.mrb[80].mxu0 %vm4205_vm1, %v6034_v26  ;;  %s8362_s13 = scalar_lea.vmem %s10901_s21, 1024 }
 0x6cb   : > { %p8363_p8 = scmp.ne.s32.totalorder %s10901_s21, %s8362_s13 }
 0x6cd   : > { %v5584_v18 = vpop.f32.mrb[52].mxu1  ;;  %p8364_p10 = pnand %p8363_p8, %p8681_p6 }
 0x6ce   : > { %v7679_v38 = vpop.f32.mrb[53].mxu1 }
 0x6cf   : > { %v5587_v62 = vpop.f32.mrb[54].mxu1  ;;  %p8365_p12 = pneg %p8364_p10 }
 0x6d0   : > { %v6036_v2 = vpack.c.bf16 %v5587_v62, %v5584_v18  ;;  %v7680_v9 = vpop.f32.mrb[55].mxu1 }
 0x6df   : > { %v5540_v55 = vpop.f32.mrb[52].mxu0 }
 0x6e0   : > { %v7673_v19 = vpop.f32.mrb[53].mxu0 }
 0x6e1   : > { %v5543_v45 = vpop.f32.mrb[54].mxu0  ;;  %v8212_v19 = vld [vmem:[%s8739_s8] sm:$0xff] }
 0x6e2   : > { %v6035_v28 = vpack.c.bf16 %v5543_v45, %v5540_v55  ;;  %v7674_v60 = vpop.f32.mrb[55].mxu0 }
 0x6e4   : > { %7757 = vmatprep.mubr.msk.bf16.mxu0 %vm4205_vm1, %v6035_v28 }
 0x6e5   : > { %7758 = vmatmul.mubr.msk.bf16.vlgmr.msra.gmra.mrb[76].mxu0 %vm4205_vm1, %v6036_v2 }
 0x6e6   : > { %7766 = vmatpush3.bf16.msra.mxu0 %v8000_v33 }
 0x6e7   : > { %v5628_v36 = vpop.f32.mrb[56].mxu0  ;;  %v5672_v39 = vpop.f32.mrb[56].mxu1  ;;  %7767 = vmatprep.subr.bf16.mxu0 %v8001_v21 }
 0x6e8   : > { %v7685_v0 = vpop.f32.mrb[57].mxu0  ;;  %v7691_v47 = vpop.f32.mrb[57].mxu1 }
 0x6e9   : > { %v5631_v61 = vpop.f32.mrb[58].mxu0  ;;  %v5675_v53 = vpop.f32.mrb[58].mxu1 }
 0x6ea   : > { %v6037_v13 = vpack.c.bf16 %v5631_v61, %v5628_v36  ;;  %v6038_v48 = vpack.c.bf16 %v5675_v53, %v5672_v39  ;;  %v7686_v22 = vpop.f32.mrb[59].mxu0  ;;  %v7692_v1 = vpop.f32.mrb[59].mxu1  ;;  %7768 = vmatpush3.bf16.msra.mxu0 %v8001_v21  ;;  %v8213_v21 = vld [vmem:[%s8739_s8 + $0x8] sm:$0xff]  ;;  %v8214_v39 = vld [vmem:[%s8739_s8 + $0x10] sm:$0xff]  ;;  %v8215_v61 = vld [vmem:[%s8739_s8 + $0x18] sm:$0xff] }
 0x6eb   : > { %7777 = vmatprep.subr.bf16.mxu0 %v8002_v54 }
 0x6ec   : > { %7761 = vmatprep.mubr.msk.bf16.mxu0 %vm4205_vm1, %v6037_v13 }
 0x6ed   : > { %7762 = vmatmul.mubr.msk.bf16.gmra.mrb[80].mxu0 %vm4205_vm1, %v6038_v48 }
 0x6ef   : > { %v5716_v52 = vpop.f32.mrb[60].mxu0  ;;  %v5760_v5 = vpop.f32.mrb[60].mxu1 }
 0x6f0   : > { %v7697_v3 = vpop.f32.mrb[61].mxu0  ;;  %v7703_v24 = vpop.f32.mrb[61].mxu1 }
 0x6f1   : > { %v5719_v23 = vpop.f32.mrb[62].mxu0  ;;  %v5763_v31 = vpop.f32.mrb[62].mxu1 }
 0x6f2   : > { %v6039_v41 = vpack.c.bf16 %v5719_v23, %v5716_v52  ;;  %v6040_v63 = vpack.c.bf16 %v5763_v31, %v5760_v5  ;;  %v7698_v46 = vpop.f32.mrb[63].mxu0  ;;  %v7704_v15 = vpop.f32.mrb[63].mxu1  ;;  %v8216_v52 = vld [vmem:[%s8739_s8 + $0x20] sm:$0xff]  ;;  %v8217_v23 = vld [vmem:[%s8739_s8 + $0x28] sm:$0xff] }
 0x6f3   : > { %v8219_v46 = vld [vmem:[%s8739_s8 + $0x38] sm:$0xff] }
 0x6f4   : > { %7769 = vmatprep.mubr.msk.bf16.mxu0 %vm4205_vm1, %v6039_v41  ;;  %v8218_v41 = vld [vmem:[%s8739_s8 + $0x30] sm:$0xff] }
 0x6f5   : > { %7770 = vmatmul.mubr.msk.bf16.vlgmr.msra.gmra.mrb[76].mxu0 %vm4205_vm1, %v6040_v63 }
 0x6f6   : > { %7778 = vmatpush3.bf16.msra.mxu0 %v8002_v54 }
 0x6f7   : > { %v5804_v8 = vpop.f32.mrb[64].mxu0  ;;  %v5848_v25 = vpop.f32.mrb[64].mxu1  ;;  %7779 = vmatprep.subr.bf16.mxu0 %v8003_v42 }
 0x6f8   : > { %v7709_v30 = vpop.f32.mrb[65].mxu0  ;;  %v7715_v57 = vpop.f32.mrb[65].mxu1 }
 0x6f9   : > { %v5807_v50 = vpop.f32.mrb[66].mxu0  ;;  %v5851_v43 = vpop.f32.mrb[66].mxu1 }
 0x6fa   : > { %v6041_v49 = vpack.c.bf16 %v5807_v50, %v5804_v8  ;;  %v6042_v14 = vpack.c.bf16 %v5851_v43, %v5848_v25  ;;  %v7710_v40 = vpop.f32.mrb[67].mxu0  ;;  %v7716_v51 = vpop.f32.mrb[67].mxu1  ;;  %7780 = vmatpush3.bf16.msra.mxu0 %v8003_v42  ;;  %v8004_v42 = vld [vmem:[#allocation8] sm:$0xff]  }
 0x6fb   : > { %7789 = vmatprep.subr.bf16.mxu1 %v8004_v42 }
 0x6fc   : > { %7773 = vmatprep.mubr.msk.bf16.mxu0 %vm4205_vm1, %v6041_v49  ;;  %7790 = vmatpush3.bf16.msra.mxu1 %v8004_v42 }
 0x6fd   : > { %7774 = vmatmul.mubr.msk.bf16.gmra.mrb[80].mxu0 %vm4205_vm1, %v6042_v14 }
 0x6ff   : > { %v5892_v27 = vpop.f32.mrb[68].mxu0  ;;  %v5936_v17 = vpop.f32.mrb[68].mxu1 }
 0x700   : > { %v7721_v16 = vpop.f32.mrb[69].mxu0  ;;  %v7727_v4 = vpop.f32.mrb[69].mxu1 }
 0x701   : > { %v5895_v34 = vpop.f32.mrb[70].mxu0  ;;  %v5939_v7 = vpop.f32.mrb[70].mxu1 }
 0x702   : > { %v6043_v58 = vpack.c.bf16 %v5895_v34, %v5892_v27  ;;  %v6044_v56 = vpack.c.bf16 %v5939_v7, %v5936_v17  ;;  %v7722_v11 = vpop.f32.mrb[71].mxu0  ;;  %v7728_v29 = vpop.f32.mrb[71].mxu1 }
 0x704   : > { %7781 = vmatprep.mubr.msk.bf16.mxu0 %vm4205_vm1, %v6043_v58 }
 0x705   : > { %7782 = vmatmul.mubr.msk.bf16.vlgmr.msra.gmra.mrb[76].mxu0 %vm4205_vm1, %v6044_v56 }
 0x707   : > { %v5980_v33 = vpop.f32.mrb[72].mxu0  ;;  %v6024_v20 = vpop.f32.mrb[72].mxu1 }
 0x708   : > { %v7733_v10 = vpop.f32.mrb[73].mxu0  ;;  %v7739_v6 = vpop.f32.mrb[73].mxu1 }
 0x709   : > { %v5983_v32 = vpop.f32.mrb[74].mxu0  ;;  %v6027_v44 = vpop.f32.mrb[74].mxu1 }
 0x70a   : > { %v6045_v37 = vpack.c.bf16 %v5983_v32, %v5980_v33  ;;  %v6046_v12 = vpack.c.bf16 %v6027_v44, %v6024_v20  ;;  %v7734_v59 = vpop.f32.mrb[75].mxu0  ;;  %v7740_v26 = vpop.f32.mrb[75].mxu1 }
 0x70c   : > { %7785 = vmatprep.mubr.msk.bf16.mxu0 %vm4205_vm1, %v6045_v37 }
 0x70d   : > { %7786 = vmatmul.mubr.msk.bf16.gmra.mrb[80].mxu0 %vm4205_vm1, %v6046_v12 }
 0x7d8   : > { %v7783_v18 = vpop.f32.mrb[76].mxu0 }
 0x7d9   : > { %v6388_v38 = vpop.f32.mrb[77].mxu0  ;;  %v6452_v55 = vadd.f32 %v7783_v18, %v7370_v35 }
 0x7da   : > { %v6450_v62 = vadd.f32 %v7370_v35, %v6388_v38  ;;  %v7784_v2 = vpop.f32.mrb[78].mxu0  ;;  %v8005_v38 = vld [vmem:[#allocation8 + $0x8] sm:$0xff]  }
 0x7db   : > { %v6391_v9 = vpop.f32.mrb[79].mxu0  ;;  %v6453_v60 = vadd.f32 %v7784_v2, %v7370_v35  ;;  %v10676_v54 = vadd.f32 %v8214_v39, %v6452_v55  ;;  %7791 = vmatprep.subr.bf16.mxu1 %v8005_v38  ;;  %v8007_v2 = vld [vmem:[#allocation8 + $0x18] sm:$0xff]   ;;  %v8009_v55 = vld [vmem:[#allocation8 + $0x28] sm:$0xff]  }
 0x7dc   : > { %v10669_v45 = vadd.f32 %v8212_v19, %v6450_v62  ;;  %v6451_v28 = vadd.f32 %v7370_v35, %v6391_v9  ;;  %7792 = vmatpush3.bf16.msra.mxu1 %v8005_v38  ;;  %v8006_v62 = vld [vmem:[#allocation8 + $0x10] sm:$0xff]   ;;  %v8008_v9 = vld [vmem:[#allocation8 + $0x20] sm:$0xff]  }
 0x7dd   : > { %v10680_v53 = vadd.f32 %v8215_v61, %v6453_v60  ;;  %7793 = vmatprep.subr.bf16.mxu1 %v8006_v62  ;;  %v8010_v19 = vld [vmem:[#allocation8 + $0x30] sm:$0xff]  }
 0x7de   : > { %v10672_v36 = vadd.f32 %v8213_v21, %v6451_v28  ;;  %6468 = vadd.xlane.f32.xlu0 %v10669_v45  ;;  %v8011_v28 = vld [vmem:[#allocation8 + $0x38] sm:$0xff]  }
 0x7e0   : > { %6470 = vadd.xlane.f32.xlu1 %v10672_v36  ;;  %v7787_v0 = vpop.f32.mrb[80].mxu0  ;;  %7794 = vmatpush3.bf16.msra.mxu1 %v8006_v62 }
 0x7e1   : > { %v6404_v47 = vpop.f32.mrb[81].mxu0  ;;  %v6456_v1 = vadd.f32 %v7787_v0, %v7370_v35  ;;  %7795 = vmatprep.subr.bf16.mxu1 %v8007_v2 }
 0x7e2   : > { %v6454_v13 = vadd.f32 %v7370_v35, %v6404_v47  ;;  %6472 = vadd.xlane.f32.xlu0 %v10676_v54  ;;  %v7788_v48 = vpop.f32.mrb[82].mxu0 }
 0x7e3   : > { %v6407_v22 = vpop.f32.mrb[83].mxu0  ;;  %v6457_v24 = vadd.f32 %v7788_v48, %v7370_v35  ;;  %v10692_v63 = vadd.f32 %v8218_v41, %v6456_v1 }
 0x7e4   : > { %v10684_v5 = vadd.f32 %v8216_v52, %v6454_v13  ;;  %v6455_v3 = vadd.f32 %v7370_v35, %v6407_v22  ;;  %6474 = vadd.xlane.f32.xlu1 %v10680_v53  ;;  %7796 = vmatpush3.bf16.msra.mxu1 %v8007_v2 }
 0x7e5   : > { %v10696_v15 = vadd.f32 %v8219_v46, %v6457_v24  ;;  %7797 = vmatprep.subr.bf16.mxu1 %v8008_v9 }
 0x7e6   : > { %v10688_v31 = vadd.f32 %v8217_v23, %v6455_v3  ;;  %6476 = vadd.xlane.f32.xlu0 %v10684_v5 }
 0x7e8   : > { %6478 = vadd.xlane.f32.xlu1 %v10688_v31  ;;  %7798 = vmatpush3.bf16.msra.mxu1 %v8008_v9 }
 0x7e9   : > { %7799 = vmatprep.subr.bf16.mxu1 %v8009_v55 }
 0x7ea   : > { %6480 = vadd.xlane.f32.xlu0 %v10692_v63 }
 0x7ec   : > { %6482 = vadd.xlane.f32.xlu1 %v10696_v15  ;;  %7800 = vmatpush3.bf16.msra.mxu1 %v8009_v55 }
 0x7ed   : > { %7801 = vmatprep.subr.bf16.mxu1 %v8010_v19 }
 0x7f0   : > { %7802 = vmatpush3.bf16.msra.mxu1 %v8010_v19 }
 0x7f1   : > { %7803 = vmatprep.subr.bf16.mxu1 %v8011_v28 }
 0x7f4   : > { %7804 = vmatpush3.bf16.msra.mxu1 %v8011_v28 }
 0x86b   : > { %v6469_v8 = vpop.xlane.xlu0 %6468 }
 0x86c   : > { %v6484_v25 = vmul.f32 0.0078125, %v6469_v8 }
 0x86d   : > { %v6471_v30 = vpop.xlane.xlu1 %6470 }
 0x86e   : > { %v10701_v57 = vsub.f32 %v10669_v45, %v6484_v25  ;;  %v6485_v50 = vmul.f32 0.0078125, %v6471_v30 }
 0x86f   : > { %v6473_v43 = vpop.xlane.xlu0 %6472 }
 0x870   : > { %v10704_v49 = vsub.f32 %v10672_v36, %v6485_v50  ;;  %v6486_v14 = vmul.f32 0.0078125, %v6473_v43  ;;  %v6500_v40 = vmul.f32 %v10701_v57, %v10701_v57 }
 0x871   : > { %v6475_v51 = vpop.xlane.xlu1 %6474 }
 0x872   : > { %v10709_v27 = vsub.f32 %v10676_v54, %v6486_v14  ;;  %v6487_v17 = vmul.f32 0.0078125, %v6475_v51  ;;  %6508 = vadd.xlane.f32.xlu0 %v6500_v40  ;;  %v6501_v16 = vmul.f32 %v10704_v49, %v10704_v49  ;;  %v7371_v51 = vld [vmem:[%s11146_s14] ss:$0 sm:$0xff]  ;;  %s11150_s14 = sld [smem:[#allocation51_spill]] }
 0x873   : > { %v6477_v4 = vpop.xlane.xlu0 %6476 }
 0x874   : > { %v10714_v34 = vsub.f32 %v10680_v53, %v6487_v17  ;;  %v6488_v7 = vmul.f32 0.0078125, %v6477_v4  ;;  %6510 = vadd.xlane.f32.xlu1 %v6501_v16  ;;  %v6502_v58 = vmul.f32 %v10709_v27, %v10709_v27 }
 0x875   : > { %v6479_v56 = vpop.xlane.xlu1 %6478 }
 0x876   : > { %v10719_v11 = vsub.f32 %v10684_v5, %v6488_v7  ;;  %v6489_v29 = vmul.f32 0.0078125, %v6479_v56  ;;  %6512 = vadd.xlane.f32.xlu0 %v6502_v58  ;;  %v6503_v33 = vmul.f32 %v10714_v34, %v10714_v34 }
 0x877   : > { %v6481_v20 = vpop.xlane.xlu0 %6480 }
 0x878   : > { %v10724_v10 = vsub.f32 %v10688_v31, %v6489_v29  ;;  %v6490_v6 = vmul.f32 0.0078125, %v6481_v20  ;;  %6514 = vadd.xlane.f32.xlu1 %v6503_v33  ;;  %v6504_v32 = vmul.f32 %v10719_v11, %v10719_v11  ;;  %v7372_v29 = vld [vmem:[%s11147_s23] ss:$0 sm:$0xff]  ;;  %s10908_s29 = scalar_lea.hbm %s11150_s14, %s7400_s22  ;;  %s8457_s23 = smov [#allocation11]  }
 0x879   : > { %v6483_v44 = vpop.xlane.xlu1 %6482  ;;  %s8366_s30 = sshll.u32 %s8457_s23, 4  ;;  %s8367_s30 = int_to_ptr.vmem [resolvable:$false] %s8366_s30 }
 0x87a   : > { %v10729_v37 = vsub.f32 %v10692_v63, %v6490_v6  ;;  %v6491_v12 = vmul.f32 0.0078125, %v6483_v44  ;;  %6516 = vadd.xlane.f32.xlu0 %v6504_v32  ;;  %v6505_v59 = vmul.f32 %v10724_v10, %v10724_v10  ;;  %s8368_s24 = scalar_lea.vmem %s8367_s30, 2048  ;;  %p8369_p3 = scmp.lt.s32.totalorder %s10901_s21, %s8367_s30 }
 0x87b   : > { %p8370_p7 = scmp.lt.s32.totalorder %s8368_s24, %s8362_s13 }
 0x87c   : > { %v10734_v26 = vsub.f32 %v10696_v15, %v6491_v12  ;;  %6518 = vadd.xlane.f32.xlu1 %v6505_v59  ;;  %v6506_v35 = vmul.f32 %v10729_v37, %v10729_v37 }
 0x87d   : > { %p8371_p9 = por %p8370_p7, %p8369_p3 }
 0x87e   : > { %6520 = vadd.xlane.f32.xlu0 %v6506_v35  ;;  %v6507_v18 = vmul.f32 %v10734_v26, %v10734_v26 }
 0x87f   : > { %p8372_p13 = pnand %p8371_p9, %p8365_p12 }
 0x880   : > { %6522 = vadd.xlane.f32.xlu1 %v6507_v18 }
 0x8ff   : > { %v6509_v60 = vpop.xlane.xlu0 %6508 }
 0x900   : > { %v6524_v21 = vmul.f32 0.0078125, %v6509_v60 }
 0x901   : > { %v6511_v39 = vpop.xlane.xlu1 %6510 }
 0x902   : > { %v6532_v0 = vadd.f32 1e-06, %v6524_v21  ;;  %v6525_v47 = vmul.f32 0.0078125, %v6511_v39 }
 0x903   : > { %v6513_v61 = vpop.xlane.xlu0 %6512 }
 0x904   : > { %8164 = vrsqrt.f32 %v6532_v0  ;;  %v6533_v13 = vadd.f32 1e-06, %v6525_v47  ;;  %v6526_v48 = vmul.f32 0.0078125, %v6513_v61 }
 0x905   : > { %v6515_v22 = vpop.xlane.xlu1 %6514 }
 0x906   : > { %8166 = vrsqrt.f32 %v6533_v13  ;;  %v6534_v1 = vadd.f32 1e-06, %v6526_v48  ;;  %v6527_v52 = vmul.f32 0.0078125, %v6515_v22 }
 0x907   : > { %v6517_v3 = vpop.xlane.xlu0 %6516 }
 0x908   : > { %8168 = vrsqrt.f32 %v6534_v1  ;;  %v6535_v24 = vadd.f32 1e-06, %v6527_v52  ;;  %v6528_v23 = vmul.f32 0.0078125, %v6517_v3  ;;  %v8013_v1 = vld [vmem:[#allocation10 + $0x8] sm:$0xff]   ;;  %v8015_v52 = vld [vmem:[#allocation10 + $0x18] sm:$0xff]  }
 0x909   : > { %v6519_v41 = vpop.xlane.xlu1 %6518  ;;  %v8017_v3 = vld [vmem:[#allocation10 + $0x28] sm:$0xff]  }
 0x90a   : > { %8170 = vrsqrt.f32 %v6535_v24  ;;  %v6536_v46 = vadd.f32 1e-06, %v6528_v23  ;;  %v6529_v42 = vmul.f32 0.0078125, %v6519_v41  ;;  %v8018_v24 = vld [vmem:[#allocation10 + $0x30] sm:$0xff]   ;;  %v8019_v23 = vld [vmem:[#allocation10 + $0x38] sm:$0xff]  }
 0x90b   : > { %v6521_v8 = vpop.xlane.xlu0 %6520  ;;  %v7373_v41 = vld [vmem:[%s11148_s15] ss:$0 sm:$0xff] }
 0x90c   : > { %8172 = vrsqrt.f32 %v6536_v46  ;;  %v6537_v25 = vadd.f32 1e-06, %v6529_v42  ;;  %v6530_v30 = vmul.f32 0.0078125, %v6521_v8 }
 0x90d   : > { %v6523_v50 = vpop.xlane.xlu1 %6522 }
 0x90e   : > { %v8165_v43 = vpop.eup %8164  ;;  %8174 = vrsqrt.f32 %v6537_v25  ;;  %v6538_v14 = vadd.f32 1e-06, %v6530_v30  ;;  %v6531_v40 = vmul.f32 0.0078125, %v6523_v50 }
 0x90f   : > { %v6548_v17 = vmul.f32 %v8165_v43, %v10701_v57 }
 0x910   : > { %v8167_v16 = vpop.eup %8166  ;;  %8176 = vrsqrt.f32 %v6538_v14  ;;  %v6539_v4 = vadd.f32 1e-06, %v6531_v40 }
 0x911   : > { %v6549_v7 = vmul.f32 %v8167_v16, %v10704_v49  ;;  %v6562_v58 = vmul.f32 %v7371_v51, %v6548_v17 }
 0x912   : > { %v8169_v56 = vpop.eup %8168  ;;  %8178 = vrsqrt.f32 %v6539_v4 }
 0x913   : > { %v6550_v33 = vmul.f32 %v8169_v56, %v10709_v27  ;;  %v6563_v20 = vmul.f32 %v7371_v51, %v6549_v7  ;;  %v6576_v44 = vadd.f32 %v7372_v29, %v6562_v58 }
 0x914   : > { %v8171_v6 = vpop.eup %8170 }
 0x915   : > { %v6551_v32 = vmul.f32 %v8171_v6, %v10714_v34  ;;  %v6577_v57 = vadd.f32 %v7372_v29, %v6563_v20  ;;  %v6564_v12 = vmul.f32 %v7371_v51, %v6550_v33 }
 0x916   : > { %v8173_v59 = vpop.eup %8172 }
 0x917   : > { %v6584_v35 = vpack.c.bf16 %v6577_v57, %v6576_v44  ;;  %v6565_v18 = vmul.f32 %v7371_v51, %v6551_v32  ;;  %v6552_v49 = vmul.f32 %v8173_v59, %v10719_v11  ;;  %v6578_v62 = vadd.f32 %v7372_v29, %v6564_v12 }
 0x918   : > { %v8175_v38 = vpop.eup %8174 }
 0x919   : > { %7805 = vmatprep.mubr.bf16.mxu1 %v6584_v35  ;;  %v6579_v2 = vadd.f32 %v7372_v29, %v6565_v18  ;;  %v6553_v9 = vmul.f32 %v8175_v38, %v10724_v10  ;;  %v6566_v55 = vmul.f32 %v7371_v51, %v6552_v49  ;;  %v8012_v10 = vld [vmem:[#allocation10] sm:$0xff]  }
 0x91a   : > { %v8177_v27 = vpop.eup %8176  ;;  %7813 = vmatprep.subr.bf16.mxu1 %v8012_v10 }
 0x91b   : > { %v6585_v19 = vpack.c.bf16 %v6579_v2, %v6578_v62  ;;  %v6567_v28 = vmul.f32 %v7371_v51, %v6553_v9  ;;  %v6554_v34 = vmul.f32 %v8177_v27, %v10729_v37  ;;  %v6580_v21 = vadd.f32 %v7372_v29, %v6566_v55  ;;  %v8014_v37 = vld [vmem:[#allocation10 + $0x10] sm:$0xff]  }
 0x91c   : > { %v8179_v60 = vpop.eup %8178 }
 0x91d   : > { %7806 = vmatmul.mubr.bf16.vlgmr.msra.gmra.mrb[76].mxu1 %v6585_v19  ;;  %v6581_v39 = vadd.f32 %v7372_v29, %v6567_v28  ;;  %v6555_v0 = vmul.f32 %v8179_v60, %v10734_v26  ;;  %v6568_v47 = vmul.f32 %v7371_v51, %v6554_v34  ;;  %v8016_v26 = vld [vmem:[#allocation10 + $0x20] sm:$0xff]  }
 0x91e   : > { %7814 = vmatpush3.bf16.msra.mxu1 %v8012_v10 }
 0x91f   : > { %v6586_v11 = vpack.c.bf16 %v6581_v39, %v6580_v21  ;;  %v6569_v61 = vmul.f32 %v7371_v51, %v6555_v0  ;;  %v6582_v13 = vadd.f32 %v7372_v29, %v6568_v47  ;;  %7815 = vmatprep.subr.bf16.mxu1 %v8013_v1 }
 0x921   : > { %7809 = vmatprep.mubr.bf16.mxu1 %v6586_v11  ;;  %v6583_v48 = vadd.f32 %v7372_v29, %v6569_v61 }
 0x922   : > { %7816 = vmatpush3.bf16.msra.mxu1 %v8013_v1 }
 0x923   : > { %v6587_v22 = vpack.c.bf16 %v6583_v48, %v6582_v13  ;;  %7817 = vmatprep.subr.bf16.mxu1 %v8014_v37 }
 0x925   : > { %7810 = vmatmul.mubr.bf16.gmra.mrb[80].mxu1 %v6587_v22 }
 0x926   : > { %7818 = vmatpush3.bf16.msra.mxu1 %v8014_v37 }
 0x927   : > { %7819 = vmatprep.subr.bf16.mxu1 %v8015_v52 }
 0x92a   : > { %7820 = vmatpush3.bf16.msra.mxu1 %v8015_v52 }
 0x92b   : > { %7821 = vmatprep.subr.bf16.mxu1 %v8016_v26 }
 0x92e   : > { %7822 = vmatpush3.bf16.msra.mxu1 %v8016_v26 }
 0x92f   : > { %7823 = vmatprep.subr.bf16.mxu1 %v8017_v3 }
 0x932   : > { %7824 = vmatpush3.bf16.msra.mxu1 %v8017_v3 }
 0x933   : > { %7825 = vmatprep.subr.bf16.mxu1 %v8018_v24 }
 0x936   : > { %7826 = vmatpush3.bf16.msra.mxu1 %v8018_v24 }
 0x937   : > { %7827 = vmatprep.subr.bf16.mxu1 %v8019_v23 }
 0x93a   : > { %7828 = vmatpush3.bf16.msra.mxu1 %v8019_v23 }
 0x9f0   : > { %v7807_v46 = vpop.f32.mrb[76].mxu1 }
 0x9f1   : > { %v6702_v42 = vadd.f32 %v7807_v46, %v7373_v41  ;;  %v6693_v8 = vpop.f32.mrb[77].mxu1 }
 0x9f2   : > { %v10757_v25 = vadd.f32 %v7373_v41, %v6693_v8  ;;  %v7808_v30 = vpop.f32.mrb[78].mxu1 }
 0x9f3   : > { %v10759_v50 = vmul.f32 0.70710677, %v6702_v42  ;;  %v10761_v43 = vadd.f32 %v7808_v30, %v7373_v41  ;;  %v6696_v14 = vpop.f32.mrb[79].mxu1  ;;  %v10801_v13 = vmul.f32 0.5, %v6702_v42 }
 0x9f4   : > { %v10764_v40 = vmul.f32 0.70710677, %v10757_v25  ;;  %v10766_v51 = vadd.f32 %v7373_v41, %v6696_v14 }
 0x9f5   : > { %v6742_v17 = vand.u32 2147483647, %v10759_v50  ;;  %v10770_v16 = vmul.f32 0.70710677, %v10761_v43  ;;  %vm6902_vm3 = vcmp.lt.f32.partialorder %v10759_v50, 0.0 }
 0x9f6   : > { %v6740_v4 = vand.u32 2147483647, %v10764_v40  ;;  %v10774_v7 = vmul.f32 0.70710677, %v10766_v51  ;;  %vm6900_vm4 = vcmp.lt.f32.partialorder %v10764_v40, 0.0 }
 0x9f7   : > { %v6750_v58 = vmul.f32 0.3275911, %v6742_v17  ;;  %v6743_v56 = vand.u32 2147483647, %v10770_v16  ;;  %v6854_v27 = vsub.f32 0.0, %v6742_v17  ;;  %vm6903_vm5 = vcmp.lt.f32.partialorder %v10770_v16, 0.0 }
 0x9f8   : > { %v6748_v29 = vmul.f32 0.3275911, %v6740_v4  ;;  %v6741_v33 = vand.u32 2147483647, %v10774_v7  ;;  %v7811_v32 = vpop.f32.mrb[80].mxu1  ;;  %v6852_v34 = vsub.f32 0.0, %v6740_v4 }
 0x9f9   : > { %v6758_v20 = vadd.f32 1.0, %v6750_v58  ;;  %v6751_v6 = vmul.f32 0.3275911, %v6743_v56  ;;  %v6709_v12 = vpop.f32.mrb[81].mxu1  ;;  %v10778_v38 = vadd.f32 %v7811_v32, %v7373_v41  ;;  %v6855_v21 = vsub.f32 0.0, %v6743_v56 }
 0x9fa   : > { %v6756_v44 = vadd.f32 1.0, %v6748_v29  ;;  %v6749_v57 = vmul.f32 0.3275911, %v6741_v33  ;;  %v7812_v35 = vpop.f32.mrb[82].mxu1  ;;  %v10780_v62 = vadd.f32 %v7373_v41, %v6709_v12  ;;  %v6853_v39 = vsub.f32 0.0, %v6741_v33 }
 0x9fb   : > { %8180 = vrcp.f32 %v6758_v20  ;;  %v6759_v59 = vadd.f32 1.0, %v6751_v6  ;;  %v6712_v18 = vpop.f32.mrb[83].mxu1  ;;  %v10782_v2 = vadd.f32 %v7812_v35, %v7373_v41  ;;  %v10785_v9 = vmul.f32 0.70710677, %v10778_v38 }
 0x9fc   : > { %8182 = vrcp.f32 %v6756_v44  ;;  %v6757_v49 = vadd.f32 1.0, %v6749_v57  ;;  %v10787_v55 = vadd.f32 %v7373_v41, %v6712_v18  ;;  %v10790_v19 = vmul.f32 0.70710677, %v10780_v62 }
 0x9fd   : > { %8184 = vrcp.f32 %v6759_v59  ;;  %v10793_v28 = vmul.f32 0.70710677, %v10782_v2  ;;  %v6746_v60 = vand.u32 2147483647, %v10785_v9  ;;  %v6862_v48 = vmul.f32 %v6854_v27, %v6742_v17 }
 0x9fe   : > { %8186 = vrcp.f32 %v6757_v49  ;;  %v6744_v0 = vand.u32 2147483647, %v10790_v19  ;;  %v10799_v61 = vmul.f32 0.70710677, %v10787_v55  ;;  %v6860_v37 = vmul.f32 %v6852_v34, %v6740_v4 }
 0x9ff   : > { %v6747_v47 = vand.u32 2147483647, %v10793_v28  ;;  %v6754_v11 = vmul.f32 0.3275911, %v6746_v60  ;;  %v6858_v26 = vsub.f32 0.0, %v6746_v60  ;;  %v6863_v41 = vmul.f32 %v6855_v21, %v6743_v56 }
 0xa00   : > { %v6752_v22 = vmul.f32 0.3275911, %v6744_v0  ;;  %v6745_v3 = vand.u32 2147483647, %v10799_v61  ;;  %v6861_v46 = vmul.f32 %v6853_v39, %v6741_v33  ;;  %v6856_v30 = vsub.f32 0.0, %v6744_v0 }
 0xa01   : > { %v6755_v10 = vmul.f32 0.3275911, %v6747_v47  ;;  %v6762_v52 = vadd.f32 1.0, %v6754_v11  ;;  %v6872_v58 = vmul.f32 1.442695, %v6862_v48  ;;  %v6866_v32 = vmul.f32 %v6858_v26, %v6746_v60 }
 0xa02   : > { %v6760_v8 = vadd.f32 1.0, %v6752_v22  ;;  %v6753_v4 = vmul.f32 0.3275911, %v6745_v3  ;;  %v6868_v6 = vmul.f32 1.442695, %v6860_v37  ;;  %v6859_v44 = vsub.f32 0.0, %v6747_v47 }
 0xa03   : > { %8188 = vrcp.f32 %v6762_v52  ;;  %v6763_v14 = vadd.f32 1.0, %v6755_v10  ;;  %v6874_v33 = vmul.f32 1.442695, %v6863_v41  ;;  %v6870_v18 = vmul.f32 1.442695, %v6861_v46 }
 0xa04   : > { %8190 = vrcp.f32 %v6760_v8  ;;  %v6761_v12 = vadd.f32 1.0, %v6753_v4  ;;  %v6864_v49 = vmul.f32 %v6856_v30, %v6744_v0  ;;  %v6880_v39 = vmul.f32 1.442695, %v6866_v32 }
 0xa05   : > { %v10803_v1 = vpop.eup %8180  ;;  %8192 = vrcp.f32 %v6763_v14  ;;  %v6867_v11 = vmul.f32 %v6859_v44, %v6747_v47  ;;  %v6857_v52 = vsub.f32 0.0, %v6745_v3  ;;  %v10825_v47 = vmul.f32 0.5, %v10757_v25 }
 0xa06   : > { %v10806_v24 = vpop.eup %8182  ;;  %v6782_v23 = vmul.f32 1.0614054, %v10803_v1  ;;  %8194 = vpow2.f32 %v6872_v58  ;;  %v6876_v0 = vmul.f32 1.442695, %v6864_v49  ;;  %vm6901_vm6 = vcmp.lt.f32.partialorder %v10774_v7, 0.0 }
 0xa07   : > { %v6780_v42 = vmul.f32 1.0614054, %v10806_v24  ;;  %v10810_v29 = vpop.eup %8184  ;;  %8196 = vrcp.f32 %v6761_v12  ;;  %v6865_v32 = vmul.f32 %v6857_v52, %v6745_v3  ;;  %vm6906_vm7 = vcmp.lt.f32.partialorder %v10785_v9, 0.0 }
 0xa08   : > { %v6790_v17 = vadd.f32 -1.4531521, %v6782_v23  ;;  %v6783_v56 = vmul.f32 1.0614054, %v10810_v29  ;;  %v10814_v59 = vpop.eup %8186  ;;  %8198 = vpow2.f32 %v6868_v6  ;;  %vm6907_vm8 = vcmp.lt.f32.partialorder %v10793_v28, 0.0 }
 0xa09   : > { %v6788_v20 = vadd.f32 -1.4531521, %v6780_v42  ;;  %v6781_v21 = vmul.f32 1.0614054, %v10814_v59  ;;  %8200 = vpow2.f32 %v6874_v33  ;;  %v6882_v42 = vmul.f32 1.442695, %v6867_v11 }
 0xa0a   : > { %v6798_v57 = vmul.f32 %v10803_v1, %v6790_v17  ;;  %v6791_v34 = vadd.f32 -1.4531521, %v6783_v56  ;;  %8202 = vpow2.f32 %v6870_v18  ;;  %vm6904_vm9 = vcmp.lt.f32.partialorder %v10790_v19, 0.0 }
 0xa0b   : > { %v6796_v35 = vmul.f32 %v10806_v24, %v6788_v20  ;;  %v6789_v10 = vadd.f32 -1.4531521, %v6781_v21  ;;  %8204 = vpow2.f32 %v6880_v39  ;;  %vm6905_vm10 = vcmp.lt.f32.partialorder %v10799_v61, 0.0 }
 0xa0c   : > { %v6806_v27 = vadd.f32 1.4214138, %v6798_v57  ;;  %v6799_v22 = vmul.f32 %v10810_v29, %v6791_v34  ;;  %8206 = vpow2.f32 %v6876_v0  ;;  %v6728_v28 = vmul.f32 0.5, %v10780_v62 }
 0xa0d   : > { %v6804_v60 = vadd.f32 1.4214138, %v6796_v35  ;;  %v6797_v41 = vmul.f32 %v10814_v59, %v6789_v10  ;;  %v10822_v46 = vpop.eup %8188  ;;  %v10839_v35 = vmul.f32 0.5, %v10761_v43  ;;  %8208 = vpow2.f32 %v6882_v42 }
 0xa0e   : > { %v6814_v48 = vmul.f32 %v10803_v1, %v6806_v27  ;;  %v6807_v23 = vadd.f32 1.4214138, %v6799_v22  ;;  %v10827_v30 = vpop.eup %8190  ;;  %v6786_v4 = vmul.f32 1.0614054, %v10822_v46 }
 0xa0f   : > { %v6812_v37 = vmul.f32 %v10806_v24, %v6804_v60  ;;  %v6805_v58 = vadd.f32 1.4214138, %v6797_v41  ;;  %v6784_v6 = vmul.f32 1.0614054, %v10827_v30  ;;  %v10835_v33 = vpop.eup %8192 }
 0xa10   : > { %v6822_v26 = vadd.f32 -0.28449672, %v6814_v48  ;;  %v6815_v17 = vmul.f32 %v10810_v29, %v6807_v23  ;;  %v6794_v56 = vadd.f32 -1.4531521, %v6786_v4  ;;  %v8195_v49 = vpop.eup %8194  ;;  %v6787_v43 = vmul.f32 1.0614054, %v10835_v33 }
 0xa11   : > { %v6820_v8 = vadd.f32 -0.28449672, %v6812_v37  ;;  %v6813_v57 = vmul.f32 %v10814_v59, %v6805_v58  ;;  %v6792_v18 = vadd.f32 -1.4531521, %v6784_v6  ;;  %v10845_v60 = vpop.eup %8196  ;;  %v6878_v48 = vmul.f32 1.442695, %v6865_v32 }
 0xa12   : > { %v6830_v14 = vmul.f32 %v10803_v1, %v6822_v26  ;;  %v6823_v44 = vadd.f32 -0.28449672, %v6815_v17  ;;  %v6802_v21 = vmul.f32 %v10822_v46, %v6794_v56  ;;  %v8199_v22 = vpop.eup %8198  ;;  %v6795_v41 = vadd.f32 -1.4531521, %v6787_v43 }
 0xa13   : > { %v6828_v20 = vmul.f32 %v10806_v24, %v6820_v8  ;;  %v6821_v34 = vadd.f32 -0.28449672, %v6813_v57  ;;  %v6800_v11 = vmul.f32 %v10827_v30, %v6792_v18  ;;  %v8201_v52 = vpop.eup %8200  ;;  %v6785_v8 = vmul.f32 1.0614054, %v10845_v60 }
 0xa14   : > { %v6838_v25 = vadd.f32 0.2548296, %v6830_v14  ;;  %v6831_v3 = vmul.f32 %v10810_v29, %v6823_v44  ;;  %v6810_v0 = vadd.f32 1.4214138, %v6802_v21  ;;  %v6803_v32 = vmul.f32 %v10835_v33, %v6795_v41 }
 0xa15   : > { %v6836_v12 = vadd.f32 0.2548296, %v6828_v20  ;;  %v6808_v23 = vadd.f32 1.4214138, %v6800_v11  ;;  %8210 = vpow2.f32 %v6878_v48 }
 0xa16   : > { %v6846_v27 = vmul.f32 %v10803_v1, %v6838_v25  ;;  %v6839_v37 = vadd.f32 0.2548296, %v6831_v3  ;;  %v6829_v1 = vmul.f32 %v10814_v59, %v6821_v34  ;;  %v6818_v58 = vmul.f32 %v10822_v46, %v6810_v0 }
 0xa17   : > { %v6844_v39 = vmul.f32 %v10806_v24, %v6836_v12  ;;  %v8203_v24 = vpop.eup %8202  ;;  %v6816_v6 = vmul.f32 %v10827_v30, %v6808_v23  ;;  %v6793_v25 = vadd.f32 -1.4531521, %v6785_v8  ;;  %v6811_v3 = vadd.f32 1.4214138, %v6803_v32 }
 0xa18   : > { %v6886_v10 = vmul.f32 %v8195_v49, %v6846_v27  ;;  %v6847_v14 = vmul.f32 %v10810_v29, %v6839_v37  ;;  %v6837_v17 = vadd.f32 0.2548296, %v6829_v1  ;;  %v8205_v4 = vpop.eup %8204  ;;  %v6826_v12 = vadd.f32 -0.28449672, %v6818_v58 }
 0xa19   : > { %v6884_v26 = vmul.f32 %v8199_v22, %v6844_v39  ;;  %v8207_v18 = vpop.eup %8206  ;;  %v6824_v27 = vadd.f32 -0.28449672, %v6816_v6  ;;  %v6801_v29 = vmul.f32 %v10845_v60, %v6793_v25  ;;  %v6725_v6 = vmul.f32 0.5, %v10766_v51 }
 0xa1a   : > { %v6894_v42 = vsub.f32 1.0, %v6886_v10  ;;  %v6887_v57 = vmul.f32 %v8201_v52, %v6847_v14  ;;  %v6845_v56 = vmul.f32 %v10814_v59, %v6837_v17  ;;  %v6834_v11 = vmul.f32 %v10822_v46, %v6826_v12  ;;  %v8209_v43 = vpop.eup %8208 }
 0xa1b   : > { %v6892_v20 = vsub.f32 1.0, %v6884_v26  ;;  %v6832_v59 = vmul.f32 %v10827_v30, %v6824_v27  ;;  %v6819_v10 = vmul.f32 %v10835_v33, %v6811_v3  ;;  %v6809_v23 = vadd.f32 1.4214138, %v6801_v29 }
 0xa1c   : > { %v6910_v44 = vsub.f32 0.0, %v6894_v42  ;;  %v6895_v21 = vsub.f32 1.0, %v6887_v57  ;;  %v6885_v39 = vmul.f32 %v8203_v24, %v6845_v56  ;;  %v6842_v52 = vadd.f32 0.2548296, %v6834_v11 }
 0xa1d   : > { %v6908_v49 = vsub.f32 0.0, %v6892_v20  ;;  %v6840_v50 = vadd.f32 0.2548296, %v6832_v59  ;;  %v6827_v26 = vadd.f32 -0.28449672, %v6819_v10  ;;  %v6817_v58 = vmul.f32 %v10845_v60, %v6809_v23 }
 0xa1e   : > { %v6918_v34 = vsel %vm6902_vm3, %v6910_v44, %v6894_v42  ;;  %v6911_v1 = vsub.f32 0.0, %v6895_v21  ;;  %v6893_v0 = vsub.f32 1.0, %v6885_v39  ;;  %v6850_v24 = vmul.f32 %v10822_v46, %v6842_v52 }
 0xa1f   : > { %v6916_v22 = vsel %vm6900_vm4, %v6908_v49, %v6892_v20  ;;  %v6926_v37 = vadd.f32 1.0, %v6918_v34  ;;  %v6848_v14 = vmul.f32 %v10827_v30, %v6840_v50  ;;  %v6835_v17 = vmul.f32 %v10835_v33, %v6827_v26 }
 0xa20   : > { %v6924_v41 = vadd.f32 1.0, %v6916_v22  ;;  %v6919_v8 = vsel %vm6903_vm5, %v6911_v1, %v6895_v21  ;;  %v6909_v40 = vsub.f32 0.0, %v6893_v0  ;;  %v6890_v32 = vmul.f32 %v8205_v4, %v6850_v24  ;;  %v8211_v4 = vpop.eup %8210 }
 0xa21   : > { %v6927_v42 = vadd.f32 1.0, %v6919_v8  ;;  %v6934_v20 = vmul.f32 %v6926_v37, %v10801_v13  ;;  %v6888_v44 = vmul.f32 %v8207_v18, %v6848_v14  ;;  %v6843_v46 = vadd.f32 0.2548296, %v6835_v17 }
 0xa22   : > { %v6917_v48 = vsel %vm6901_vm6, %v6909_v40, %v6893_v0  ;;  %v6898_v57 = vsub.f32 1.0, %v6890_v32  ;;  %v6825_v56 = vadd.f32 -0.28449672, %v6817_v58  ;;  %v6932_v30 = vmul.f32 %v6924_v41, %v10825_v47 }
 0xa23   : > { %v6935_v16 = vmul.f32 %v6927_v42, %v10839_v35  ;;  %v6925_v25 = vadd.f32 1.0, %v6917_v48  ;;  %v6851_v27 = vmul.f32 %v10835_v33, %v6843_v46  ;;  %v6896_v3 = vsub.f32 1.0, %v6888_v44 }
 0xa24   : > { %v6914_v13 = vsub.f32 0.0, %v6898_v57  ;;  %v6833_v51 = vmul.f32 %v10845_v60, %v6825_v56  ;;  %v6730_v22 = vmul.f32 0.5, %v10778_v38  ;;  %v6731_v59 = vmul.f32 0.5, %v10782_v2  ;;  %v7382_v2 = vld [vmem:[%s11149_s25] ss:$0 sm:$0xff] }
 0xa25   : > { %v6941_v12 = vpack.c.bf16 %v6935_v16, %v6934_v20  ;;  %v6933_v49 = vmul.f32 %v6925_v25, %v6725_v6  ;;  %v6891_v7 = vmul.f32 %v8209_v43, %v6851_v27  ;;  %v6912_v21 = vsub.f32 0.0, %v6896_v3 }
 0xa26   : > { %v6841_v35 = vadd.f32 0.2548296, %v6833_v51  ;;  %v6922_v18 = vsel %vm6906_vm7, %v6914_v13, %v6898_v57  ;;  %v6729_v38 = vmul.f32 0.5, %v10787_v55 }
 0xa27   : > { %v6940_v29 = vpack.c.bf16 %v6933_v49, %v6932_v30  ;;  %v6899_v34 = vsub.f32 1.0, %v6891_v7  ;;  %v6930_v11 = vadd.f32 1.0, %v6922_v18  ;;  %v6920_v9 = vsel %vm6904_vm9, %v6912_v21, %v6896_v3 }
 0xa28   : > { %v6849_v47 = vmul.f32 %v10845_v60, %v6841_v35  ;;  %v6928_v60 = vadd.f32 1.0, %v6920_v9 }
 0xa29   : > { %7829 = vmatprep.mubr.bf16.mxu1 %v6940_v29  ;;  %v6915_v39 = vsub.f32 0.0, %v6899_v34  ;;  %v6938_v1 = vmul.f32 %v6930_v11, %v6730_v22 }
 0xa2a   : > { %7830 = vmatmul.mubr.bf16.vlgmr.msra.gmra.mrb[84].mxu1 %v6941_v12  ;;  %v6889_v33 = vmul.f32 %v8211_v4, %v6849_v47  ;;  %v6936_v19 = vmul.f32 %v6928_v60, %v6728_v28 }
 0xa2b   : > { %v6923_v43 = vsel %vm6907_vm8, %v6915_v39, %v6899_v34 }
 0xa2c   : > { %v6931_v10 = vadd.f32 1.0, %v6923_v43  ;;  %v6897_v37 = vsub.f32 1.0, %v6889_v33 }
 0xa2e   : > { %v6939_v0 = vmul.f32 %v6931_v10, %v6731_v59  ;;  %v6913_v52 = vsub.f32 0.0, %v6897_v37 }
 0xa30   : > { %v6921_v50 = vsel %vm6905_vm10, %v6913_v52, %v6897_v37  ;;  %v6943_v26 = vpack.c.bf16 %v6939_v0, %v6938_v1 }
 0xa31   : > { %v6929_v23 = vadd.f32 1.0, %v6921_v50 }
 0xa33   : > { %v6937_v41 = vmul.f32 %v6929_v23, %v6729_v38 }
 0xa35   : > { %v6942_v8 = vpack.c.bf16 %v6937_v41, %v6936_v19 }
 0xa37   : > { %7833 = vmatprep.mubr.bf16.mxu1 %v6942_v8 }
 0xa38   : > { %7834 = vmatmul.mubr.bf16.gmra.mrb[88].mxu1 %v6943_v26 }
 0xafd   : > { %v7831_v40 = vpop.f32.mrb[84].mxu1 }
 0xafe   : > { %v7058_v24 = vadd.f32 %v7831_v40, %v7382_v2  ;;  %v7049_v61 = vpop.f32.mrb[85].mxu1 }
 0xaff   : > { %v7050_v42 = vadd.f32 %v7382_v2, %v7049_v61  ;;  %v7832_v14 = vpop.f32.mrb[86].mxu1 }
 0xb00   : > { %v7082_v62 = vadd.f32 %v7058_v24, %v10676_v54  ;;  %v7061_v17 = vadd.f32 %v7832_v14, %v7382_v2  ;;  %v7052_v55 = vpop.f32.mrb[87].mxu1 }
 0xb01   : > { %v7080_v58 = vadd.f32 %v7050_v42, %v10669_v45  ;;  %v7053_v20 = vadd.f32 %v7382_v2, %v7052_v55 }
 0xb02   : > { %7090 = vst [vmem:[%s517_s20 + $0x10] sm:$0xff] %v7082_v62  ;;  %v7083_v6 = vadd.f32 %v7061_v17, %v10680_v53 }
 0xb03   : > { %7088 = vst [vmem:[%s517_s20] sm:$0xff] %v7080_v58  ;;  %v7081_v48 = vadd.f32 %v7053_v20, %v10672_v36 }
 0xb04   : > { %7091 = vst [vmem:[%s517_s20 + $0x18] sm:$0xff] %v7083_v6 }
 0xb05   : > { %7089 = vst [vmem:[%s517_s20 + $0x8] sm:$0xff] %v7081_v48 }
 0xb0b   : > { %v7835_v32 = vpop.f32.mrb[88].mxu1 }
 0xb0c   : > { %v7074_v16 = vadd.f32 %v7835_v32, %v7382_v2  ;;  %v7065_v54 = vpop.f32.mrb[89].mxu1 }
 0xb0d   : > { %v7066_v25 = vadd.f32 %v7382_v2, %v7065_v54  ;;  %v7836_v44 = vpop.f32.mrb[90].mxu1 }
 0xb0e   : > { %v7086_v45 = vadd.f32 %v7074_v16, %v10692_v63  ;;  %v7077_v46 = vadd.f32 %v7836_v44, %v7382_v2  ;;  %v7068_v57 = vpop.f32.mrb[91].mxu1 }
 0xb0f   : > { %v7084_v36 = vadd.f32 %v7066_v25, %v10684_v5  ;;  %v7069_v53 = vadd.f32 %v7382_v2, %v7068_v57 }
 0xb10   : > { %7094 = vst [vmem:[%s517_s20 + $0x30] sm:$0xff] %v7086_v45  ;;  %v7087_v56 = vadd.f32 %v7077_v46, %v10696_v15 }
 0xb11   : > { %7092 = vst [vmem:[%s517_s20 + $0x20] sm:$0xff] %v7084_v36  ;;  %v7085_v63 = vadd.f32 %v7069_v53, %v10688_v31 }
 0xb12   : > { %7095 = vst [vmem:[%s517_s20 + $0x38] sm:$0xff] %v7087_v56 }
 0xb13   : > { %7093 = vst [vmem:[%s517_s20 + $0x28] sm:$0xff] %v7085_v63 }
 0xb14   : > { %8375 = shalt.err (!%p8372_p13)
}
 0xb15   : > { %s8376_s15 = scalar_lea.hbm %s10908_s29, 1024  ;;  %s8380_s25 = scalar_lea.hbm %s11150_s14, 2048 }
 0xb16   : > { %p8377_p0 = scmp.ne.s32.totalorder %s10908_s29, %s8376_s15  ;;  %p8381_p1 = scmp.lt.u32.totalorder %s10908_s29, %s11150_s14 }
 0xb17   : > { %p8382_p2 = scmp.lt.u32.totalorder %s8380_s25, %s8376_s15  ;;  %p8384_p8 = scmp.lt.u32.totalorder %s8376_s15, %s10908_s29 }
 0xb18   : > { %p8378_p5 = pnand %p8377_p0, %p8681_p6 }
 0xb19   : > { %p8383_p4 = por %p8382_p2, %p8381_p1 }
 0xb1a   : > { %p8379_p11 = pneg %p8378_p5 }
 0xb1b   : > { %p8385_p10 = por %p8384_p8, %p8383_p4 }
 0xb1d   : > { %p8386_p12 = pnand %p8385_p10, %p8379_p11 }
 0xb1f   : > { %8389 = shalt.err (!%p8386_p12)
}
 0xb20   : > { %s8458_s18 = smov 128   ;;  %s8459_s8 = smov 8  }
 0xb21   : > { %7879 = dma.vmem_to_hbm [thread:$0]  (%p8681_p6), %s10901_s21, 1024, %s10908_s29, %s7097_s16, %s8458_s18, %s8458_s18, %s8459_s8  }
 0xb22 PF: > { %s11151_s13 = sld [smem:[#allocation16_spill]]  ;;  %s11152_s23 = sld [smem:[#allocation17_spill]] }
 0xb23   : > { %p11154_p7 = scmp.ge.s32.totalorder %s8436_s28, 2 }
 0xb28   : > { %s7126_s30 = sand.u32 1, %s11151_s13   ;;  %p11153_p3 = scmp.ne.s32.totalorder %s11152_s23, 0 }
 0xb29   : > { %s7127_s24 = scalar_lea.sflag [#allocation4], %s7126_s30 }
 0xb2a   : > { %p7899_p9 = pnand %p11154_p7, %p11153_p3 }
 0xb2c   : > { %8419 = dma.done.wait (!%p7899_p9), %s7127_s24, 1024  }
 0xb2d   : > { %8421 = vsyncadd (!%p7899_p9), %s7127_s24, 4294966272  ;;  %p28_p13 = scmp.ge.s32.totalorder %s8671_s17, 4   ;;  %s11155_s25 = smov %s8428_s26 }
 0xb2e   : > { %s11156_s26 = smov %s8432_s27  ;;  %s11157_s27 = smov %s8687_s10 }
 0xb2f   : > { %s11158_s28 = smov %s8671_s17  ;;  %30 = sbr.rel (!%p28_p13) target bundleno = 14 (0xe), region = 133 }
 0xb36   :  { %7132 = vsyncpa [#allocation3], 1 }
 0xb37   :  { %7134 = vsyncpa [#allocation3 + $0x1], 1 }
 0xb38   :  { %7135 = vsyncpa [#allocation6], 1 }
 0xb39   :  { %7136 = vsyncpa [#allocation9], 1 }
 0xb3a   :  { %7137 = vsyncpa [#allocation4], 1 }
 0xb3b   :  { %7139 = vsyncpa [#allocation4 + $0x1], 1 }

// kernel: tpu_custom_call.1
= control target key start
LH: loop header
LB: loop body
LE: loop exit
PB: predicated region body
PF: predicated region fallthrough
CT: control target
= control target key end

     0   :  { %s10953_s0 = inlined_call_operand.hbm [shape: f32[8,16,128], index: 0, kind: input, shape index: {}]   ;;  %s10954_s1 = inlined_call_operand.hbm [shape: bf16[128,384], index: 1, kind: input, shape index: {}]   ;;  %s10955_s2 = inlined_call_operand.vmem [shape: f32[1,384], index: 2, kind: input, shape index: {}]   ;;  %s10956_s3 = inlined_call_operand.hbm [shape: bf16[4,32,128], index: 3, kind: input, shape index: {}]   ;;  %s10957_s4 = inlined_call_operand.vmem [shape: f32[1,128], index: 4, kind: input, shape index: {}]   ;;  %s10958_s5 = inlined_call_operand.vmem [shape: f32[1,128], index: 5, kind: input, shape index: {}]   ;;  %s10959_s6 = inlined_call_operand.vmem [shape: f32[1,128], index: 6, kind: input, shape index: {}]   ;;  %s10960_s7 = inlined_call_operand.vmem [shape: f32[1,128], index: 7, kind: input, shape index: {}]   ;;  %s10961_s8 = inlined_call_operand.vmem [shape: f32[1,128], index: 8, kind: input, shape index: {}]   ;;  %s10962_s9 = inlined_call_operand.hbm [shape: bf16[128,128], index: 9, kind: input, shape index: {}]   ;;  %s10963_s10 = inlined_call_operand.vmem [shape: f32[1,128], index: 10, kind: input, shape index: {}]   ;;  %s10964_s11 = inlined_call_operand.hbm [shape: bf16[128,128], index: 11, kind: input, shape index: {}]   ;;  %s10965_s12 = inlined_call_operand.vmem [shape: f32[1,128], index: 12, kind: input, shape index: {}]   ;;  %s10966_s13 = inlined_call_operand.hbm [shape: f32[8,16,128], index: 13, kind: output, shape index: {}]  }
   0x1   :  { %11006 = sst [smem:[#allocation46_spill]] %s10957_s4 }
   0x2   :  { %11007 = sst [smem:[#allocation47_spill]] %s10960_s7 }
   0x3   :  { %11008 = sst [smem:[#allocation48_spill]] %s10961_s8 }
   0x4   :  { %11009 = sst [smem:[#allocation49_spill]] %s10963_s10 }
   0x5   :  { %11010 = sst [smem:[#allocation50_spill]] %s10965_s12 }
   0x6   :  { %11011 = sst [smem:[#allocation51_spill]] %s10966_s13 }
   0x7   :  { %18 = vsyncpa [#allocation3], 0 }
   0x8   :  { %20 = vsyncpa [#allocation3 + $0x1], 0 }
   0x9   :  { %21 = vsyncpa [#allocation6], 0 }
   0xa   :  { %22 = vsyncpa [#allocation9], 0 }
   0xb   :  { %23 = vsyncpa [#allocation4], 0 }
   0xc   :  { %25 = vsyncpa [#allocation4 + $0x1], 0  ;;  %s8530_s25 = smov 0   ;;  %s8532_s26 = smov 0  }
   0xd   :  { %s8534_s27 = smov 0   ;;  %s8536_s28 = smov 0  }
   0xe LB: > { %11012 = sst [smem:[#allocation16_spill]] %s8424_s25  ;;  %s8551_s29 = sadd.s32 4294967295, %s8436_s28   ;;  %s8436_s28 = sphi %s8536_s28, %s11158_s28   ;;  %s8432_s27 = sphi %s8534_s27, %s11157_s27   ;;  %s8428_s26 = sphi %s8532_s26, %s11156_s26   ;;  %s8424_s25 = sphi %s8530_s25, %s11155_s25  }
   0xf   : > { %s7222_s30 = sadd.s32 4294967294, %s8436_s28   ;;  %p51_p0 = scmp.ne.s32.totalorder %s8428_s26, %s8424_s25 }
  0x10   : > { %p10970_p1 = scmp.eq.s32.totalorder %s8551_s29, 0  ;;  %p333_p3 = scmp.eq.s32.totalorder %s7222_s30, 1 }
  0x11   : > { %p7223_p5 = scmp.ge.s32.totalorder %s8436_s28, 1  ;;  %p340_p7 = scmp.lt.s32.totalorder %s8436_s28, 3 }
  0x12   : > { %p8560_p4 = por %p10970_p1, %p51_p0  ;;  %p8565_p6 = por %p333_p3, %p51_p0 }
  0x13   : > { %p8570_p8 = pnand %p7223_p5, %p340_p7  ;;  %s8438_s17 = smov [#allocation5]  }
  0x14   : > { %s11013_s14 = scalar_select %p8560_p4, 1, 0 }
  0x15   : > { %s11014_s15 = scalar_select %p8565_p6, 1, 0 }
  0x16   : > { %s11016_s16 = scalar_select %p8570_p8, 1, 0 }
  0x17   : > { %11015 = sst [smem:[#allocation17_spill]] %s11014_s15  ;;  %s352_s18 = sshll.u32 %s8438_s17, 4  ;;  %s353_s18 = int_to_ptr.vmem [resolvable:$true] %s352_s18 }
  0x18   : > { %p7881_p9 = pneg %p8570_p8  ;;  %s8439_s20 = smov [#allocation8]  }
  0x19   : > { %s396_s21 = sshll.u32 %s8439_s20, 4  ;;  %s8220_s24 = scalar_lea.hbm %s10954_s1, 3072  ;;  %s397_s21 = int_to_ptr.vmem [resolvable:$true] %s396_s21 }
  0x1a   : > { %p8579_p11 = pnand %p7881_p9, %p10970_p1  ;;  %p8221_p12 = scmp.ne.s32.totalorder %s10954_s1, %s8220_s24 }
  0x1b   : > { %p8227_p5 = scmp.lt.u32.totalorder %s8220_s24, %s10954_s1 }
  0x1c   : > { %p8591_p13 = pneg %p8579_p11 }
  0x1e   : > { %p8223_p0 = pnand %p8591_p13, %p8221_p12 }
  0x20   : > { %p8224_p3 = pneg %p8223_p0 }
  0x22   : > { %p8229_p7 = pnand %p8227_p5, %p8224_p3 }
  0x24   : > { %8232 = shalt.err (!%p8229_p7)
}
  0x25   : > { %s8233_s20 = scalar_lea.vmem %s353_s18, 3072  ;;  %p8241_p2 = scmp.lt.s32.totalorder %s353_s18, %s353_s18 }
  0x26   : > { %p8234_p9 = scmp.ne.s32.totalorder %s353_s18, %s8233_s20  ;;  %p8242_p6 = scmp.lt.s32.totalorder %s8233_s20, %s8233_s20 }
  0x28   : > { %p8236_p10 = pnand %p8234_p9, %p8591_p13  ;;  %p8243_p4 = por %p8242_p6, %p8241_p2 }
  0x2a   : > { %p8237_p1 = pneg %p8236_p10 }
  0x2c   : > { %p8244_p8 = pnand %p8243_p4, %p8237_p1 }
  0x2e   : > { %8247 = shalt.err (!%p8244_p8)
}
  0x2f   : > { %s8440_s15 = smov 192   ;;  %s8441_s22 = smov 12  }
  0x30   : > { %7884 = dma.hbm_to_vmem [thread:$0]  (!%p8579_p11), %s10954_s1, 3072, %s353_s18, [#allocation6], %s8440_s15, %s8440_s15, %s8441_s22  }
  0x31   : > { %s8442_s23 = smov [#allocation7]   ;;  %s8248_s10 = scalar_lea.hbm %s10962_s9, 1024 }
  0x32   : > { %s368_s24 = sshll.u32 %s8442_s23, 4  ;;  %p8249_p1 = scmp.ne.s32.totalorder %s10962_s9, %s8248_s10  ;;  %s369_s24 = int_to_ptr.vmem [resolvable:$true] %s368_s24 }
  0x33   : > { %p8255_p6 = scmp.lt.u32.totalorder %s8248_s10, %s10962_s9 }
  0x34   : > { %p8251_p2 = pnand %p8249_p1, %p8591_p13 }
  0x36   : > { %p8252_p4 = pneg %p8251_p2 }
  0x38   : > { %p8257_p8 = pnand %p8255_p6, %p8252_p4 }
  0x3a   : > { %8260 = shalt.err (!%p8257_p8)
}
  0x3b   : > { %s8261_s18 = scalar_lea.vmem %s397_s21, 1024  ;;  %p8269_p3 = scmp.lt.s32.totalorder %s397_s21, %s397_s21 }
  0x3c   : > { %p8262_p10 = scmp.ne.s32.totalorder %s397_s21, %s8261_s18  ;;  %p8270_p5 = scmp.lt.s32.totalorder %s8261_s18, %s8261_s18 }
  0x3e   : > { %p8264_p12 = pnand %p8262_p10, %p8591_p13  ;;  %p8271_p7 = por %p8270_p5, %p8269_p3 }
  0x40   : > { %p8265_p0 = pneg %p8264_p12 }
  0x42   : > { %p8272_p9 = pnand %p8271_p7, %p8265_p0 }
  0x44   : > { %8275 = shalt.err (!%p8272_p9)
}
  0x45   : > { %s8443_s8 = smov 64   ;;  %s8444_s12 = smov 4  }
  0x46   : > { %7890 = dma.hbm_to_vmem [thread:$0]  (!%p8579_p11), %s10962_s9, 1024, %s397_s21, [#allocation9], %s8443_s8, %s8443_s8, %s8444_s12  }
  0x47   : > { %s8276_s22 = scalar_lea.hbm %s10956_s3, 1024 }
  0x48   : > { %p8277_p1 = scmp.ne.s32.totalorder %s10956_s3, %s8276_s22  ;;  %p8283_p6 = scmp.lt.u32.totalorder %s8276_s22, %s10956_s3 }
  0x4a   : > { %p8279_p2 = pnand %p8277_p1, %p8591_p13 }
  0x4c   : > { %p8280_p4 = pneg %p8279_p2 }
  0x4e   : > { %p8285_p8 = pnand %p8283_p6, %p8280_p4 }
  0x50   : > { %8288 = shalt.err (!%p8285_p8)
}
  0x51   : > { %s8289_s20 = scalar_lea.vmem %s369_s24, 1024  ;;  %p8297_p3 = scmp.lt.s32.totalorder %s369_s24, %s369_s24 }
  0x52   : > { %p8290_p10 = scmp.ne.s32.totalorder %s369_s24, %s8289_s20  ;;  %p8298_p5 = scmp.lt.s32.totalorder %s8289_s20, %s8289_s20 }
  0x54   : > { %p8292_p12 = pnand %p8290_p10, %p8591_p13  ;;  %p8299_p7 = por %p8298_p5, %p8297_p3 }
  0x56   : > { %p8293_p0 = pneg %p8292_p12 }
  0x58   : > { %p8300_p9 = pnand %p8299_p7, %p8293_p0 }
  0x5a   : > { %8303 = shalt.err (!%p8300_p9)
}
  0x5b   : > { %7887 = dma.hbm_to_vmem [thread:$0]  (!%p8579_p11), %s10956_s3, 1024, %s369_s24, [#allocation6], %s8443_s8, %s8443_s8, %s8444_s12  }
  0x5c   : > { %s8445_s4 = smov [#allocation10]   ;;  %s8304_s22 = scalar_lea.hbm %s10964_s11, 1024 }
  0x5d   : > { %s412_s7 = sshll.u32 %s8445_s4, 4  ;;  %p8305_p1 = scmp.ne.s32.totalorder %s10964_s11, %s8304_s22  ;;  %s413_s7 = int_to_ptr.vmem [resolvable:$true] %s412_s7 }
  0x5e   : > { %p8311_p6 = scmp.lt.u32.totalorder %s8304_s22, %s10964_s11 }
  0x5f   : > { %p8307_p2 = pnand %p8305_p1, %p8591_p13 }
  0x61   : > { %p8308_p4 = pneg %p8307_p2 }
  0x63   : > { %p8313_p8 = pnand %p8311_p6, %p8308_p4 }
  0x65   : > { %8316 = shalt.err (!%p8313_p8)
}
  0x66   : > { %s8317_s24 = scalar_lea.vmem %s413_s7, 1024  ;;  %p8325_p3 = scmp.lt.s32.totalorder %s413_s7, %s413_s7 }
  0x67   : > { %p8318_p10 = scmp.ne.s32.totalorder %s413_s7, %s8317_s24  ;;  %p8326_p5 = scmp.lt.s32.totalorder %s8317_s24, %s8317_s24 }
  0x69   : > { %p8320_p12 = pnand %p8318_p10, %p8591_p13  ;;  %p8327_p7 = por %p8326_p5, %p8325_p3 }
  0x6b   : > { %p8321_p0 = pneg %p8320_p12 }
  0x6d   : > { %p8328_p9 = pnand %p8327_p7, %p8321_p0 }
  0x6f   : > { %8331 = shalt.err (!%p8328_p9)
}
  0x70   : > { %7893 = dma.hbm_to_vmem [thread:$0]  (!%p8579_p11), %s10964_s11, 1024, %s413_s7, [#allocation9], %s8443_s8, %s8443_s8, %s8444_s12  }
  0x71   : > { %s8671_s17 = sadd.s32 1, %s8436_s28   ;;  %s38_s19 = sadd.s32 1, %s8432_s27 }
  0x72   : > { %s35_s18 = ssub.s32 %s8436_s28, %s8671_s17  ;;  %p45_p13 = scmp.ne.s32.totalorder %s8432_s27, %s8428_s26 }
  0x73   : > { %p36_p1 = scmp.eq.s32.totalorder %s35_s18, 0  ;;  %p46_p2 = scmp.eq.s32.totalorder %s8436_s28, 0 }
  0x74   : > { %p11019_p4 = scmp.eq.s32.totalorder %s8551_s29, 1  ;;  %p7906_p8 = scmp.lt.s32.totalorder %s8436_s28, 2 }
  0x75   : > { %s8687_s10 = scalar_select %p36_p1, %s8432_s27, %s38_s19  }
  0x76   : > { %p8681_p6 = por %p11019_p4, %p45_p13  ;;  %p47_p10 = por %p46_p2, %p45_p13 }
  0x77   : > { %s429_s15 = sand.u32 1, %s8432_s27   ;;  %s7398_s8 = sshll.u32 %s8436_s28, 10 }
  0x78   : > { %s7229_s22 = sshll.u32 %s429_s15, 6  ;;  %s8694_s13 = scalar_lea.hbm %s10953_s0, %s7398_s8 }
  0x79   : > { %s433_s25 = scalar_lea.vmem [#allocation2], %s7229_s22  ;;  %p8698_p11 = pnand %p7906_p8, %p47_p10 }
  0x7a   : > { %s441_s23 = sshll.u32 %s433_s25, 4  ;;  %s8702_s24 = scalar_lea.sflag [#allocation3], %s429_s15  ;;  %s8696_s23 = int_to_ptr.vmem [resolvable:$true] %s441_s23 }
  0x7b   : > { %s8332_s20 = scalar_lea.hbm %s8694_s13, 1024  ;;  %p8334_p0 = pneg %p8698_p11 }
  0x7c   : > { %p8333_p12 = scmp.ne.s32.totalorder %s8694_s13, %s8332_s20  ;;  %s8337_s18 = scalar_lea.hbm %s10953_s0, 2048 }
  0x7d   : > { %p8338_p7 = scmp.lt.u32.totalorder %s8694_s13, %s10953_s0  ;;  %p8339_p9 = scmp.lt.u32.totalorder %s8337_s18, %s8332_s20 }
  0x7e   : > { %p8335_p3 = pnand %p8334_p0, %p8333_p12  ;;  %p8341_p1 = scmp.lt.u32.totalorder %s8332_s20, %s8694_s13 }
  0x7f   : > { %p8340_p13 = por %p8339_p9, %p8338_p7 }
  0x80   : > { %p8336_p5 = pneg %p8335_p3 }
  0x81   : > { %p8342_p2 = por %p8341_p1, %p8340_p13 }
  0x83   : > { %p8343_p4 = pnand %p8342_p2, %p8336_p5 }
  0x85   : > { %8346 = shalt.err (!%p8343_p4)
}
  0x86   : > { %s8347_s15 = scalar_lea.vmem %s8696_s23, 1024  ;;  %s8446_s12 = smov [#allocation2]  }
  0x87   : > { %p8348_p8 = scmp.ne.s32.totalorder %s8696_s23, %s8347_s15  ;;  %s8352_s7 = sshll.u32 %s8446_s12, 4  ;;  %s8353_s7 = int_to_ptr.vmem [resolvable:$false] %s8352_s7 }
  0x88   : > { %s8354_s25 = scalar_lea.vmem %s8353_s7, 2048  ;;  %p8355_p3 = scmp.lt.s32.totalorder %s8696_s23, %s8353_s7 }
  0x89   : > { %p8350_p10 = pnand %p8348_p8, %p8334_p0  ;;  %p8356_p7 = scmp.lt.s32.totalorder %s8354_s25, %s8347_s15 }
  0x8b   : > { %p8351_p12 = pneg %p8350_p10  ;;  %p8357_p9 = por %p8356_p7, %p8355_p3 }
  0x8d   : > { %p8358_p13 = pnand %p8357_p9, %p8351_p12 }
  0x8f   : > { %8361 = shalt.err (!%p8358_p13)
}
  0x90   : > { %s8447_s20 = smov 128   ;;  %s8448_s21 = smov 8  }
  0x91   : > { %7897 = dma.hbm_to_vmem [thread:$0]  (!%p8698_p11), %s8694_s13, 1024, %s8696_s23, %s8702_s24, %s8447_s20, %s8447_s20, %s8448_s21  }
  0x92   : > { %p11022_p0 = scmp.ne.s32.totalorder %s11016_s16, 0 }
  0x94   : > { %453 = sbr.rel (%p11022_p0) target bundleno = 2850 (0xb22), region = 72 }
  0x9b   : > { %s8733_s19 = sand.u32 1, %s8428_s26   ;;  %p11023_p5 = scmp.ne.s32.totalorder %s11013_s14, 0 }
  0x9c   : > { %s7234_s18 = sshll.u32 %s8733_s19, 6  ;;  %s456_s22 = scalar_lea.sflag [#allocation3], %s8733_s19 }
  0x9d   : > { %s8739_s8 = scalar_lea.vmem [#allocation2], %s7234_s18 }
  0x9e   : > { %8407 = dma.done.wait (%p11023_p5), %s456_s22, 1024  }
  0x9f   : > { %8409 = vsyncadd (%p11023_p5), %s456_s22, 4294966272  ;;  %p11024_p11 = scmp.eq.s32.totalorder %s8551_s29, 0 }
  0xa1   : > { %8411 = dma.done.wait (%p11024_p11), [#allocation6], 4096   ;;  %p11025_p1 = pmov %p11024_p11 }
  0xa3   : > { %8413 = vsyncadd (%p11025_p1), [#allocation6], 4294963200  ;;  %p11026_p2 = pmov %p11025_p1 }
  0xa4   : > { %p11027_p4 = pmov %p11025_p1 }
  0xa5   : > { %8415 = dma.done.wait (%p11026_p2), [#allocation9], 2048  }
  0xa6   : > { %8417 = vsyncadd (%p11027_p4), [#allocation9], 4294965248  ;;  %v521_v0 = vld [vmem:[%s8739_s8] sm:$0xff]  ;;  %v523_v1 = vld [vmem:[%s8739_s8 + $0x10] sm:$0xff]  ;;  %v8449_v63 = vmov 0   ;;  %s8450_s15 = smov 64  }
  0xa7   : > { %531 = vadd.xlane.f32.xlu0 %v521_v0  ;;  %535 = vadd.xlane.f32.xlu1 %v523_v1  ;;  %v522_v2 = vld [vmem:[%s8739_s8 + $0x8] sm:$0xff]  ;;  %v524_v3 = vld [vmem:[%s8739_s8 + $0x18] sm:$0xff]  ;;  %v525_v4 = vld [vmem:[%s8739_s8 + $0x20] sm:$0xff]  ;;  %s8451_s12 = smov 96   ;;  %s8452_s7 = smov 32   ;;  %vm8454_vm0 = vmmov 0  }
  0xa8   : > { %v526_v5 = vld [vmem:[%s8739_s8 + $0x28] sm:$0xff]  ;;  %v527_v6 = vld [vmem:[%s8739_s8 + $0x30] sm:$0xff]  ;;  %v528_v7 = vld [vmem:[%s8739_s8 + $0x38] sm:$0xff]  ;;  %861 = vmatprep.mubr.bf16.mxu0 %v8449_v63  ;;  %vm4205_vm1 = vcmask 261120   ;;  %vm4958_vm2 = vcmask 130048   ;;  %s11145_s21 = sld [smem:[#allocation46_spill]] }
  0xa9   : > { %v7964_v8 = vld [vmem:[#allocation5 + $0x4] ss:$12 sps:$4 sm:$0xff]   ;;  %v7966_v9 = vld [vmem:[#allocation5] ss:$12 sps:$4 sm:$0xff]   ;;  %v7967_v10 = vld [vmem:[#allocation5 + $0x1c] ss:$12 sps:$4 sm:$0xff]  }
  0xaa   : > { %v7969_v11 = vld [vmem:[#allocation5 + $0x8] ss:$12 sps:$4 sm:$0xff]   ;;  %829 = vmatprep.subr.bf16.mxu0 %v7964_v8  ;;  %v7970_v44 = vld [vmem:[#allocation5 + $0x18] ss:$12 sps:$4 sm:$0xff]   ;;  %v7973_v46 = vld [vmem:[#allocation5 + $0x20] ss:$12 sps:$4 sm:$0xff]  }
  0xab   : > { %533 = vadd.xlane.f32.xlu0 %v522_v2  ;;  %537 = vadd.xlane.f32.xlu1 %v524_v3  ;;  %v7971_v45 = vld [vmem:[#allocation5 + $0x34] ss:$12 sps:$4 sm:$0xff]   ;;  %v7974_v47 = vld [vmem:[#allocation5 + $0x30] ss:$12 sps:$4 sm:$0xff]   ;;  %v7975_v48 = vld [vmem:[#allocation5 + $0x4c] ss:$12 sps:$4 sm:$0xff]  }
  0xac   : > { %830 = vmatpush1.bf16.msra.mxu0 %v7966_v9  ;;  %7525 = vmatprep.subr.bf16.mxu1 %v7969_v11  ;;  %v7977_v49 = vld [vmem:[#allocation5 + $0x38] ss:$12 sps:$4 sm:$0xff]   ;;  %v7978_v50 = vld [vmem:[#allocation5 + $0x48] ss:$12 sps:$4 sm:$0xff]   ;;  %v7981_v52 = vld [vmem:[#allocation5 + $0x50] ss:$12 sps:$4 sm:$0xff]  }
  0xad   : > { %831 = vmatprep.subr.bf16.mxu0 %v7967_v10  ;;  %7526 = vmatpush3.bf16.msra.mxu1 %v7969_v11  ;;  %v7979_v51 = vld [vmem:[#allocation5 + $0x64] ss:$12 sps:$4 sm:$0xff]   ;;  %v7982_v53 = vld [vmem:[#allocation5 + $0x60] ss:$12 sps:$4 sm:$0xff]   ;;  %v7983_v54 = vld [vmem:[#allocation5 + $0x7c] ss:$12 sps:$4 sm:$0xff]  }
  0xae   : > { %7527 = vmatprep.subr.bf16.mxu1 %v7973_v46  ;;  %v7985_v55 = vld [vmem:[#allocation5 + $0x68] ss:$12 sps:$4 sm:$0xff]   ;;  %v7986_v56 = vld [vmem:[#allocation5 + $0x78] ss:$12 sps:$4 sm:$0xff]   ;;  %v7989_v58 = vld [vmem:[#allocation5 + $0x80] ss:$12 sps:$4 sm:$0xff]  }
  0xaf   : > { %539 = vadd.xlane.f32.xlu0 %v525_v4  ;;  %541 = vadd.xlane.f32.xlu1 %v526_v5  ;;  %v7987_v57 = vld [vmem:[#allocation5 + $0x94] ss:$12 sps:$4 sm:$0xff]   ;;  %v7990_v59 = vld [vmem:[#allocation5 + $0x90] ss:$12 sps:$4 sm:$0xff]   ;;  %v7991_v60 = vld [vmem:[#allocation5 + $0xac] ss:$12 sps:$4 sm:$0xff]  }
  0xb0   : > { %832 = vmatpush1.bf16.msra.mxu0 %v7970_v44  ;;  %v7993_v61 = vld [vmem:[#allocation5 + $0x98] ss:$12 sps:$4 sm:$0xff]   ;;  %v7994_v62 = vld [vmem:[#allocation5 + $0xa8] ss:$12 sps:$4 sm:$0xff]   ;;  %s11146_s14 = sld [smem:[#allocation47_spill]]  ;;  %s11147_s23 = sld [smem:[#allocation48_spill]] }
  0xb1   : > { %833 = vmatprep.subr.bf16.mxu0 %v7971_v45  ;;  %7528 = vmatpush3.bf16.msra.mxu1 %v7973_v46  ;;  %s11149_s25 = sld [smem:[#allocation50_spill]]  ;;  %s517_s20 = scalar_lea.vmem [#allocation11], %s7234_s18 }
  0xb2   : > { %7529 = vmatprep.subr.bf16.mxu1 %v7977_v49  ;;  %s7400_s22 = sshll.u32 %s8551_s29, 10  ;;  %s7097_s16 = scalar_lea.sflag [#allocation4], %s8733_s19 }
  0xb3   : > { %543 = vadd.xlane.f32.xlu0 %v527_v6  ;;  %545 = vadd.xlane.f32.xlu1 %v528_v7 }
  0xb4   : > { %834 = vmatpush1.bf16.msra.mxu0 %v7974_v47 }
  0xb5   : > { %835 = vmatprep.subr.bf16.mxu0 %v7975_v48  ;;  %7530 = vmatpush3.bf16.msra.mxu1 %v7977_v49 }
  0xb6   : > { %7531 = vmatprep.subr.bf16.mxu1 %v7981_v52 }
  0xb8   : > { %836 = vmatpush1.bf16.msra.mxu0 %v7978_v50 }
  0xb9   : > { %837 = vmatprep.subr.bf16.mxu0 %v7979_v51  ;;  %7532 = vmatpush3.bf16.msra.mxu1 %v7981_v52 }
  0xba   : > { %7533 = vmatprep.subr.bf16.mxu1 %v7985_v55 }
  0xbc   : > { %838 = vmatpush1.bf16.msra.mxu0 %v7982_v53 }
  0xbd   : > { %839 = vmatprep.subr.bf16.mxu0 %v7983_v54  ;;  %7534 = vmatpush3.bf16.msra.mxu1 %v7985_v55 }
  0xbe   : > { %7535 = vmatprep.subr.bf16.mxu1 %v7989_v58 }
  0xc0   : > { %840 = vmatpush1.bf16.msra.mxu0 %v7986_v56 }
  0xc1   : > { %841 = vmatprep.subr.bf16.mxu0 %v7987_v57  ;;  %7536 = vmatpush3.bf16.msra.mxu1 %v7989_v58 }
  0xc2   : > { %7537 = vmatprep.subr.bf16.mxu1 %v7993_v61 }
  0xc4   : > { %842 = vmatpush1.bf16.msra.mxu0 %v7990_v59 }
  0xc5   : > { %843 = vmatprep.subr.bf16.mxu0 %v7991_v60  ;;  %7538 = vmatpush3.bf16.msra.mxu1 %v7993_v61 }
  0xc8   : > { %844 = vmatpush1.bf16.msra.mxu0 %v7994_v62 }
 0x134   : > { %v532_v12 = vpop.xlane.xlu0 %531  ;;  %v536_v13 = vpop.xlane.xlu1 %535 }
 0x135   : > { %v548_v14 = vmul.f32 0.0078125, %v532_v12  ;;  %v550_v15 = vmul.f32 0.0078125, %v536_v13 }
 0x137   : > { %v8761_v16 = vsub.f32 %v521_v0, %v548_v14  ;;  %v8763_v17 = vsub.f32 %v523_v1, %v550_v15  ;;  %v7995_v0 = vld [vmem:[#allocation5 + $0xb0] ss:$12 sps:$4 sm:$0xff]  }
 0x138   : > { %v534_v18 = vpop.xlane.xlu0 %533  ;;  %v538_v19 = vpop.xlane.xlu1 %537  ;;  %7539 = vmatprep.subr.bf16.mxu1 %v7995_v0 }
 0x139   : > { %v549_v20 = vmul.f32 0.0078125, %v534_v18  ;;  %v564_v21 = vmul.f32 %v8761_v16, %v8761_v16  ;;  %v551_v22 = vmul.f32 0.0078125, %v538_v19  ;;  %v566_v23 = vmul.f32 %v8763_v17, %v8763_v17  ;;  %7540 = vmatpush3.bf16.msra.mxu1 %v7995_v0 }
 0x13b   : > { %572 = vadd.xlane.f32.xlu0 %v564_v21  ;;  %v8769_v24 = vsub.f32 %v522_v2, %v549_v20  ;;  %v8771_v25 = vsub.f32 %v524_v3, %v551_v22 }
 0x13c   : > { %v540_v26 = vpop.xlane.xlu0 %539  ;;  %v542_v27 = vpop.xlane.xlu1 %541 }
 0x13d   : > { %v552_v28 = vmul.f32 0.0078125, %v540_v26  ;;  %v565_v29 = vmul.f32 %v8769_v24, %v8769_v24  ;;  %v553_v30 = vmul.f32 0.0078125, %v542_v27  ;;  %v567_v31 = vmul.f32 %v8771_v25, %v8771_v25 }
 0x13f   : > { %576 = vadd.xlane.f32.xlu0 %v566_v23  ;;  %574 = vadd.xlane.f32.xlu1 %v565_v29  ;;  %v8777_v32 = vsub.f32 %v525_v4, %v552_v28  ;;  %v8779_v33 = vsub.f32 %v526_v5, %v553_v30  ;;  %v7240_v30 = vld [vmem:[%s10958_s5] ss:$0 sm:$0xff] }
 0x140   : > { %v544_v34 = vpop.xlane.xlu0 %543  ;;  %v546_v35 = vpop.xlane.xlu1 %545 }
 0x141   : > { %v554_v36 = vmul.f32 0.0078125, %v544_v34  ;;  %v568_v37 = vmul.f32 %v8777_v32, %v8777_v32  ;;  %v555_v38 = vmul.f32 0.0078125, %v546_v35  ;;  %v569_v39 = vmul.f32 %v8779_v33, %v8779_v33 }
 0x143   : > { %578 = vadd.xlane.f32.xlu1 %v567_v31  ;;  %580 = vadd.xlane.f32.xlu0 %v568_v37  ;;  %v8785_v40 = vsub.f32 %v527_v6, %v554_v36  ;;  %v8787_v41 = vsub.f32 %v528_v7, %v555_v38  ;;  %v7241_v38 = vld [vmem:[%s10959_s6] ss:$0 sm:$0xff] }
 0x145   : > { %v570_v42 = vmul.f32 %v8785_v40, %v8785_v40  ;;  %v571_v43 = vmul.f32 %v8787_v41, %v8787_v41 }
 0x147   : > { %582 = vadd.xlane.f32.xlu1 %v569_v39  ;;  %584 = vadd.xlane.f32.xlu0 %v570_v42 }
 0x14b   : > { %586 = vadd.xlane.f32.xlu1 %v571_v43 }
 0x1c8   : > { %v573_v1 = vpop.xlane.xlu0 %572 }
 0x1c9   : > { %v588_v2 = vmul.f32 0.0078125, %v573_v1 }
 0x1cb   : > { %v596_v3 = vadd.f32 1e-06, %v588_v2 }
 0x1cc   : > { %v575_v4 = vpop.xlane.xlu1 %574  ;;  %v577_v5 = vpop.xlane.xlu0 %576 }
 0x1cd   : > { %8020 = vrsqrt.f32 %v596_v3  ;;  %v589_v6 = vmul.f32 0.0078125, %v575_v4  ;;  %v590_v7 = vmul.f32 0.0078125, %v577_v5  ;;  %v684_v3 = vld [vmem:[%s10955_s2] sm:$0x7] }
 0x1cf   : > { %v597_v8 = vadd.f32 1e-06, %v589_v6  ;;  %v598_v9 = vadd.f32 1e-06, %v590_v7 }
 0x1d0   : > { %v579_v10 = vpop.xlane.xlu1 %578  ;;  %v581_v11 = vpop.xlane.xlu0 %580 }
 0x1d1   : > { %8022 = vrsqrt.f32 %v597_v8  ;;  %v591_v12 = vmul.f32 0.0078125, %v579_v10  ;;  %v592_v13 = vmul.f32 0.0078125, %v581_v11 }
 0x1d2   : > { %8024 = vrsqrt.f32 %v598_v9 }
 0x1d3   : > { %v599_v14 = vadd.f32 1e-06, %v591_v12  ;;  %v600_v15 = vadd.f32 1e-06, %v592_v13 }
 0x1d4   : > { %v583_v18 = vpop.xlane.xlu1 %582  ;;  %v585_v19 = vpop.xlane.xlu0 %584 }
 0x1d5   : > { %8026 = vrsqrt.f32 %v599_v14  ;;  %v593_v20 = vmul.f32 0.0078125, %v583_v18  ;;  %v594_v21 = vmul.f32 0.0078125, %v585_v19 }
 0x1d6   : > { %8028 = vrsqrt.f32 %v600_v15 }
 0x1d7   : > { %v8021_v22 = vpop.eup %8020  ;;  %v601_v23 = vadd.f32 1e-06, %v593_v20  ;;  %v602_v26 = vadd.f32 1e-06, %v594_v21 }
 0x1d8   : > { %v587_v27 = vpop.xlane.xlu1 %586  ;;  %v612_v28 = vmul.f32 %v8021_v22, %v8761_v16 }
 0x1d9   : > { %8030 = vrsqrt.f32 %v601_v23  ;;  %v595_v29 = vmul.f32 0.0078125, %v587_v27 }
 0x1da   : > { %8032 = vrsqrt.f32 %v602_v26  ;;  %v626_v37 = vmul.f32 %v7240_v30, %v612_v28 }
 0x1db   : > { %v8023_v31 = vpop.eup %8022  ;;  %v603_v34 = vadd.f32 1e-06, %v595_v29 }
 0x1dc   : > { %v8025_v35 = vpop.eup %8024  ;;  %v613_v36 = vmul.f32 %v8023_v31, %v8769_v24  ;;  %v640_v45 = vadd.f32 %v7241_v38, %v626_v37 }
 0x1dd   : > { %8034 = vrsqrt.f32 %v603_v34  ;;  %v614_v16 = vmul.f32 %v8025_v35, %v8763_v17 }
 0x1de   : > { %v627_v39 = vmul.f32 %v7240_v30, %v613_v36 }
 0x1df   : > { %v8027_v42 = vpop.eup %8026  ;;  %v628_v43 = vmul.f32 %v7240_v30, %v614_v16 }
 0x1e0   : > { %v8029_v44 = vpop.eup %8028  ;;  %v641_v46 = vadd.f32 %v7241_v38, %v627_v39  ;;  %v615_v47 = vmul.f32 %v8027_v42, %v8771_v25 }
 0x1e1   : > { %v616_v48 = vmul.f32 %v8029_v44, %v8777_v32  ;;  %v642_v51 = vadd.f32 %v7241_v38, %v628_v43 }
 0x1e2   : > { %v648_v49 = vpack.c.bf16 %v641_v46, %v640_v45  ;;  %v629_v24 = vmul.f32 %v7240_v30, %v615_v47 }
 0x1e3   : > { %v8031_v50 = vpop.eup %8030  ;;  %v630_v54 = vmul.f32 %v7240_v30, %v616_v48 }
 0x1e4   : > { %v8033_v52 = vpop.eup %8032  ;;  %862 = vmatmul.mubr.bf16.vlgmr.msra.gmra.mrb[0].mxu0 %v648_v49  ;;  %7541 = vmatprep.mubr.bf16.mxu1 %v648_v49  ;;  %v643_v53 = vadd.f32 %v7241_v38, %v629_v24  ;;  %v617_v17 = vmul.f32 %v8031_v50, %v8779_v33 }
 0x1e5   : > { %871 = vmatprep.mubr.bf16.mxu0 %v8449_v63  ;;  %v618_v55 = vmul.f32 %v8033_v52, %v8785_v40  ;;  %v644_v32 = vadd.f32 %v7241_v38, %v630_v54  ;;  %v686_v40 = vlaneseq }
 0x1e6   : > { %v649_v56 = vpack.c.bf16 %v643_v53, %v642_v51  ;;  %v631_v57 = vmul.f32 %v7240_v30, %v617_v17 }
 0x1e7   : > { %v8035_v25 = vpop.eup %8034  ;;  %v632_v60 = vmul.f32 %v7240_v30, %v618_v55  ;;  %v8811_v2 = vshrl.u32 %v686_v40, 7 }
 0x1e8   : > { %7542 = vmatmul.mubr.bf16.vlgmr.msra.gmra.mrb[0].mxu1 %v649_v56  ;;  %v645_v58 = vadd.f32 %v7241_v38, %v631_v57  ;;  %v619_v59 = vmul.f32 %v8035_v25, %v8787_v41 }
 0x1e9   : > { %v646_v0 = vadd.f32 %v7241_v38, %v632_v60  ;;  %v688_v41 = vsub.s32 0, %v8811_v2  ;;  %v692_v4 = vsub.s32 1, %v8811_v2  ;;  %v696_v6 = vsub.s32 2, %v8811_v2 }
 0x1ea   : > { %v650_v61 = vpack.c.bf16 %v645_v58, %v644_v32  ;;  %v633_v62 = vmul.f32 %v7240_v30, %v619_v59 }
 0x1eb   : > { %v8818_v5 = vrot.slane %v684_v3, %v688_v41  ;;  %v8821_v8 = vrot.slane %v684_v3, %v692_v4  ;;  %v697_v14 = vrot.slane %v684_v3, %v696_v6 }
 0x1ec   : > { %872 = vmatmul.mubr.bf16.gmra.mrb[4].mxu0 %v649_v56  ;;  %7545 = vmatprep.mubr.bf16.mxu1 %v650_v61  ;;  %v647_v33 = vadd.f32 %v7241_v38, %v633_v62 }
 0x1ed   : > { %881 = vmatprep.mubr.bf16.mxu0 %v8449_v63 }
 0x1ee   : > { %v651_v1 = vpack.c.bf16 %v647_v33, %v646_v0 }
 0x1f0   : > { %7546 = vmatmul.mubr.bf16.gmra.mrb[4].mxu1 %v651_v1 }
 0x1f4   : > { %882 = vmatmul.mubr.bf16.gmra.mrb[8].mxu0 %v650_v61 }
 0x1f5   : > { %891 = vmatprep.mubr.bf16.mxu0 %v8449_v63 }
 0x1fc   : > { %892 = vmatmul.mubr.bf16.gmra.mrb[12].mxu0 %v651_v1 }
 0x2b7   : > { %v863_v7 = vpop.f32.mrb[0].mxu0 }
 0x2b8   : > { %v865_v9 = vpop.f32.mrb[1].mxu0  ;;  %v864_v11 = vadd.f32 %v863_v7, %v8818_v5 }
 0x2b9   : > { %v867_v10 = vpop.f32.mrb[2].mxu0  ;;  %v866_v15 = vadd.f32 %v865_v9, %v8821_v8 }
 0x2ba   : > { %v868_v12 = vadd.f32 %v867_v10, %v8818_v5  ;;  %v869_v13 = vpop.f32.mrb[3].mxu0 }
 0x2bb   : > { %v870_v18 = vadd.f32 %v869_v13, %v8821_v8  ;;  %v7543_v19 = vpop.f32.mrb[0].mxu1 }
 0x2bc   : > { %v8827_v20 = vpack.c.bf16 %v868_v12, %v864_v11  ;;  %v936_v21 = vpop.f32.mrb[1].mxu1  ;;  %v945_v26 = vadd.f32 %v7543_v19, %v697_v14  ;;  %v8456_v11 = vmov 1934713408  }
 0x2bd   : > { %v8829_v22 = vpack.c.bf16 %v870_v18, %v866_v15  ;;  %v7544_v23 = vpop.f32.mrb[2].mxu1  ;;  %v937_v29 = vadd.f32 %v936_v21, %v697_v14  ;;  %v1110_v12 = vunpack.c.l.s4 %v8456_v11 }
 0x2be   : > { %v948_v27 = vadd.f32 %v7544_v23, %v697_v14  ;;  %991 = vrot.lane.b32.xlu0 %v8827_v20, %s8450_s15  ;;  %983 = vrot.lane.b32.xlu1 %v8827_v20, %s8451_s12  ;;  %v939_v28 = vpop.f32.mrb[3].mxu1 }
 0x2bf   : > { %v940_v30 = vadd.f32 %v939_v28, %v697_v14  ;;  %v873_v31 = vpop.f32.mrb[4].mxu0  ;;  %v1111_v21 = vunpack.c.0.s8 %v1110_v12 }
 0x2c0   : > { %v8835_v34 = vpack.c.bf16 %v948_v27, %v945_v26  ;;  %v875_v35 = vpop.f32.mrb[5].mxu0  ;;  %v874_v38 = vadd.f32 %v873_v31, %v8818_v5  ;;  %v1011_v26 = vshrl.u32 %v8827_v20, 16 }
 0x2c1   : > { %v8837_v36 = vpack.c.bf16 %v940_v30, %v937_v29  ;;  %v877_v37 = vpop.f32.mrb[6].mxu0  ;;  %v876_v42 = vadd.f32 %v875_v35, %v8821_v8 }
 0x2c2   : > { %11028 = vst [vmem:[#allocation18_spill] sm:$0xff] %v8835_v34  ;;  %v878_v16 = vadd.f32 %v877_v37, %v8818_v5  ;;  %2057 = vrot.lane.b32.xlu0 %v8829_v22, %s8451_s12  ;;  %999 = vrot.lane.b32.xlu1 %v8827_v20, %s8452_s7  ;;  %v879_v39 = vpop.f32.mrb[7].mxu0 }
 0x2c3   : > { %v880_v43 = vadd.f32 %v879_v39, %v8821_v8  ;;  %v7547_v44 = vpop.f32.mrb[4].mxu1 }
 0x2c4   : > { %v8847_v45 = vpack.c.bf16 %v878_v16, %v874_v38  ;;  %v952_v46 = vpop.f32.mrb[5].mxu1  ;;  %v961_v49 = vadd.f32 %v7547_v44, %v697_v14 }
 0x2c5   : > { %v8849_v47 = vpack.c.bf16 %v880_v43, %v876_v42  ;;  %v7548_v48 = vpop.f32.mrb[6].mxu1  ;;  %v953_v51 = vadd.f32 %v952_v46, %v697_v14 }
 0x2c6   : > { %v964_v24 = vadd.f32 %v7548_v48, %v697_v14  ;;  %2065 = vrot.lane.b32.xlu1 %v8829_v22, %s8450_s15  ;;  %985 = vrot.lane.b32.xlu0 %v8847_v45, %s8451_s12  ;;  %v955_v50 = vpop.f32.mrb[7].mxu1 }
 0x2c7   : > { %v956_v52 = vadd.f32 %v955_v50, %v697_v14  ;;  %v883_v53 = vpop.f32.mrb[8].mxu0  ;;  %v8939_v14 = vpack.i.b16 %v8449_v63, %v8449_v63  ;;  %v8948_v63 = vsub.s32 %v1111_v21, %v8811_v2 }
 0x2c8   : > { %v8855_v17 = vpack.c.bf16 %v964_v24, %v961_v49  ;;  %v885_v54 = vpop.f32.mrb[9].mxu0  ;;  %v884_v57 = vadd.f32 %v883_v53, %v8818_v5 }
 0x2c9   : > { %v8857_v55 = vpack.c.bf16 %v956_v52, %v953_v51  ;;  %v887_v56 = vpop.f32.mrb[10].mxu0  ;;  %v886_v58 = vadd.f32 %v885_v54, %v8821_v8 }
 0x2ca   : > { %11029 = vst [vmem:[#allocation19_spill] sm:$0xff] %v8855_v17  ;;  %v888_v25 = vadd.f32 %v887_v56, %v8818_v5  ;;  %2073 = vrot.lane.b32.xlu1 %v8829_v22, %s8452_s7  ;;  %1001 = vrot.lane.b32.xlu0 %v8847_v45, %s8452_s7  ;;  %v889_v32 = vpop.f32.mrb[11].mxu0 }
 0x2cb   : > { %v890_v59 = vadd.f32 %v889_v32, %v8821_v8  ;;  %v2085_v32 = vshrl.u32 %v8829_v22, 16 }
 0x2cc   : > { %v8867_v60 = vpack.c.bf16 %v888_v25, %v884_v57 }
 0x2cd   : > { %v8869_v61 = vpack.c.bf16 %v890_v59, %v886_v58 }
 0x2ce   : > { %993 = vrot.lane.b32.xlu1 %v8847_v45, %s8450_s15  ;;  %2059 = vrot.lane.b32.xlu0 %v8849_v47, %s8451_s12  ;;  %v1049_v21 = vshrl.u32 %v8867_v60, 16 }
 0x2cf   : > { %v893_v62 = vpop.f32.mrb[12].mxu0 }
 0x2d0   : > { %v895_v0 = vpop.f32.mrb[13].mxu0  ;;  %v894_v1 = vadd.f32 %v893_v62, %v8818_v5 }
 0x2d1   : > { %v897_v33 = vpop.f32.mrb[14].mxu0  ;;  %v896_v3 = vadd.f32 %v895_v0, %v8821_v8 }
 0x2d2   : > { %v898_v40 = vadd.f32 %v897_v33, %v8818_v5  ;;  %2067 = vrot.lane.b32.xlu1 %v8849_v47, %s8450_s15  ;;  %2075 = vrot.lane.b32.xlu0 %v8849_v47, %s8452_s7  ;;  %v899_v41 = vpop.f32.mrb[15].mxu0  ;;  %v10973_v5 = vmov 0.0  }
 0x2d3   : > { %v900_v4 = vadd.f32 %v899_v41, %v8821_v8  ;;  %7549 = vmatprep.subr.bf16.mxu1 %v10973_v5  ;;  %7561 = vmatprep.subr.bf16.mxu0 %v10973_v5  ;;  %v8455_v8 = vmov 1983009808  }
 0x2d4   : > { %v8883_v6 = vpack.c.bf16 %v898_v40, %v894_v1  ;;  %7551 = vmatprep.mubr.msk.bf16.mxu1 %vm8454_vm0, %v10973_v5  ;;  %7563 = vmatprep.mubr.msk.bf16.mxu0 %vm8454_vm0, %v10973_v5  ;;  %v1079_v9 = vunpack.c.l.s4 %v8455_v8 }
 0x2d5   : > { %v8885_v7 = vpack.c.bf16 %v900_v4, %v896_v3 }
 0x2d6   : > { %995 = vrot.lane.b32.xlu1 %v8867_v60, %s8450_s15  ;;  %987 = vrot.lane.b32.xlu0 %v8867_v60, %s8451_s12  ;;  %v1080_v10 = vunpack.c.0.s8 %v1079_v9  ;;  %v1033_v9 = vshrl.u32 %v8847_v45, 16 }
 0x2d8   : > { %v8943_v19 = vsub.s32 %v1080_v10, %v8811_v2 }
 0x2da   : > { %2061 = vrot.lane.b32.xlu1 %v8869_v61, %s8451_s12  ;;  %2069 = vrot.lane.b32.xlu0 %v8869_v61, %s8450_s15 }
 0x2de   : > { %2077 = vrot.lane.b32.xlu1 %v8869_v61, %s8452_s7  ;;  %2071 = vrot.lane.b32.xlu0 %v8885_v7, %s8450_s15 }
 0x2e2   : > { %1003 = vrot.lane.b32.xlu0 %v8867_v60, %s8452_s7  ;;  %2063 = vrot.lane.b32.xlu1 %v8885_v7, %s8451_s12 }
 0x2e6   : > { %2079 = vrot.lane.b32.xlu1 %v8885_v7, %s8452_s7  ;;  %997 = vrot.lane.b32.xlu0 %v8883_v6, %s8450_s15 }
 0x2ea   : > { %3125 = vrot.lane.b32.xlu0 %v8837_v36, %s8451_s12  ;;  %989 = vrot.lane.b32.xlu1 %v8883_v6, %s8451_s12 }
 0x2ee   : > { %3135 = vrot.lane.b32.xlu0 %v8835_v34, %s8450_s15  ;;  %1005 = vrot.lane.b32.xlu1 %v8883_v6, %s8452_s7 }
 0x2f2   : > { %3129 = vrot.lane.b32.xlu0 %v8857_v55, %s8451_s12  ;;  %3133 = vrot.lane.b32.xlu1 %v8837_v36, %s8450_s15 }
 0x2f6   : > { %3141 = vrot.lane.b32.xlu1 %v8837_v36, %s8452_s7 }
 0x2fa   : > { %3127 = vrot.lane.b32.xlu1 %v8835_v34, %s8451_s12 }
 0x2fe   : > { %3143 = vrot.lane.b32.xlu1 %v8835_v34, %s8452_s7 }
 0x302   : > { %3137 = vrot.lane.b32.xlu1 %v8857_v55, %s8450_s15 }
 0x306   : > { %3145 = vrot.lane.b32.xlu1 %v8857_v55, %s8452_s7 }
 0x30a   : > { %3131 = vrot.lane.b32.xlu1 %v8855_v17, %s8451_s12  ;;  %v11037_v17 = vshrl.u32 %v8885_v7, 16 }
 0x330   : > { %v984_v13 = vpop.permute.xlu1 %983  ;;  %v992_v23 = vpop.permute.xlu0 %991 }
 0x331   : > { %v1009_v15 = vpack.i.b16 %v984_v13, %v8827_v20  ;;  %v1012_v18 = vshrl.u32 %v984_v13, 16  ;;  %v1019_v31 = vshrl.u32 %v992_v23, 16 }
 0x333   : > { %v1077_v28 = vcombine.high %v1009_v15, %v8939_v14  ;;  %v1013_v30 = vpack.i.b16 %v1012_v18, %v1011_v26  ;;  %v1084_v37 = vrot.slane %v1009_v15, %v8943_v19 }
 0x334   : > { %v1000_v27 = vpop.permute.xlu1 %999  ;;  %v2058_v50 = vpop.permute.xlu0 %2057 }
 0x335   : > { %v1017_v29 = vpack.i.b16 %v1000_v27, %v992_v23  ;;  %v1020_v35 = vshrl.u32 %v1000_v27, 16  ;;  %v1091_v42 = vrot.slane %v1077_v28, %v8943_v19  ;;  %v1143_v48 = vcombine.high %v1013_v30, %v8939_v14 }
 0x336   : > { %v1150_v2 = vrot.slane %v1013_v30, %v8943_v19  ;;  %v2083_v58 = vpack.i.b16 %v2058_v50, %v8829_v22  ;;  %v2086_v1 = vshrl.u32 %v2058_v50, 16  ;;  %v2101_v22 = vshrl.u32 %v8849_v47, 16 }
 0x337   : > { %v1092_v38 = vcombine.high %v1017_v29, %v8939_v14  ;;  %v1099_v16 = vrot.slane %v1017_v29, %v8943_v19  ;;  %v1021_v39 = vpack.i.b16 %v1020_v35, %v1019_v31  ;;  %v1157_v62 = vrot.slane %v1143_v48, %v8943_v19 }
 0x338   : > { %v8955_v46 = vpop.permute.xlu1 %2065  ;;  %v986_v10 = vpop.permute.xlu0 %985  ;;  %v2145_v18 = vcombine.high %v2083_v58, %v8939_v14  ;;  %v2087_v27 = vpack.i.b16 %v2086_v1, %v2085_v32  ;;  %v2117_v28 = vshrl.u32 %v8869_v61, 16 }
 0x339   : > { %v1106_v20 = vrot.slane %v1092_v38, %v8943_v19  ;;  %v1107_v43 = vcombine.low %v1084_v37, %v1099_v16  ;;  %v1108_v44 = vcombine.high %v1084_v37, %v1099_v16  ;;  %v1158_v49 = vcombine.high %v1021_v39, %v8939_v14 }
 0x33a   : > { %v1165_v24 = vrot.slane %v1021_v39, %v8943_v19  ;;  %v2152_v37 = vrot.slane %v2083_v58, %v8943_v19 }
 0x33b   : > { %v1115_v51 = vrot.slane %v1107_v43, %v8948_v63  ;;  %v1122_v52 = vrot.slane %v1108_v44, %v8948_v63  ;;  %v1123_v53 = vcombine.low %v1091_v42, %v1106_v20  ;;  %v1124_v54 = vcombine.high %v1091_v42, %v1106_v20 }
 0x33c   : > { %v1173_v56 = vcombine.low %v1150_v2, %v1165_v24  ;;  %v1174_v57 = vcombine.high %v1150_v2, %v1165_v24  ;;  %v1172_v25 = vrot.slane %v1158_v49, %v8943_v19  ;;  %v2074_v8 = vpop.permute.xlu1 %2073  ;;  %v2159_v43 = vrot.slane %v2145_v18, %v8943_v19 }
 0x33d   : > { %v1131_v0 = vrot.slane %v1123_v53, %v8948_v63  ;;  %v1138_v33 = vrot.slane %v1124_v54, %v8948_v63  ;;  %v1605_v3 = vcombine.low %v1115_v51, %v1122_v52  ;;  %v7266_v4 = vcombine.high %v1115_v51, %v1122_v52  ;;  %v1002_v51 = vpop.permute.xlu0 %1001 }
 0x33e   : > { %v1181_v40 = vrot.slane %v1173_v56, %v8948_v63  ;;  %v1188_v41 = vrot.slane %v1174_v57, %v8948_v63  ;;  %v1189_v13 = vcombine.low %v1157_v62, %v1172_v25  ;;  %v1190_v15 = vcombine.high %v1157_v62, %v1172_v25 }
 0x33f   : > { %v1621_v23 = vcombine.low %v1131_v0, %v1138_v33  ;;  %v7267_v26 = vcombine.high %v1131_v0, %v1138_v33  ;;  %v1612_v29 = vrot.slane %v1605_v3, %v8943_v19  ;;  %v1620_v30 = vrot.slane %v7266_v4, %v8943_v19 }
 0x340   : > { %v1655_v31 = vcombine.low %v1181_v40, %v1188_v41  ;;  %v7268_v35 = vcombine.high %v1181_v40, %v1188_v41  ;;  %v2091_v38 = vpack.i.b16 %v2074_v8, %v8955_v46  ;;  %v1197_v42 = vrot.slane %v1189_v13, %v8948_v63  ;;  %v994_v48 = vpop.permute.xlu1 %993 }
 0x341   : > { %v1204_v20 = vrot.slane %v1190_v15, %v8948_v63  ;;  %v2093_v44 = vshrl.u32 %v8955_v46, 16  ;;  %v1628_v2 = vrot.slane %v1621_v23, %v8943_v19  ;;  %v1636_v49 = vrot.slane %v7267_v26, %v8943_v19  ;;  %v9006_v26 = vpop.permute.xlu0 %2059 }
 0x342   : > { %v2094_v24 = vshrl.u32 %v2074_v8, 16  ;;  %v2160_v50 = vcombine.high %v2091_v38, %v8939_v14  ;;  %v1637_v52 = vcombine.low %v1612_v29, %v1620_v30  ;;  %v1662_v53 = vrot.slane %v1655_v31, %v8943_v19 }
 0x343   : > { %v1670_v54 = vrot.slane %v7268_v35, %v8943_v19  ;;  %v2211_v56 = vcombine.high %v2087_v27, %v8939_v14  ;;  %v1031_v57 = vpack.i.b16 %v986_v10, %v8847_v45  ;;  %v1034_v25 = vshrl.u32 %v986_v10, 16 }
 0x344   : > { %v2095_v46 = vpack.i.b16 %v2094_v24, %v2093_v44  ;;  %v1039_v32 = vpack.i.b16 %v1002_v51, %v994_v48  ;;  %v1671_v58 = vcombine.low %v1197_v42, %v1204_v20  ;;  %v2167_v62 = vrot.slane %v2091_v38, %v8943_v19 }
 0x345   : > { %v2174_v0 = vrot.slane %v2160_v50, %v8943_v19  ;;  %v1041_v33 = vshrl.u32 %v994_v48, 16  ;;  %v1645_v1 = vcombine.low %v1628_v2, %v1636_v49  ;;  %v7269_v40 = vcombine.high %v1197_v42, %v1204_v20 }
 0x346   : > { %v2218_v41 = vrot.slane %v2087_v27, %v8943_v19  ;;  %v1042_v3 = vshrl.u32 %v1002_v51, 16  ;;  %v9000_v4 = vrot.slane %v1637_v52, %v8948_v63  ;;  %v1687_v8 = vcombine.low %v1662_v53, %v1670_v54  ;;  %v2068_v54 = vpop.permute.xlu1 %2067 }
 0x347   : > { %v2225_v45 = vrot.slane %v2211_v56, %v8943_v19  ;;  %v1224_v10 = vcombine.high %v1039_v32, %v8939_v14  ;;  %v1035_v13 = vpack.i.b16 %v1034_v25, %v1033_v9  ;;  %v1209_v15 = vcombine.high %v1031_v57, %v8939_v14 }
 0x348   : > { %11030 = vst [vmem:[#allocation20_spill] sm:$0xff] %v9000_v4  ;;  %v2226_v18 = vcombine.high %v2095_v46, %v8939_v14  ;;  %v1043_v23 = vpack.i.b16 %v1042_v3, %v1041_v33  ;;  %v9009_v29 = vrot.slane %v1671_v58, %v8943_v19  ;;  %v2175_v27 = vcombine.low %v2152_v37, %v2167_v62 }
 0x349   : > { %v2176_v30 = vcombine.high %v2152_v37, %v2167_v62  ;;  %v2191_v31 = vcombine.low %v2159_v43, %v2174_v0  ;;  %v9012_v35 = vrot.slane %v1645_v1, %v8948_v63  ;;  %v9015_v38 = vrot.slane %v7269_v40, %v8943_v19 }
 0x34a   : > { %v2192_v9 = vcombine.high %v2159_v43, %v2174_v0  ;;  %v2233_v42 = vrot.slane %v2095_v46, %v8943_v19  ;;  %v9019_v20 = vrot.slane %v1687_v8, %v8948_v63  ;;  %v1216_v44 = vrot.slane %v1031_v57, %v8943_v19 }
 0x34b   : > { %11031 = vst [vmem:[#allocation21_spill] sm:$0xff] %v9012_v35  ;;  %v1231_v48 = vrot.slane %v1039_v32, %v8943_v19  ;;  %v1238_v2 = vrot.slane %v1224_v10, %v8943_v19  ;;  %v1223_v37 = vrot.slane %v1209_v15, %v8943_v19  ;;  %v1275_v49 = vcombine.high %v1035_v13, %v8939_v14  ;;  %v2076_v32 = vpop.permute.xlu0 %2075 }
 0x34c   : > { %11032 = vst [vmem:[#allocation22_spill] sm:$0xff] %v9019_v20  ;;  %v2240_v24 = vrot.slane %v2226_v18, %v8943_v19  ;;  %v1290_v50 = vcombine.high %v1043_v23, %v8939_v14  ;;  %v1282_v43 = vrot.slane %v1035_v13, %v8943_v19  ;;  %v9030_v51 = vrot.slane %v2175_v27, %v8948_v63 }
 0x34d   : > { %v9033_v52 = vrot.slane %v2176_v30, %v8948_v63  ;;  %v9036_v53 = vrot.slane %v2191_v31, %v8948_v63  ;;  %v9039_v56 = vrot.slane %v2192_v9, %v8948_v63  ;;  %v2241_v57 = vcombine.low %v2218_v41, %v2233_v42 }
 0x34e   : > { %v2242_v25 = vcombine.high %v2218_v41, %v2233_v42  ;;  %v1297_v46 = vrot.slane %v1043_v23, %v8943_v19  ;;  %v1239_v58 = vcombine.low %v1216_v44, %v1231_v48  ;;  %v1240_v62 = vcombine.high %v1216_v44, %v1231_v48  ;;  %v9062_v44 = vpop.permute.xlu1 %995 }
 0x34f   : > { %v1255_v0 = vcombine.low %v1223_v37, %v1238_v2  ;;  %v1256_v33 = vcombine.high %v1223_v37, %v1238_v2  ;;  %v1289_v40 = vrot.slane %v1275_v49, %v8943_v19  ;;  %v2257_v3 = vcombine.low %v2225_v45, %v2240_v24 }
 0x350   : > { %v1304_v8 = vrot.slane %v1290_v50, %v8943_v19  ;;  %v2258_v10 = vcombine.high %v2225_v45, %v2240_v24  ;;  %v1305_v41 = vcombine.low %v1282_v43, %v1297_v46  ;;  %v1306_v15 = vcombine.high %v1282_v43, %v1297_v46  ;;  %v988_v24 = vpop.permute.xlu0 %987 }
 0x351   : > { %v9049_v18 = vrot.slane %v2241_v57, %v8948_v63  ;;  %v9052_v23 = vrot.slane %v2242_v25, %v8948_v63  ;;  %v1247_v31 = vrot.slane %v1239_v58, %v8948_v63  ;;  %v1254_v45 = vrot.slane %v1240_v62, %v8948_v63 }
 0x352   : > { %v1263_v9 = vrot.slane %v1255_v0, %v8948_v63  ;;  %v1270_v42 = vrot.slane %v1256_v33, %v8948_v63  ;;  %v9065_v48 = vrot.slane %v2257_v3, %v8948_v63  ;;  %v1321_v37 = vcombine.low %v1289_v40, %v1304_v8  ;;  %v2062_v39 = vpop.permute.xlu1 %2061 }
 0x353   : > { %v1322_v49 = vcombine.high %v1289_v40, %v1304_v8  ;;  %v9070_v50 = vrot.slane %v2258_v10, %v8948_v63  ;;  %v1313_v43 = vrot.slane %v1305_v41, %v8948_v63  ;;  %v1320_v57 = vrot.slane %v1306_v15, %v8948_v63 }
 0x354   : > { %v2102_v25 = vshrl.u32 %v9006_v26, 16  ;;  %v2099_v62 = vpack.i.b16 %v9006_v26, %v8849_v47  ;;  %v2109_v0 = vshrl.u32 %v2068_v54, 16  ;;  %v1705_v33 = vcombine.low %v1247_v31, %v1254_v45 }
 0x355   : > { %v7270_v40 = vcombine.high %v1247_v31, %v1254_v45  ;;  %v1721_v3 = vcombine.low %v1263_v9, %v1270_v42  ;;  %v7271_v8 = vcombine.high %v1263_v9, %v1270_v42  ;;  %v1329_v10 = vrot.slane %v1321_v37, %v8948_v63  ;;  %v9088_v9 = vpop.permute.xlu0 %2069 }
 0x356   : > { %v1336_v41 = vrot.slane %v1322_v49, %v8948_v63  ;;  %v2107_v15 = vpack.i.b16 %v2076_v32, %v2068_v54  ;;  %v2110_v59 = vshrl.u32 %v2076_v32, 16  ;;  %v1755_v12 = vcombine.low %v1313_v43, %v1320_v57 }
 0x357   : > { %v7272_v11 = vcombine.high %v1313_v43, %v1320_v57  ;;  %v2103_v1 = vpack.i.b16 %v2102_v25, %v2101_v22  ;;  %v1050_v5 = vshrl.u32 %v988_v24, 16  ;;  %v2277_v26 = vcombine.high %v2099_v62, %v8939_v14 }
 0x358   : > { %v2111_v58 = vpack.i.b16 %v2110_v59, %v2109_v0  ;;  %v2292_v31 = vcombine.high %v2107_v15, %v8939_v14  ;;  %v2299_v45 = vrot.slane %v2107_v15, %v8943_v19  ;;  %v9091_v42 = vrot.slane %v1705_v33, %v8943_v19 }
 0x359   : > { %v9094_v54 = vrot.slane %v7270_v40, %v8943_v19  ;;  %v9097_v47 = vrot.slane %v1721_v3, %v8943_v19  ;;  %v9100_v22 = vrot.slane %v7271_v8, %v8943_v19  ;;  %v1771_v32 = vcombine.low %v1329_v10, %v1336_v41  ;;  %v9127_v15 = vpop.permute.xlu0 %2071 }
 0x35a   : > { %11033 = vst [vmem:[#allocation23_spill] sm:$0xff] %v9091_v42  ;;  %v7273_v59 = vcombine.high %v1329_v10, %v1336_v41  ;;  %v2284_v37 = vrot.slane %v2099_v62, %v8943_v19  ;;  %v2306_v49 = vrot.slane %v2292_v31, %v8943_v19  ;;  %v9105_v43 = vrot.slane %v1755_v12, %v8943_v19 }
 0x35b   : > { %11034 = vst [vmem:[#allocation24_spill] sm:$0xff] %v9094_v54  ;;  %v9108_v57 = vrot.slane %v7272_v11, %v8943_v19  ;;  %v1047_v25 = vpack.i.b16 %v988_v24, %v8867_v60  ;;  %v1051_v0 = vpack.i.b16 %v1050_v5, %v1049_v21  ;;  %v2291_v33 = vrot.slane %v2277_v26, %v8943_v19  ;;  %v2078_v24 = vpop.permute.xlu1 %2077 }
 0x35c   : > { %11035 = vst [vmem:[#allocation25_spill] sm:$0xff] %v9105_v43  ;;  %v2307_v40 = vcombine.low %v2284_v37, %v2299_v45  ;;  %v2308_v3 = vcombine.high %v2284_v37, %v2299_v45  ;;  %v2358_v8 = vcombine.high %v2111_v58, %v8939_v14  ;;  %v2343_v11 = vcombine.high %v2103_v1, %v8939_v14 }
 0x35d   : > { %11036 = vst [vmem:[#allocation26_spill] sm:$0xff] %v9108_v57  ;;  %v2365_v10 = vrot.slane %v2111_v58, %v8943_v19  ;;  %v9122_v60 = vrot.slane %v1771_v32, %v8943_v19  ;;  %v9125_v5 = vrot.slane %v7273_v59, %v8943_v19  ;;  %v2323_v21 = vcombine.low %v2291_v33, %v2306_v49  ;;  %v1004_v13 = vpop.permute.xlu0 %1003 }
 0x35e   : > { %v2324_v41 = vcombine.high %v2291_v33, %v2306_v49  ;;  %v2350_v31 = vrot.slane %v2103_v1, %v8943_v19  ;;  %v1341_v45 = vcombine.high %v1047_v25, %v8939_v14  ;;  %v1407_v58 = vcombine.high %v1051_v0, %v8939_v14 }
 0x35f   : > { %v9135_v37 = vrot.slane %v2307_v40, %v8948_v63  ;;  %v9138_v32 = vrot.slane %v2308_v3, %v8948_v63  ;;  %v2372_v59 = vrot.slane %v2358_v8, %v8943_v19  ;;  %v2118_v49 = vshrl.u32 %v2062_v39, 16 }
 0x360   : > { %v2357_v33 = vrot.slane %v2343_v11, %v8943_v19  ;;  %v2373_v62 = vcombine.low %v2350_v31, %v2365_v10  ;;  %v2374_v12 = vcombine.high %v2350_v31, %v2365_v10  ;;  %v1057_v26 = vshrl.u32 %v9062_v44, 16  ;;  %v2064_v31 = vpop.permute.xlu1 %2063 }
 0x361   : > { %v9144_v1 = vrot.slane %v2323_v21, %v8948_v63  ;;  %v9147_v46 = vrot.slane %v2324_v41, %v8948_v63  ;;  %v9150_v40 = vrot.slane %v1047_v25, %v8943_v19  ;;  %v2115_v3 = vpack.i.b16 %v2062_v39, %v8869_v61 }
 0x362   : > { %v9154_v8 = vrot.slane %v1341_v45, %v8943_v19  ;;  %v9157_v11 = vrot.slane %v1051_v0, %v8943_v19  ;;  %v9160_v10 = vrot.slane %v1407_v58, %v8943_v19  ;;  %v2123_v21 = vpack.i.b16 %v2078_v24, %v9088_v9 }
 0x363   : > { %v2389_v27 = vcombine.low %v2357_v33, %v2372_v59  ;;  %v2390_v41 = vcombine.high %v2357_v33, %v2372_v59  ;;  %v2119_v39 = vpack.i.b16 %v2118_v49, %v2117_v28  ;;  %v9168_v45 = vrot.slane %v2373_v62, %v8948_v63 }
 0x364   : > { %v9171_v0 = vrot.slane %v2374_v12, %v8948_v63  ;;  %v2126_v2 = vshrl.u32 %v2078_v24, 16  ;;  %v2424_v33 = vcombine.high %v2123_v21, %v8939_v14  ;;  %v2131_v25 = vpack.i.b16 %v2064_v31, %v8885_v7 }
 0x365   : > { %v2134_v61 = vshrl.u32 %v2064_v31, 16  ;;  %v2409_v62 = vcombine.high %v2115_v3, %v8939_v14  ;;  %v2125_v12 = vshrl.u32 %v9088_v9, 16  ;;  %v1055_v49 = vpack.i.b16 %v1004_v13, %v9062_v44 }
 0x366   : > { %v9185_v58 = vrot.slane %v2389_v27, %v8948_v63  ;;  %v9188_v24 = vrot.slane %v2390_v41, %v8948_v63  ;;  %v2475_v59 = vcombine.high %v2119_v39, %v8939_v14  ;;  %v2431_v30 = vrot.slane %v2123_v21, %v8943_v19 }
 0x367   : > { %v2127_v16 = vpack.i.b16 %v2126_v2, %v2125_v12  ;;  %v1058_v9 = vshrl.u32 %v1004_v13, 16  ;;  %v2416_v44 = vrot.slane %v2115_v3, %v8943_v19  ;;  %v2438_v27 = vrot.slane %v2424_v33, %v8943_v19 }
 0x368   : > { %v2135_v41 = vpack.i.b16 %v2134_v61, %v11037_v17  ;;  %v2541_v34 = vcombine.high %v2131_v25, %v8939_v14  ;;  %v2423_v57 = vrot.slane %v2409_v62, %v8943_v19  ;;  %v2482_v21 = vrot.slane %v2119_v39, %v8943_v19 }
 0x369   : > { %v1356_v43 = vcombine.high %v1055_v49, %v8939_v14  ;;  %v9206_v2 = vrot.slane %v2475_v59, %v8943_v19  ;;  %v2439_v13 = vcombine.low %v2416_v44, %v2431_v30  ;;  %v2440_v3 = vcombine.high %v2416_v44, %v2431_v30 }
 0x36a   : > { %v9209_v33 = vrot.slane %v2131_v25, %v8943_v19  ;;  %v2490_v17 = vcombine.high %v2127_v16, %v8939_v14  ;;  %v2497_v7 = vrot.slane %v2127_v16, %v8943_v19  ;;  %v1059_v61 = vpack.i.b16 %v1058_v9, %v1057_v26 }
 0x36b   : > { %v1363_v62 = vrot.slane %v1055_v49, %v8943_v19  ;;  %v2455_v39 = vcombine.low %v2423_v57, %v2438_v27  ;;  %v9215_v12 = vrot.slane %v2541_v34, %v8943_v19  ;;  %v2607_v28 = vcombine.high %v2135_v41, %v8939_v14 }
 0x36c   : > { %v9219_v59 = vrot.slane %v2135_v41, %v8943_v19  ;;  %v1370_v30 = vrot.slane %v1356_v43, %v8943_v19  ;;  %v1422_v16 = vcombine.high %v1059_v61, %v8939_v14  ;;  %v9226_v26 = vrot.slane %v2439_v13, %v8948_v63 }
 0x36d   : > { %v1371_v25 = vcombine.low %v9150_v40, %v1363_v62  ;;  %v1372_v44 = vcombine.high %v9150_v40, %v1363_v62  ;;  %v9229_v49 = vrot.slane %v2440_v3, %v8948_v63  ;;  %v2456_v34 = vcombine.high %v2423_v57, %v2438_v27 }
 0x36e   : > { %v1429_v9 = vrot.slane %v1059_v61, %v8943_v19  ;;  %v2505_v31 = vcombine.low %v2482_v21, %v2497_v7  ;;  %v1387_v43 = vcombine.low %v9154_v8, %v1370_v30  ;;  %v1388_v54 = vcombine.high %v9154_v8, %v1370_v30 }
 0x36f   : > { %11038 = vst [vmem:[#allocation27_spill] sm:$0xff] %v9229_v49  ;;  %v1379_v41 = vrot.slane %v1371_v25, %v8948_v63  ;;  %v1386_v40 = vrot.slane %v1372_v44, %v8948_v63  ;;  %v1436_v62 = vrot.slane %v1422_v16, %v8943_v19  ;;  %v9240_v3 = vrot.slane %v2455_v39, %v8948_v63 }
 0x370   : > { %v1437_v13 = vcombine.low %v9157_v11, %v1429_v9  ;;  %v1438_v42 = vcombine.high %v9157_v11, %v1429_v9  ;;  %v9243_v57 = vrot.slane %v2490_v17, %v8943_v19  ;;  %v2506_v27 = vcombine.high %v2482_v21, %v2497_v7 }
 0x371   : > { %v9246_v61 = vrot.slane %v2607_v28, %v8943_v19  ;;  %v9249_v8 = vrot.slane %v2456_v34, %v8948_v63  ;;  %v1395_v25 = vrot.slane %v1387_v43, %v8948_v63  ;;  %v1402_v11 = vrot.slane %v1388_v54, %v8948_v63 }
 0x372   : > { %v9256_v39 = vrot.slane %v2505_v31, %v8948_v63  ;;  %v1453_v21 = vcombine.low %v9160_v10, %v1436_v62  ;;  %v1454_v28 = vcombine.high %v9160_v10, %v1436_v62  ;;  %v1445_v7 = vrot.slane %v1437_v13, %v8948_v63 }
 0x373   : > { %v1452_v44 = vrot.slane %v1438_v42, %v8948_v63  ;;  %v1805_v16 = vcombine.low %v1379_v41, %v1386_v40  ;;  %v7274_v34 = vcombine.high %v1379_v41, %v1386_v40  ;;  %v9265_v9 = vrot.slane %v2506_v27, %v8948_v63 }
 0x374   : > { %v2521_v54 = vcombine.low %v9206_v2, %v9243_v57  ;;  %v11039_v31 = vcombine.low %v9036_v53, %v9039_v56  ;;  %v11040_v10 = vcombine.high %v9036_v53, %v9039_v56  ;;  %v2522_v42 = vcombine.high %v9206_v2, %v9243_v57  ;;  %v2080_v2 = vpop.permute.xlu1 %2079 }
 0x375   : > { %v1821_v40 = vcombine.low %v1395_v25, %v1402_v11  ;;  %v7275_v13 = vcombine.high %v1395_v25, %v1402_v11  ;;  %v1461_v27 = vrot.slane %v1453_v21, %v8948_v63  ;;  %v1468_v17 = vrot.slane %v1454_v28, %v8948_v63 }
 0x376   : > { %v2696_v43 = vrot.slane %v11039_v31, %v8943_v19  ;;  %v2704_v62 = vrot.slane %v11040_v10, %v8943_v19  ;;  %v11041_v31 = vcombine.low %v9030_v51, %v9033_v52  ;;  %v11042_v53 = vcombine.high %v9030_v51, %v9033_v52 }
 0x377   : > { %v1812_v57 = vrot.slane %v1805_v16, %v8943_v19  ;;  %v1820_v10 = vrot.slane %v7274_v34, %v8943_v19  ;;  %v1855_v25 = vcombine.low %v1445_v7, %v1452_v44  ;;  %v11043_v11 = vcombine.low %v9049_v18, %v9052_v23 }
 0x378   : > { %v2680_v30 = vrot.slane %v11041_v31, %v8943_v19  ;;  %v2688_v56 = vrot.slane %v11042_v53, %v8943_v19  ;;  %v7276_v28 = vcombine.high %v1445_v7, %v1452_v44  ;;  %v2713_v41 = vcombine.low %v2696_v43, %v2704_v62 }
 0x379   : > { %v2730_v21 = vrot.slane %v11043_v11, %v8943_v19  ;;  %v11044_v31 = vcombine.high %v9049_v18, %v9052_v23  ;;  %v2739_v51 = vcombine.low %v9065_v48, %v9070_v50  ;;  %v1828_v52 = vrot.slane %v1821_v40, %v8943_v19 }
 0x37a   : > { %v1836_v16 = vrot.slane %v7275_v13, %v8943_v19  ;;  %v7285_v34 = vcombine.high %v9065_v48, %v9070_v50  ;;  %v2139_v53 = vpack.i.b16 %v2080_v2, %v9127_v15  ;;  %v1871_v11 = vcombine.low %v1461_v27, %v1468_v17 }
 0x37b   : > { %v2738_v49 = vrot.slane %v11044_v31, %v8943_v19  ;;  %v7277_v7 = vcombine.high %v1461_v27, %v1468_v17  ;;  %v2705_v44 = vcombine.low %v2680_v30, %v2688_v56  ;;  %v2746_v43 = vrot.slane %v2739_v51, %v8943_v19 }
 0x37c   : > { %v2754_v18 = vrot.slane %v7285_v34, %v8943_v19  ;;  %v2142_v62 = vshrl.u32 %v2080_v2, 16  ;;  %v2556_v31 = vcombine.high %v2139_v53, %v8939_v14  ;;  %v1862_v13 = vrot.slane %v1855_v25, %v8943_v19 }
 0x37d   : > { %v2755_v23 = vcombine.low %v2730_v21, %v2738_v49  ;;  %v9315_v48 = vrot.slane %v2713_v41, %v8948_v63  ;;  %v2563_v50 = vrot.slane %v2139_v53, %v8943_v19  ;;  %v1870_v30 = vrot.slane %v7276_v28, %v8943_v19 }
 0x37e   : > { %v2763_v17 = vcombine.low %v2746_v43, %v2754_v18  ;;  %v11046_v27 = vshrl.u32 %v9127_v15, 16  ;;  %v2570_v49 = vrot.slane %v2556_v31, %v8943_v19  ;;  %v1845_v2 = vcombine.low %v1828_v52, %v1836_v16 }
 0x37f   : > { %11045 = vst [vmem:[#allocation28_spill] sm:$0xff] %v9315_v48  ;;  %v1878_v21 = vrot.slane %v1871_v11, %v8943_v19  ;;  %v1886_v51 = vrot.slane %v7277_v7, %v8943_v19  ;;  %v9325_v25 = vrot.slane %v2705_v44, %v8948_v63  ;;  %v9328_v41 = vrot.slane %v2521_v54, %v8948_v63  ;;  %v990_v7 = vpop.permute.xlu1 %989 }
 0x380   : > { %v2143_v56 = vpack.i.b16 %v2142_v62, %v11046_v27  ;;  %v1837_v34 = vcombine.low %v1812_v57, %v1820_v10  ;;  %v9331_v28 = vrot.slane %v2755_v23, %v8948_v63  ;;  %v9334_v15 = vrot.slane %v2763_v17, %v8948_v63 }
 0x381   : > { %11047 = vst [vmem:[#allocation29_spill] sm:$0xff] %v9325_v25  ;;  %v9338_v52 = vcombine.low %v9325_v25, %v9315_v48  ;;  %v2571_v16 = vcombine.low %v9209_v33, %v2563_v50  ;;  %v2572_v53 = vcombine.high %v9209_v33, %v2563_v50  ;;  %v2587_v11 = vcombine.low %v9215_v12, %v2570_v49  ;;  %v11075_v25 = vld [vmem:[#allocation25_spill] sm:$0xff] }
 0x382   : > { %11048 = vst [vmem:[#allocation30_spill] sm:$0xff] %v9331_v28  ;;  %11049 = vst [vmem:[#allocation31_spill] sm:$0xff] %v9334_v15  ;;  %v9345_v54 = vcombine.low %v9331_v28, %v9334_v15  ;;  %v2588_v57 = vcombine.high %v9215_v12, %v2570_v49  ;;  %v2622_v10 = vcombine.high %v2143_v56, %v8939_v14  ;;  %v1066_v50 = vshrl.u32 %v990_v7, 16 }
 0x383   : > { %v2629_v44 = vrot.slane %v2143_v56, %v8943_v19  ;;  %v9351_v43 = vrot.slane %v2522_v42, %v8948_v63  ;;  %v9354_v18 = vrot.slane %v1845_v2, %v8948_v63  ;;  %v1887_v33 = vcombine.low %v1862_v13, %v1870_v30  ;;  %v998_v13 = vpop.permute.xlu0 %997 }
 0x384   : > { %v1895_v23 = vcombine.low %v1878_v21, %v1886_v51  ;;  %v3075_v31 = vpack.i.b16 %v9345_v54, %v9338_v52  ;;  %v1063_v12 = vpack.i.b16 %v990_v7, %v8883_v6  ;;  %v9362_v17 = vrot.slane %v1837_v34, %v8948_v63 }
 0x385   : > { %11050 = vst [vmem:[#allocation32_spill] sm:$0xff] %v9354_v18  ;;  %v2579_v42 = vrot.slane %v2571_v16, %v8948_v63  ;;  %v2586_v27 = vrot.slane %v2572_v53, %v8948_v63  ;;  %v9367_v56 = vrot.slane %v2587_v11, %v8948_v63  ;;  %v9371_v49 = vrot.slane %v2588_v57, %v8948_v63 }
 0x386   : > { %11051 = vst [vmem:[#allocation33_spill] sm:$0xff] %v9362_v17  ;;  %v4210_v30 = vsel %vm4205_vm1, %v3075_v31, 0  ;;  %v2636_v2 = vrot.slane %v2622_v10, %v8943_v19  ;;  %v2637_v21 = vcombine.low %v9219_v59, %v2629_v44  ;;  %v9379_v34 = vcombine.low %v9362_v17, %v9354_v18 }
 0x387   : > { %v9382_v16 = vrot.slane %v1887_v33, %v8948_v63  ;;  %v9385_v53 = vrot.slane %v1895_v23, %v8948_v63  ;;  %7550 = vmatpush3.bf16.xpose.msra.mxu1 %v4210_v30  ;;  %v1073_v11 = vshrl.u32 %v998_v13, 16  ;;  %v11053_v7 = vshrl.u32 %v8883_v6, 16  ;;  %v3126_v17 = vpop.permute.xlu0 %3125 }
 0x388   : > { %v1473_v10 = vcombine.high %v1063_v12, %v8939_v14  ;;  %v9393_v31 = vrot.slane %v1063_v12, %v8943_v19  ;;  %v11054_v51 = vmov 0.0   ;;  %v2638_v62 = vcombine.high %v9219_v59, %v2629_v44 }
 0x389   : > { %11052 = vst [vmem:[#allocation34_spill] sm:$0xff] %v9382_v16  ;;  %v9389_v57 = vpack.i.b16 %v1066_v50, %v11053_v7  ;;  %7555 = vmatprep.subr.bf16.mxu1 %v11054_v51  ;;  %v2973_v33 = vcombine.low %v2579_v42, %v2586_v27  ;;  %v7294_v40 = vcombine.high %v2579_v42, %v2586_v27 }
 0x38a   : > { %v11055_v23 = vcombine.low %v9009_v29, %v9015_v38  ;;  %v9404_v6 = vrot.slane %v2637_v21, %v8948_v63  ;;  %v2653_v50 = vcombine.low %v9246_v61, %v2636_v2  ;;  %v2654_v12 = vcombine.high %v9246_v61, %v2636_v2 }
 0x38b   : > { %v9412_v59 = vcombine.low %v9000_v4, %v9012_v35  ;;  %v11057_v38 = vcombine.low %v9144_v1, %v9147_v46  ;;  %v11058_v61 = vcombine.high %v9144_v1, %v9147_v46  ;;  %v11059_v27 = vcombine.low %v9135_v37, %v9138_v32 }
 0x38c   : > { %v9401_v30 = vrot.slane %v11055_v23, %v8948_v63  ;;  %v11060_v21 = vcombine.high %v9135_v37, %v9138_v32  ;;  %v11061_v7 = vcombine.low %v9168_v45, %v9171_v0  ;;  %v11062_v46 = vcombine.high %v9168_v45, %v9171_v0 }
 0x38d   : > { %v2796_v44 = vrot.slane %v11057_v38, %v8943_v19  ;;  %v2804_v42 = vrot.slane %v11058_v61, %v8943_v19  ;;  %v2780_v2 = vrot.slane %v11059_v27, %v8943_v19  ;;  %v1006_v61 = vpop.permute.xlu1 %1005  ;;  %v9443_v18 = vrot.slane %v2638_v62, %v8948_v63 }
 0x38e   : > { %11056 = vst [vmem:[#allocation35_spill] sm:$0xff] %v9401_v30  ;;  %v9416_v29 = vcombine.low %v9019_v20, %v9401_v30  ;;  %v2788_v23 = vrot.slane %v11060_v21, %v8943_v19  ;;  %v2830_v38 = vrot.slane %v11061_v7, %v8943_v19  ;;  %v2838_v1 = vrot.slane %v11062_v46, %v8943_v19  ;;  %v9471_v20 = vpop.permute.xlu0 %3135 }
 0x38f   : > { %v9446_v27 = vrot.slane %v2973_v33, %v8943_v19  ;;  %v9449_v37 = vrot.slane %v7294_v40, %v8943_v19  ;;  %v9454_v7 = vrot.slane %v2653_v50, %v8948_v63  ;;  %v2813_v21 = vcombine.low %v2796_v44, %v2804_v42 }
 0x390   : > { %v2007_v32 = vpack.i.b16 %v9416_v29, %v9412_v59  ;;  %v2839_v45 = vcombine.low %v9185_v58, %v9188_v24  ;;  %v7289_v0 = vcombine.high %v9185_v58, %v9188_v24  ;;  %v9461_v62 = vrot.slane %v2654_v12, %v8948_v63 }
 0x391   : > { %v3154_v33 = vshrl.u32 %v3126_v17, 16  ;;  %v1071_v40 = vpack.i.b16 %v1006_v61, %v998_v13  ;;  %v1074_v46 = vshrl.u32 %v1006_v61, 16  ;;  %v2805_v4 = vcombine.low %v2780_v2, %v2788_v23 }
 0x392   : > { %7552 = vmatmul.mubr.msk.bf16.vlgmr.msra.gmra.mrb[8].mxu1 %vm4205_vm1, %v2007_v32  ;;  %v2846_v35 = vrot.slane %v2839_v45, %v8943_v19  ;;  %v2854_v50 = vrot.slane %v7289_v0, %v8943_v19  ;;  %v2855_v44 = vcombine.low %v2830_v38, %v2838_v1  ;;  %v1487_v42 = vrot.slane %v1473_v10, %v8943_v19 }
 0x393   : > { %7557 = vmatprep.mubr.msk.bf16.mxu1 %vm8454_vm0, %v11054_v51  ;;  %v1075_v58 = vpack.i.b16 %v1074_v46, %v1073_v11  ;;  %v1488_v24 = vcombine.high %v1071_v40, %v8939_v14  ;;  %v1495_v12 = vrot.slane %v1071_v40, %v8943_v19  ;;  %v1539_v13 = vcombine.high %v9389_v57, %v8939_v14 }
 0x394   : > { %v3151_v2 = vpack.i.b16 %v3126_v17, %v8837_v36  ;;  %v9477_v23 = vrot.slane %v2813_v21, %v8948_v63  ;;  %v2863_v38 = vcombine.low %v2846_v35, %v2854_v50  ;;  %v11064_v32 = vshrl.u32 %v8837_v36, 16 }
 0x395   : > { %v1502_v1 = vrot.slane %v1488_v24, %v8943_v19  ;;  %v1503_v10 = vcombine.low %v9393_v31, %v1495_v12  ;;  %v1504_v11 = vcombine.high %v9393_v31, %v1495_v12  ;;  %v1554_v61 = vcombine.high %v1075_v58, %v8939_v14  ;;  %v3134_v12 = vpop.permute.xlu1 %3133 }
 0x396   : > { %11063 = vst [vmem:[#allocation36_spill] sm:$0xff] %v9477_v23  ;;  %v3155_v45 = vpack.i.b16 %v3154_v33, %v11064_v32  ;;  %v9486_v0 = vrot.slane %v2805_v4, %v8948_v63  ;;  %v9489_v17 = vrot.slane %v2855_v44, %v8948_v63  ;;  %v9492_v21 = vrot.slane %v2863_v38, %v8948_v63  ;;  %v3130_v38 = vpop.permute.xlu0 %3129 }
 0x397   : > { %v1519_v40 = vcombine.low %v1487_v42, %v1502_v1  ;;  %v1520_v46 = vcombine.high %v1487_v42, %v1502_v1  ;;  %v1561_v31 = vrot.slane %v1075_v58, %v8943_v19  ;;  %v1511_v33 = vrot.slane %v1503_v10, %v8948_v63 }
 0x398   : > { %11065 = vst [vmem:[#allocation37_spill] sm:$0xff] %v9486_v0  ;;  %11066 = vst [vmem:[#allocation38_spill] sm:$0xff] %v9489_v17  ;;  %v9499_v36 = vcombine.low %v9486_v0, %v9477_v23  ;;  %v9503_v4 = vcombine.low %v9489_v17, %v9492_v21  ;;  %v1518_v50 = vrot.slane %v1504_v11, %v8948_v63 }
 0x399   : > { %11067 = vst [vmem:[#allocation39_spill] sm:$0xff] %v9492_v21  ;;  %v1546_v58 = vrot.slane %v9389_v57, %v8943_v19  ;;  %v1568_v24 = vrot.slane %v1554_v61, %v8943_v19  ;;  %v1553_v1 = vrot.slane %v1539_v13, %v8943_v19  ;;  %v3213_v32 = vcombine.high %v3151_v2, %v8939_v14 }
 0x39a   : > { %v3279_v10 = vcombine.high %v3155_v45, %v8939_v14  ;;  %v3087_v11 = vpack.i.b16 %v9503_v4, %v9499_v36  ;;  %v1527_v44 = vrot.slane %v1519_v40, %v8948_v63  ;;  %v1534_v42 = vrot.slane %v1520_v46, %v8948_v63 }
 0x39b   : > { %v1569_v35 = vcombine.low %v1546_v58, %v1561_v31  ;;  %v1570_v30 = vcombine.high %v1546_v58, %v1561_v31  ;;  %v1905_v0 = vcombine.low %v1511_v33, %v1518_v50  ;;  %v3186_v13 = vshrl.u32 %v3130_v38, 16 }
 0x39c   : > { %v4257_v61 = vsel %vm4205_vm1, %v3087_v11, 0  ;;  %v1585_v17 = vcombine.low %v1553_v1, %v1568_v24  ;;  %v1586_v21 = vcombine.high %v1553_v1, %v1568_v24  ;;  %v7278_v28 = vcombine.high %v1511_v33, %v1518_v50 }
 0x39d   : > { %7556 = vmatpush3.bf16.xpose.msra.mxu1 %v4257_v61  ;;  %v9527_v40 = vrot.slane %v3151_v2, %v8943_v19  ;;  %v9530_v46 = vrot.slane %v3213_v32, %v8943_v19  ;;  %v9533_v31 = vrot.slane %v3155_v45, %v8943_v19  ;;  %v3183_v58 = vpack.i.b16 %v3130_v38, %v8857_v55  ;;  %v3142_v2 = vpop.permute.xlu1 %3141 }
 0x39e   : > { %7567 = vmatprep.subr.bf16.mxu1 %v11054_v51  ;;  %v9538_v11 = vrot.slane %v3279_v10, %v8943_v19  ;;  %v1577_v61 = vrot.slane %v1569_v35, %v8948_v63  ;;  %v1584_v33 = vrot.slane %v1570_v30, %v8948_v63  ;;  %v1921_v50 = vcombine.low %v1527_v44, %v1534_v42 }
 0x39f   : > { %v1912_v24 = vrot.slane %v1905_v0, %v8943_v19  ;;  %v3161_v32 = vshrl.u32 %v3134_v12, 16  ;;  %v11068_v45 = vshrl.u32 %v8857_v55, 16  ;;  %v1593_v38 = vrot.slane %v1585_v17, %v8948_v63 }
 0x3a0   : > { %v1600_v57 = vrot.slane %v1586_v21, %v8948_v63  ;;  %v1920_v10 = vrot.slane %v7278_v28, %v8943_v19  ;;  %v7279_v15 = vcombine.high %v1527_v44, %v1534_v42  ;;  %v3477_v35 = vcombine.high %v3183_v58, %v8939_v14  ;;  %v11071_v21 = vld [vmem:[#allocation23_spill] sm:$0xff]  ;;  %v11072_v28 = vld [vmem:[#allocation24_spill] sm:$0xff] }
 0x3a1   : > { %v3187_v23 = vpack.i.b16 %v3186_v13, %v11068_v45  ;;  %v11069_v30 = vcombine.low %v9097_v47, %v9100_v22  ;;  %v1795_v1 = vcombine.low %v9122_v60, %v9125_v5  ;;  %v3159_v55 = vpack.i.b16 %v3142_v2, %v3134_v12  ;;  %v11076_v47 = vld [vmem:[#allocation26_spill] sm:$0xff] }
 0x3a2   : > { %v9559_v13 = vrot.slane %v1921_v50, %v8943_v19  ;;  %v1955_v17 = vcombine.low %v1577_v61, %v1584_v33  ;;  %v11073_v44 = vcombine.low %v11071_v21, %v11072_v28  ;;  %v3162_v45 = vshrl.u32 %v3142_v2, 16 }
 0x3a3   : > { %v9554_v0 = vrot.slane %v11069_v30, %v8948_v63  ;;  %v11077_v22 = vcombine.low %v11075_v25, %v11076_v47  ;;  %v9574_v60 = vrot.slane %v1795_v1, %v8948_v63  ;;  %v3228_v5 = vcombine.high %v3159_v55, %v8939_v14 }
 0x3a4   : > { %v9565_v42 = vrot.slane %v11073_v44, %v8948_v63  ;;  %v3235_v12 = vrot.slane %v3159_v55, %v8943_v19  ;;  %v9579_v50 = vrot.slane %v7279_v15, %v8943_v19  ;;  %v1937_v21 = vcombine.low %v1912_v24, %v1920_v10 }
 0x3a5   : > { %11070 = vst [vmem:[#allocation40_spill] sm:$0xff] %v9554_v0  ;;  %v9571_v30 = vrot.slane %v11077_v22, %v8948_v63  ;;  %11079 = vst [vmem:[#allocation25_spill] sm:$0xff] %v9574_v60  ;;  %v7280_v28 = vcombine.high %v1577_v61, %v1584_v33  ;;  %v1971_v44 = vcombine.low %v1593_v38, %v1600_v57 }
 0x3a6   : > { %11074 = vst [vmem:[#allocation23_spill] sm:$0xff] %v9565_v42  ;;  %v7281_v2 = vcombine.high %v1593_v38, %v1600_v57  ;;  %v9583_v48 = vcombine.low %v9565_v42, %v9554_v0  ;;  %v3163_v1 = vpack.i.b16 %v3162_v45, %v3161_v32  ;;  %v9590_v47 = vrot.slane %v1955_v17, %v8943_v19  ;;  %v11081_v57 = vld [vmem:[#allocation27_spill] sm:$0xff] }
 0x3a7   : > { %11078 = vst [vmem:[#allocation24_spill] sm:$0xff] %v9571_v30  ;;  %v9587_v25 = vcombine.low %v9571_v30, %v9574_v60  ;;  %v9593_v55 = vrot.slane %v3183_v58, %v8943_v19  ;;  %v3242_v15 = vrot.slane %v3228_v5, %v8943_v19  ;;  %v11082_v61 = vcombine.low %v9226_v26, %v11081_v57 }
 0x3a8   : > { %11080 = vst [vmem:[#allocation26_spill] sm:$0xff] %v9583_v48  ;;  %v3243_v38 = vcombine.low %v9527_v40, %v3235_v12  ;;  %v3244_v32 = vcombine.high %v9527_v40, %v3235_v12  ;;  %v11083_v10 = vcombine.high %v9226_v26, %v11081_v57  ;;  %v9609_v17 = vrot.slane %v7280_v28, %v8943_v19 }
 0x3a9   : > { %v2880_v33 = vrot.slane %v11082_v61, %v8943_v19  ;;  %v2019_v24 = vpack.i.b16 %v9587_v25, %v9583_v48  ;;  %v9612_v45 = vrot.slane %v1971_v44, %v8943_v19  ;;  %v9615_v22 = vrot.slane %v3477_v35, %v8943_v19  ;;  %v3128_v61 = vpop.permute.xlu1 %3127 }
 0x3aa   : > { %v2888_v58 = vrot.slane %v11083_v10, %v8943_v19  ;;  %v3543_v5 = vcombine.high %v3187_v23, %v8939_v14  ;;  %v9619_v30 = vrot.slane %v7281_v2, %v8943_v19  ;;  %v3294_v26 = vcombine.high %v3163_v1, %v8939_v14 }
 0x3ab   : > { %7558 = vmatmul.mubr.msk.bf16.vlgmr.msra.gmra.mrb[12].mxu1 %vm4205_vm1, %v2019_v24  ;;  %v11084_v40 = vcombine.low %v9240_v3, %v9249_v8  ;;  %v11085_v35 = vcombine.high %v9240_v3, %v9249_v8  ;;  %v9632_v44 = vrot.slane %v1937_v21, %v8948_v63  ;;  %v3259_v57 = vcombine.low %v9530_v46, %v3242_v15 }
 0x3ac   : > { %v3301_v24 = vrot.slane %v3163_v1, %v8943_v19  ;;  %7569 = vmatprep.mubr.msk.bf16.mxu1 %vm8454_vm0, %v11054_v51  ;;  %v9641_v10 = vrot.slane %v3187_v23, %v8943_v19  ;;  %v3258_v3 = vrot.slane %v3244_v32, %v8948_v63  ;;  %v2905_v8 = vcombine.low %v2880_v33, %v2888_v58 }
 0x3ad   : > { %v2896_v12 = vrot.slane %v11084_v40, %v8943_v19  ;;  %v2904_v28 = vrot.slane %v11085_v35, %v8943_v19  ;;  %v3251_v40 = vrot.slane %v3243_v38, %v8948_v63  ;;  %v9648_v35 = vrot.slane %v3543_v5, %v8943_v19  ;;  %v3144_v21 = vpop.permute.xlu1 %3143 }
 0x3ae   : > { %v3260_v2 = vcombine.high %v9530_v46, %v3242_v15  ;;  %v11086_v1 = vcombine.low %v9256_v39, %v9265_v9  ;;  %v3308_v38 = vrot.slane %v3294_v26, %v8943_v19  ;;  %v11087_v33 = vcombine.high %v9256_v39, %v9265_v9 }
 0x3af   : > { %v2913_v32 = vcombine.low %v2896_v12, %v2904_v28  ;;  %v3267_v5 = vrot.slane %v3259_v57, %v8948_v63  ;;  %v3309_v46 = vcombine.low %v9533_v31, %v3301_v24  ;;  %v3310_v15 = vcombine.high %v9533_v31, %v3301_v24  ;;  %v11089_v57 = vld [vmem:[#allocation18_spill] sm:$0xff] }
 0x3b0   : > { %v2930_v60 = vrot.slane %v11086_v1, %v8943_v19  ;;  %v2938_v58 = vrot.slane %v11087_v33, %v8943_v19  ;;  %v2939_v1 = vcombine.low %v9328_v41, %v9351_v43  ;;  %v3741_v42 = vcombine.low %v3251_v40, %v3258_v3 }
 0x3b1   : > { %v7298_v23 = vcombine.high %v3251_v40, %v3258_v3  ;;  %v9668_v26 = vrot.slane %v2905_v8, %v8948_v63  ;;  %v7293_v12 = vcombine.high %v9328_v41, %v9351_v43  ;;  %v3274_v39 = vrot.slane %v3260_v2, %v8948_v63 }
 0x3b2   : > { %v2946_v9 = vrot.slane %v2939_v1, %v8943_v19  ;;  %v2955_v28 = vcombine.low %v2930_v60, %v2938_v58  ;;  %v3167_v33 = vpack.i.b16 %v3128_v61, %v11089_v57  ;;  %v3170_v24 = vshrl.u32 %v3128_v61, 16 }
 0x3b3   : > { %11088 = vst [vmem:[#allocation27_spill] sm:$0xff] %v9668_v26  ;;  %v2954_v31 = vrot.slane %v7293_v12, %v8943_v19  ;;  %v3175_v0 = vpack.i.b16 %v3144_v21, %v9471_v20  ;;  %v3178_v48 = vshrl.u32 %v3144_v21, 16  ;;  %v3317_v40 = vrot.slane %v3309_v46, %v8948_v63 }
 0x3b4   : > { %v3324_v3 = vrot.slane %v3310_v15, %v8948_v63  ;;  %v3325_v8 = vcombine.low %v9538_v11, %v3308_v38  ;;  %v9681_v41 = vrot.slane %v2913_v32, %v8948_v63  ;;  %v11090_v60 = vshrl.u32 %v9471_v20, 16 }
 0x3b5   : > { %v2963_v43 = vcombine.low %v2946_v9, %v2954_v31  ;;  %v3360_v58 = vcombine.high %v3175_v0, %v8939_v14  ;;  %v3367_v61 = vrot.slane %v3175_v0, %v8943_v19  ;;  %v3326_v1 = vcombine.high %v9538_v11, %v3308_v38 }
 0x3b6   : > { %v3179_v2 = vpack.i.b16 %v3178_v48, %v11090_v60  ;;  %v9689_v21 = vrot.slane %v3741_v42, %v8943_v19  ;;  %v3345_v46 = vcombine.high %v3167_v33, %v8939_v14  ;;  %v3352_v15 = vrot.slane %v3167_v33, %v8943_v19  ;;  %v3138_v60 = vpop.permute.xlu1 %3137 }
 0x3b7   : > { %v9694_v32 = vrot.slane %v7298_v23, %v8943_v19  ;;  %v9697_v12 = vrot.slane %v2955_v28, %v8948_v63  ;;  %v9700_v20 = vrot.slane %v2963_v43, %v8948_v63  ;;  %v11093_v48 = vshrl.u32 %v11089_v57, 16 }
 0x3b8   : > { %11091 = vst [vmem:[#allocation18_spill] sm:$0xff] %v9689_v21  ;;  %v9705_v11 = vrot.slane %v3325_v8, %v8948_v63  ;;  %v3757_v42 = vcombine.low %v3267_v5, %v3274_v39  ;;  %v3374_v38 = vrot.slane %v3360_v58, %v8943_v19  ;;  %v3375_v9 = vcombine.low %v3352_v15, %v3367_v61 }
 0x3b9   : > { %11092 = vst [vmem:[#allocation41_spill] sm:$0xff] %v9694_v32  ;;  %v3171_v0 = vpack.i.b16 %v3170_v24, %v11093_v48  ;;  %v9710_v23 = vcombine.low %v9668_v26, %v9681_v41  ;;  %v9714_v28 = vcombine.low %v9697_v12, %v9700_v20  ;;  %v3376_v33 = vcombine.high %v3352_v15, %v3367_v61 }
 0x3ba   : > { %v3433_v31 = vrot.slane %v3179_v2, %v8943_v19  ;;  %v9718_v57 = vrot.slane %v3326_v1, %v8948_v63  ;;  %v7299_v24 = vcombine.high %v3267_v5, %v3274_v39  ;;  %v3791_v8 = vcombine.low %v3317_v40, %v3324_v3 }
 0x3bb   : > { %v3359_v43 = vrot.slane %v3345_v46, %v8943_v19  ;;  %v7300_v58 = vcombine.high %v3317_v40, %v3324_v3  ;;  %v3099_v48 = vpack.i.b16 %v9714_v28, %v9710_v23  ;;  %v3418_v21 = vrot.slane %v3171_v0, %v8943_v19 }
 0x3bc   : > { %v9726_v32 = vcombine.low %v9382_v16, %v9385_v53  ;;  %v3411_v61 = vcombine.high %v3171_v0, %v8939_v14  ;;  %v9730_v1 = vrot.slane %v3375_v9, %v8948_v63  ;;  %v3426_v39 = vcombine.high %v3179_v2, %v8939_v14 }
 0x3bd   : > { %v3391_v5 = vcombine.low %v3359_v43, %v3374_v38  ;;  %v4304_v46 = vsel %vm4205_vm1, %v3099_v48, 0  ;;  %v9735_v40 = vrot.slane %v3376_v33, %v8948_v63  ;;  %v3392_v3 = vcombine.high %v3359_v43, %v3374_v38 }
 0x3be   : > { %v3441_v15 = vcombine.low %v3418_v21, %v3433_v31  ;;  %v9738_v26 = vrot.slane %v3757_v42, %v8943_v19  ;;  %v9741_v16 = vrot.slane %v7299_v24, %v8943_v19  ;;  %v9744_v0 = vrot.slane %v3791_v8, %v8943_v19  ;;  %7562 = vmatpush3.bf16.xpose.msra.mxu0 %v4304_v46 }
 0x3bf   : > { %v11097_v2 = vcombine.low %v9367_v56, %v9371_v49  ;;  %v9751_v33 = vrot.slane %v7300_v58, %v8943_v19  ;;  %v3442_v38 = vcombine.high %v3418_v21, %v3433_v31  ;;  %v2031_v42 = vpack.i.b16 %v9726_v32, %v9379_v34  ;;  %7573 = vmatprep.subr.bf16.mxu0 %v11054_v51  ;;  %v3146_v58 = vpop.permute.xlu1 %3145 }
 0x3c0   : > { %11094 = vst [vmem:[#allocation42_spill] sm:$0xff] %v9738_v26  ;;  %11095 = vst [vmem:[#allocation43_spill] sm:$0xff] %v9741_v16  ;;  %v11099_v24 = vcombine.high %v9367_v56, %v9371_v49  ;;  %v3425_v43 = vrot.slane %v3411_v61, %v8943_v19  ;;  %v3399_v48 = vrot.slane %v3391_v5, %v8948_v63  ;;  %v3193_v16 = vshrl.u32 %v3138_v60, 16 }
 0x3c1   : > { %11096 = vst [vmem:[#allocation44_spill] sm:$0xff] %v9744_v0  ;;  %v2996_v9 = vrot.slane %v11097_v2, %v8943_v19  ;;  %11098 = vst [vmem:[#allocation45_spill] sm:$0xff] %v9751_v33  ;;  %v3440_v46 = vrot.slane %v3426_v39, %v8943_v19  ;;  %v11100_v21 = vcombine.low %v9404_v6, %v9443_v18 }
 0x3c2   : > { %v3004_v8 = vrot.slane %v11099_v24, %v8943_v19  ;;  %v3406_v2 = vrot.slane %v3392_v3, %v8948_v63  ;;  %v3449_v0 = vrot.slane %v3441_v15, %v8948_v63  ;;  %v3841_v56 = vcombine.low %v9730_v1, %v9735_v40 }
 0x3c3   : > { %v3030_v31 = vrot.slane %v11100_v21, %v8943_v19  ;;  %v3005_v49 = vcombine.low %v9446_v27, %v9449_v37  ;;  %v11101_v5 = vcombine.high %v9404_v6, %v9443_v18  ;;  %v11102_v24 = vcombine.low %v9454_v7, %v9461_v62 }
 0x3c4   : > { %v3013_v61 = vcombine.low %v2996_v9, %v3004_v8  ;;  %v11103_v3 = vcombine.high %v9454_v7, %v9461_v62  ;;  %v3456_v33 = vrot.slane %v3442_v38, %v8948_v63  ;;  %v3076_v27 = vshrl.u32 %v9338_v52, 16 }
 0x3c5   : > { %v3038_v39 = vrot.slane %v11101_v5, %v8943_v19  ;;  %v3046_v21 = vrot.slane %v11102_v24, %v8943_v19  ;;  %v3077_v37 = vshrl.u32 %v9345_v54, 16  ;;  %v3191_v9 = vpack.i.b16 %v3146_v58, %v3138_v60  ;;  %7564 = vmatmul.mubr.msk.bf16.vlgmr.msra.gmra.mrb[16].mxu0 %vm4205_vm1, %v2031_v42 }
 0x3c6   : > { %v3054_v15 = vrot.slane %v11103_v3, %v8943_v19  ;;  %v9789_v18 = vrot.slane %v3013_v61, %v8948_v63  ;;  %v3194_v5 = vshrl.u32 %v3146_v58, 16  ;;  %v3457_v26 = vcombine.low %v3425_v43, %v3440_v46  ;;  %7575 = vmatprep.mubr.msk.bf16.mxu0 %vm8454_vm0, %v11054_v51 }
 0x3c7   : > { %v3055_v6 = vcombine.low %v3030_v31, %v3038_v39  ;;  %v3078_v24 = vpack.i.b16 %v3077_v37, %v3076_v27  ;;  %v3499_v7 = vrot.slane %v3191_v9, %v8943_v19  ;;  %v3458_v62 = vcombine.high %v3425_v43, %v3440_v46 }
 0x3c8   : > { %v3063_v8 = vcombine.low %v3046_v21, %v3054_v15  ;;  %v9794_v38 = vrot.slane %v3005_v49, %v8948_v63  ;;  %v7302_v42 = vcombine.high %v9730_v1, %v9735_v40  ;;  %v3195_v31 = vpack.i.b16 %v3194_v5, %v3193_v16 }
 0x3c9   : > { %v9797_v52 = vrot.slane %v3055_v6, %v8948_v63  ;;  %v4398_v60 = vsel %vm4205_vm1, %v3078_v24, 0  ;;  %v3492_v43 = vcombine.high %v3191_v9, %v8939_v14  ;;  %v3507_v49 = vcombine.low %v9593_v55, %v3499_v7 }
 0x3ca   : > { %v9800_v54 = vrot.slane %v3063_v8, %v8948_v63  ;;  %v9810_v46 = vcombine.low %v9794_v38, %v9789_v18  ;;  %7574 = vmatpush3.bf16.xpose.msra.mxu0 %v4398_v60  ;;  %v3508_v61 = vcombine.high %v9593_v55, %v3499_v7  ;;  %v9819_v1 = vrot.slane %v3457_v26, %v8948_v63 }
 0x3cb   : > { %v3857_v40 = vcombine.low %v3399_v48, %v3406_v2  ;;  %v7303_v16 = vcombine.high %v3399_v48, %v3406_v2  ;;  %v3891_v39 = vcombine.low %v3449_v0, %v3456_v33  ;;  %7585 = vmatprep.subr.bf16.mxu0 %v11054_v51  ;;  %v9823_v21 = vrot.slane %v3458_v62, %v8948_v63 }
 0x3cc   : > { %v9814_v58 = vcombine.low %v9797_v52, %v9800_v54  ;;  %v7304_v3 = vcombine.high %v3449_v0, %v3456_v33  ;;  %v11104_v27 = vcombine.low %v9559_v13, %v9579_v50  ;;  %v3807_v26 = vcombine.low %v9705_v11, %v9718_v57 }
 0x3cd   : > { %v7301_v48 = vcombine.high %v9705_v11, %v9718_v57  ;;  %v3506_v2 = vrot.slane %v3492_v43, %v8943_v19  ;;  %v3558_v37 = vcombine.high %v3195_v31, %v8939_v14  ;;  %v3515_v33 = vrot.slane %v3507_v49, %v8948_v63 }
 0x3ce   : > { %v3111_v15 = vpack.i.b16 %v9814_v58, %v9810_v46  ;;  %v9831_v55 = vrot.slane %v11104_v27, %v8948_v63  ;;  %v3522_v9 = vrot.slane %v3508_v61, %v8948_v63  ;;  %v3565_v13 = vrot.slane %v3195_v31, %v8943_v19 }
 0x3cf   : > { %v9844_v50 = vrot.slane %v3841_v56, %v8943_v19  ;;  %v9847_v6 = vrot.slane %v7302_v42, %v8943_v19  ;;  %v9850_v8 = vrot.slane %v3857_v40, %v8943_v19  ;;  %v9853_v5 = vrot.slane %v7303_v16, %v8943_v19 }
 0x3d0   : > { %v4351_v0 = vsel %vm4205_vm1, %v3111_v15, 0  ;;  %v9856_v24 = vrot.slane %v3891_v39, %v8943_v19  ;;  %v9859_v7 = vrot.slane %v7304_v3, %v8943_v19  ;;  %v3907_v56 = vcombine.low %v9819_v1, %v9823_v21 }
 0x3d1   : > { %7568 = vmatpush3.bf16.xpose.msra.mxu1 %v4351_v0  ;;  %v9865_v62 = vcombine.low %v9632_v44, %v9831_v55  ;;  %v3523_v42 = vcombine.low %v9615_v22, %v3506_v2  ;;  %v3524_v60 = vcombine.high %v9615_v22, %v3506_v2  ;;  %v11105_v31 = vcombine.low %v9590_v47, %v9609_v17 }
 0x3d2   : > { %7579 = vmatprep.subr.bf16.mxu1 %v11054_v51  ;;  %v11106_v49 = vcombine.low %v9612_v45, %v9619_v30  ;;  %v3572_v40 = vrot.slane %v3558_v37, %v8943_v19  ;;  %v3573_v16 = vcombine.low %v9641_v10, %v3565_v13  ;;  %v3574_v39 = vcombine.high %v9641_v10, %v3565_v13 }
 0x3d3   : > { %v9874_v43 = vrot.slane %v11105_v31, %v8948_v63  ;;  %v3941_v3 = vcombine.low %v3515_v33, %v3522_v9  ;;  %v7306_v22 = vcombine.high %v3515_v33, %v3522_v9  ;;  %v2008_v47 = vshrl.u32 %v9412_v59, 16 }
 0x3d4   : > { %v9880_v61 = vrot.slane %v11106_v49, %v8948_v63  ;;  %v2009_v17 = vshrl.u32 %v9416_v29, 16  ;;  %v3088_v30 = vshrl.u32 %v9499_v36, 16  ;;  %v3089_v45 = vshrl.u32 %v9503_v4, 16 }
 0x3d5   : > { %v3100_v27 = vshrl.u32 %v9710_v23, 16  ;;  %v3101_v2 = vshrl.u32 %v9714_v28, 16  ;;  %v3531_v10 = vrot.slane %v3523_v42, %v8948_v63  ;;  %v3538_v37 = vrot.slane %v3524_v60, %v8948_v63 }
 0x3d6   : > { %v9887_v15 = vcombine.low %v9874_v43, %v9880_v61  ;;  %v2010_v33 = vpack.i.b16 %v2009_v17, %v2008_v47  ;;  %v7305_v59 = vcombine.high %v9819_v1, %v9823_v21  ;;  %v3581_v29 = vrot.slane %v3573_v16, %v8948_v63  ;;  %v11108_v47 = vld [vmem:[#allocation29_spill] sm:$0xff] }
 0x3d7   : > { %v3090_v36 = vpack.i.b16 %v3089_v45, %v3088_v30  ;;  %v3102_v9 = vpack.i.b16 %v3101_v2, %v3100_v27  ;;  %v3588_v4 = vrot.slane %v3574_v39, %v8948_v63  ;;  %v3589_v23 = vcombine.low %v9648_v35, %v3572_v40  ;;  %v11109_v30 = vld [vmem:[#allocation31_spill] sm:$0xff]  ;;  %v11110_v45 = vld [vmem:[#allocation30_spill] sm:$0xff] }
 0x3d8   : > { %v2043_v0 = vpack.i.b16 %v9887_v15, %v9865_v62  ;;  %v3590_v28 = vcombine.high %v9648_v35, %v3572_v40  ;;  %7576 = vmatmul.mubr.msk.bf16.vlgmr.msra.gmra.mrb[20].mxu0 %vm4205_vm1, %v2010_v33  ;;  %v9908_v13 = vrot.slane %v3941_v3, %v8943_v19  ;;  %v9911_v42 = vrot.slane %v7306_v22, %v8943_v19  ;;  %v11107_v22 = vld [vmem:[#allocation28_spill] sm:$0xff] }
 0x3d9   : > { %v4445_v60 = vsel %vm4205_vm1, %v3090_v36, 0  ;;  %v4492_v31 = vsel %vm4205_vm1, %v3102_v9, 0  ;;  %7587 = vmatprep.mubr.msk.bf16.mxu0 %vm8454_vm0, %v11054_v51  ;;  %v3957_v35 = vcombine.low %v3531_v10, %v3538_v37  ;;  %v7307_v49 = vcombine.high %v3531_v10, %v3538_v37  ;;  %v11111_v37 = vld [vmem:[#allocation26_spill] sm:$0xff] }
 0x3da   : > { %7570 = vmatmul.mubr.msk.bf16.vlgmr.msra.gmra.mrb[16].mxu1 %vm4205_vm1, %v2043_v0  ;;  %7586 = vmatpush3.bf16.xpose.msra.mxu0 %v4492_v31  ;;  %v2021_v40 = vshrl.u32 %v9587_v25, 16  ;;  %v2033_v16 = vshrl.u32 %v9726_v32, 16  ;;  %v3112_v39 = vshrl.u32 %v9810_v46, 16  ;;  %v3113_v3 = vshrl.u32 %v9814_v58, 16 }
 0x3db   : > { %7581 = vmatprep.mubr.msk.bf16.mxu1 %vm8454_vm0, %v11054_v51  ;;  %7580 = vmatpush3.bf16.xpose.msra.mxu1 %v4445_v60  ;;  %v2722_v17 = vcombine.high %v11108_v47, %v11107_v22  ;;  %v2772_v27 = vcombine.high %v11110_v45, %v11109_v30  ;;  %v9930_v2 = vrot.slane %v3589_v23, %v8948_v63  ;;  %v2020_v0 = vshrl.u32 %v11111_v37, 16  ;;  %v11112_v60 = vld [vmem:[#allocation39_spill] sm:$0xff]  ;;  %v11113_v23 = vld [vmem:[#allocation38_spill] sm:$0xff]  ;;  %v11114_v22 = vld [vmem:[#allocation36_spill] sm:$0xff] }
 0x3dc   : > { %7591 = vmatprep.subr.bf16.mxu1 %v11054_v51  ;;  %7597 = vmatprep.subr.bf16.mxu0 %v11054_v51  ;;  %v9933_v25 = vrot.slane %v3590_v28, %v8948_v63  ;;  %v3991_v32 = vcombine.low %v3581_v29, %v3588_v4  ;;  %v7308_v10 = vcombine.high %v3581_v29, %v3588_v4  ;;  %v2032_v46 = vshrl.u32 %v9379_v34, 16  ;;  %v11115_v34 = vld [vmem:[#allocation37_spill] sm:$0xff]  ;;  %v11118_v45 = vld [vmem:[#allocation27_spill] sm:$0xff] }
 0x3dd   : > { %v3114_v33 = vpack.i.b16 %v3113_v3, %v3112_v39  ;;  %v3081_v58 = vpack.i.b16 %v2772_v27, %v2722_v17  ;;  %v9938_v36 = vrot.slane %v3957_v35, %v8943_v19  ;;  %v9941_v9 = vrot.slane %v7307_v49, %v8943_v19  ;;  %v11116_v3 = vld [vmem:[#allocation40_spill] sm:$0xff]  ;;  %v11117_v35 = vld [vmem:[#allocation23_spill] sm:$0xff] }
 0x3de   : > { %v9945_v31 = vcombine.high %v11113_v23, %v11112_v60  ;;  %v9949_v28 = vcombine.high %v9697_v12, %v9700_v20  ;;  %v2022_v29 = vpack.i.b16 %v2021_v40, %v2020_v0  ;;  %v2034_v4 = vpack.i.b16 %v2033_v16, %v2032_v46  ;;  %v11119_v12 = vld [vmem:[#allocation25_spill] sm:$0xff]  ;;  %v11120_v20 = vld [vmem:[#allocation24_spill] sm:$0xff]  ;;  %v11122_v46 = vld [vmem:[#allocation22_spill] sm:$0xff] }
 0x3df   : > { %v9953_v39 = vcombine.high %v11115_v34, %v11114_v22  ;;  %v9957_v47 = vcombine.high %v11117_v35, %v11116_v3  ;;  %v9960_v49 = vrot.slane %v3991_v32, %v8943_v19  ;;  %v2045_v30 = vshrl.u32 %v9887_v15, 16  ;;  %v11121_v32 = vld [vmem:[#allocation35_spill] sm:$0xff]  ;;  %v11124_v22 = vld [vmem:[#allocation20_spill] sm:$0xff]  ;;  %v11125_v3 = vld [vmem:[#allocation34_spill] sm:$0xff] }
 0x3e0   : > { %v9965_v37 = vcombine.high %v11118_v45, %v9681_v41  ;;  %v9969_v40 = vcombine.high %v11120_v20, %v11119_v12  ;;  %v4539_v16 = vsel %vm4205_vm1, %v3114_v33, 0  ;;  %v4586_v0 = vsel %vm4205_vm1, %v3081_v58, 0  ;;  %v11126_v20 = vld [vmem:[#allocation32_spill] sm:$0xff] }
 0x3e1   : > { %7588 = vmatmul.mubr.msk.bf16.vlgmr.msra.gmra.mrb[24].mxu0 %vm4205_vm1, %v2034_v4  ;;  %v1704_v60 = vcombine.high %v11122_v46, %v11121_v32  ;;  %v3093_v15 = vpack.i.b16 %v9945_v31, %v9953_v39  ;;  %v9988_v33 = vrot.slane %v7308_v10, %v8943_v19  ;;  %v2044_v58 = vshrl.u32 %v9865_v62, 16  ;;  %v11123_v4 = vld [vmem:[#allocation21_spill] sm:$0xff] }
 0x3e2   : > { %7582 = vmatmul.mubr.msk.bf16.vlgmr.msra.gmra.mrb[20].mxu1 %vm4205_vm1, %v2022_v29  ;;  %7598 = vmatpush3.bf16.xpose.msra.mxu0 %v4586_v0  ;;  %v3105_v41 = vpack.i.b16 %v9949_v28, %v9965_v37  ;;  %v2025_v23 = vpack.i.b16 %v9969_v40, %v9957_v47  ;;  %v9985_v29 = vcombine.high %v9797_v52, %v9800_v54  ;;  %v3083_v10 = vshrl.u32 %v2772_v27, 16 }
 0x3e3   : > { %7592 = vmatpush3.bf16.xpose.msra.mxu1 %v4539_v16  ;;  %7593 = vmatprep.mubr.msk.bf16.mxu1 %vm8454_vm0, %v11054_v51  ;;  %v1654_v34 = vcombine.high %v11124_v22, %v11123_v4  ;;  %v9999_v35 = vcombine.high %v11125_v3, %v9385_v53  ;;  %v4007_v52 = vcombine.low %v9930_v2, %v9933_v25  ;;  %v11127_v53 = vld [vmem:[#allocation33_spill] sm:$0xff]  ;;  %v3082_v0 = vshrl.u32 %v2722_v17, 16  ;;  %v11129_v3 = vld [vmem:[#allocation18_spill] sm:$0xff] }
 0x3e4   : > { %7599 = vmatprep.mubr.msk.bf16.mxu0 %vm8454_vm0, %v11054_v51  ;;  %7603 = vmatprep.subr.bf16.mxu1 %v11054_v51  ;;  %v10009_v62 = vcombine.high %v9794_v38, %v9789_v18  ;;  %v2046_v45 = vpack.i.b16 %v2045_v30, %v2044_v58  ;;  %v10013_v16 = vcombine.high %v11127_v53, %v11126_v20  ;;  %v4633_v32 = vsel %vm4205_vm1, %v3093_v15, 0  ;;  %v11128_v58 = vld [vmem:[#allocation41_spill] sm:$0xff]  ;;  %v11131_v53 = vld [vmem:[#allocation42_spill] sm:$0xff] }
 0x3e5   : > { %7609 = vmatprep.subr.bf16.mxu0 %v11054_v51  ;;  %v2013_v12 = vpack.i.b16 %v1704_v60, %v1654_v34  ;;  %v4680_v46 = vsel %vm4205_vm1, %v3105_v41, 0  ;;  %v10021_v22 = vcombine.high %v9874_v43, %v9880_v61  ;;  %v10027_v38 = vcombine.high %v9632_v44, %v9831_v55  ;;  %v11130_v55 = vld [vmem:[#allocation43_spill] sm:$0xff] }
 0x3e6   : > { %v3117_v4 = vpack.i.b16 %v9985_v29, %v10009_v62  ;;  %v2037_v18 = vpack.i.b16 %v9999_v35, %v10013_v16  ;;  %v2026_v17 = vshrl.u32 %v9957_v47, 16  ;;  %v2027_v27 = vshrl.u32 %v9969_v40, 16 }
 0x3e7   : > { %v3084_v30 = vpack.i.b16 %v3083_v10, %v3082_v0  ;;  %v2014_v15 = vshrl.u32 %v1654_v34, 16  ;;  %v2015_v41 = vshrl.u32 %v1704_v60, 16  ;;  %v3773_v20 = vcombine.low %v11129_v3, %v11128_v58 }
 0x3e8   : > { %v3094_v43 = vshrl.u32 %v9953_v39, 16  ;;  %v3095_v61 = vshrl.u32 %v9945_v31, 16  ;;  %v10037_v44 = vpack.i.b16 %v2027_v27, %v2026_v17  ;;  %v3781_v54 = vcombine.low %v11131_v53, %v11130_v55 }
 0x3e9   : > { %7600 = vmatmul.mubr.msk.bf16.vlgmr.msra.gmra.mrb[28].mxu0 %vm4205_vm1, %v2013_v12  ;;  %v4727_v60 = vsel %vm4205_vm1, %v3117_v4, 0  ;;  %v2049_v34 = vpack.i.b16 %v10021_v22, %v10027_v38  ;;  %v3107_v10 = vshrl.u32 %v9949_v28, 16  ;;  %v3106_v31 = vshrl.u32 %v9965_v37, 16  ;;  %v11133_v37 = vld [vmem:[#allocation44_spill] sm:$0xff] }
 0x3ea   : > { %7594 = vmatmul.mubr.msk.bf16.vlgmr.msra.gmra.mrb[24].mxu1 %vm4205_vm1, %v2046_v45  ;;  %7610 = vmatpush3.bf16.xpose.msra.mxu0 %v4680_v46  ;;  %v3780_v45 = vrot.slane %v3773_v20, %v8948_v63  ;;  %v3788_v39 = vrot.slane %v3781_v54, %v8948_v63  ;;  %v3814_v12 = vrot.slane %v3807_v26, %v8943_v19  ;;  %v4774_v0 = vsel %vm4205_vm1, %v3084_v30, 0 }
 0x3eb   : > { %7604 = vmatpush3.bf16.xpose.msra.mxu1 %v4633_v32  ;;  %7605 = vmatprep.mubr.msk.bf16.mxu1 %vm8454_vm0, %v11054_v51  ;;  %v3822_v28 = vrot.slane %v7301_v48, %v8943_v19  ;;  %v11132_v32 = vld [vmem:[#allocation45_spill] sm:$0xff]  ;;  %v3873_v54 = vcombine.low %v9844_v50, %v9847_v6  ;;  %v3881_v26 = vcombine.low %v9850_v8, %v9853_v5  ;;  %v2039_v1 = vshrl.u32 %v9999_v35, 16 }
 0x3ec   : > { %7611 = vmatprep.mubr.msk.bf16.mxu0 %vm8454_vm0, %v11054_v51  ;;  %7615 = vmatprep.subr.bf16.mxu1 %v11054_v51  ;;  %v3823_v46 = vcombine.low %v11133_v37, %v11132_v32  ;;  %v2016_v4 = vpack.i.b16 %v2015_v41, %v2014_v15  ;;  %v3096_v17 = vpack.i.b16 %v3095_v61, %v3094_v43 }
 0x3ed   : > { %7621 = vmatprep.subr.bf16.mxu0 %v11054_v51  ;;  %v3831_v27 = vcombine.low %v3814_v12, %v3822_v28  ;;  %v3914_v11 = vrot.slane %v3907_v56, %v8943_v19  ;;  %v3108_v57 = vpack.i.b16 %v3107_v10, %v3106_v31  ;;  %v10073_v48 = vcombine.low %v3780_v45, %v3788_v39 }
 0x3ee   : > { %v3888_v30 = vrot.slane %v3881_v26, %v8948_v63  ;;  %v3922_v50 = vrot.slane %v7305_v59, %v8943_v19  ;;  %v3830_v6 = vrot.slane %v3823_v46, %v8948_v63  ;;  %v3880_v5 = vrot.slane %v3873_v54, %v8948_v63 }
 0x3ef   : > { %v3838_v8 = vrot.slane %v3831_v27, %v8948_v63  ;;  %v3923_v15 = vcombine.low %v9856_v24, %v9859_v7  ;;  %v3973_v41 = vcombine.low %v9908_v13, %v9911_v42  ;;  %v3981_v58 = vcombine.low %v9938_v36, %v9941_v9 }
 0x3f0   : > { %v3931_v56 = vcombine.low %v3914_v11, %v3922_v50  ;;  %v4014_v3 = vrot.slane %v4007_v52, %v8943_v19  ;;  %v10098_v24 = vcombine.low %v3880_v5, %v3888_v30  ;;  %v3119_v59 = vshrl.u32 %v9985_v29, 16 }
 0x3f1   : > { %7612 = vmatmul.mubr.msk.bf16.vlgmr.msra.gmra.mrb[32].mxu0 %vm4205_vm1, %v2037_v18  ;;  %v10096_v21 = vcombine.low %v3830_v6, %v3838_v8  ;;  %v3930_v7 = vrot.slane %v3923_v15, %v8948_v63  ;;  %v3988_v42 = vrot.slane %v3981_v58, %v8948_v63  ;;  %v11134_v36 = vcombine.high %v9930_v2, %v9933_v25 }
 0x3f2   : > { %7606 = vmatmul.mubr.msk.bf16.vlgmr.msra.gmra.mrb[28].mxu1 %vm4205_vm1, %v2025_v23  ;;  %7622 = vmatpush3.bf16.xpose.msra.mxu0 %v4774_v0  ;;  %v3938_v13 = vrot.slane %v3931_v56, %v8948_v63  ;;  %v4023_v47 = vcombine.low %v9960_v49, %v9988_v33  ;;  %v4145_v40 = vshrl.u32 %v10073_v48, 16  ;;  %v10116_v29 = vcombine.high %v3780_v45, %v3788_v39 }
 0x3f3   : > { %7616 = vmatpush3.bf16.xpose.msra.mxu1 %v4727_v60  ;;  %v4022_v9 = vrot.slane %v11134_v36, %v8943_v19  ;;  %7617 = vmatprep.mubr.msk.bf16.mxu1 %vm8454_vm0, %v11054_v51  ;;  %v4146_v23 = vshrl.u32 %v10096_v21, 16  ;;  %v4821_v2 = vsel %vm4205_vm1, %v3096_v17, 0  ;;  %v3980_v35 = vrot.slane %v3973_v41, %v8948_v63 }
 0x3f4   : > { %7623 = vmatprep.mubr.msk.bf16.mxu0 %vm8454_vm0, %v11054_v51  ;;  %7627 = vmatprep.subr.bf16.mxu1 %v11054_v51  ;;  %v3939_v25 = vcombine.low %v3930_v7, %v3938_v13  ;;  %v4161_v49 = vshrl.u32 %v10098_v24, 16  ;;  %v10125_v33 = vcombine.high %v3830_v6, %v3838_v8  ;;  %v10127_v20 = vcombine.high %v3880_v5, %v3888_v30 }
 0x3f5   : > { %7633 = vmatprep.subr.bf16.mxu0 %v11054_v51  ;;  %v4031_v52 = vcombine.low %v4014_v3, %v4022_v9  ;;  %v10122_v18 = vpack.i.b16 %v4146_v23, %v4145_v40  ;;  %v10129_v43 = vcombine.low %v3980_v35, %v3988_v42  ;;  %v4030_v61 = vrot.slane %v4023_v47, %v8948_v63 }
 0x3f6   : > { %v4162_v53 = vshrl.u32 %v3939_v25, 16  ;;  %v10135_v10 = vcombine.high %v3930_v7, %v3938_v13  ;;  %v10137_v45 = vcombine.high %v3980_v35, %v3988_v42  ;;  %v4153_v31 = vshrl.u32 %v10116_v29, 16 }
 0x3f7   : > { %v4038_v55 = vrot.slane %v4031_v52, %v8948_v63  ;;  %v4154_v0 = vshrl.u32 %v10125_v33, 16  ;;  %v4868_v32 = vsel %vm4205_vm1, %v3108_v57, 0  ;;  %v4169_v46 = vshrl.u32 %v10127_v20, 16 }
 0x3f8   : > { %v10142_v12 = vpack.i.b16 %v4162_v53, %v4161_v49  ;;  %v4170_v54 = vshrl.u32 %v10135_v10, 16  ;;  %v4177_v26 = vshrl.u32 %v10129_v43, 16  ;;  %v4185_v57 = vshrl.u32 %v10137_v45, 16 }
 0x3f9   : > { %v10140_v39 = vcombine.low %v4030_v61, %v4038_v55  ;;  %v10144_v28 = vcombine.high %v4030_v61, %v4038_v55  ;;  %7624 = vmatmul.mubr.msk.bf16.vlgmr.msra.gmra.mrb[36].mxu0 %vm4205_vm1, %v2016_v4  ;;  %v10161_v27 = vpack.i.b16 %v4154_v0, %v4153_v31  ;;  %v3118_v4 = vshrl.u32 %v10009_v62, 16 }
 0x3fa   : > { %7618 = vmatmul.mubr.msk.bf16.vlgmr.msra.gmra.mrb[32].mxu1 %vm4205_vm1, %v2049_v34  ;;  %7634 = vmatpush3.bf16.xpose.msra.mxu0 %v4868_v32  ;;  %v10168_v11 = vpack.i.b16 %v4170_v54, %v4169_v46  ;;  %v2038_v6 = vshrl.u32 %v10013_v16, 16  ;;  %v4143_v62 = vpack.i.b16 %v10096_v21, %v10073_v48  ;;  %v2051_v16 = vshrl.u32 %v10021_v22, 16 }
 0x3fb   : > { %7628 = vmatpush3.bf16.xpose.msra.mxu1 %v4821_v2  ;;  %v4178_v17 = vshrl.u32 %v10140_v39, 16  ;;  %11135 = vst [vmem:[#allocation28_spill] sm:$0xff] %v10161_v27  ;;  %7629 = vmatprep.mubr.msk.bf16.mxu1 %vm8454_vm0, %v11054_v51  ;;  %v4186_v30 = vshrl.u32 %v10144_v28, 16  ;;  %v3120_v8 = vpack.i.b16 %v3119_v59, %v3118_v4  ;;  %v4159_v41 = vpack.i.b16 %v3939_v25, %v10098_v24 }
 0x3fc   : > { %7635 = vmatprep.mubr.msk.bf16.mxu0 %vm8454_vm0, %v11054_v51  ;;  %11136 = vst [vmem:[#allocation29_spill] sm:$0xff] %v10168_v11  ;;  %7639 = vmatprep.subr.bf16.mxu1 %v11054_v51  ;;  %v2040_v15 = vpack.i.b16 %v2039_v1, %v2038_v6 }
 0x3fd   : > { %7645 = vmatprep.subr.bf16.mxu0 %v11054_v51  ;;  %v10174_v50 = vpack.i.b16 %v4178_v17, %v4177_v26  ;;  %v10177_v5 = vpack.i.b16 %v4186_v30, %v4185_v57  ;;  %v4915_v56 = vsel %vm4205_vm1, %v3120_v8, 0 }
 0x3ff   : > { %11137 = vst [vmem:[#allocation31_spill] sm:$0xff] %v10177_v5 }
 0x401   : > { %7636 = vmatmul.mubr.msk.bf16.vlgmr.msra.gmra.mrb[40].mxu0 %vm4205_vm1, %v2040_v15 }
 0x402   : > { %7630 = vmatmul.mubr.msk.bf16.vlgmr.msra.gmra.mrb[36].mxu1 %vm4205_vm1, %v10037_v44  ;;  %7646 = vmatpush3.bf16.msra.mxu0 %v4143_v62  ;;  %v2050_v44 = vshrl.u32 %v10027_v38, 16 }
 0x403   : > { %7640 = vmatpush3.bf16.xpose.msra.mxu1 %v4915_v56  ;;  %7641 = vmatprep.mubr.msk.bf16.mxu1 %vm8454_vm0, %v11054_v51 }
 0x404   : > { %7651 = vmatprep.subr.bf16.mxu1 %v11054_v51  ;;  %7647 = vmatprep.mubr.msk.bf16.mxu0 %vm8454_vm0, %v11054_v51  ;;  %v2052_v48 = vpack.i.b16 %v2051_v16, %v2050_v44 }
 0x405   : > { %7657 = vmatprep.subr.bf16.mxu0 %v11054_v51 }
 0x40a   : > { %7642 = vmatmul.mubr.msk.bf16.vlgmr.msra.gmra.mrb[40].mxu1 %vm4205_vm1, %v2052_v48 }
 0x40b   : > { %7652 = vmatpush3.bf16.msra.mxu1 %v4159_v41  ;;  %7653 = vmatprep.mubr.msk.bf16.mxu1 %vm8454_vm0, %v11054_v51 }
 0x40c   : > { %7663 = vmatprep.subr.bf16.mxu1 %v11054_v51 }
 0x465   : > { %v10198_v22 = vpop.f32.mrb[8].mxu1 }
 0x466   : > { %v7553_v58 = vpop.f32.mrb[9].mxu1  ;;  %v4959_v3 = vsel %vm4958_vm2, %v10198_v22, -inf }
 0x467   : > { %4960 = vmax.xlane.f32.xlu0 %v4959_v3  ;;  %v10202_v38 = vpop.f32.mrb[10].mxu1 }
 0x468   : > { %v7554_v1 = vpop.f32.mrb[11].mxu1  ;;  %v4962_v21 = vsel %vm4958_vm2, %v10202_v38, -inf }
 0x469   : > { %4963 = vmax.xlane.f32.xlu1 %v4962_v21 }
 0x47e   : > { %v10206_v24 = vpop.f32.mrb[12].mxu1 }
 0x47f   : > { %v7559_v7 = vpop.f32.mrb[13].mxu1  ;;  %v4965_v59 = vsel %vm4958_vm2, %v10206_v24, -inf }
 0x480   : > { %4966 = vmax.xlane.f32.xlu0 %v4965_v59  ;;  %v10210_v13 = vpop.f32.mrb[14].mxu1 }
 0x481   : > { %v7560_v42 = vpop.f32.mrb[15].mxu1  ;;  %v4968_v36 = vsel %vm4958_vm2, %v10210_v13, -inf }
 0x484   : > { %4969 = vmax.xlane.f32.xlu0 %v4968_v36 }
 0x498   : > { %v10214_v9 = vpop.f32.mrb[16].mxu0 }
 0x499   : > { %v7565_v47 = vpop.f32.mrb[17].mxu0  ;;  %v4971_v40 = vsel %vm4958_vm2, %v10214_v9, -inf }
 0x49a   : > { %4972 = vmax.xlane.f32.xlu0 %v4971_v40  ;;  %v10218_v23 = vpop.f32.mrb[18].mxu0 }
 0x49b   : > { %v7566_v2 = vpop.f32.mrb[19].mxu0  ;;  %v4974_v25 = vsel %vm4958_vm2, %v10218_v23, -inf }
 0x49c   : > { %4975 = vmax.xlane.f32.xlu1 %v4974_v25 }
 0x4ab   : > { %v10224_v52 = vpop.f32.mrb[20].mxu0 }
 0x4ac   : > { %v7577_v61 = vpop.f32.mrb[21].mxu0  ;;  %v4983_v54 = vsel %vm4958_vm2, %v10224_v52, -inf }
 0x4ad   : > { %v10222_v35 = vpop.f32.mrb[16].mxu1  ;;  %v10228_v53 = vpop.f32.mrb[22].mxu0 }
 0x4ae   : > { %v7571_v49 = vpop.f32.mrb[17].mxu1  ;;  %v4977_v55 = vsel %vm4958_vm2, %v10222_v35, -inf  ;;  %v7578_v32 = vpop.f32.mrb[23].mxu0  ;;  %v4986_v26 = vsel %vm4958_vm2, %v10228_v53, -inf }
 0x4af   : > { %4978 = vmax.xlane.f32.xlu0 %v4977_v55  ;;  %v10230_v31 = vpop.f32.mrb[18].mxu1 }
 0x4b0   : > { %v7572_v0 = vpop.f32.mrb[19].mxu1  ;;  %v4980_v46 = vsel %vm4958_vm2, %v10230_v31, -inf }
 0x4b1   : > { %4981 = vmax.xlane.f32.xlu1 %v4980_v46 }
 0x4b3   : > { %4984 = vmax.xlane.f32.xlu0 %v4983_v54 }
 0x4b4   : > { %v10238_v17 = vpop.f32.mrb[24].mxu0 }
 0x4b5   : > { %4987 = vmax.xlane.f32.xlu1 %v4986_v26  ;;  %v10240_v4 = vpop.f32.mrb[20].mxu1  ;;  %v7589_v30 = vpop.f32.mrb[25].mxu0  ;;  %v4995_v44 = vsel %vm4958_vm2, %v10238_v17, -inf }
 0x4b6   : > { %v7583_v57 = vpop.f32.mrb[21].mxu1  ;;  %v4989_v6 = vsel %vm4958_vm2, %v10240_v4, -inf  ;;  %v10244_v8 = vpop.f32.mrb[26].mxu0 }
 0x4b7   : > { %4990 = vmax.xlane.f32.xlu0 %v4989_v6  ;;  %v10246_v15 = vpop.f32.mrb[22].mxu1  ;;  %v7590_v56 = vpop.f32.mrb[27].mxu0  ;;  %v4998_v48 = vsel %vm4958_vm2, %v10244_v8, -inf }
 0x4b8   : > { %v7584_v62 = vpop.f32.mrb[23].mxu1  ;;  %v4992_v16 = vsel %vm4958_vm2, %v10246_v15, -inf }
 0x4b9   : > { %4993 = vmax.xlane.f32.xlu1 %v4992_v16 }
 0x4bb   : > { %4996 = vmax.xlane.f32.xlu0 %v4995_v44 }
 0x4bc   : > { %v10254_v41 = vpop.f32.mrb[28].mxu0 }
 0x4bd   : > { %4999 = vmax.xlane.f32.xlu1 %v4998_v48  ;;  %v10256_v58 = vpop.f32.mrb[24].mxu1  ;;  %v7601_v1 = vpop.f32.mrb[29].mxu0  ;;  %v5007_v40 = vsel %vm4958_vm2, %v10254_v41, -inf }
 0x4be   : > { %v7595_v3 = vpop.f32.mrb[25].mxu1  ;;  %v5001_v21 = vsel %vm4958_vm2, %v10256_v58, -inf  ;;  %v10260_v7 = vpop.f32.mrb[30].mxu0 }
 0x4bf   : > { %5002 = vmax.xlane.f32.xlu0 %v5001_v21  ;;  %v10262_v59 = vpop.f32.mrb[26].mxu1  ;;  %v7602_v36 = vpop.f32.mrb[31].mxu0  ;;  %v5010_v2 = vsel %vm4958_vm2, %v10260_v7, -inf }
 0x4c0   : > { %v7596_v42 = vpop.f32.mrb[27].mxu1  ;;  %v5004_v47 = vsel %vm4958_vm2, %v10262_v59, -inf }
 0x4c1   : > { %5005 = vmax.xlane.f32.xlu1 %v5004_v47 }
 0x4c3   : > { %5008 = vmax.xlane.f32.xlu0 %v5007_v40 }
 0x4c4   : > { %v10270_v25 = vpop.f32.mrb[32].mxu0 }
 0x4c5   : > { %5011 = vmax.xlane.f32.xlu1 %v5010_v2  ;;  %v10272_v49 = vpop.f32.mrb[28].mxu1  ;;  %v7613_v55 = vpop.f32.mrb[33].mxu0  ;;  %v5019_v30 = vsel %vm4958_vm2, %v10270_v25, -inf }
 0x4c6   : > { %v7607_v61 = vpop.f32.mrb[29].mxu1  ;;  %v5013_v0 = vsel %vm4958_vm2, %v10272_v49, -inf  ;;  %v10276_v32 = vpop.f32.mrb[34].mxu0 }
 0x4c7   : > { %5014 = vmax.xlane.f32.xlu0 %v5013_v0  ;;  %v10278_v46 = vpop.f32.mrb[30].mxu1  ;;  %v7614_v26 = vpop.f32.mrb[35].mxu0  ;;  %v5022_v6 = vsel %vm4958_vm2, %v10276_v32, -inf }
 0x4c8   : > { %v7608_v54 = vpop.f32.mrb[31].mxu1  ;;  %v5016_v57 = vsel %vm4958_vm2, %v10278_v46, -inf }
 0x4c9   : > { %5017 = vmax.xlane.f32.xlu1 %v5016_v57 }
 0x4cb   : > { %5020 = vmax.xlane.f32.xlu0 %v5019_v30 }
 0x4cc   : > { %v10286_v62 = vpop.f32.mrb[36].mxu0 }
 0x4cd   : > { %5023 = vmax.xlane.f32.xlu1 %v5022_v6  ;;  %v10288_v56 = vpop.f32.mrb[32].mxu1  ;;  %v7625_v44 = vpop.f32.mrb[37].mxu0  ;;  %v5031_v47 = vsel %vm4958_vm2, %v10286_v62, -inf }
 0x4ce   : > { %v7619_v16 = vpop.f32.mrb[33].mxu1  ;;  %v5025_v48 = vsel %vm4958_vm2, %v10288_v56, -inf  ;;  %v10292_v3 = vpop.f32.mrb[38].mxu0 }
 0x4cf   : > { %5026 = vmax.xlane.f32.xlu0 %v5025_v48  ;;  %v10294_v1 = vpop.f32.mrb[34].mxu1  ;;  %v7626_v42 = vpop.f32.mrb[39].mxu0  ;;  %v5034_v40 = vsel %vm4958_vm2, %v10292_v3, -inf }
 0x4d0   : > { %v7620_v21 = vpop.f32.mrb[35].mxu1  ;;  %v5028_v36 = vsel %vm4958_vm2, %v10294_v1, -inf }
 0x4d1   : > { %5029 = vmax.xlane.f32.xlu1 %v5028_v36 }
 0x4d3   : > { %5032 = vmax.xlane.f32.xlu0 %v5031_v47 }
 0x4d4   : > { %v10302_v2 = vpop.f32.mrb[40].mxu0 }
 0x4d5   : > { %5035 = vmax.xlane.f32.xlu1 %v5034_v40  ;;  %v10304_v61 = vpop.f32.mrb[36].mxu1  ;;  %v7637_v0 = vpop.f32.mrb[41].mxu0  ;;  %v5043_v44 = vsel %vm4958_vm2, %v10302_v2, -inf }
 0x4d6   : > { %v7631_v55 = vpop.f32.mrb[37].mxu1  ;;  %v5037_v54 = vsel %vm4958_vm2, %v10304_v61, -inf  ;;  %v10308_v26 = vpop.f32.mrb[42].mxu0  ;;  %v11138_v0 = vld [vmem:[#allocation19_spill] sm:$0xff] }
 0x4d7   : > { %5038 = vmax.xlane.f32.xlu0 %v5037_v54  ;;  %v10310_v57 = vpop.f32.mrb[38].mxu1  ;;  %v7638_v6 = vpop.f32.mrb[43].mxu0  ;;  %v5046_v48 = vsel %vm4958_vm2, %v10308_v26, -inf }
 0x4d8   : > { %v7632_v30 = vpop.f32.mrb[39].mxu1  ;;  %v5040_v16 = vsel %vm4958_vm2, %v10310_v57, -inf  ;;  %v10328_v54 = vpop.permute.xlu1 %3131 }
 0x4d9   : > { %5041 = vmax.xlane.f32.xlu1 %v5040_v16 }
 0x4db   : > { %5044 = vmax.xlane.f32.xlu0 %v5043_v44 }
 0x4dd   : > { %5047 = vmax.xlane.f32.xlu1 %v5046_v48  ;;  %v10318_v21 = vpop.f32.mrb[40].mxu1 }
 0x4de   : > { %v7643_v42 = vpop.f32.mrb[41].mxu1  ;;  %v5049_v36 = vsel %vm4958_vm2, %v10318_v21, -inf }
 0x4df   : > { %5050 = vmax.xlane.f32.xlu0 %v5049_v36  ;;  %v10322_v47 = vpop.f32.mrb[42].mxu1 }
 0x4e0   : > { %v7644_v40 = vpop.f32.mrb[43].mxu1  ;;  %v5052_v55 = vsel %vm4958_vm2, %v10322_v47, -inf }
 0x4e1   : > { %5053 = vmax.xlane.f32.xlu1 %v5052_v55 }
 0x4f4   : > { %v4961_v30 = vpop.xlane.xlu0 %4960 }
 0x4f5   : > { %3139 = vrot.lane.b32.xlu0 %v11138_v0, %s8450_s15  ;;  %v5055_v44 = vsub.f32 %v10198_v22, %v4961_v30  ;;  %s11148_s15 = sld [smem:[#allocation49_spill]] }
 0x4f6   : > { %v4964_v6 = vpop.xlane.xlu1 %4963 }
 0x4f7   : > { %v5056_v16 = vsub.f32 %v10202_v38, %v4964_v6  ;;  %v5087_v42 = vmul.f32 1.442695, %v5055_v44 }
 0x4f9   : > { %v5089_v48 = vmul.f32 1.442695, %v5056_v16 }
 0x4fb   : > { %8036 = vpow2.f32 %v5089_v48 }
 0x4fc   : > { %8038 = vpow2.f32 %v5087_v42 }
 0x505   : > { %v10332_v36 = vpop.eup %8036 }
 0x506   : > { %v5154_v40 = vsel %vm4958_vm2, %v10332_v36, 0.0  ;;  %v10336_v55 = vpop.eup %8038 }
 0x507   : > { %5155 = vadd.xlane.f32.xlu1 %v5154_v40  ;;  %v5151_v37 = vsel %vm4958_vm2, %v10336_v55, 0.0 }
 0x50d   : > { %v4967_v34 = vpop.xlane.xlu0 %4966 }
 0x50e   : > { %v5057_v38 = vsub.f32 %v10206_v24, %v4967_v34 }
 0x510   : > { %v5091_v6 = vmul.f32 1.442695, %v5057_v38 }
 0x511   : > { %v4970_v22 = vpop.xlane.xlu0 %4969 }
 0x512   : > { %8040 = vpow2.f32 %v5091_v6  ;;  %v5058_v30 = vsub.f32 %v10210_v13, %v4970_v22 }
 0x514   : > { %5152 = vadd.xlane.f32.xlu0 %v5151_v37  ;;  %v5093_v16 = vmul.f32 1.442695, %v5058_v30 }
 0x516   : > { %8042 = vpow2.f32 %v5093_v16 }
 0x51c   : > { %v10342_v44 = vpop.eup %8040 }
 0x51d   : > { %v5157_v48 = vsel %vm4958_vm2, %v10342_v44, 0.0 }
 0x51e   : > { %5158 = vadd.xlane.f32.xlu0 %v5157_v48 }
 0x520   : > { %v10346_v42 = vpop.eup %8042 }
 0x521   : > { %v5160_v40 = vsel %vm4958_vm2, %v10346_v42, 0.0 }
 0x522   : > { %5161 = vadd.xlane.f32.xlu1 %v5160_v40 }
 0x527   : > { %v4973_v34 = vpop.xlane.xlu0 %4972 }
 0x528   : > { %v5059_v37 = vsub.f32 %v10214_v9, %v4973_v34 }
 0x529   : > { %v4976_v24 = vpop.xlane.xlu1 %4975 }
 0x52a   : > { %v5095_v38 = vmul.f32 1.442695, %v5059_v37  ;;  %v5060_v13 = vsub.f32 %v10218_v23, %v4976_v24 }
 0x52c   : > { %8044 = vpow2.f32 %v5095_v38  ;;  %v5097_v6 = vmul.f32 1.442695, %v5060_v13 }
 0x52e   : > { %8046 = vpow2.f32 %v5097_v6 }
 0x536   : > { %v10352_v22 = vpop.eup %8044 }
 0x537   : > { %v5163_v16 = vsel %vm4958_vm2, %v10352_v22, 0.0 }
 0x538   : > { %v10356_v48 = vpop.eup %8046  ;;  %5164 = vadd.xlane.f32.xlu0 %v5163_v16 }
 0x539   : > { %v5166_v9 = vsel %vm4958_vm2, %v10356_v48, 0.0 }
 0x53a   : > { %5167 = vadd.xlane.f32.xlu1 %v5166_v9 }
 0x53c   : > { %v4979_v30 = vpop.xlane.xlu0 %4978 }
 0x53d   : > { %v5061_v40 = vsub.f32 %v10222_v35, %v4979_v30 }
 0x53e   : > { %v4982_v60 = vpop.xlane.xlu1 %4981 }
 0x53f   : > { %v5099_v34 = vmul.f32 1.442695, %v5061_v40  ;;  %v5062_v23 = vsub.f32 %v10230_v31, %v4982_v60 }
 0x540   : > { %v4985_v37 = vpop.xlane.xlu0 %4984 }
 0x541   : > { %8048 = vpow2.f32 %v5099_v34  ;;  %v5063_v24 = vsub.f32 %v10224_v52, %v4985_v37  ;;  %v5101_v13 = vmul.f32 1.442695, %v5062_v23 }
 0x542   : > { %v4988_v38 = vpop.xlane.xlu1 %4987 }
 0x543   : > { %v5103_v6 = vmul.f32 1.442695, %v5063_v24 }
 0x544   : > { %v4991_v5 = vpop.xlane.xlu0 %4990 }
 0x545   : > { %8050 = vpow2.f32 %v5103_v6  ;;  %v5065_v35 = vsub.f32 %v10240_v4, %v4991_v5 }
 0x546   : > { %8052 = vpow2.f32 %v5101_v13  ;;  %v4994_v30 = vpop.xlane.xlu1 %4993 }
 0x547   : > { %v5107_v16 = vmul.f32 1.442695, %v5065_v35  ;;  %v5066_v11 = vsub.f32 %v10246_v15, %v4994_v30 }
 0x548   : > { %v4997_v40 = vpop.xlane.xlu0 %4996 }
 0x549   : > { %8054 = vpow2.f32 %v5107_v16  ;;  %v5109_v60 = vmul.f32 1.442695, %v5066_v11  ;;  %v5067_v31 = vsub.f32 %v10238_v17, %v4997_v40 }
 0x54a   : > { %v5000_v9 = vpop.xlane.xlu1 %4999 }
 0x54b   : > { %v10365_v27 = vpop.eup %8048  ;;  %8056 = vpow2.f32 %v5109_v60  ;;  %v5111_v5 = vmul.f32 1.442695, %v5067_v31  ;;  %3147 = vrot.lane.b32.xlu1 %v11138_v0, %s8452_s7 }
 0x54c   : > { %v5169_v52 = vsel %vm4958_vm2, %v10365_v27, 0.0  ;;  %v5003_v34 = vpop.xlane.xlu0 %5002 }
 0x54d   : > { %5170 = vadd.xlane.f32.xlu0 %v5169_v52  ;;  %v5069_v4 = vsub.f32 %v10256_v58, %v5003_v34  ;;  %8058 = vpow2.f32 %v5111_v5 }
 0x54e   : > { %v5006_v24 = vpop.xlane.xlu1 %5005 }
 0x54f   : > { %v10370_v23 = vpop.eup %8050  ;;  %v5115_v37 = vmul.f32 1.442695, %v5069_v4 }
 0x550   : > { %v5175_v15 = vsel %vm4958_vm2, %v10370_v23, 0.0  ;;  %v10377_v11 = vpop.eup %8052  ;;  %v5009_v17 = vpop.xlane.xlu0 %5008 }
 0x551   : > { %5176 = vadd.xlane.f32.xlu0 %v5175_v15  ;;  %v5071_v13 = vsub.f32 %v10254_v41, %v5009_v17  ;;  %v5172_v6 = vsel %vm4958_vm2, %v10377_v11, 0.0  ;;  %8060 = vpow2.f32 %v5115_v37 }
 0x552   : > { %v5012_v31 = vpop.xlane.xlu1 %5011 }
 0x553   : > { %v10382_v35 = vpop.eup %8054  ;;  %v5119_v30 = vmul.f32 1.442695, %v5071_v13 }
 0x554   : > { %v5015_v58 = vpop.xlane.xlu0 %5014  ;;  %v5181_v40 = vsel %vm4958_vm2, %v10382_v35, 0.0 }
 0x555   : > { %5173 = vadd.xlane.f32.xlu0 %v5172_v6  ;;  %v5073_v16 = vsub.f32 %v10272_v49, %v5015_v58  ;;  %v10387_v60 = vpop.eup %8056  ;;  %8062 = vpow2.f32 %v5119_v30  ;;  %v5064_v49 = vsub.f32 %v10228_v53, %v4988_v38 }
 0x556   : > { %v5184_v5 = vsel %vm4958_vm2, %v10387_v60, 0.0  ;;  %v5018_v17 = vpop.xlane.xlu1 %5017 }
 0x557   : > { %v5123_v41 = vmul.f32 1.442695, %v5073_v16  ;;  %v10392_v4 = vpop.eup %8058  ;;  %v5105_v30 = vmul.f32 1.442695, %v5064_v49  ;;  %v5068_v16 = vsub.f32 %v10244_v8, %v5000_v9 }
 0x558   : > { %v5021_v52 = vpop.xlane.xlu0 %5020  ;;  %v5187_v6 = vsel %vm4958_vm2, %v10392_v4, 0.0 }
 0x559   : > { %5182 = vadd.xlane.f32.xlu0 %v5181_v40  ;;  %v5075_v34 = vsub.f32 %v10270_v25, %v5021_v52  ;;  %8064 = vpow2.f32 %v5123_v41 }
 0x55b   : > { %v5127_v37 = vmul.f32 1.442695, %v5075_v34  ;;  %v10398_v58 = vpop.eup %8060  ;;  %v5113_v34 = vmul.f32 1.442695, %v5068_v16 }
 0x55c   : > { %v5027_v15 = vpop.xlane.xlu0 %5026  ;;  %v5193_v53 = vsel %vm4958_vm2, %v10398_v58, 0.0 }
 0x55d   : > { %5185 = vadd.xlane.f32.xlu0 %v5184_v5  ;;  %v5077_v13 = vsub.f32 %v10288_v56, %v5027_v15  ;;  %8066 = vpow2.f32 %v5127_v37  ;;  %v5024_v56 = vpop.xlane.xlu1 %5023  ;;  %v5070_v5 = vsub.f32 %v10262_v59, %v5006_v24 }
 0x55e   : > { %8068 = vpow2.f32 %v5105_v30 }
 0x55f   : > { %v5131_v40 = vmul.f32 1.442695, %v5077_v13  ;;  %v10404_v38 = vpop.eup %8062  ;;  %v5117_v37 = vmul.f32 1.442695, %v5070_v5  ;;  %v5072_v13 = vsub.f32 %v10260_v7, %v5012_v31  ;;  %v5076_v5 = vsub.f32 %v10276_v32, %v5024_v56 }
 0x560   : > { %v5033_v25 = vpop.xlane.xlu0 %5032  ;;  %v5199_v9 = vsel %vm4958_vm2, %v10404_v38, 0.0 }
 0x561   : > { %5188 = vadd.xlane.f32.xlu0 %v5187_v6  ;;  %v5079_v52 = vsub.f32 %v10286_v62, %v5033_v25  ;;  %8070 = vpow2.f32 %v5131_v40  ;;  %v5030_v6 = vpop.xlane.xlu1 %5029  ;;  %v5121_v16 = vmul.f32 1.442695, %v5072_v13  ;;  %v5074_v40 = vsub.f32 %v10278_v46, %v5018_v17 }
 0x562   : > { %8072 = vpow2.f32 %v5113_v34 }
 0x563   : > { %v5135_v15 = vmul.f32 1.442695, %v5079_v52  ;;  %v10410_v62 = vpop.eup %8064  ;;  %v5125_v34 = vmul.f32 1.442695, %v5074_v40 }
 0x564   : > { %v5039_v41 = vpop.xlane.xlu0 %5038  ;;  %v5205_v24 = vsel %vm4958_vm2, %v10410_v62, 0.0 }
 0x565   : > { %5194 = vadd.xlane.f32.xlu0 %v5193_v53  ;;  %v5081_v8 = vsub.f32 %v10304_v61, %v5039_v41  ;;  %8074 = vpow2.f32 %v5135_v15  ;;  %v5036_v41 = vpop.xlane.xlu1 %5035 }
 0x566   : > { %8076 = vpow2.f32 %v5117_v37 }
 0x567   : > { %v5139_v25 = vmul.f32 1.442695, %v5081_v8  ;;  %v10416_v61 = vpop.eup %8066 }
 0x568   : > { %v5045_v49 = vpop.xlane.xlu0 %5044  ;;  %v10420_v31 = vpop.eup %8068 }
 0x569   : > { %5200 = vadd.xlane.f32.xlu0 %v5199_v9  ;;  %v5083_v59 = vsub.f32 %v10302_v2, %v5045_v49  ;;  %8078 = vpow2.f32 %v5139_v25  ;;  %v5211_v2 = vsel %vm4958_vm2, %v10416_v61, 0.0  ;;  %v5178_v46 = vsel %vm4958_vm2, %v10420_v31, 0.0  ;;  %v5042_v37 = vpop.xlane.xlu1 %5041 }
 0x56a   : > { %8080 = vpow2.f32 %v5121_v16  ;;  %v5129_v9 = vmul.f32 1.442695, %v5076_v5  ;;  %v5078_v49 = vsub.f32 %v10294_v1, %v5030_v6 }
 0x56b   : > { %v5143_v52 = vmul.f32 1.442695, %v5083_v59  ;;  %v10424_v53 = vpop.eup %8070 }
 0x56c   : > { %v5051_v30 = vpop.xlane.xlu0 %5050  ;;  %v10429_v17 = vpop.eup %8072  ;;  %v5133_v59 = vmul.f32 1.442695, %v5078_v49 }
 0x56d   : > { %5206 = vadd.xlane.f32.xlu0 %v5205_v24  ;;  %v5085_v7 = vsub.f32 %v10318_v21, %v5051_v30  ;;  %8082 = vpow2.f32 %v5143_v52  ;;  %v5217_v21 = vsel %vm4958_vm2, %v10424_v53, 0.0  ;;  %v5190_v32 = vsel %vm4958_vm2, %v10429_v17, 0.0  ;;  %v5048_v40 = vpop.xlane.xlu1 %5047 }
 0x56e   : > { %8084 = vpow2.f32 %v5125_v34  ;;  %v5080_v24 = vsub.f32 %v10292_v3, %v5036_v41 }
 0x56f   : > { %v5147_v15 = vmul.f32 1.442695, %v5085_v7  ;;  %5179 = vadd.xlane.f32.xlu1 %v5178_v46  ;;  %v10433_v8 = vpop.eup %8074  ;;  %v5082_v7 = vsub.f32 %v10310_v57, %v5042_v37 }
 0x570   : > { %v10438_v56 = vpop.eup %8076  ;;  %v5223_v13 = vsel %vm4958_vm2, %v10433_v8, 0.0  ;;  %v5137_v52 = vmul.f32 1.442695, %v5080_v24 }
 0x571   : > { %5212 = vadd.xlane.f32.xlu0 %v5211_v2  ;;  %8086 = vpow2.f32 %v5147_v15  ;;  %v5196_v1 = vsel %vm4958_vm2, %v10438_v56, 0.0  ;;  %v5141_v5 = vmul.f32 1.442695, %v5082_v7  ;;  %v5084_v15 = vsub.f32 %v10308_v26, %v5048_v40  ;;  %v5054_v46 = vpop.xlane.xlu1 %5053 }
 0x572   : > { %8088 = vpow2.f32 %v5129_v9  ;;  %v5086_v37 = vsub.f32 %v10322_v47, %v5054_v46 }
 0x573   : > { %5191 = vadd.xlane.f32.xlu1 %v5190_v32  ;;  %v10442_v25 = vpop.eup %8078  ;;  %8090 = vpow2.f32 %v5133_v59  ;;  %v5145_v49 = vmul.f32 1.442695, %v5084_v15 }
 0x574   : > { %v10447_v6 = vpop.eup %8080  ;;  %v5229_v30 = vsel %vm4958_vm2, %v10442_v25, 0.0  ;;  %8092 = vpow2.f32 %v5137_v52  ;;  %v5149_v26 = vmul.f32 1.442695, %v5086_v37 }
 0x575   : > { %5218 = vadd.xlane.f32.xlu0 %v5217_v21  ;;  %v5202_v3 = vsel %vm4958_vm2, %v10447_v6, 0.0  ;;  %8094 = vpow2.f32 %v5141_v5  ;;  %v3140_v5 = vpop.permute.xlu0 %3139 }
 0x576   : > { %8096 = vpow2.f32 %v5145_v49 }
 0x577   : > { %5197 = vadd.xlane.f32.xlu1 %v5196_v1  ;;  %v10451_v16 = vpop.eup %8082  ;;  %8098 = vpow2.f32 %v5149_v26  ;;  %v4175_v26 = vpack.i.b16 %v10140_v39, %v10129_v43  ;;  %v3202_v43 = vshrl.u32 %v10328_v54, 16 }
 0x578   : > { %v10456_v2 = vpop.eup %8084  ;;  %v5235_v41 = vsel %vm4958_vm2, %v10451_v16, 0.0 }
 0x579   : > { %5224 = vadd.xlane.f32.xlu0 %v5223_v13  ;;  %v5208_v57 = vsel %vm4958_vm2, %v10456_v2, 0.0 }
 0x57b   : > { %5203 = vadd.xlane.f32.xlu1 %v5202_v3  ;;  %v10460_v34 = vpop.eup %8086 }
 0x57c   : > { %v10465_v21 = vpop.eup %8088  ;;  %v5241_v9 = vsel %vm4958_vm2, %v10460_v34, 0.0 }
 0x57d   : > { %5230 = vadd.xlane.f32.xlu0 %v5229_v30  ;;  %v5214_v32 = vsel %vm4958_vm2, %v10465_v21, 0.0  ;;  %v10472_v13 = vpop.eup %8090 }
 0x57e   : > { %v5220_v59 = vsel %vm4958_vm2, %v10472_v13, 0.0  ;;  %v10476_v24 = vpop.eup %8092 }
 0x57f   : > { %5209 = vadd.xlane.f32.xlu1 %v5208_v57  ;;  %v5226_v1 = vsel %vm4958_vm2, %v10476_v24, 0.0  ;;  %v10480_v30 = vpop.eup %8094 }
 0x580   : > { %v5232_v47 = vsel %vm4958_vm2, %v10480_v30, 0.0  ;;  %v10484_v40 = vpop.eup %8096 }
 0x581   : > { %5236 = vadd.xlane.f32.xlu0 %v5235_v41  ;;  %v5238_v52 = vsel %vm4958_vm2, %v10484_v40, 0.0  ;;  %v10488_v7 = vpop.eup %8098 }
 0x582   : > { %v5244_v3 = vsel %vm4958_vm2, %v10488_v7, 0.0 }
 0x583   : > { %5215 = vadd.xlane.f32.xlu1 %v5214_v32 }
 0x585   : > { %5242 = vadd.xlane.f32.xlu0 %v5241_v9 }
 0x587   : > { %5221 = vadd.xlane.f32.xlu1 %v5220_v59 }
 0x58b   : > { %5227 = vadd.xlane.f32.xlu1 %v5226_v1 }
 0x58f   : > { %5233 = vadd.xlane.f32.xlu1 %v5232_v47 }
 0x593   : > { %5239 = vadd.xlane.f32.xlu1 %v5238_v52 }
 0x594   : > { %v5156_v41 = vpop.xlane.xlu1 %5155 }
 0x595   : > { %8100 = vrcp.f32 %v5156_v41  ;;  %v3199_v41 = vpack.i.b16 %v10328_v54, %v11138_v0 }
 0x597   : > { %5245 = vadd.xlane.f32.xlu1 %v5244_v3  ;;  %v3201_v3 = vshrl.u32 %v11138_v0, 16 }
 0x59f   : > { %v8101_v46 = vpop.eup %8100 }
 0x5a0   : > { %v5280_v57 = vmul.f32 %v8101_v46, %v10332_v36 }
 0x5a1   : > { %v5153_v15 = vpop.xlane.xlu0 %5152 }
 0x5a2   : > { %8102 = vrcp.f32 %v5153_v15 }
 0x5ab   : > { %v5159_v37 = vpop.xlane.xlu0 %5158 }
 0x5ac   : > { %v8103_v9 = vpop.eup %8102  ;;  %8104 = vrcp.f32 %v5159_v37 }
 0x5ad   : > { %v5279_v49 = vmul.f32 %v8103_v9, %v10336_v55 }
 0x5af   : > { %v5311_v32 = vpack.c.bf16 %v5280_v57, %v5279_v49  ;;  %v5162_v59 = vpop.xlane.xlu1 %5161  ;;  %v3209_v57 = vshrl.u32 %v3140_v5, 16 }
 0x5b0   : > { %8106 = vrcp.f32 %v5162_v59 }
 0x5b1   : > { %7648 = vmatmul.mubr.msk.bf16.vlgmr.msra.gmra.mrb[44].mxu0 %vm4958_vm2, %v5311_v32  ;;  %v3616_v32 = vrot.slane %v3199_v41, %v8943_v19 }
 0x5b2   : > { %7658 = vmatpush3.bf16.msra.mxu0 %v4175_v26  ;;  %7659 = vmatprep.mubr.msk.bf16.mxu0 %vm8454_vm0, %v11054_v51 }
 0x5b3   : > { %7669 = vmatprep.subr.bf16.mxu0 %v11054_v51 }
 0x5b6   : > { %v8105_v36 = vpop.eup %8104 }
 0x5b7   : > { %v5281_v55 = vmul.f32 %v8105_v36, %v10342_v44  ;;  %v3203_v44 = vpack.i.b16 %v3202_v43, %v3201_v3 }
 0x5b9   : > { %v3675_v37 = vcombine.high %v3203_v44, %v8939_v14 }
 0x5ba   : > { %v8107_v1 = vpop.eup %8106 }
 0x5bb   : > { %v5282_v47 = vmul.f32 %v8107_v1, %v10346_v42  ;;  %v3609_v42 = vcombine.high %v3199_v41, %v8939_v14  ;;  %v3689_v43 = vrot.slane %v3675_v37, %v8943_v19 }
 0x5bd   : > { %v5312_v52 = vpack.c.bf16 %v5282_v47, %v5281_v55  ;;  %v3623_v0 = vrot.slane %v3609_v42, %v8943_v19 }
 0x5bf   : > { %7654 = vmatmul.mubr.msk.bf16.vlgmr.msra.gmra.mrb[44].mxu1 %vm4958_vm2, %v5312_v52 }
 0x5c0   : > { %7665 = vmatprep.mubr.msk.bf16.mxu1 %vm8454_vm0, %v11054_v51 }
 0x5c5   : > { %v5165_v39 = vpop.xlane.xlu0 %5164 }
 0x5c6   : > { %8108 = vrcp.f32 %v5165_v39 }
 0x5c7   : > { %v5168_v15 = vpop.xlane.xlu1 %5167 }
 0x5c8   : > { %8110 = vrcp.f32 %v5168_v15 }
 0x5cb   : > { %v3148_v46 = vpop.permute.xlu1 %3147 }
 0x5cc   : > { %v3207_v9 = vpack.i.b16 %v3148_v46, %v3140_v5  ;;  %v3210_v49 = vshrl.u32 %v3148_v46, 16  ;;  %v3682_v5 = vrot.slane %v3203_v44, %v8943_v19 }
 0x5ce   : > { %v3211_v26 = vpack.i.b16 %v3210_v49, %v3209_v57  ;;  %v3624_v59 = vcombine.high %v3207_v9, %v8939_v14  ;;  %v3631_v36 = vrot.slane %v3207_v9, %v8943_v19 }
 0x5d0   : > { %v8109_v54 = vpop.eup %8108  ;;  %v3638_v1 = vrot.slane %v3624_v59, %v8943_v19  ;;  %v3639_v55 = vcombine.low %v3616_v32, %v3631_v36  ;;  %v3640_v47 = vcombine.high %v3616_v32, %v3631_v36  ;;  %v3690_v52 = vcombine.high %v3211_v26, %v8939_v14 }
 0x5d1   : > { %v5283_v39 = vmul.f32 %v8109_v54, %v10352_v22  ;;  %v3697_v3 = vrot.slane %v3211_v26, %v8943_v19 }
 0x5d2   : > { %v8111_v41 = vpop.eup %8110  ;;  %v3647_v15 = vrot.slane %v3639_v55, %v8948_v63  ;;  %v3654_v42 = vrot.slane %v3640_v47, %v8948_v63  ;;  %v3655_v46 = vcombine.low %v3623_v0, %v3638_v1  ;;  %v3656_v57 = vcombine.high %v3623_v0, %v3638_v1 }
 0x5d3   : > { %v5284_v9 = vmul.f32 %v8111_v41, %v10356_v48  ;;  %v3704_v49 = vrot.slane %v3690_v52, %v8943_v19  ;;  %v3705_v14 = vcombine.low %v3682_v5, %v3697_v3  ;;  %v3706_v32 = vcombine.high %v3682_v5, %v3697_v3 }
 0x5d4   : > { %v3663_v44 = vrot.slane %v3655_v46, %v8948_v63  ;;  %v3670_v37 = vrot.slane %v3656_v57, %v8948_v63  ;;  %v4041_v22 = vcombine.low %v3647_v15, %v3654_v42  ;;  %v7310_v59 = vcombine.high %v3647_v15, %v3654_v42 }
 0x5d5   : > { %v3713_v26 = vrot.slane %v3705_v14, %v8948_v63  ;;  %v3720_v36 = vrot.slane %v3706_v32, %v8948_v63  ;;  %v3721_v54 = vcombine.low %v3689_v43, %v3704_v49  ;;  %v3722_v55 = vcombine.high %v3689_v43, %v3704_v49 }
 0x5d6   : > { %v4048_v0 = vrot.slane %v4041_v22, %v8943_v19  ;;  %v4056_v48 = vrot.slane %v7310_v59, %v8943_v19  ;;  %v4057_v1 = vcombine.low %v3663_v44, %v3670_v37  ;;  %v7311_v52 = vcombine.high %v3663_v44, %v3670_v37 }
 0x5d7   : > { %v3729_v5 = vrot.slane %v3721_v54, %v8948_v63  ;;  %v3736_v3 = vrot.slane %v3722_v55, %v8948_v63  ;;  %v4091_v41 = vcombine.low %v3713_v26, %v3720_v36  ;;  %v7312_v46 = vcombine.high %v3713_v26, %v3720_v36 }
 0x5d8   : > { %v4064_v15 = vrot.slane %v4057_v1, %v8943_v19  ;;  %v4072_v42 = vrot.slane %v7311_v52, %v8943_v19  ;;  %v5313_v57 = vpack.c.bf16 %v5284_v9, %v5283_v39  ;;  %v4073_v44 = vcombine.low %v4048_v0, %v4056_v48 }
 0x5d9   : > { %v4098_v43 = vrot.slane %v4091_v41, %v8943_v19  ;;  %v4106_v49 = vrot.slane %v7312_v46, %v8943_v19  ;;  %v4107_v14 = vcombine.low %v3729_v5, %v3736_v3  ;;  %v7313_v32 = vcombine.high %v3729_v5, %v3736_v3 }
 0x5da   : > { %v5171_v47 = vpop.xlane.xlu0 %5170  ;;  %7660 = vmatmul.mubr.msk.bf16.vlgmr.msra.gmra.mrb[48].mxu0 %vm4958_vm2, %v5313_v57  ;;  %v4081_v37 = vcombine.low %v4064_v15, %v4072_v42  ;;  %v10548_v55 = vrot.slane %v4073_v44, %v8948_v63 }
 0x5db   : > { %7670 = vmatpush3.bf16.msra.mxu0 %v10122_v18  ;;  %v4114_v59 = vrot.slane %v4107_v14, %v8943_v19  ;;  %v4122_v26 = vrot.slane %v7313_v32, %v8943_v19  ;;  %v4123_v36 = vcombine.low %v4098_v43, %v4106_v49  ;;  %7671 = vmatprep.mubr.msk.bf16.mxu0 %vm8454_vm0, %v11054_v51  ;;  %8112 = vrcp.f32 %v5171_v47 }
 0x5dc   : > { %7681 = vmatprep.subr.bf16.mxu0 %v11054_v51  ;;  %v10545_v9 = vrot.slane %v4081_v37, %v8948_v63 }
 0x5dd   : > { %v4131_v54 = vcombine.low %v4114_v59, %v4122_v26  ;;  %v10551_v18 = vrot.slane %v4123_v36, %v8948_v63 }
 0x5de   : > { %v5177_v22 = vpop.xlane.xlu0 %5176  ;;  %v4089_v47 = vcombine.low %v10548_v55, %v10545_v9 }
 0x5df   : > { %v10554_v19 = vrot.slane %v4131_v54, %v8948_v63 }
 0x5e1   : > { %v4139_v48 = vcombine.low %v10551_v18, %v10554_v19 }
 0x5e2   : > { %v5174_v39 = vpop.xlane.xlu0 %5173 }
 0x5e3   : > { %8114 = vrcp.f32 %v5174_v39  ;;  %v4191_v1 = vpack.i.b16 %v4139_v48, %v4089_v47  ;;  %v4194_v49 = vshrl.u32 %v4139_v48, 16 }
 0x5e5   : > { %7664 = vmatpush3.bf16.msra.mxu1 %v4191_v1  ;;  %v8113_v5 = vpop.eup %8112 }
 0x5e6   : > { %v5183_v0 = vpop.xlane.xlu0 %5182  ;;  %7675 = vmatprep.subr.bf16.mxu1 %v11054_v51  ;;  %v5285_v41 = vmul.f32 %v8113_v5, %v10365_v27 }
 0x5e7   : > { %8116 = vrcp.f32 %v5183_v0 }
 0x5ea   : > { %v5186_v52 = vpop.xlane.xlu0 %5185 }
 0x5eb   : > { %8118 = vrcp.f32 %v5186_v52 }
 0x5ec   : > { %8120 = vrcp.f32 %v5177_v22 }
 0x5ed   : > { %v8115_v3 = vpop.eup %8114 }
 0x5ee   : > { %v5286_v63 = vmul.f32 %v8115_v3, %v10377_v11  ;;  %v5189_v46 = vpop.xlane.xlu0 %5188  ;;  %v4193_v11 = vshrl.u32 %v4089_v47, 16 }
 0x5f0   : > { %v5314_v15 = vpack.c.bf16 %v5286_v63, %v5285_v41  ;;  %v4195_v44 = vpack.i.b16 %v4194_v49, %v4193_v11 }
 0x5f1   : > { %v8117_v42 = vpop.eup %8116 }
 0x5f2   : > { %7666 = vmatmul.mubr.msk.bf16.vlgmr.msra.gmra.mrb[48].mxu1 %vm4958_vm2, %v5314_v15  ;;  %v5195_v43 = vpop.xlane.xlu0 %5194  ;;  %v5289_v14 = vmul.f32 %v8117_v42, %v10382_v35 }
 0x5f3   : > { %7676 = vmatpush3.bf16.msra.mxu1 %v10142_v12  ;;  %7677 = vmatprep.mubr.msk.bf16.mxu1 %vm8454_vm0, %v11054_v51 }
 0x5f4   : > { %7687 = vmatprep.subr.bf16.mxu1 %v11054_v51 }
 0x5f5   : > { %v8119_v57 = vpop.eup %8118 }
 0x5f6   : > { %v5290_v27 = vmul.f32 %v8119_v57, %v10387_v60  ;;  %v5201_v37 = vpop.xlane.xlu0 %5200  ;;  %v8121_v36 = vpop.eup %8120 }
 0x5f7   : > { %v5287_v54 = vmul.f32 %v8121_v36, %v10370_v23 }
 0x5f8   : > { %v5316_v32 = vpack.c.bf16 %v5290_v27, %v5289_v14 }
 0x5fa   : > { %7678 = vmatmul.mubr.msk.bf16.vlgmr.msra.gmra.mrb[52].mxu1 %vm4958_vm2, %v5316_v32  ;;  %v5207_v12 = vpop.xlane.xlu0 %5206  ;;  %v4090_v32 = vcombine.high %v10548_v55, %v10545_v9 }
 0x5fb   : > { %7688 = vmatpush3.bf16.msra.mxu1 %v4195_v44  ;;  %7689 = vmatprep.mubr.msk.bf16.mxu1 %vm8454_vm0, %v11054_v51 }
 0x5fc   : > { %7699 = vmatprep.subr.bf16.mxu1 %v11054_v51  ;;  %v5180_v59 = vpop.xlane.xlu1 %5179 }
 0x5fd   : > { %8122 = vrcp.f32 %v5180_v59 }
 0x5fe   : > { %v5213_v35 = vpop.xlane.xlu0 %5212 }
 0x600   : > { %v5192_v26 = vpop.xlane.xlu1 %5191 }
 0x601   : > { %8124 = vrcp.f32 %v5192_v26 }
 0x602   : > { %8126 = vrcp.f32 %v5189_v46  ;;  %v5219_v0 = vpop.xlane.xlu0 %5218 }
 0x603   : > { %8128 = vrcp.f32 %v5195_v43 }
 0x604   : > { %v5198_v60 = vpop.xlane.xlu1 %5197 }
 0x605   : > { %8130 = vrcp.f32 %v5198_v60 }
 0x606   : > { %v5225_v23 = vpop.xlane.xlu0 %5224 }
 0x607   : > { %v8123_v39 = vpop.eup %8122 }
 0x608   : > { %v5288_v47 = vmul.f32 %v8123_v39, %v10420_v31  ;;  %v5204_v48 = vpop.xlane.xlu1 %5203 }
 0x609   : > { %8132 = vrcp.f32 %v5204_v48 }
 0x60a   : > { %8134 = vrcp.f32 %v5201_v37  ;;  %v5315_v22 = vpack.c.bf16 %v5288_v47, %v5287_v54  ;;  %v5231_v14 = vpop.xlane.xlu0 %5230 }
 0x60b   : > { %v8125_v1 = vpop.eup %8124  ;;  %8136 = vrcp.f32 %v5207_v12 }
 0x60c   : > { %v8127_v52 = vpop.eup %8126  ;;  %v5210_v5 = vpop.xlane.xlu1 %5209  ;;  %7672 = vmatmul.mubr.msk.bf16.vlgmr.msra.gmra.mrb[52].mxu0 %vm4958_vm2, %v5315_v22  ;;  %v5292_v31 = vmul.f32 %v8125_v1, %v10429_v17 }
 0x60d   : > { %v8129_v3 = vpop.eup %8128  ;;  %8138 = vrcp.f32 %v5210_v5  ;;  %7682 = vmatpush3.bf16.msra.mxu0 %v10174_v50  ;;  %7683 = vmatprep.mubr.msk.bf16.mxu0 %vm8454_vm0, %v11054_v51  ;;  %v5291_v63 = vmul.f32 %v8127_v52, %v10392_v4  ;;  %v11139_v4 = vpack.i.b16 %v10125_v33, %v10116_v29  ;;  %v4140_v29 = vcombine.high %v10551_v18, %v10554_v19 }
 0x60e   : > { %7693 = vmatprep.subr.bf16.mxu0 %v11054_v51  ;;  %v5293_v46 = vmul.f32 %v8129_v3, %v10398_v58  ;;  %v11140_v58 = vpack.i.b16 %v10135_v10, %v10127_v20  ;;  %v5237_v44 = vpop.xlane.xlu0 %5236  ;;  %v4201_v3 = vshrl.u32 %v4090_v32, 16 }
 0x60f   : > { %v8131_v41 = vpop.eup %8130  ;;  %v5317_v57 = vpack.c.bf16 %v5292_v31, %v5291_v63  ;;  %v4199_v26 = vpack.i.b16 %v4140_v29, %v4090_v32  ;;  %v4202_v22 = vshrl.u32 %v4140_v29, 16  ;;  %v7996_v63 = vld [vmem:[#allocation7] sm:$0xff]   ;;  %v7999_v29 = vld [vmem:[#allocation7 + $0x18] sm:$0xff]  }
 0x610   : > { %v5294_v15 = vmul.f32 %v8131_v41, %v10438_v56  ;;  %v5216_v42 = vpop.xlane.xlu1 %5215 }
 0x611   : > { %8140 = vrcp.f32 %v5216_v42  ;;  %v4203_v41 = vpack.i.b16 %v4202_v22, %v4201_v3  ;;  %v11144_v42 = vld [vmem:[#allocation31_spill] sm:$0xff] }
 0x612   : > { %8142 = vrcp.f32 %v5213_v35  ;;  %v5318_v50 = vpack.c.bf16 %v5294_v15, %v5293_v46 }
 0x613   : > { %v8133_v43 = vpop.eup %8132  ;;  %8144 = vrcp.f32 %v5219_v0 }
 0x614   : > { %v8135_v49 = vpop.eup %8134  ;;  %v5222_v27 = vpop.xlane.xlu1 %5221  ;;  %7684 = vmatmul.mubr.msk.bf16.vlgmr.msra.gmra.mrb[56].mxu0 %vm4958_vm2, %v5317_v57  ;;  %7690 = vmatmul.mubr.msk.bf16.vlgmr.msra.gmra.mrb[56].mxu1 %vm4958_vm2, %v5318_v50  ;;  %v5296_v56 = vmul.f32 %v8133_v43, %v10447_v6 }
 0x615   : > { %v8137_v17 = vpop.eup %8136  ;;  %8146 = vrcp.f32 %v5222_v27  ;;  %7694 = vmatpush3.bf16.msra.mxu0 %v11139_v4  ;;  %7700 = vmatpush3.bf16.msra.mxu1 %v11140_v58  ;;  %v5295_v33 = vmul.f32 %v8135_v49, %v10404_v38 }
 0x616   : > { %7695 = vmatprep.mubr.msk.bf16.mxu0 %vm8454_vm0, %v11054_v51  ;;  %7701 = vmatprep.mubr.msk.bf16.mxu1 %vm8454_vm0, %v11054_v51  ;;  %v5297_v20 = vmul.f32 %v8137_v17, %v10410_v62  ;;  %v11141_v62 = vpack.i.b16 %v10144_v28, %v10137_v45  ;;  %v5243_v45 = vpop.xlane.xlu0 %5242 }
 0x617   : > { %v8139_v11 = vpop.eup %8138  ;;  %7705 = vmatprep.subr.bf16.mxu0 %v11054_v51  ;;  %7711 = vmatprep.subr.bf16.mxu1 %v11054_v51  ;;  %v5319_v37 = vpack.c.bf16 %v5296_v56, %v5295_v33  ;;  %v8000_v33 = vld [vmem:[#allocation7 + $0x20] sm:$0xff]  }
 0x618   : > { %v5298_v10 = vmul.f32 %v8139_v11, %v10456_v2  ;;  %v5228_v6 = vpop.xlane.xlu1 %5227 }
 0x619   : > { %8148 = vrcp.f32 %v5228_v6 }
 0x61a   : > { %8150 = vrcp.f32 %v5225_v23  ;;  %v5320_v12 = vpack.c.bf16 %v5298_v10, %v5297_v20 }
 0x61b   : > { %v8141_v59 = vpop.eup %8140  ;;  %8152 = vrcp.f32 %v5231_v14  ;;  %v7997_v14 = vld [vmem:[#allocation7 + $0x8] sm:$0xff]  }
 0x61c   : > { %v8143_v35 = vpop.eup %8142  ;;  %v5234_v18 = vpop.xlane.xlu1 %5233  ;;  %7696 = vmatmul.mubr.msk.bf16.vlgmr.msra.gmra.mrb[60].mxu0 %vm4958_vm2, %v5319_v37  ;;  %7702 = vmatmul.mubr.msk.bf16.vlgmr.msra.gmra.mrb[60].mxu1 %vm4958_vm2, %v5320_v12  ;;  %v5300_v2 = vmul.f32 %v8141_v59, %v10465_v21 }
 0x61d   : > { %v8145_v38 = vpop.eup %8144  ;;  %8154 = vrcp.f32 %v5234_v18  ;;  %7706 = vmatpush3.bf16.msra.mxu0 %v11141_v62  ;;  %7712 = vmatpush3.bf16.msra.mxu1 %v4199_v26  ;;  %v5299_v55 = vmul.f32 %v8143_v35, %v10416_v61  ;;  %v11142_v61 = vld [vmem:[#allocation28_spill] sm:$0xff] }
 0x61e   : > { %7707 = vmatprep.mubr.msk.bf16.mxu0 %vm8454_vm0, %v11054_v51  ;;  %7713 = vmatprep.mubr.msk.bf16.mxu1 %vm8454_vm0, %v11054_v51  ;;  %v5301_v19 = vmul.f32 %v8145_v38, %v10424_v53  ;;  %v11143_v53 = vld [vmem:[#allocation29_spill] sm:$0xff] }
 0x61f   : > { %v8147_v9 = vpop.eup %8146  ;;  %7717 = vmatprep.subr.bf16.mxu0 %v11054_v51  ;;  %7723 = vmatprep.subr.bf16.mxu1 %v11054_v51  ;;  %v5321_v21 = vpack.c.bf16 %v5300_v2, %v5299_v55 }
 0x620   : > { %v5302_v28 = vmul.f32 %v8147_v9, %v10472_v13  ;;  %v5240_v60 = vpop.xlane.xlu1 %5239 }
 0x621   : > { %8156 = vrcp.f32 %v5240_v60 }
 0x622   : > { %8158 = vrcp.f32 %v5237_v44  ;;  %v5322_v36 = vpack.c.bf16 %v5302_v28, %v5301_v19 }
 0x623   : > { %v8149_v39 = vpop.eup %8148  ;;  %8160 = vrcp.f32 %v5243_v45 }
 0x624   : > { %v8151_v54 = vpop.eup %8150  ;;  %v5246_v0 = vpop.xlane.xlu1 %5245  ;;  %7708 = vmatmul.mubr.msk.bf16.vlgmr.msra.gmra.mrb[64].mxu0 %vm4958_vm2, %v5321_v21  ;;  %7714 = vmatmul.mubr.msk.bf16.vlgmr.msra.gmra.mrb[64].mxu1 %vm4958_vm2, %v5322_v36  ;;  %v5304_v13 = vmul.f32 %v8149_v39, %v10476_v24  ;;  %v8001_v21 = vld [vmem:[#allocation7 + $0x28] sm:$0xff]  }
 0x625   : > { %v8153_v47 = vpop.eup %8152  ;;  %8162 = vrcp.f32 %v5246_v0  ;;  %7718 = vmatpush3.bf16.msra.mxu0 %v11142_v61  ;;  %7724 = vmatpush3.bf16.msra.mxu1 %v11143_v53  ;;  %v5303_v1 = vmul.f32 %v8151_v54, %v10433_v8  ;;  %v8002_v54 = vld [vmem:[#allocation7 + $0x30] sm:$0xff]  }
 0x626   : > { %7719 = vmatprep.mubr.msk.bf16.mxu0 %vm8454_vm0, %v11054_v51  ;;  %7725 = vmatprep.mubr.msk.bf16.mxu1 %vm8454_vm0, %v11054_v51  ;;  %v5305_v52 = vmul.f32 %v8153_v47, %v10442_v25 }
 0x627   : > { %v8155_v48 = vpop.eup %8154  ;;  %7729 = vmatprep.subr.bf16.mxu0 %v11054_v51  ;;  %7735 = vmatprep.subr.bf16.mxu1 %v11054_v51  ;;  %v5323_v24 = vpack.c.bf16 %v5304_v13, %v5303_v1 }
 0x628   : > { %v5306_v5 = vmul.f32 %v8155_v48, %v10480_v30 }
 0x62a   : > { %v5324_v23 = vpack.c.bf16 %v5306_v5, %v5305_v52 }
 0x62b   : > { %v8157_v31 = vpop.eup %8156 }
 0x62c   : > { %v8159_v46 = vpop.eup %8158  ;;  %7720 = vmatmul.mubr.msk.bf16.vlgmr.msra.gmra.mrb[68].mxu0 %vm4958_vm2, %v5323_v24  ;;  %7726 = vmatmul.mubr.msk.bf16.vlgmr.msra.gmra.mrb[68].mxu1 %vm4958_vm2, %v5324_v23  ;;  %v5308_v8 = vmul.f32 %v8157_v31, %v10484_v40  ;;  %v7998_v40 = vld [vmem:[#allocation7 + $0x10] sm:$0xff]  }
 0x62d   : > { %v8161_v15 = vpop.eup %8160  ;;  %7730 = vmatpush3.bf16.msra.mxu0 %v11144_v42  ;;  %7736 = vmatpush3.bf16.msra.mxu1 %v4203_v41  ;;  %v5307_v30 = vmul.f32 %v8159_v46, %v10451_v16  ;;  %v8003_v42 = vld [vmem:[#allocation7 + $0x38] sm:$0xff]  }
 0x62e   : > { %7731 = vmatprep.mubr.msk.bf16.mxu0 %vm8454_vm0, %v11054_v51  ;;  %7737 = vmatprep.mubr.msk.bf16.mxu1 %vm8454_vm0, %v11054_v51  ;;  %v5309_v57 = vmul.f32 %v8161_v15, %v10460_v34 }
 0x62f   : > { %v8163_v25 = vpop.eup %8162  ;;  %7741 = vmatprep.subr.bf16.mxu0 %v7996_v63  ;;  %v5325_v43 = vpack.c.bf16 %v5308_v8, %v5307_v30 }
 0x630   : > { %v5310_v50 = vmul.f32 %v8163_v25, %v10488_v7 }
 0x632   : > { %v5326_v49 = vpack.c.bf16 %v5310_v50, %v5309_v57 }
 0x634   : > { %7732 = vmatmul.mubr.msk.bf16.vlgmr.msra.gmra.mrb[72].mxu0 %vm4958_vm2, %v5325_v43  ;;  %7738 = vmatmul.mubr.msk.bf16.vlgmr.msra.gmra.mrb[72].mxu1 %vm4958_vm2, %v5326_v49 }
 0x635   : > { %7742 = vmatpush3.bf16.msra.mxu0 %v7996_v63 }
 0x636   : > { %7743 = vmatprep.subr.bf16.mxu0 %v7997_v14 }
 0x639   : > { %7744 = vmatpush3.bf16.msra.mxu0 %v7997_v14 }
 0x63a   : > { %7753 = vmatprep.subr.bf16.mxu0 %v7998_v40 }
 0x684   : > { %v5364_v51 = vpop.f32.mrb[44].mxu0 }
 0x685   : > { %v7649_v27 = vpop.f32.mrb[45].mxu0 }
 0x686   : > { %v5367_v17 = vpop.f32.mrb[46].mxu0 }
 0x687   : > { %v6031_v16 = vpack.c.bf16 %v5367_v17, %v5364_v51  ;;  %v7650_v4 = vpop.f32.mrb[47].mxu0 }
 0x689   : > { %7745 = vmatprep.mubr.msk.bf16.mxu0 %vm4205_vm1, %v6031_v16 }
 0x692   : > { %v5408_v34 = vpop.f32.mrb[44].mxu1 }
 0x693   : > { %v7655_v7 = vpop.f32.mrb[45].mxu1 }
 0x694   : > { %v5411_v58 = vpop.f32.mrb[46].mxu1 }
 0x695   : > { %v6032_v56 = vpack.c.bf16 %v5411_v58, %v5408_v34  ;;  %v7656_v11 = vpop.f32.mrb[47].mxu1 }
 0x697   : > { %7746 = vmatmul.mubr.msk.bf16.vlgmr.msra.gmra.mrb[76].mxu0 %vm4205_vm1, %v6032_v56 }
 0x698   : > { %7754 = vmatpush3.bf16.msra.mxu0 %v7998_v40 }
 0x699   : > { %7755 = vmatprep.subr.bf16.mxu0 %v7999_v29 }
 0x69c   : > { %7756 = vmatpush3.bf16.msra.mxu0 %v7999_v29 }
 0x69d   : > { %7765 = vmatprep.subr.bf16.mxu0 %v8000_v33 }
 0x6ad   : > { %v5452_v20 = vpop.f32.mrb[48].mxu0 }
 0x6ae   : > { %v7661_v10 = vpop.f32.mrb[49].mxu0 }
 0x6af   : > { %v5455_v6 = vpop.f32.mrb[50].mxu0 }
 0x6b0   : > { %v6033_v32 = vpack.c.bf16 %v5455_v6, %v5452_v20  ;;  %v7662_v44 = vpop.f32.mrb[51].mxu0 }
 0x6b2   : > { %7749 = vmatprep.mubr.msk.bf16.mxu0 %vm4205_vm1, %v6033_v32 }
 0x6c5   : > { %v5496_v37 = vpop.f32.mrb[48].mxu1 }
 0x6c6   : > { %v7667_v12 = vpop.f32.mrb[49].mxu1 }
 0x6c7   : > { %v5499_v59 = vpop.f32.mrb[50].mxu1 }
 0x6c8   : > { %v6034_v26 = vpack.c.bf16 %v5499_v59, %v5496_v37  ;;  %v7668_v35 = vpop.f32.mrb[51].mxu1 }
 0x6c9   : > { %v7370_v35 = vld [vmem:[%s11145_s21] ss:$0 sm:$0xff]  ;;  %s7111_s21 = sshll.u32 %s517_s20, 4  ;;  %s10901_s21 = int_to_ptr.vmem [resolvable:$true] %s7111_s21 }
 0x6ca   : > { %7750 = vmatmul.mubr.msk.bf16.gmra.mrb[80].mxu0 %vm4205_vm1, %v6034_v26  ;;  %s8362_s13 = scalar_lea.vmem %s10901_s21, 1024 }
 0x6cb   : > { %p8363_p8 = scmp.ne.s32.totalorder %s10901_s21, %s8362_s13 }
 0x6cd   : > { %v5584_v18 = vpop.f32.mrb[52].mxu1  ;;  %p8364_p10 = pnand %p8363_p8, %p8681_p6 }
 0x6ce   : > { %v7679_v38 = vpop.f32.mrb[53].mxu1 }
 0x6cf   : > { %v5587_v62 = vpop.f32.mrb[54].mxu1  ;;  %p8365_p12 = pneg %p8364_p10 }
 0x6d0   : > { %v6036_v2 = vpack.c.bf16 %v5587_v62, %v5584_v18  ;;  %v7680_v9 = vpop.f32.mrb[55].mxu1 }
 0x6df   : > { %v5540_v55 = vpop.f32.mrb[52].mxu0 }
 0x6e0   : > { %v7673_v19 = vpop.f32.mrb[53].mxu0 }
 0x6e1   : > { %v5543_v45 = vpop.f32.mrb[54].mxu0  ;;  %v8212_v19 = vld [vmem:[%s8739_s8] sm:$0xff] }
 0x6e2   : > { %v6035_v28 = vpack.c.bf16 %v5543_v45, %v5540_v55  ;;  %v7674_v60 = vpop.f32.mrb[55].mxu0 }
 0x6e4   : > { %7757 = vmatprep.mubr.msk.bf16.mxu0 %vm4205_vm1, %v6035_v28 }
 0x6e5   : > { %7758 = vmatmul.mubr.msk.bf16.vlgmr.msra.gmra.mrb[76].mxu0 %vm4205_vm1, %v6036_v2 }
 0x6e6   : > { %7766 = vmatpush3.bf16.msra.mxu0 %v8000_v33 }
 0x6e7   : > { %v5628_v36 = vpop.f32.mrb[56].mxu0  ;;  %v5672_v39 = vpop.f32.mrb[56].mxu1  ;;  %7767 = vmatprep.subr.bf16.mxu0 %v8001_v21 }
 0x6e8   : > { %v7685_v0 = vpop.f32.mrb[57].mxu0  ;;  %v7691_v47 = vpop.f32.mrb[57].mxu1 }
 0x6e9   : > { %v5631_v61 = vpop.f32.mrb[58].mxu0  ;;  %v5675_v53 = vpop.f32.mrb[58].mxu1 }
 0x6ea   : > { %v6037_v13 = vpack.c.bf16 %v5631_v61, %v5628_v36  ;;  %v6038_v48 = vpack.c.bf16 %v5675_v53, %v5672_v39  ;;  %v7686_v22 = vpop.f32.mrb[59].mxu0  ;;  %v7692_v1 = vpop.f32.mrb[59].mxu1  ;;  %7768 = vmatpush3.bf16.msra.mxu0 %v8001_v21  ;;  %v8213_v21 = vld [vmem:[%s8739_s8 + $0x8] sm:$0xff]  ;;  %v8214_v39 = vld [vmem:[%s8739_s8 + $0x10] sm:$0xff]  ;;  %v8215_v61 = vld [vmem:[%s8739_s8 + $0x18] sm:$0xff] }
 0x6eb   : > { %7777 = vmatprep.subr.bf16.mxu0 %v8002_v54 }
 0x6ec   : > { %7761 = vmatprep.mubr.msk.bf16.mxu0 %vm4205_vm1, %v6037_v13 }
 0x6ed   : > { %7762 = vmatmul.mubr.msk.bf16.gmra.mrb[80].mxu0 %vm4205_vm1, %v6038_v48 }
 0x6ef   : > { %v5716_v52 = vpop.f32.mrb[60].mxu0  ;;  %v5760_v5 = vpop.f32.mrb[60].mxu1 }
 0x6f0   : > { %v7697_v3 = vpop.f32.mrb[61].mxu0  ;;  %v7703_v24 = vpop.f32.mrb[61].mxu1 }
 0x6f1   : > { %v5719_v23 = vpop.f32.mrb[62].mxu0  ;;  %v5763_v31 = vpop.f32.mrb[62].mxu1 }
 0x6f2   : > { %v6039_v41 = vpack.c.bf16 %v5719_v23, %v5716_v52  ;;  %v6040_v63 = vpack.c.bf16 %v5763_v31, %v5760_v5  ;;  %v7698_v46 = vpop.f32.mrb[63].mxu0  ;;  %v7704_v15 = vpop.f32.mrb[63].mxu1  ;;  %v8216_v52 = vld [vmem:[%s8739_s8 + $0x20] sm:$0xff]  ;;  %v8217_v23 = vld [vmem:[%s8739_s8 + $0x28] sm:$0xff] }
 0x6f3   : > { %v8219_v46 = vld [vmem:[%s8739_s8 + $0x38] sm:$0xff] }
 0x6f4   : > { %7769 = vmatprep.mubr.msk.bf16.mxu0 %vm4205_vm1, %v6039_v41  ;;  %v8218_v41 = vld [vmem:[%s8739_s8 + $0x30] sm:$0xff] }
 0x6f5   : > { %7770 = vmatmul.mubr.msk.bf16.vlgmr.msra.gmra.mrb[76].mxu0 %vm4205_vm1, %v6040_v63 }
 0x6f6   : > { %7778 = vmatpush3.bf16.msra.mxu0 %v8002_v54 }
 0x6f7   : > { %v5804_v8 = vpop.f32.mrb[64].mxu0  ;;  %v5848_v25 = vpop.f32.mrb[64].mxu1  ;;  %7779 = vmatprep.subr.bf16.mxu0 %v8003_v42 }
 0x6f8   : > { %v7709_v30 = vpop.f32.mrb[65].mxu0  ;;  %v7715_v57 = vpop.f32.mrb[65].mxu1 }
 0x6f9   : > { %v5807_v50 = vpop.f32.mrb[66].mxu0  ;;  %v5851_v43 = vpop.f32.mrb[66].mxu1 }
 0x6fa   : > { %v6041_v49 = vpack.c.bf16 %v5807_v50, %v5804_v8  ;;  %v6042_v14 = vpack.c.bf16 %v5851_v43, %v5848_v25  ;;  %v7710_v40 = vpop.f32.mrb[67].mxu0  ;;  %v7716_v51 = vpop.f32.mrb[67].mxu1  ;;  %7780 = vmatpush3.bf16.msra.mxu0 %v8003_v42  ;;  %v8004_v42 = vld [vmem:[#allocation8] sm:$0xff]  }
 0x6fb   : > { %7789 = vmatprep.subr.bf16.mxu1 %v8004_v42 }
 0x6fc   : > { %7773 = vmatprep.mubr.msk.bf16.mxu0 %vm4205_vm1, %v6041_v49  ;;  %7790 = vmatpush3.bf16.msra.mxu1 %v8004_v42 }
 0x6fd   : > { %7774 = vmatmul.mubr.msk.bf16.gmra.mrb[80].mxu0 %vm4205_vm1, %v6042_v14 }
 0x6ff   : > { %v5892_v27 = vpop.f32.mrb[68].mxu0  ;;  %v5936_v17 = vpop.f32.mrb[68].mxu1 }
 0x700   : > { %v7721_v16 = vpop.f32.mrb[69].mxu0  ;;  %v7727_v4 = vpop.f32.mrb[69].mxu1 }
 0x701   : > { %v5895_v34 = vpop.f32.mrb[70].mxu0  ;;  %v5939_v7 = vpop.f32.mrb[70].mxu1 }
 0x702   : > { %v6043_v58 = vpack.c.bf16 %v5895_v34, %v5892_v27  ;;  %v6044_v56 = vpack.c.bf16 %v5939_v7, %v5936_v17  ;;  %v7722_v11 = vpop.f32.mrb[71].mxu0  ;;  %v7728_v29 = vpop.f32.mrb[71].mxu1 }
 0x704   : > { %7781 = vmatprep.mubr.msk.bf16.mxu0 %vm4205_vm1, %v6043_v58 }
 0x705   : > { %7782 = vmatmul.mubr.msk.bf16.vlgmr.msra.gmra.mrb[76].mxu0 %vm4205_vm1, %v6044_v56 }
 0x707   : > { %v5980_v33 = vpop.f32.mrb[72].mxu0  ;;  %v6024_v20 = vpop.f32.mrb[72].mxu1 }
 0x708   : > { %v7733_v10 = vpop.f32.mrb[73].mxu0  ;;  %v7739_v6 = vpop.f32.mrb[73].mxu1 }
 0x709   : > { %v5983_v32 = vpop.f32.mrb[74].mxu0  ;;  %v6027_v44 = vpop.f32.mrb[74].mxu1 }
 0x70a   : > { %v6045_v37 = vpack.c.bf16 %v5983_v32, %v5980_v33  ;;  %v6046_v12 = vpack.c.bf16 %v6027_v44, %v6024_v20  ;;  %v7734_v59 = vpop.f32.mrb[75].mxu0  ;;  %v7740_v26 = vpop.f32.mrb[75].mxu1 }
 0x70c   : > { %7785 = vmatprep.mubr.msk.bf16.mxu0 %vm4205_vm1, %v6045_v37 }
 0x70d   : > { %7786 = vmatmul.mubr.msk.bf16.gmra.mrb[80].mxu0 %vm4205_vm1, %v6046_v12 }
 0x7d8   : > { %v7783_v18 = vpop.f32.mrb[76].mxu0 }
 0x7d9   : > { %v6388_v38 = vpop.f32.mrb[77].mxu0  ;;  %v6452_v55 = vadd.f32 %v7783_v18, %v7370_v35 }
 0x7da   : > { %v6450_v62 = vadd.f32 %v7370_v35, %v6388_v38  ;;  %v7784_v2 = vpop.f32.mrb[78].mxu0  ;;  %v8005_v38 = vld [vmem:[#allocation8 + $0x8] sm:$0xff]  }
 0x7db   : > { %v6391_v9 = vpop.f32.mrb[79].mxu0  ;;  %v6453_v60 = vadd.f32 %v7784_v2, %v7370_v35  ;;  %v10676_v54 = vadd.f32 %v8214_v39, %v6452_v55  ;;  %7791 = vmatprep.subr.bf16.mxu1 %v8005_v38  ;;  %v8007_v2 = vld [vmem:[#allocation8 + $0x18] sm:$0xff]   ;;  %v8009_v55 = vld [vmem:[#allocation8 + $0x28] sm:$0xff]  }
 0x7dc   : > { %v10669_v45 = vadd.f32 %v8212_v19, %v6450_v62  ;;  %v6451_v28 = vadd.f32 %v7370_v35, %v6391_v9  ;;  %7792 = vmatpush3.bf16.msra.mxu1 %v8005_v38  ;;  %v8006_v62 = vld [vmem:[#allocation8 + $0x10] sm:$0xff]   ;;  %v8008_v9 = vld [vmem:[#allocation8 + $0x20] sm:$0xff]  }
 0x7dd   : > { %v10680_v53 = vadd.f32 %v8215_v61, %v6453_v60  ;;  %7793 = vmatprep.subr.bf16.mxu1 %v8006_v62  ;;  %v8010_v19 = vld [vmem:[#allocation8 + $0x30] sm:$0xff]  }
 0x7de   : > { %v10672_v36 = vadd.f32 %v8213_v21, %v6451_v28  ;;  %6468 = vadd.xlane.f32.xlu0 %v10669_v45  ;;  %v8011_v28 = vld [vmem:[#allocation8 + $0x38] sm:$0xff]  }
 0x7e0   : > { %6470 = vadd.xlane.f32.xlu1 %v10672_v36  ;;  %v7787_v0 = vpop.f32.mrb[80].mxu0  ;;  %7794 = vmatpush3.bf16.msra.mxu1 %v8006_v62 }
 0x7e1   : > { %v6404_v47 = vpop.f32.mrb[81].mxu0  ;;  %v6456_v1 = vadd.f32 %v7787_v0, %v7370_v35  ;;  %7795 = vmatprep.subr.bf16.mxu1 %v8007_v2 }
 0x7e2   : > { %v6454_v13 = vadd.f32 %v7370_v35, %v6404_v47  ;;  %6472 = vadd.xlane.f32.xlu0 %v10676_v54  ;;  %v7788_v48 = vpop.f32.mrb[82].mxu0 }
 0x7e3   : > { %v6407_v22 = vpop.f32.mrb[83].mxu0  ;;  %v6457_v24 = vadd.f32 %v7788_v48, %v7370_v35  ;;  %v10692_v63 = vadd.f32 %v8218_v41, %v6456_v1 }
 0x7e4   : > { %v10684_v5 = vadd.f32 %v8216_v52, %v6454_v13  ;;  %v6455_v3 = vadd.f32 %v7370_v35, %v6407_v22  ;;  %6474 = vadd.xlane.f32.xlu1 %v10680_v53  ;;  %7796 = vmatpush3.bf16.msra.mxu1 %v8007_v2 }
 0x7e5   : > { %v10696_v15 = vadd.f32 %v8219_v46, %v6457_v24  ;;  %7797 = vmatprep.subr.bf16.mxu1 %v8008_v9 }
 0x7e6   : > { %v10688_v31 = vadd.f32 %v8217_v23, %v6455_v3  ;;  %6476 = vadd.xlane.f32.xlu0 %v10684_v5 }
 0x7e8   : > { %6478 = vadd.xlane.f32.xlu1 %v10688_v31  ;;  %7798 = vmatpush3.bf16.msra.mxu1 %v8008_v9 }
 0x7e9   : > { %7799 = vmatprep.subr.bf16.mxu1 %v8009_v55 }
 0x7ea   : > { %6480 = vadd.xlane.f32.xlu0 %v10692_v63 }
 0x7ec   : > { %6482 = vadd.xlane.f32.xlu1 %v10696_v15  ;;  %7800 = vmatpush3.bf16.msra.mxu1 %v8009_v55 }
 0x7ed   : > { %7801 = vmatprep.subr.bf16.mxu1 %v8010_v19 }
 0x7f0   : > { %7802 = vmatpush3.bf16.msra.mxu1 %v8010_v19 }
 0x7f1   : > { %7803 = vmatprep.subr.bf16.mxu1 %v8011_v28 }
 0x7f4   : > { %7804 = vmatpush3.bf16.msra.mxu1 %v8011_v28 }
 0x86b   : > { %v6469_v8 = vpop.xlane.xlu0 %6468 }
 0x86c   : > { %v6484_v25 = vmul.f32 0.0078125, %v6469_v8 }
 0x86d   : > { %v6471_v30 = vpop.xlane.xlu1 %6470 }
 0x86e   : > { %v10701_v57 = vsub.f32 %v10669_v45, %v6484_v25  ;;  %v6485_v50 = vmul.f32 0.0078125, %v6471_v30 }
 0x86f   : > { %v6473_v43 = vpop.xlane.xlu0 %6472 }
 0x870   : > { %v10704_v49 = vsub.f32 %v10672_v36, %v6485_v50  ;;  %v6486_v14 = vmul.f32 0.0078125, %v6473_v43  ;;  %v6500_v40 = vmul.f32 %v10701_v57, %v10701_v57 }
 0x871   : > { %v6475_v51 = vpop.xlane.xlu1 %6474 }
 0x872   : > { %v10709_v27 = vsub.f32 %v10676_v54, %v6486_v14  ;;  %v6487_v17 = vmul.f32 0.0078125, %v6475_v51  ;;  %6508 = vadd.xlane.f32.xlu0 %v6500_v40  ;;  %v6501_v16 = vmul.f32 %v10704_v49, %v10704_v49  ;;  %v7371_v51 = vld [vmem:[%s11146_s14] ss:$0 sm:$0xff]  ;;  %s11150_s14 = sld [smem:[#allocation51_spill]] }
 0x873   : > { %v6477_v4 = vpop.xlane.xlu0 %6476 }
 0x874   : > { %v10714_v34 = vsub.f32 %v10680_v53, %v6487_v17  ;;  %v6488_v7 = vmul.f32 0.0078125, %v6477_v4  ;;  %6510 = vadd.xlane.f32.xlu1 %v6501_v16  ;;  %v6502_v58 = vmul.f32 %v10709_v27, %v10709_v27 }
 0x875   : > { %v6479_v56 = vpop.xlane.xlu1 %6478 }
 0x876   : > { %v10719_v11 = vsub.f32 %v10684_v5, %v6488_v7  ;;  %v6489_v29 = vmul.f32 0.0078125, %v6479_v56  ;;  %6512 = vadd.xlane.f32.xlu0 %v6502_v58  ;;  %v6503_v33 = vmul.f32 %v10714_v34, %v10714_v34 }
 0x877   : > { %v6481_v20 = vpop.xlane.xlu0 %6480 }
 0x878   : > { %v10724_v10 = vsub.f32 %v10688_v31, %v6489_v29  ;;  %v6490_v6 = vmul.f32 0.0078125, %v6481_v20  ;;  %6514 = vadd.xlane.f32.xlu1 %v6503_v33  ;;  %v6504_v32 = vmul.f32 %v10719_v11, %v10719_v11  ;;  %v7372_v29 = vld [vmem:[%s11147_s23] ss:$0 sm:$0xff]  ;;  %s10908_s29 = scalar_lea.hbm %s11150_s14, %s7400_s22  ;;  %s8457_s23 = smov [#allocation11]  }
 0x879   : > { %v6483_v44 = vpop.xlane.xlu1 %6482  ;;  %s8366_s30 = sshll.u32 %s8457_s23, 4  ;;  %s8367_s30 = int_to_ptr.vmem [resolvable:$false] %s8366_s30 }
 0x87a   : > { %v10729_v37 = vsub.f32 %v10692_v63, %v6490_v6  ;;  %v6491_v12 = vmul.f32 0.0078125, %v6483_v44  ;;  %6516 = vadd.xlane.f32.xlu0 %v6504_v32  ;;  %v6505_v59 = vmul.f32 %v10724_v10, %v10724_v10  ;;  %s8368_s24 = scalar_lea.vmem %s8367_s30, 2048  ;;  %p8369_p3 = scmp.lt.s32.totalorder %s10901_s21, %s8367_s30 }
 0x87b   : > { %p8370_p7 = scmp.lt.s32.totalorder %s8368_s24, %s8362_s13 }
 0x87c   : > { %v10734_v26 = vsub.f32 %v10696_v15, %v6491_v12  ;;  %6518 = vadd.xlane.f32.xlu1 %v6505_v59  ;;  %v6506_v35 = vmul.f32 %v10729_v37, %v10729_v37 }
 0x87d   : > { %p8371_p9 = por %p8370_p7, %p8369_p3 }
 0x87e   : > { %6520 = vadd.xlane.f32.xlu0 %v6506_v35  ;;  %v6507_v18 = vmul.f32 %v10734_v26, %v10734_v26 }
 0x87f   : > { %p8372_p13 = pnand %p8371_p9, %p8365_p12 }
 0x880   : > { %6522 = vadd.xlane.f32.xlu1 %v6507_v18 }
 0x8ff   : > { %v6509_v60 = vpop.xlane.xlu0 %6508 }
 0x900   : > { %v6524_v21 = vmul.f32 0.0078125, %v6509_v60 }
 0x901   : > { %v6511_v39 = vpop.xlane.xlu1 %6510 }
 0x902   : > { %v6532_v0 = vadd.f32 1e-06, %v6524_v21  ;;  %v6525_v47 = vmul.f32 0.0078125, %v6511_v39 }
 0x903   : > { %v6513_v61 = vpop.xlane.xlu0 %6512 }
 0x904   : > { %8164 = vrsqrt.f32 %v6532_v0  ;;  %v6533_v13 = vadd.f32 1e-06, %v6525_v47  ;;  %v6526_v48 = vmul.f32 0.0078125, %v6513_v61 }
 0x905   : > { %v6515_v22 = vpop.xlane.xlu1 %6514 }
 0x906   : > { %8166 = vrsqrt.f32 %v6533_v13  ;;  %v6534_v1 = vadd.f32 1e-06, %v6526_v48  ;;  %v6527_v52 = vmul.f32 0.0078125, %v6515_v22 }
 0x907   : > { %v6517_v3 = vpop.xlane.xlu0 %6516 }
 0x908   : > { %8168 = vrsqrt.f32 %v6534_v1  ;;  %v6535_v24 = vadd.f32 1e-06, %v6527_v52  ;;  %v6528_v23 = vmul.f32 0.0078125, %v6517_v3  ;;  %v8013_v1 = vld [vmem:[#allocation10 + $0x8] sm:$0xff]   ;;  %v8015_v52 = vld [vmem:[#allocation10 + $0x18] sm:$0xff]  }
 0x909   : > { %v6519_v41 = vpop.xlane.xlu1 %6518  ;;  %v8017_v3 = vld [vmem:[#allocation10 + $0x28] sm:$0xff]  }
 0x90a   : > { %8170 = vrsqrt.f32 %v6535_v24  ;;  %v6536_v46 = vadd.f32 1e-06, %v6528_v23  ;;  %v6529_v42 = vmul.f32 0.0078125, %v6519_v41  ;;  %v8018_v24 = vld [vmem:[#allocation10 + $0x30] sm:$0xff]   ;;  %v8019_v23 = vld [vmem:[#allocation10 + $0x38] sm:$0xff]  }
 0x90b   : > { %v6521_v8 = vpop.xlane.xlu0 %6520  ;;  %v7373_v41 = vld [vmem:[%s11148_s15] ss:$0 sm:$0xff] }
 0x90c   : > { %8172 = vrsqrt.f32 %v6536_v46  ;;  %v6537_v25 = vadd.f32 1e-06, %v6529_v42  ;;  %v6530_v30 = vmul.f32 0.0078125, %v6521_v8 }
 0x90d   : > { %v6523_v50 = vpop.xlane.xlu1 %6522 }
 0x90e   : > { %v8165_v43 = vpop.eup %8164  ;;  %8174 = vrsqrt.f32 %v6537_v25  ;;  %v6538_v14 = vadd.f32 1e-06, %v6530_v30  ;;  %v6531_v40 = vmul.f32 0.0078125, %v6523_v50 }
 0x90f   : > { %v6548_v17 = vmul.f32 %v8165_v43, %v10701_v57 }
 0x910   : > { %v8167_v16 = vpop.eup %8166  ;;  %8176 = vrsqrt.f32 %v6538_v14  ;;  %v6539_v4 = vadd.f32 1e-06, %v6531_v40 }
 0x911   : > { %v6549_v7 = vmul.f32 %v8167_v16, %v10704_v49  ;;  %v6562_v58 = vmul.f32 %v7371_v51, %v6548_v17 }
 0x912   : > { %v8169_v56 = vpop.eup %8168  ;;  %8178 = vrsqrt.f32 %v6539_v4 }
 0x913   : > { %v6550_v33 = vmul.f32 %v8169_v56, %v10709_v27  ;;  %v6563_v20 = vmul.f32 %v7371_v51, %v6549_v7  ;;  %v6576_v44 = vadd.f32 %v7372_v29, %v6562_v58 }
 0x914   : > { %v8171_v6 = vpop.eup %8170 }
 0x915   : > { %v6551_v32 = vmul.f32 %v8171_v6, %v10714_v34  ;;  %v6577_v57 = vadd.f32 %v7372_v29, %v6563_v20  ;;  %v6564_v12 = vmul.f32 %v7371_v51, %v6550_v33 }
 0x916   : > { %v8173_v59 = vpop.eup %8172 }
 0x917   : > { %v6584_v35 = vpack.c.bf16 %v6577_v57, %v6576_v44  ;;  %v6565_v18 = vmul.f32 %v7371_v51, %v6551_v32  ;;  %v6552_v49 = vmul.f32 %v8173_v59, %v10719_v11  ;;  %v6578_v62 = vadd.f32 %v7372_v29, %v6564_v12 }
 0x918   : > { %v8175_v38 = vpop.eup %8174 }
 0x919   : > { %7805 = vmatprep.mubr.bf16.mxu1 %v6584_v35  ;;  %v6579_v2 = vadd.f32 %v7372_v29, %v6565_v18  ;;  %v6553_v9 = vmul.f32 %v8175_v38, %v10724_v10  ;;  %v6566_v55 = vmul.f32 %v7371_v51, %v6552_v49  ;;  %v8012_v10 = vld [vmem:[#allocation10] sm:$0xff]  }
 0x91a   : > { %v8177_v27 = vpop.eup %8176  ;;  %7813 = vmatprep.subr.bf16.mxu1 %v8012_v10 }
 0x91b   : > { %v6585_v19 = vpack.c.bf16 %v6579_v2, %v6578_v62  ;;  %v6567_v28 = vmul.f32 %v7371_v51, %v6553_v9  ;;  %v6554_v34 = vmul.f32 %v8177_v27, %v10729_v37  ;;  %v6580_v21 = vadd.f32 %v7372_v29, %v6566_v55  ;;  %v8014_v37 = vld [vmem:[#allocation10 + $0x10] sm:$0xff]  }
 0x91c   : > { %v8179_v60 = vpop.eup %8178 }
 0x91d   : > { %7806 = vmatmul.mubr.bf16.vlgmr.msra.gmra.mrb[76].mxu1 %v6585_v19  ;;  %v6581_v39 = vadd.f32 %v7372_v29, %v6567_v28  ;;  %v6555_v0 = vmul.f32 %v8179_v60, %v10734_v26  ;;  %v6568_v47 = vmul.f32 %v7371_v51, %v6554_v34  ;;  %v8016_v26 = vld [vmem:[#allocation10 + $0x20] sm:$0xff]  }
 0x91e   : > { %7814 = vmatpush3.bf16.msra.mxu1 %v8012_v10 }
 0x91f   : > { %v6586_v11 = vpack.c.bf16 %v6581_v39, %v6580_v21  ;;  %v6569_v61 = vmul.f32 %v7371_v51, %v6555_v0  ;;  %v6582_v13 = vadd.f32 %v7372_v29, %v6568_v47  ;;  %7815 = vmatprep.subr.bf16.mxu1 %v8013_v1 }
 0x921   : > { %7809 = vmatprep.mubr.bf16.mxu1 %v6586_v11  ;;  %v6583_v48 = vadd.f32 %v7372_v29, %v6569_v61 }
 0x922   : > { %7816 = vmatpush3.bf16.msra.mxu1 %v8013_v1 }
 0x923   : > { %v6587_v22 = vpack.c.bf16 %v6583_v48, %v6582_v13  ;;  %7817 = vmatprep.subr.bf16.mxu1 %v8014_v37 }
 0x925   : > { %7810 = vmatmul.mubr.bf16.gmra.mrb[80].mxu1 %v6587_v22 }
 0x926   : > { %7818 = vmatpush3.bf16.msra.mxu1 %v8014_v37 }
 0x927   : > { %7819 = vmatprep.subr.bf16.mxu1 %v8015_v52 }
 0x92a   : > { %7820 = vmatpush3.bf16.msra.mxu1 %v8015_v52 }
 0x92b   : > { %7821 = vmatprep.subr.bf16.mxu1 %v8016_v26 }
 0x92e   : > { %7822 = vmatpush3.bf16.msra.mxu1 %v8016_v26 }
 0x92f   : > { %7823 = vmatprep.subr.bf16.mxu1 %v8017_v3 }
 0x932   : > { %7824 = vmatpush3.bf16.msra.mxu1 %v8017_v3 }
 0x933   : > { %7825 = vmatprep.subr.bf16.mxu1 %v8018_v24 }
 0x936   : > { %7826 = vmatpush3.bf16.msra.mxu1 %v8018_v24 }
 0x937   : > { %7827 = vmatprep.subr.bf16.mxu1 %v8019_v23 }
 0x93a   : > { %7828 = vmatpush3.bf16.msra.mxu1 %v8019_v23 }
 0x9f0   : > { %v7807_v46 = vpop.f32.mrb[76].mxu1 }
 0x9f1   : > { %v6702_v42 = vadd.f32 %v7807_v46, %v7373_v41  ;;  %v6693_v8 = vpop.f32.mrb[77].mxu1 }
 0x9f2   : > { %v10757_v25 = vadd.f32 %v7373_v41, %v6693_v8  ;;  %v7808_v30 = vpop.f32.mrb[78].mxu1 }
 0x9f3   : > { %v10759_v50 = vmul.f32 0.70710677, %v6702_v42  ;;  %v10761_v43 = vadd.f32 %v7808_v30, %v7373_v41  ;;  %v6696_v14 = vpop.f32.mrb[79].mxu1  ;;  %v10801_v13 = vmul.f32 0.5, %v6702_v42 }
 0x9f4   : > { %v10764_v40 = vmul.f32 0.70710677, %v10757_v25  ;;  %v10766_v51 = vadd.f32 %v7373_v41, %v6696_v14 }
 0x9f5   : > { %v6742_v17 = vand.u32 2147483647, %v10759_v50  ;;  %v10770_v16 = vmul.f32 0.70710677, %v10761_v43  ;;  %vm6902_vm3 = vcmp.lt.f32.partialorder %v10759_v50, 0.0 }
 0x9f6   : > { %v6740_v4 = vand.u32 2147483647, %v10764_v40  ;;  %v10774_v7 = vmul.f32 0.70710677, %v10766_v51  ;;  %vm6900_vm4 = vcmp.lt.f32.partialorder %v10764_v40, 0.0 }
 0x9f7   : > { %v6750_v58 = vmul.f32 0.3275911, %v6742_v17  ;;  %v6743_v56 = vand.u32 2147483647, %v10770_v16  ;;  %v6854_v27 = vsub.f32 0.0, %v6742_v17  ;;  %vm6903_vm5 = vcmp.lt.f32.partialorder %v10770_v16, 0.0 }
 0x9f8   : > { %v6748_v29 = vmul.f32 0.3275911, %v6740_v4  ;;  %v6741_v33 = vand.u32 2147483647, %v10774_v7  ;;  %v7811_v32 = vpop.f32.mrb[80].mxu1  ;;  %v6852_v34 = vsub.f32 0.0, %v6740_v4 }
 0x9f9   : > { %v6758_v20 = vadd.f32 1.0, %v6750_v58  ;;  %v6751_v6 = vmul.f32 0.3275911, %v6743_v56  ;;  %v6709_v12 = vpop.f32.mrb[81].mxu1  ;;  %v10778_v38 = vadd.f32 %v7811_v32, %v7373_v41  ;;  %v6855_v21 = vsub.f32 0.0, %v6743_v56 }
 0x9fa   : > { %v6756_v44 = vadd.f32 1.0, %v6748_v29  ;;  %v6749_v57 = vmul.f32 0.3275911, %v6741_v33  ;;  %v7812_v35 = vpop.f32.mrb[82].mxu1  ;;  %v10780_v62 = vadd.f32 %v7373_v41, %v6709_v12  ;;  %v6853_v39 = vsub.f32 0.0, %v6741_v33 }
 0x9fb   : > { %8180 = vrcp.f32 %v6758_v20  ;;  %v6759_v59 = vadd.f32 1.0, %v6751_v6  ;;  %v6712_v18 = vpop.f32.mrb[83].mxu1  ;;  %v10782_v2 = vadd.f32 %v7812_v35, %v7373_v41  ;;  %v10785_v9 = vmul.f32 0.70710677, %v10778_v38 }
 0x9fc   : > { %8182 = vrcp.f32 %v6756_v44  ;;  %v6757_v49 = vadd.f32 1.0, %v6749_v57  ;;  %v10787_v55 = vadd.f32 %v7373_v41, %v6712_v18  ;;  %v10790_v19 = vmul.f32 0.70710677, %v10780_v62 }
 0x9fd   : > { %8184 = vrcp.f32 %v6759_v59  ;;  %v10793_v28 = vmul.f32 0.70710677, %v10782_v2  ;;  %v6746_v60 = vand.u32 2147483647, %v10785_v9  ;;  %v6862_v48 = vmul.f32 %v6854_v27, %v6742_v17 }
 0x9fe   : > { %8186 = vrcp.f32 %v6757_v49  ;;  %v6744_v0 = vand.u32 2147483647, %v10790_v19  ;;  %v10799_v61 = vmul.f32 0.70710677, %v10787_v55  ;;  %v6860_v37 = vmul.f32 %v6852_v34, %v6740_v4 }
 0x9ff   : > { %v6747_v47 = vand.u32 2147483647, %v10793_v28  ;;  %v6754_v11 = vmul.f32 0.3275911, %v6746_v60  ;;  %v6858_v26 = vsub.f32 0.0, %v6746_v60  ;;  %v6863_v41 = vmul.f32 %v6855_v21, %v6743_v56 }
 0xa00   : > { %v6752_v22 = vmul.f32 0.3275911, %v6744_v0  ;;  %v6745_v3 = vand.u32 2147483647, %v10799_v61  ;;  %v6861_v46 = vmul.f32 %v6853_v39, %v6741_v33  ;;  %v6856_v30 = vsub.f32 0.0, %v6744_v0 }
 0xa01   : > { %v6755_v10 = vmul.f32 0.3275911, %v6747_v47  ;;  %v6762_v52 = vadd.f32 1.0, %v6754_v11  ;;  %v6872_v58 = vmul.f32 1.442695, %v6862_v48  ;;  %v6866_v32 = vmul.f32 %v6858_v26, %v6746_v60 }
 0xa02   : > { %v6760_v8 = vadd.f32 1.0, %v6752_v22  ;;  %v6753_v4 = vmul.f32 0.3275911, %v6745_v3  ;;  %v6868_v6 = vmul.f32 1.442695, %v6860_v37  ;;  %v6859_v44 = vsub.f32 0.0, %v6747_v47 }
 0xa03   : > { %8188 = vrcp.f32 %v6762_v52  ;;  %v6763_v14 = vadd.f32 1.0, %v6755_v10  ;;  %v6874_v33 = vmul.f32 1.442695, %v6863_v41  ;;  %v6870_v18 = vmul.f32 1.442695, %v6861_v46 }
 0xa04   : > { %8190 = vrcp.f32 %v6760_v8  ;;  %v6761_v12 = vadd.f32 1.0, %v6753_v4  ;;  %v6864_v49 = vmul.f32 %v6856_v30, %v6744_v0  ;;  %v6880_v39 = vmul.f32 1.442695, %v6866_v32 }
 0xa05   : > { %v10803_v1 = vpop.eup %8180  ;;  %8192 = vrcp.f32 %v6763_v14  ;;  %v6867_v11 = vmul.f32 %v6859_v44, %v6747_v47  ;;  %v6857_v52 = vsub.f32 0.0, %v6745_v3  ;;  %v10825_v47 = vmul.f32 0.5, %v10757_v25 }
 0xa06   : > { %v10806_v24 = vpop.eup %8182  ;;  %v6782_v23 = vmul.f32 1.0614054, %v10803_v1  ;;  %8194 = vpow2.f32 %v6872_v58  ;;  %v6876_v0 = vmul.f32 1.442695, %v6864_v49  ;;  %vm6901_vm6 = vcmp.lt.f32.partialorder %v10774_v7, 0.0 }
 0xa07   : > { %v6780_v42 = vmul.f32 1.0614054, %v10806_v24  ;;  %v10810_v29 = vpop.eup %8184  ;;  %8196 = vrcp.f32 %v6761_v12  ;;  %v6865_v32 = vmul.f32 %v6857_v52, %v6745_v3  ;;  %vm6906_vm7 = vcmp.lt.f32.partialorder %v10785_v9, 0.0 }
 0xa08   : > { %v6790_v17 = vadd.f32 -1.4531521, %v6782_v23  ;;  %v6783_v56 = vmul.f32 1.0614054, %v10810_v29  ;;  %v10814_v59 = vpop.eup %8186  ;;  %8198 = vpow2.f32 %v6868_v6  ;;  %vm6907_vm8 = vcmp.lt.f32.partialorder %v10793_v28, 0.0 }
 0xa09   : > { %v6788_v20 = vadd.f32 -1.4531521, %v6780_v42  ;;  %v6781_v21 = vmul.f32 1.0614054, %v10814_v59  ;;  %8200 = vpow2.f32 %v6874_v33  ;;  %v6882_v42 = vmul.f32 1.442695, %v6867_v11 }
 0xa0a   : > { %v6798_v57 = vmul.f32 %v10803_v1, %v6790_v17  ;;  %v6791_v34 = vadd.f32 -1.4531521, %v6783_v56  ;;  %8202 = vpow2.f32 %v6870_v18  ;;  %vm6904_vm9 = vcmp.lt.f32.partialorder %v10790_v19, 0.0 }
 0xa0b   : > { %v6796_v35 = vmul.f32 %v10806_v24, %v6788_v20  ;;  %v6789_v10 = vadd.f32 -1.4531521, %v6781_v21  ;;  %8204 = vpow2.f32 %v6880_v39  ;;  %vm6905_vm10 = vcmp.lt.f32.partialorder %v10799_v61, 0.0 }
 0xa0c   : > { %v6806_v27 = vadd.f32 1.4214138, %v6798_v57  ;;  %v6799_v22 = vmul.f32 %v10810_v29, %v6791_v34  ;;  %8206 = vpow2.f32 %v6876_v0  ;;  %v6728_v28 = vmul.f32 0.5, %v10780_v62 }
 0xa0d   : > { %v6804_v60 = vadd.f32 1.4214138, %v6796_v35  ;;  %v6797_v41 = vmul.f32 %v10814_v59, %v6789_v10  ;;  %v10822_v46 = vpop.eup %8188  ;;  %v10839_v35 = vmul.f32 0.5, %v10761_v43  ;;  %8208 = vpow2.f32 %v6882_v42 }
 0xa0e   : > { %v6814_v48 = vmul.f32 %v10803_v1, %v6806_v27  ;;  %v6807_v23 = vadd.f32 1.4214138, %v6799_v22  ;;  %v10827_v30 = vpop.eup %8190  ;;  %v6786_v4 = vmul.f32 1.0614054, %v10822_v46 }
 0xa0f   : > { %v6812_v37 = vmul.f32 %v10806_v24, %v6804_v60  ;;  %v6805_v58 = vadd.f32 1.4214138, %v6797_v41  ;;  %v6784_v6 = vmul.f32 1.0614054, %v10827_v30  ;;  %v10835_v33 = vpop.eup %8192 }
 0xa10   : > { %v6822_v26 = vadd.f32 -0.28449672, %v6814_v48  ;;  %v6815_v17 = vmul.f32 %v10810_v29, %v6807_v23  ;;  %v6794_v56 = vadd.f32 -1.4531521, %v6786_v4  ;;  %v8195_v49 = vpop.eup %8194  ;;  %v6787_v43 = vmul.f32 1.0614054, %v10835_v33 }
 0xa11   : > { %v6820_v8 = vadd.f32 -0.28449672, %v6812_v37  ;;  %v6813_v57 = vmul.f32 %v10814_v59, %v6805_v58  ;;  %v6792_v18 = vadd.f32 -1.4531521, %v6784_v6  ;;  %v10845_v60 = vpop.eup %8196  ;;  %v6878_v48 = vmul.f32 1.442695, %v6865_v32 }
 0xa12   : > { %v6830_v14 = vmul.f32 %v10803_v1, %v6822_v26  ;;  %v6823_v44 = vadd.f32 -0.28449672, %v6815_v17  ;;  %v6802_v21 = vmul.f32 %v10822_v46, %v6794_v56  ;;  %v8199_v22 = vpop.eup %8198  ;;  %v6795_v41 = vadd.f32 -1.4531521, %v6787_v43 }
 0xa13   : > { %v6828_v20 = vmul.f32 %v10806_v24, %v6820_v8  ;;  %v6821_v34 = vadd.f32 -0.28449672, %v6813_v57  ;;  %v6800_v11 = vmul.f32 %v10827_v30, %v6792_v18  ;;  %v8201_v52 = vpop.eup %8200  ;;  %v6785_v8 = vmul.f32 1.0614054, %v10845_v60 }
 0xa14   : > { %v6838_v25 = vadd.f32 0.2548296, %v6830_v14  ;;  %v6831_v3 = vmul.f32 %v10810_v29, %v6823_v44  ;;  %v6810_v0 = vadd.f32 1.4214138, %v6802_v21  ;;  %v6803_v32 = vmul.f32 %v10835_v33, %v6795_v41 }
 0xa15   : > { %v6836_v12 = vadd.f32 0.2548296, %v6828_v20  ;;  %v6808_v23 = vadd.f32 1.4214138, %v6800_v11  ;;  %8210 = vpow2.f32 %v6878_v48 }
 0xa16   : > { %v6846_v27 = vmul.f32 %v10803_v1, %v6838_v25  ;;  %v6839_v37 = vadd.f32 0.2548296, %v6831_v3  ;;  %v6829_v1 = vmul.f32 %v10814_v59, %v6821_v34  ;;  %v6818_v58 = vmul.f32 %v10822_v46, %v6810_v0 }
 0xa17   : > { %v6844_v39 = vmul.f32 %v10806_v24, %v6836_v12  ;;  %v8203_v24 = vpop.eup %8202  ;;  %v6816_v6 = vmul.f32 %v10827_v30, %v6808_v23  ;;  %v6793_v25 = vadd.f32 -1.4531521, %v6785_v8  ;;  %v6811_v3 = vadd.f32 1.4214138, %v6803_v32 }
 0xa18   : > { %v6886_v10 = vmul.f32 %v8195_v49, %v6846_v27  ;;  %v6847_v14 = vmul.f32 %v10810_v29, %v6839_v37  ;;  %v6837_v17 = vadd.f32 0.2548296, %v6829_v1  ;;  %v8205_v4 = vpop.eup %8204  ;;  %v6826_v12 = vadd.f32 -0.28449672, %v6818_v58 }
 0xa19   : > { %v6884_v26 = vmul.f32 %v8199_v22, %v6844_v39  ;;  %v8207_v18 = vpop.eup %8206  ;;  %v6824_v27 = vadd.f32 -0.28449672, %v6816_v6  ;;  %v6801_v29 = vmul.f32 %v10845_v60, %v6793_v25  ;;  %v6725_v6 = vmul.f32 0.5, %v10766_v51 }
 0xa1a   : > { %v6894_v42 = vsub.f32 1.0, %v6886_v10  ;;  %v6887_v57 = vmul.f32 %v8201_v52, %v6847_v14  ;;  %v6845_v56 = vmul.f32 %v10814_v59, %v6837_v17  ;;  %v6834_v11 = vmul.f32 %v10822_v46, %v6826_v12  ;;  %v8209_v43 = vpop.eup %8208 }
 0xa1b   : > { %v6892_v20 = vsub.f32 1.0, %v6884_v26  ;;  %v6832_v59 = vmul.f32 %v10827_v30, %v6824_v27  ;;  %v6819_v10 = vmul.f32 %v10835_v33, %v6811_v3  ;;  %v6809_v23 = vadd.f32 1.4214138, %v6801_v29 }
 0xa1c   : > { %v6910_v44 = vsub.f32 0.0, %v6894_v42  ;;  %v6895_v21 = vsub.f32 1.0, %v6887_v57  ;;  %v6885_v39 = vmul.f32 %v8203_v24, %v6845_v56  ;;  %v6842_v52 = vadd.f32 0.2548296, %v6834_v11 }
 0xa1d   : > { %v6908_v49 = vsub.f32 0.0, %v6892_v20  ;;  %v6840_v50 = vadd.f32 0.2548296, %v6832_v59  ;;  %v6827_v26 = vadd.f32 -0.28449672, %v6819_v10  ;;  %v6817_v58 = vmul.f32 %v10845_v60, %v6809_v23 }
 0xa1e   : > { %v6918_v34 = vsel %vm6902_vm3, %v6910_v44, %v6894_v42  ;;  %v6911_v1 = vsub.f32 0.0, %v6895_v21  ;;  %v6893_v0 = vsub.f32 1.0, %v6885_v39  ;;  %v6850_v24 = vmul.f32 %v10822_v46, %v6842_v52 }
 0xa1f   : > { %v6916_v22 = vsel %vm6900_vm4, %v6908_v49, %v6892_v20  ;;  %v6926_v37 = vadd.f32 1.0, %v6918_v34  ;;  %v6848_v14 = vmul.f32 %v10827_v30, %v6840_v50  ;;  %v6835_v17 = vmul.f32 %v10835_v33, %v6827_v26 }
 0xa20   : > { %v6924_v41 = vadd.f32 1.0, %v6916_v22  ;;  %v6919_v8 = vsel %vm6903_vm5, %v6911_v1, %v6895_v21  ;;  %v6909_v40 = vsub.f32 0.0, %v6893_v0  ;;  %v6890_v32 = vmul.f32 %v8205_v4, %v6850_v24  ;;  %v8211_v4 = vpop.eup %8210 }
 0xa21   : > { %v6927_v42 = vadd.f32 1.0, %v6919_v8  ;;  %v6934_v20 = vmul.f32 %v6926_v37, %v10801_v13  ;;  %v6888_v44 = vmul.f32 %v8207_v18, %v6848_v14  ;;  %v6843_v46 = vadd.f32 0.2548296, %v6835_v17 }
 0xa22   : > { %v6917_v48 = vsel %vm6901_vm6, %v6909_v40, %v6893_v0  ;;  %v6898_v57 = vsub.f32 1.0, %v6890_v32  ;;  %v6825_v56 = vadd.f32 -0.28449672, %v6817_v58  ;;  %v6932_v30 = vmul.f32 %v6924_v41, %v10825_v47 }
 0xa23   : > { %v6935_v16 = vmul.f32 %v6927_v42, %v10839_v35  ;;  %v6925_v25 = vadd.f32 1.0, %v6917_v48  ;;  %v6851_v27 = vmul.f32 %v10835_v33, %v6843_v46  ;;  %v6896_v3 = vsub.f32 1.0, %v6888_v44 }
 0xa24   : > { %v6914_v13 = vsub.f32 0.0, %v6898_v57  ;;  %v6833_v51 = vmul.f32 %v10845_v60, %v6825_v56  ;;  %v6730_v22 = vmul.f32 0.5, %v10778_v38  ;;  %v6731_v59 = vmul.f32 0.5, %v10782_v2  ;;  %v7382_v2 = vld [vmem:[%s11149_s25] ss:$0 sm:$0xff] }
 0xa25   : > { %v6941_v12 = vpack.c.bf16 %v6935_v16, %v6934_v20  ;;  %v6933_v49 = vmul.f32 %v6925_v25, %v6725_v6  ;;  %v6891_v7 = vmul.f32 %v8209_v43, %v6851_v27  ;;  %v6912_v21 = vsub.f32 0.0, %v6896_v3 }
 0xa26   : > { %v6841_v35 = vadd.f32 0.2548296, %v6833_v51  ;;  %v6922_v18 = vsel %vm6906_vm7, %v6914_v13, %v6898_v57  ;;  %v6729_v38 = vmul.f32 0.5, %v10787_v55 }
 0xa27   : > { %v6940_v29 = vpack.c.bf16 %v6933_v49, %v6932_v30  ;;  %v6899_v34 = vsub.f32 1.0, %v6891_v7  ;;  %v6930_v11 = vadd.f32 1.0, %v6922_v18  ;;  %v6920_v9 = vsel %vm6904_vm9, %v6912_v21, %v6896_v3 }
 0xa28   : > { %v6849_v47 = vmul.f32 %v10845_v60, %v6841_v35  ;;  %v6928_v60 = vadd.f32 1.0, %v6920_v9 }
 0xa29   : > { %7829 = vmatprep.mubr.bf16.mxu1 %v6940_v29  ;;  %v6915_v39 = vsub.f32 0.0, %v6899_v34  ;;  %v6938_v1 = vmul.f32 %v6930_v11, %v6730_v22 }
 0xa2a   : > { %7830 = vmatmul.mubr.bf16.vlgmr.msra.gmra.mrb[84].mxu1 %v6941_v12  ;;  %v6889_v33 = vmul.f32 %v8211_v4, %v6849_v47  ;;  %v6936_v19 = vmul.f32 %v6928_v60, %v6728_v28 }
 0xa2b   : > { %v6923_v43 = vsel %vm6907_vm8, %v6915_v39, %v6899_v34 }
 0xa2c   : > { %v6931_v10 = vadd.f32 1.0, %v6923_v43  ;;  %v6897_v37 = vsub.f32 1.0, %v6889_v33 }
 0xa2e   : > { %v6939_v0 = vmul.f32 %v6931_v10, %v6731_v59  ;;  %v6913_v52 = vsub.f32 0.0, %v6897_v37 }
 0xa30   : > { %v6921_v50 = vsel %vm6905_vm10, %v6913_v52, %v6897_v37  ;;  %v6943_v26 = vpack.c.bf16 %v6939_v0, %v6938_v1 }
 0xa31   : > { %v6929_v23 = vadd.f32 1.0, %v6921_v50 }
 0xa33   : > { %v6937_v41 = vmul.f32 %v6929_v23, %v6729_v38 }
 0xa35   : > { %v6942_v8 = vpack.c.bf16 %v6937_v41, %v6936_v19 }
 0xa37   : > { %7833 = vmatprep.mubr.bf16.mxu1 %v6942_v8 }
 0xa38   : > { %7834 = vmatmul.mubr.bf16.gmra.mrb[88].mxu1 %v6943_v26 }
 0xafd   : > { %v7831_v40 = vpop.f32.mrb[84].mxu1 }
 0xafe   : > { %v7058_v24 = vadd.f32 %v7831_v40, %v7382_v2  ;;  %v7049_v61 = vpop.f32.mrb[85].mxu1 }
 0xaff   : > { %v7050_v42 = vadd.f32 %v7382_v2, %v7049_v61  ;;  %v7832_v14 = vpop.f32.mrb[86].mxu1 }
 0xb00   : > { %v7082_v62 = vadd.f32 %v7058_v24, %v10676_v54  ;;  %v7061_v17 = vadd.f32 %v7832_v14, %v7382_v2  ;;  %v7052_v55 = vpop.f32.mrb[87].mxu1 }
 0xb01   : > { %v7080_v58 = vadd.f32 %v7050_v42, %v10669_v45  ;;  %v7053_v20 = vadd.f32 %v7382_v2, %v7052_v55 }
 0xb02   : > { %7090 = vst [vmem:[%s517_s20 + $0x10] sm:$0xff] %v7082_v62  ;;  %v7083_v6 = vadd.f32 %v7061_v17, %v10680_v53 }
 0xb03   : > { %7088 = vst [vmem:[%s517_s20] sm:$0xff] %v7080_v58  ;;  %v7081_v48 = vadd.f32 %v7053_v20, %v10672_v36 }
 0xb04   : > { %7091 = vst [vmem:[%s517_s20 + $0x18] sm:$0xff] %v7083_v6 }
 0xb05   : > { %7089 = vst [vmem:[%s517_s20 + $0x8] sm:$0xff] %v7081_v48 }
 0xb0b   : > { %v7835_v32 = vpop.f32.mrb[88].mxu1 }
 0xb0c   : > { %v7074_v16 = vadd.f32 %v7835_v32, %v7382_v2  ;;  %v7065_v54 = vpop.f32.mrb[89].mxu1 }
 0xb0d   : > { %v7066_v25 = vadd.f32 %v7382_v2, %v7065_v54  ;;  %v7836_v44 = vpop.f32.mrb[90].mxu1 }
 0xb0e   : > { %v7086_v45 = vadd.f32 %v7074_v16, %v10692_v63  ;;  %v7077_v46 = vadd.f32 %v7836_v44, %v7382_v2  ;;  %v7068_v57 = vpop.f32.mrb[91].mxu1 }
 0xb0f   : > { %v7084_v36 = vadd.f32 %v7066_v25, %v10684_v5  ;;  %v7069_v53 = vadd.f32 %v7382_v2, %v7068_v57 }
 0xb10   : > { %7094 = vst [vmem:[%s517_s20 + $0x30] sm:$0xff] %v7086_v45  ;;  %v7087_v56 = vadd.f32 %v7077_v46, %v10696_v15 }
 0xb11   : > { %7092 = vst [vmem:[%s517_s20 + $0x20] sm:$0xff] %v7084_v36  ;;  %v7085_v63 = vadd.f32 %v7069_v53, %v10688_v31 }
 0xb12   : > { %7095 = vst [vmem:[%s517_s20 + $0x38] sm:$0xff] %v7087_v56 }
 0xb13   : > { %7093 = vst [vmem:[%s517_s20 + $0x28] sm:$0xff] %v7085_v63 }
 0xb14   : > { %8375 = shalt.err (!%p8372_p13)
}
 0xb15   : > { %s8376_s15 = scalar_lea.hbm %s10908_s29, 1024  ;;  %s8380_s25 = scalar_lea.hbm %s11150_s14, 2048 }
 0xb16   : > { %p8377_p0 = scmp.ne.s32.totalorder %s10908_s29, %s8376_s15  ;;  %p8381_p1 = scmp.lt.u32.totalorder %s10908_s29, %s11150_s14 }
 0xb17   : > { %p8382_p2 = scmp.lt.u32.totalorder %s8380_s25, %s8376_s15  ;;  %p8384_p8 = scmp.lt.u32.totalorder %s8376_s15, %s10908_s29 }
 0xb18   : > { %p8378_p5 = pnand %p8377_p0, %p8681_p6 }
 0xb19   : > { %p8383_p4 = por %p8382_p2, %p8381_p1 }
 0xb1a   : > { %p8379_p11 = pneg %p8378_p5 }
 0xb1b   : > { %p8385_p10 = por %p8384_p8, %p8383_p4 }
 0xb1d   : > { %p8386_p12 = pnand %p8385_p10, %p8379_p11 }
 0xb1f   : > { %8389 = shalt.err (!%p8386_p12)
}
 0xb20   : > { %s8458_s18 = smov 128   ;;  %s8459_s8 = smov 8  }
 0xb21   : > { %7879 = dma.vmem_to_hbm [thread:$0]  (%p8681_p6), %s10901_s21, 1024, %s10908_s29, %s7097_s16, %s8458_s18, %s8458_s18, %s8459_s8  }
 0xb22 PF: > { %s11151_s13 = sld [smem:[#allocation16_spill]]  ;;  %s11152_s23 = sld [smem:[#allocation17_spill]] }
 0xb23   : > { %p11154_p7 = scmp.ge.s32.totalorder %s8436_s28, 2 }
 0xb28   : > { %s7126_s30 = sand.u32 1, %s11151_s13   ;;  %p11153_p3 = scmp.ne.s32.totalorder %s11152_s23, 0 }
 0xb29   : > { %s7127_s24 = scalar_lea.sflag [#allocation4], %s7126_s30 }
 0xb2a   : > { %p7899_p9 = pnand %p11154_p7, %p11153_p3 }
 0xb2c   : > { %8419 = dma.done.wait (!%p7899_p9), %s7127_s24, 1024  }
 0xb2d   : > { %8421 = vsyncadd (!%p7899_p9), %s7127_s24, 4294966272  ;;  %p28_p13 = scmp.ge.s32.totalorder %s8671_s17, 4   ;;  %s11155_s25 = smov %s8428_s26 }
 0xb2e   : > { %s11156_s26 = smov %s8432_s27  ;;  %s11157_s27 = smov %s8687_s10 }
 0xb2f   : > { %s11158_s28 = smov %s8671_s17  ;;  %30 = sbr.rel (!%p28_p13) target bundleno = 14 (0xe), region = 133 }
 0xb36   :  { %7132 = vsyncpa [#allocation3], 1 }
 0xb37   :  { %7134 = vsyncpa [#allocation3 + $0x1], 1 }
 0xb38   :  { %7135 = vsyncpa [#allocation6], 1 }
 0xb39   :  { %7136 = vsyncpa [#allocation9], 1 }
 0xb3a   :  { %7137 = vsyncpa [#allocation4], 1 }
 0xb3b   :  { %7139 = vsyncpa [#allocation4 + $0x1], 1 }

</bundles_post_ra>
